<compile_context>
chip_gen: v5e
topology: v5e:2x2
jax: 0.10.0
libtpu: 0.0.40
codegen_flags: <defaults>
</compile_context>

<pallas_src>
import functools

import jax
import jax.numpy as jnp
from jax.experimental import pallas as pl
from jax.experimental.pallas import tpu as pltpu


def _round_up(n, m):
    return ((n + m - 1) // m) * m


def darnn_kernel(x_ref, enc_wih_ref, enc_whh_ref, enc_b_ref,
                 dec_wih_ref, dec_whh_ref, dec_b_ref,
                 fc_wc_ref, fcf_wd_ref, fcf_wc_ref, scal_ref,
                 out_ref, *, window_size, hid_dim, unroll_threshold=16):
    H = hid_dim
    W = window_size
    TB = out_ref.shape[1]

    enc_wih = enc_wih_ref[...]         # (4H, F)
    enc_whh = enc_whh_ref[...]         # (4H, H)
    enc_b = enc_b_ref[...]             # (4H, 1)
    dec_wih = dec_wih_ref[...]         # (4H, 1)
    dec_whh = dec_whh_ref[...]         # (4H, H)
    dec_b = dec_b_ref[...]             # (4H, 1)
    fc_wc = fc_wc_ref[...]             # (H, 1)  context part of fc
    fcf_wd = fcf_wd_ref[...]           # (H, 1)  d_n part of fc_final
    fcf_wc = fcf_wc_ref[...]           # (H, 1)  context part of fc_final

    fc_wy = scal_ref[0]                # fc weight on Y[:, t]
    fc_b = scal_ref[1]                 # fc bias
    fcf_b = scal_ref[2]                # fc_final bias

    def lstm_step(gates_in, h, c, whh):
        # Gates packed (i, f, o, g): sigmoid on the first 3H rows, tanh on the last H.
        gates = gates_in + jnp.dot(whh, h, preferred_element_type=jnp.float32)  # (4H, TB)
        sig = jax.nn.sigmoid(gates[:3 * H, :])
        g = jnp.tanh(gates[3 * H:, :])
        i = sig[:H, :]
        f = sig[H:2 * H, :]
        o = sig[2 * H:, :]
        c = f * c + i * g
        h = o * jnp.tanh(c)
        return h, c

    def enc_step(x_t, h, c):
        # Input projection is independent of (h, c); scheduler overlaps it with the
        # recurrent chain.  No (W, TB, 4H) slab is ever materialized in VMEM.
        gates_in = jnp.dot(enc_wih, x_t, preferred_element_type=jnp.float32) + enc_b
        return lstm_step(gates_in, h, c, enc_whh)

    zeros = jnp.zeros((H, TB), jnp.float32)
    unrolled = W <= unroll_threshold

    # ---------------- Encoder (use_att=False): plain LSTM over W steps --------------
    if unrolled:
        x = x_ref[...]                                           # (W, F, TB), tiny
        h, c, enc_sum = zeros, zeros, zeros
        for t in range(W):
            h, c = enc_step(x[t], h, c)
            enc_sum = enc_sum + h
    else:
        def enc_body(t, carry):
            h, c, s = carry
            h, c = enc_step(x_ref[t], h, c)
            return h, c, s + h
        h, c, enc_sum = jax.lax.fori_loop(0, W, enc_body,
                                          (zeros, zeros, zeros), unroll=4)

    # Decoder use_att=False: context = uniform-weight bmm == mean over time.
    context = enc_sum * (1.0 / W)                                # (H, TB)

    # Loop-invariant context contribution to y_tilde (sublane reduction, lane-dense).
    ctx_fc = jnp.sum(fc_wc * context, axis=0, keepdims=True) + fc_b   # (1, TB)

    def dec_step(y_t, d, cc):
        y_tilde = ctx_fc + y_t * fc_wy                           # (1, TB)
        gates_in = dec_wih * y_tilde + dec_b                     # (4H, TB) broadcast-FMA
        return lstm_step(gates_in, d, cc, dec_whh)

    # ---------------- Decoder: LSTM(input_size=1) over W steps ----------------------
    if unrolled:
        d, cc = zeros, zeros
        for t in range(W):
            d, cc = dec_step(x[t, 1:2, :], d, cc)                # prev_load = seq[:, t, 1]
    else:
        def dec_body(t, carry):
            d, cc = carry
            x_t = x_ref[t]                                       # (F, TB)
            return dec_step(x_t[1:2, :], d, cc)
        d, cc = jax.lax.fori_loop(0, W, dec_body, (zeros, zeros), unroll=4)

    # y_pred = fc_final(cat(d_n[0], context)) as sublane reductions -> lane-dense (1, TB)
    y_pred = (jnp.sum(fcf_wd * d, axis=0, keepdims=True)
              + jnp.sum(fcf_wc * context, axis=0, keepdims=True)
              + fcf_b)
    out_ref[...] = y_pred


def rnnda_att_forward(seq, params, *, hid_dim, window_size, batch_tile=512):
    B, W, F = seq.shape
    assert W == window_size
    H = hid_dim
    LANE = 128

    # Batch lives on the lane axis -> TB must be a multiple of 128.
    TB = _round_up(min(batch_tile, max(B, 1)), LANE)
    Bp = _round_up(B, TB)
    # v7x has 2 TensorCores: prefer >= 2 grid steps when the batch allows it so the
    # "parallel" batch axis can be sharded across cores (no-op on v5e/v6e).
    if Bp // TB == 1 and Bp >= 2 * LANE:
        TB = _round_up(Bp // 2, LANE)
        Bp = _round_up(B, TB)
    grid = (Bp // TB,)

    if Bp != B:
        seq = jnp.pad(seq, ((0, Bp - B), (0, 0), (0, 0)))
    # Wrapper-side layout plumbing: (B, W, F) -> (W, F, Bp) so batch is lane-dense and
    # each per-step kernel slice is a cheap leading-dim index.
    seq_wfb = jnp.transpose(seq, (1, 2, 0))                      # (W, F, Bp)

    kernel = functools.partial(darnn_kernel, window_size=W, hid_dim=H)

    def rep(shape):
        return pl.BlockSpec(shape, lambda i: (0, 0))

    in_specs = [
        pl.BlockSpec((W, F, TB), lambda i: (0, 0, i)),           # seq tile
        rep((4 * H, F)),                                         # enc_wih
        rep((4 * H, H)),                                         # enc_whh
        rep((4 * H, 1)),                                         # enc_b
        rep((4 * H, 1)),                                         # dec_wih
        rep((4 * H, H)),                                         # dec_whh
        rep((4 * H, 1)),                                         # dec_b
        rep((H, 1)),                                             # fc_wc
        rep((H, 1)),                                             # fcf_wd
        rep((H, 1)),                                             # fcf_wc
        pl.BlockSpec(memory_space=pltpu.MemorySpace.SMEM),       # scalars
    ]
    out_specs = pl.BlockSpec((1, TB), lambda i: (0, i))          # lane-dense output

    # Per-tile working set is tens of KiB (weights + (W,F,TB) block + states), so the
    # default scoped-VMEM limit is ample on v5e/v6e/v7x alike; no vmem_limit override.
    out = pl.pallas_call(
        kernel,
        out_shape=jax.ShapeDtypeStruct((1, Bp), jnp.float32),
        grid=grid,
        in_specs=in_specs,
        out_specs=out_specs,
        compiler_params=pltpu.CompilerParams(
            dimension_semantics=("parallel",),
        ),
    )(seq_wfb, *params)
    return out[0, :B][:, None]                                   # (B, 1)


# ------------------------- parameter construction ---------------------------
def init_params(key, feat_dim, hid_dim):
    """Deterministic synthetic params mirroring the PyTorch module's shapes."""
    H = hid_dim
    k = 1.0 / jnp.sqrt(jnp.float32(H))
    keys = jax.random.split(key, 12)
    u = lambda kk, shp: jax.random.uniform(kk, shp, jnp.float32, -k, k)

    # encoder LSTM (input_size=feat_dim, hidden=H); PyTorch gate packing (i, f, g, o)
    enc_w_ih = u(keys[0], (4 * H, feat_dim))
    enc_w_hh = u(keys[1], (4 * H, H))
    enc_b_ih = u(keys[2], (4 * H,))
    enc_b_hh = u(keys[3], (4 * H,))
    # decoder LSTM (input_size=1, hidden=H)
    dec_w_ih = u(keys[4], (4 * H, 1))
    dec_w_hh = u(keys[5], (4 * H, H))
    dec_b_ih = u(keys[6], (4 * H,))
    dec_b_hh = u(keys[7], (4 * H,))
    # decoder fc: Linear(H + 1, 1)
    fc_w = u(keys[8], (1, H + 1))
    fc_b = u(keys[9], (1,))
    # decoder fc_final: Linear(2H, 1)
    fcf_w = u(keys[10], (1, 2 * H))
    fcf_b = u(keys[11], (1,))

    def regate(w):
        # Re-pack gate rows (i, f, g, o) -> (i, f, o, g) so the kernel can apply
        # sigmoid to the first 3H rows and tanh to the last H rows only.
        return jnp.concatenate([w[:H], w[H:2 * H], w[3 * H:], w[2 * H:3 * H]], axis=0)

    kernel_params = (
        regate(enc_w_ih),                              # (4H, F)
        regate(enc_w_hh),                              # (4H, H)
        regate((enc_b_ih + enc_b_hh)[:, None]),        # (4H, 1)
        regate(dec_w_ih),                              # (4H, 1)
        regate(dec_w_hh),                              # (4H, H)
        regate((dec_b_ih + dec_b_hh)[:, None]),        # (4H, 1)
        fc_w[:, :H].T,                                 # (H, 1)  context part of fc
        fcf_w[:, :H].T,                                # (H, 1)  d_n part of fc_final
        fcf_w[:, H:].T,                                # (H, 1)  context part of fc_final
        jnp.array([fc_w[0, H], fc_b[0], fcf_b[0]], jnp.float32),  # scalars (SMEM)
    )
    return kernel_params


# ------------------------- pure-JAX reference --------------------------------
def reference_forward(seq, params, *, hid_dim, window_size):
    (enc_wih, enc_whh, enc_b, dec_wih, dec_whh, dec_b,
     fc_wc, fcf_wd, fcf_wc, scal) = params
    B = seq.shape[0]
    H = hid_dim

    def cell(x_t, h, c, wih, whh, b):
        # wih: (4H, K), whh: (4H, H), b: (4H, 1); gate packing (i, f, o, g)
        g = x_t @ wih.T + h @ whh.T + b[:, 0]
        i = jax.nn.sigmoid(g[:, :H])
        f = jax.nn.sigmoid(g[:, H:2 * H])
        o = jax.nn.sigmoid(g[:, 2 * H:3 * H])
        gg = jnp.tanh(g[:, 3 * H:])
        c = f * c + i * gg
        return o * jnp.tanh(c), c

    h = jnp.zeros((B, H)); c = jnp.zeros((B, H)); outs = []
    for t in range(window_size):
        h, c = cell(seq[:, t, :], h, c, enc_wih, enc_whh, enc_b)
        outs.append(h)
    context = jnp.stack(outs, axis=1).mean(axis=1)
    ctx_fc = context @ fc_wc                            # (B, 1)
    d = jnp.zeros((B, H)); cc = jnp.zeros((B, H))
    for t in range(window_size):
        y_tilde = ctx_fc + seq[:, t, 1:2] * scal[0] + scal[1]
        d, cc = cell(y_tilde, d, cc, dec_wih, dec_whh, dec_b)
    return d @ fcf_wd + context @ fcf_wc + scal[2]      # (B, 1)


if __name__ == "__main__":
    B, window_size, input_dim, hidden_dim = 2, 8, 4, 32

    key = jax.random.PRNGKey(0)
    k_seq, k_par = jax.random.split(key)
    seq = jax.random.normal(k_seq, (B, window_size, input_dim), jnp.float32)
    params = init_params(k_par, input_dim, hidden_dim)

    out = rnnda_att_forward(seq, params, hid_dim=hidden_dim,
                            window_size=window_size)
    out = jax.block_until_ready(out)

    ref = reference_forward(seq, params, hid_dim=hidden_dim,
                            window_size=window_size)
    assert out.shape == (B, 1)
    assert jnp.allclose(out, ref, rtol=2e-3, atol=2e-3), (out, ref)
    print("KERNEL_OK")
</pallas_src>

<mosaic_0001>
module attributes {stable_mosaic.version = 11 : i64} {
  func.func @darnn_kernel(%arg0: i32, %arg1: memref<8x4x128xf32, #tpu.memory_space<vmem>>, %arg2: memref<128x4xf32, #tpu.memory_space<vmem>>, %arg3: memref<128x32xf32, #tpu.memory_space<vmem>>, %arg4: memref<128x1xf32, #tpu.memory_space<vmem>>, %arg5: memref<128x1xf32, #tpu.memory_space<vmem>>, %arg6: memref<128x32xf32, #tpu.memory_space<vmem>>, %arg7: memref<128x1xf32, #tpu.memory_space<vmem>>, %arg8: memref<32x1xf32, #tpu.memory_space<vmem>>, %arg9: memref<32x1xf32, #tpu.memory_space<vmem>>, %arg10: memref<32x1xf32, #tpu.memory_space<vmem>>, %arg11: memref<3xf32, #tpu.memory_space<smem>>, %arg12: memref<1x128xf32, #tpu.memory_space<vmem>>) attributes {dimension_semantics = [#tpu.dimension_semantics<parallel>], iteration_bounds = array<i64: 1>, scalar_prefetch = 0 : i64, scratch_operands = 0 : i64, tpu.core_type = #tpu.core_type<tc>, window_params = [{transform_indices = @transform_0, window_bounds = array<i64: 8, 4, 128>}, {pipeline_mode = #tpu.pipeline_mode<synchronous>, transform_indices = @transform_1, window_bounds = array<i64: 128, 4>}, {pipeline_mode = #tpu.pipeline_mode<synchronous>, transform_indices = @transform_2, window_bounds = array<i64: 128, 32>}, {pipeline_mode = #tpu.pipeline_mode<synchronous>, transform_indices = @transform_3, window_bounds = array<i64: 128, 1>}, {pipeline_mode = #tpu.pipeline_mode<synchronous>, transform_indices = @transform_4, window_bounds = array<i64: 128, 1>}, {pipeline_mode = #tpu.pipeline_mode<synchronous>, transform_indices = @transform_5, window_bounds = array<i64: 128, 32>}, {pipeline_mode = #tpu.pipeline_mode<synchronous>, transform_indices = @transform_6, window_bounds = array<i64: 128, 1>}, {pipeline_mode = #tpu.pipeline_mode<synchronous>, transform_indices = @transform_7, window_bounds = array<i64: 32, 1>}, {pipeline_mode = #tpu.pipeline_mode<synchronous>, transform_indices = @transform_8, window_bounds = array<i64: 32, 1>}, {pipeline_mode = #tpu.pipeline_mode<synchronous>, transform_indices = @transform_9, window_bounds = array<i64: 32, 1>}, {transform_indices = @transform_10, window_bounds = array<i64: 3>}, {transform_indices = @transform_11, window_bounds = array<i64: 1, 128>}]} {
    %c0 = arith.constant 0 : index
    %c0_0 = arith.constant 0 : index
    %0 = vector.load %arg2[%c0, %c0_0] : memref<128x4xf32, #tpu.memory_space<vmem>>, vector<128x4xf32>
    %c0_1 = arith.constant 0 : index
    %c0_2 = arith.constant 0 : index
    %1 = vector.load %arg3[%c0_1, %c0_2] : memref<128x32xf32, #tpu.memory_space<vmem>>, vector<128x32xf32>
    %c0_3 = arith.constant 0 : index
    %c0_4 = arith.constant 0 : index
    %2 = vector.load %arg4[%c0_3, %c0_4] : memref<128x1xf32, #tpu.memory_space<vmem>>, vector<128x1xf32>
    %c0_5 = arith.constant 0 : index
    %c0_6 = arith.constant 0 : index
    %3 = vector.load %arg5[%c0_5, %c0_6] : memref<128x1xf32, #tpu.memory_space<vmem>>, vector<128x1xf32>
    %c0_7 = arith.constant 0 : index
    %c0_8 = arith.constant 0 : index
    %4 = vector.load %arg6[%c0_7, %c0_8] : memref<128x32xf32, #tpu.memory_space<vmem>>, vector<128x32xf32>
    %c0_9 = arith.constant 0 : index
    %c0_10 = arith.constant 0 : index
    %5 = vector.load %arg7[%c0_9, %c0_10] : memref<128x1xf32, #tpu.memory_space<vmem>>, vector<128x1xf32>
    %c0_11 = arith.constant 0 : index
    %c0_12 = arith.constant 0 : index
    %6 = vector.load %arg8[%c0_11, %c0_12] : memref<32x1xf32, #tpu.memory_space<vmem>>, vector<32x1xf32>
    %c0_13 = arith.constant 0 : index
    %c0_14 = arith.constant 0 : index
    %7 = vector.load %arg9[%c0_13, %c0_14] : memref<32x1xf32, #tpu.memory_space<vmem>>, vector<32x1xf32>
    %c0_15 = arith.constant 0 : index
    %c0_16 = arith.constant 0 : index
    %8 = vector.load %arg10[%c0_15, %c0_16] : memref<32x1xf32, #tpu.memory_space<vmem>>, vector<32x1xf32>
    %c0_17 = arith.constant 0 : index
    %9 = memref.load %arg11[%c0_17] : memref<3xf32, #tpu.memory_space<smem>>
    %c1 = arith.constant 1 : index
    %10 = memref.load %arg11[%c1] : memref<3xf32, #tpu.memory_space<smem>>
    %c2 = arith.constant 2 : index
    %11 = memref.load %arg11[%c2] : memref<3xf32, #tpu.memory_space<smem>>
    %cst = arith.constant 0.000000e+00 : f32
    %12 = vector.broadcast %cst : f32 to vector<32x128xf32>
    %c0_18 = arith.constant 0 : index
    %c0_19 = arith.constant 0 : index
    %c0_20 = arith.constant 0 : index
    %13 = vector.load %arg1[%c0_18, %c0_19, %c0_20] : memref<8x4x128xf32, #tpu.memory_space<vmem>>, vector<8x4x128xf32>
    %14 = vector.extract_strided_slice %13 {offsets = [0, 0, 0], sizes = [1, 4, 128], strides = [1, 1, 1]} : vector<8x4x128xf32> to vector<1x4x128xf32>
    %15 = vector.shape_cast %14 : vector<1x4x128xf32> to vector<4x128xf32>
    %cst_21 = arith.constant dense<0.000000e+00> : vector<128x128xf32>
    %16 = tpu.matmul %0, %15, %cst_21 {dimension_numbers = #tpu.dot_dimension_numbers<[1], [0], [0], [1], [0, 0, 1, 1], [], []>} : vector<128x4xf32>, vector<4x128xf32>, vector<128x128xf32> -> vector<128x128xf32>
    %17 = vector.broadcast %2 : vector<128x1xf32> to vector<128x128xf32>
    %18 = arith.addf %16, %17 : vector<128x128xf32>
    %cst_22 = arith.constant dense<0.000000e+00> : vector<128x128xf32>
    %19 = tpu.matmul %1, %12, %cst_22 {dimension_numbers = #tpu.dot_dimension_numbers<[1], [0], [0], [1], [0, 0, 1, 1], [], []>} : vector<128x32xf32>, vector<32x128xf32>, vector<128x128xf32> -> vector<128x128xf32>
    %20 = arith.addf %18, %19 : vector<128x128xf32>
    %21 = vector.extract_strided_slice %20 {offsets = [0, 0], sizes = [96, 128], strides = [1, 1]} : vector<128x128xf32> to vector<96x128xf32>
    %22 = arith.negf %21 : vector<96x128xf32>
    %23 = math.exp %22 : vector<96x128xf32>
    %cst_23 = arith.constant 1.000000e+00 : f32
    %24 = vector.broadcast %cst_23 : f32 to vector<96x128xf32>
    %25 = arith.addf %24, %23 : vector<96x128xf32>
    %26 = arith.divf %24, %25 : vector<96x128xf32>
    %27 = vector.extract_strided_slice %20 {offsets = [96, 0], sizes = [32, 128], strides = [1, 1]} : vector<128x128xf32> to vector<32x128xf32>
    %28 = math.tanh %27 : vector<32x128xf32>
    %29 = vector.extract_strided_slice %26 {offsets = [0, 0], sizes = [32, 128], strides = [1, 1]} : vector<96x128xf32> to vector<32x128xf32>
    %30 = vector.extract_strided_slice %26 {offsets = [32, 0], sizes = [32, 128], strides = [1, 1]} : vector<96x128xf32> to vector<32x128xf32>
    %31 = vector.extract_strided_slice %26 {offsets = [64, 0], sizes = [32, 128], strides = [1, 1]} : vector<96x128xf32> to vector<32x128xf32>
    %32 = arith.mulf %30, %12 : vector<32x128xf32>
    %33 = arith.mulf %29, %28 : vector<32x128xf32>
    %34 = arith.addf %32, %33 : vector<32x128xf32>
    %35 = math.tanh %34 : vector<32x128xf32>
    %36 = arith.mulf %31, %35 : vector<32x128xf32>
    %37 = arith.addf %12, %36 : vector<32x128xf32>
    %38 = vector.extract_strided_slice %13 {offsets = [1, 0, 0], sizes = [1, 4, 128], strides = [1, 1, 1]} : vector<8x4x128xf32> to vector<1x4x128xf32>
    %39 = vector.shape_cast %38 : vector<1x4x128xf32> to vector<4x128xf32>
    %cst_24 = arith.constant dense<0.000000e+00> : vector<128x128xf32>
    %40 = tpu.matmul %0, %39, %cst_24 {dimension_numbers = #tpu.dot_dimension_numbers<[1], [0], [0], [1], [0, 0, 1, 1], [], []>} : vector<128x4xf32>, vector<4x128xf32>, vector<128x128xf32> -> vector<128x128xf32>
    %41 = vector.broadcast %2 : vector<128x1xf32> to vector<128x128xf32>
    %42 = arith.addf %40, %41 : vector<128x128xf32>
    %cst_25 = arith.constant dense<0.000000e+00> : vector<128x128xf32>
    %43 = tpu.matmul %1, %36, %cst_25 {dimension_numbers = #tpu.dot_dimension_numbers<[1], [0], [0], [1], [0, 0, 1, 1], [], []>} : vector<128x32xf32>, vector<32x128xf32>, vector<128x128xf32> -> vector<128x128xf32>
    %44 = arith.addf %42, %43 : vector<128x128xf32>
    %45 = vector.extract_strided_slice %44 {offsets = [0, 0], sizes = [96, 128], strides = [1, 1]} : vector<128x128xf32> to vector<96x128xf32>
    %46 = arith.negf %45 : vector<96x128xf32>
    %47 = math.exp %46 : vector<96x128xf32>
    %cst_26 = arith.constant 1.000000e+00 : f32
    %48 = vector.broadcast %cst_26 : f32 to vector<96x128xf32>
    %49 = arith.addf %48, %47 : vector<96x128xf32>
    %50 = arith.divf %48, %49 : vector<96x128xf32>
    %51 = vector.extract_strided_slice %44 {offsets = [96, 0], sizes = [32, 128], strides = [1, 1]} : vector<128x128xf32> to vector<32x128xf32>
    %52 = math.tanh %51 : vector<32x128xf32>
    %53 = vector.extract_strided_slice %50 {offsets = [0, 0], sizes = [32, 128], strides = [1, 1]} : vector<96x128xf32> to vector<32x128xf32>
    %54 = vector.extract_strided_slice %50 {offsets = [32, 0], sizes = [32, 128], strides = [1, 1]} : vector<96x128xf32> to vector<32x128xf32>
    %55 = vector.extract_strided_slice %50 {offsets = [64, 0], sizes = [32, 128], strides = [1, 1]} : vector<96x128xf32> to vector<32x128xf32>
    %56 = arith.mulf %54, %34 : vector<32x128xf32>
    %57 = arith.mulf %53, %52 : vector<32x128xf32>
    %58 = arith.addf %56, %57 : vector<32x128xf32>
    %59 = math.tanh %58 : vector<32x128xf32>
    %60 = arith.mulf %55, %59 : vector<32x128xf32>
    %61 = arith.addf %37, %60 : vector<32x128xf32>
    %62 = vector.extract_strided_slice %13 {offsets = [2, 0, 0], sizes = [1, 4, 128], strides = [1, 1, 1]} : vector<8x4x128xf32> to vector<1x4x128xf32>
    %63 = vector.shape_cast %62 : vector<1x4x128xf32> to vector<4x128xf32>
    %cst_27 = arith.constant dense<0.000000e+00> : vector<128x128xf32>
    %64 = tpu.matmul %0, %63, %cst_27 {dimension_numbers = #tpu.dot_dimension_numbers<[1], [0], [0], [1], [0, 0, 1, 1], [], []>} : vector<128x4xf32>, vector<4x128xf32>, vector<128x128xf32> -> vector<128x128xf32>
    %65 = vector.broadcast %2 : vector<128x1xf32> to vector<128x128xf32>
    %66 = arith.addf %64, %65 : vector<128x128xf32>
    %cst_28 = arith.constant dense<0.000000e+00> : vector<128x128xf32>
    %67 = tpu.matmul %1, %60, %cst_28 {dimension_numbers = #tpu.dot_dimension_numbers<[1], [0], [0], [1], [0, 0, 1, 1], [], []>} : vector<128x32xf32>, vector<32x128xf32>, vector<128x128xf32> -> vector<128x128xf32>
    %68 = arith.addf %66, %67 : vector<128x128xf32>
    %69 = vector.extract_strided_slice %68 {offsets = [0, 0], sizes = [96, 128], strides = [1, 1]} : vector<128x128xf32> to vector<96x128xf32>
    %70 = arith.negf %69 : vector<96x128xf32>
    %71 = math.exp %70 : vector<96x128xf32>
    %cst_29 = arith.constant 1.000000e+00 : f32
    %72 = vector.broadcast %cst_29 : f32 to vector<96x128xf32>
    %73 = arith.addf %72, %71 : vector<96x128xf32>
    %74 = arith.divf %72, %73 : vector<96x128xf32>
    %75 = vector.extract_strided_slice %68 {offsets = [96, 0], sizes = [32, 128], strides = [1, 1]} : vector<128x128xf32> to vector<32x128xf32>
    %76 = math.tanh %75 : vector<32x128xf32>
    %77 = vector.extract_strided_slice %74 {offsets = [0, 0], sizes = [32, 128], strides = [1, 1]} : vector<96x128xf32> to vector<32x128xf32>
    %78 = vector.extract_strided_slice %74 {offsets = [32, 0], sizes = [32, 128], strides = [1, 1]} : vector<96x128xf32> to vector<32x128xf32>
    %79 = vector.extract_strided_slice %74 {offsets = [64, 0], sizes = [32, 128], strides = [1, 1]} : vector<96x128xf32> to vector<32x128xf32>
    %80 = arith.mulf %78, %58 : vector<32x128xf32>
    %81 = arith.mulf %77, %76 : vector<32x128xf32>
    %82 = arith.addf %80, %81 : vector<32x128xf32>
    %83 = math.tanh %82 : vector<32x128xf32>
    %84 = arith.mulf %79, %83 : vector<32x128xf32>
    %85 = arith.addf %61, %84 : vector<32x128xf32>
    %86 = vector.extract_strided_slice %13 {offsets = [3, 0, 0], sizes = [1, 4, 128], strides = [1, 1, 1]} : vector<8x4x128xf32> to vector<1x4x128xf32>
    %87 = vector.shape_cast %86 : vector<1x4x128xf32> to vector<4x128xf32>
    %cst_30 = arith.constant dense<0.000000e+00> : vector<128x128xf32>
    %88 = tpu.matmul %0, %87, %cst_30 {dimension_numbers = #tpu.dot_dimension_numbers<[1], [0], [0], [1], [0, 0, 1, 1], [], []>} : vector<128x4xf32>, vector<4x128xf32>, vector<128x128xf32> -> vector<128x128xf32>
    %89 = vector.broadcast %2 : vector<128x1xf32> to vector<128x128xf32>
    %90 = arith.addf %88, %89 : vector<128x128xf32>
    %cst_31 = arith.constant dense<0.000000e+00> : vector<128x128xf32>
    %91 = tpu.matmul %1, %84, %cst_31 {dimension_numbers = #tpu.dot_dimension_numbers<[1], [0], [0], [1], [0, 0, 1, 1], [], []>} : vector<128x32xf32>, vector<32x128xf32>, vector<128x128xf32> -> vector<128x128xf32>
    %92 = arith.addf %90, %91 : vector<128x128xf32>
    %93 = vector.extract_strided_slice %92 {offsets = [0, 0], sizes = [96, 128], strides = [1, 1]} : vector<128x128xf32> to vector<96x128xf32>
    %94 = arith.negf %93 : vector<96x128xf32>
    %95 = math.exp %94 : vector<96x128xf32>
    %cst_32 = arith.constant 1.000000e+00 : f32
    %96 = vector.broadcast %cst_32 : f32 to vector<96x128xf32>
    %97 = arith.addf %96, %95 : vector<96x128xf32>
    %98 = arith.divf %96, %97 : vector<96x128xf32>
    %99 = vector.extract_strided_slice %92 {offsets = [96, 0], sizes = [32, 128], strides = [1, 1]} : vector<128x128xf32> to vector<32x128xf32>
    %100 = math.tanh %99 : vector<32x128xf32>
    %101 = vector.extract_strided_slice %98 {offsets = [0, 0], sizes = [32, 128], strides = [1, 1]} : vector<96x128xf32> to vector<32x128xf32>
    %102 = vector.extract_strided_slice %98 {offsets = [32, 0], sizes = [32, 128], strides = [1, 1]} : vector<96x128xf32> to vector<32x128xf32>
    %103 = vector.extract_strided_slice %98 {offsets = [64, 0], sizes = [32, 128], strides = [1, 1]} : vector<96x128xf32> to vector<32x128xf32>
    %104 = arith.mulf %102, %82 : vector<32x128xf32>
    %105 = arith.mulf %101, %100 : vector<32x128xf32>
    %106 = arith.addf %104, %105 : vector<32x128xf32>
    %107 = math.tanh %106 : vector<32x128xf32>
    %108 = arith.mulf %103, %107 : vector<32x128xf32>
    %109 = arith.addf %85, %108 : vector<32x128xf32>
    %110 = vector.extract_strided_slice %13 {offsets = [4, 0, 0], sizes = [1, 4, 128], strides = [1, 1, 1]} : vector<8x4x128xf32> to vector<1x4x128xf32>
    %111 = vector.shape_cast %110 : vector<1x4x128xf32> to vector<4x128xf32>
    %cst_33 = arith.constant dense<0.000000e+00> : vector<128x128xf32>
    %112 = tpu.matmul %0, %111, %cst_33 {dimension_numbers = #tpu.dot_dimension_numbers<[1], [0], [0], [1], [0, 0, 1, 1], [], []>} : vector<128x4xf32>, vector<4x128xf32>, vector<128x128xf32> -> vector<128x128xf32>
    %113 = vector.broadcast %2 : vector<128x1xf32> to vector<128x128xf32>
    %114 = arith.addf %112, %113 : vector<128x128xf32>
    %cst_34 = arith.constant dense<0.000000e+00> : vector<128x128xf32>
    %115 = tpu.matmul %1, %108, %cst_34 {dimension_numbers = #tpu.dot_dimension_numbers<[1], [0], [0], [1], [0, 0, 1, 1], [], []>} : vector<128x32xf32>, vector<32x128xf32>, vector<128x128xf32> -> vector<128x128xf32>
    %116 = arith.addf %114, %115 : vector<128x128xf32>
    %117 = vector.extract_strided_slice %116 {offsets = [0, 0], sizes = [96, 128], strides = [1, 1]} : vector<128x128xf32> to vector<96x128xf32>
    %118 = arith.negf %117 : vector<96x128xf32>
    %119 = math.exp %118 : vector<96x128xf32>
    %cst_35 = arith.constant 1.000000e+00 : f32
    %120 = vector.broadcast %cst_35 : f32 to vector<96x128xf32>
    %121 = arith.addf %120, %119 : vector<96x128xf32>
    %122 = arith.divf %120, %121 : vector<96x128xf32>
    %123 = vector.extract_strided_slice %116 {offsets = [96, 0], sizes = [32, 128], strides = [1, 1]} : vector<128x128xf32> to vector<32x128xf32>
    %124 = math.tanh %123 : vector<32x128xf32>
    %125 = vector.extract_strided_slice %122 {offsets = [0, 0], sizes = [32, 128], strides = [1, 1]} : vector<96x128xf32> to vector<32x128xf32>
    %126 = vector.extract_strided_slice %122 {offsets = [32, 0], sizes = [32, 128], strides = [1, 1]} : vector<96x128xf32> to vector<32x128xf32>
    %127 = vector.extract_strided_slice %122 {offsets = [64, 0], sizes = [32, 128], strides = [1, 1]} : vector<96x128xf32> to vector<32x128xf32>
    %128 = arith.mulf %126, %106 : vector<32x128xf32>
    %129 = arith.mulf %125, %124 : vector<32x128xf32>
    %130 = arith.addf %128, %129 : vector<32x128xf32>
    %131 = math.tanh %130 : vector<32x128xf32>
    %132 = arith.mulf %127, %131 : vector<32x128xf32>
    %133 = arith.addf %109, %132 : vector<32x128xf32>
    %134 = vector.extract_strided_slice %13 {offsets = [5, 0, 0], sizes = [1, 4, 128], strides = [1, 1, 1]} : vector<8x4x128xf32> to vector<1x4x128xf32>
    %135 = vector.shape_cast %134 : vector<1x4x128xf32> to vector<4x128xf32>
    %cst_36 = arith.constant dense<0.000000e+00> : vector<128x128xf32>
    %136 = tpu.matmul %0, %135, %cst_36 {dimension_numbers = #tpu.dot_dimension_numbers<[1], [0], [0], [1], [0, 0, 1, 1], [], []>} : vector<128x4xf32>, vector<4x128xf32>, vector<128x128xf32> -> vector<128x128xf32>
    %137 = vector.broadcast %2 : vector<128x1xf32> to vector<128x128xf32>
    %138 = arith.addf %136, %137 : vector<128x128xf32>
    %cst_37 = arith.constant dense<0.000000e+00> : vector<128x128xf32>
    %139 = tpu.matmul %1, %132, %cst_37 {dimension_numbers = #tpu.dot_dimension_numbers<[1], [0], [0], [1], [0, 0, 1, 1], [], []>} : vector<128x32xf32>, vector<32x128xf32>, vector<128x128xf32> -> vector<128x128xf32>
    %140 = arith.addf %138, %139 : vector<128x128xf32>
    %141 = vector.extract_strided_slice %140 {offsets = [0, 0], sizes = [96, 128], strides = [1, 1]} : vector<128x128xf32> to vector<96x128xf32>
    %142 = arith.negf %141 : vector<96x128xf32>
    %143 = math.exp %142 : vector<96x128xf32>
    %cst_38 = arith.constant 1.000000e+00 : f32
    %144 = vector.broadcast %cst_38 : f32 to vector<96x128xf32>
    %145 = arith.addf %144, %143 : vector<96x128xf32>
    %146 = arith.divf %144, %145 : vector<96x128xf32>
    %147 = vector.extract_strided_slice %140 {offsets = [96, 0], sizes = [32, 128], strides = [1, 1]} : vector<128x128xf32> to vector<32x128xf32>
    %148 = math.tanh %147 : vector<32x128xf32>
    %149 = vector.extract_strided_slice %146 {offsets = [0, 0], sizes = [32, 128], strides = [1, 1]} : vector<96x128xf32> to vector<32x128xf32>
    %150 = vector.extract_strided_slice %146 {offsets = [32, 0], sizes = [32, 128], strides = [1, 1]} : vector<96x128xf32> to vector<32x128xf32>
    %151 = vector.extract_strided_slice %146 {offsets = [64, 0], sizes = [32, 128], strides = [1, 1]} : vector<96x128xf32> to vector<32x128xf32>
    %152 = arith.mulf %150, %130 : vector<32x128xf32>
    %153 = arith.mulf %149, %148 : vector<32x128xf32>
    %154 = arith.addf %152, %153 : vector<32x128xf32>
    %155 = math.tanh %154 : vector<32x128xf32>
    %156 = arith.mulf %151, %155 : vector<32x128xf32>
    %157 = arith.addf %133, %156 : vector<32x128xf32>
    %158 = vector.extract_strided_slice %13 {offsets = [6, 0, 0], sizes = [1, 4, 128], strides = [1, 1, 1]} : vector<8x4x128xf32> to vector<1x4x128xf32>
    %159 = vector.shape_cast %158 : vector<1x4x128xf32> to vector<4x128xf32>
    %cst_39 = arith.constant dense<0.000000e+00> : vector<128x128xf32>
    %160 = tpu.matmul %0, %159, %cst_39 {dimension_numbers = #tpu.dot_dimension_numbers<[1], [0], [0], [1], [0, 0, 1, 1], [], []>} : vector<128x4xf32>, vector<4x128xf32>, vector<128x128xf32> -> vector<128x128xf32>
    %161 = vector.broadcast %2 : vector<128x1xf32> to vector<128x128xf32>
    %162 = arith.addf %160, %161 : vector<128x128xf32>
    %cst_40 = arith.constant dense<0.000000e+00> : vector<128x128xf32>
    %163 = tpu.matmul %1, %156, %cst_40 {dimension_numbers = #tpu.dot_dimension_numbers<[1], [0], [0], [1], [0, 0, 1, 1], [], []>} : vector<128x32xf32>, vector<32x128xf32>, vector<128x128xf32> -> vector<128x128xf32>
    %164 = arith.addf %162, %163 : vector<128x128xf32>
    %165 = vector.extract_strided_slice %164 {offsets = [0, 0], sizes = [96, 128], strides = [1, 1]} : vector<128x128xf32> to vector<96x128xf32>
    %166 = arith.negf %165 : vector<96x128xf32>
    %167 = math.exp %166 : vector<96x128xf32>
    %cst_41 = arith.constant 1.000000e+00 : f32
    %168 = vector.broadcast %cst_41 : f32 to vector<96x128xf32>
    %169 = arith.addf %168, %167 : vector<96x128xf32>
    %170 = arith.divf %168, %169 : vector<96x128xf32>
    %171 = vector.extract_strided_slice %164 {offsets = [96, 0], sizes = [32, 128], strides = [1, 1]} : vector<128x128xf32> to vector<32x128xf32>
    %172 = math.tanh %171 : vector<32x128xf32>
    %173 = vector.extract_strided_slice %170 {offsets = [0, 0], sizes = [32, 128], strides = [1, 1]} : vector<96x128xf32> to vector<32x128xf32>
    %174 = vector.extract_strided_slice %170 {offsets = [32, 0], sizes = [32, 128], strides = [1, 1]} : vector<96x128xf32> to vector<32x128xf32>
    %175 = vector.extract_strided_slice %170 {offsets = [64, 0], sizes = [32, 128], strides = [1, 1]} : vector<96x128xf32> to vector<32x128xf32>
    %176 = arith.mulf %174, %154 : vector<32x128xf32>
    %177 = arith.mulf %173, %172 : vector<32x128xf32>
    %178 = arith.addf %176, %177 : vector<32x128xf32>
    %179 = math.tanh %178 : vector<32x128xf32>
    %180 = arith.mulf %175, %179 : vector<32x128xf32>
    %181 = arith.addf %157, %180 : vector<32x128xf32>
    %182 = vector.extract_strided_slice %13 {offsets = [7, 0, 0], sizes = [1, 4, 128], strides = [1, 1, 1]} : vector<8x4x128xf32> to vector<1x4x128xf32>
    %183 = vector.shape_cast %182 : vector<1x4x128xf32> to vector<4x128xf32>
    %cst_42 = arith.constant dense<0.000000e+00> : vector<128x128xf32>
    %184 = tpu.matmul %0, %183, %cst_42 {dimension_numbers = #tpu.dot_dimension_numbers<[1], [0], [0], [1], [0, 0, 1, 1], [], []>} : vector<128x4xf32>, vector<4x128xf32>, vector<128x128xf32> -> vector<128x128xf32>
    %185 = vector.broadcast %2 : vector<128x1xf32> to vector<128x128xf32>
    %186 = arith.addf %184, %185 : vector<128x128xf32>
    %cst_43 = arith.constant dense<0.000000e+00> : vector<128x128xf32>
    %187 = tpu.matmul %1, %180, %cst_43 {dimension_numbers = #tpu.dot_dimension_numbers<[1], [0], [0], [1], [0, 0, 1, 1], [], []>} : vector<128x32xf32>, vector<32x128xf32>, vector<128x128xf32> -> vector<128x128xf32>
    %188 = arith.addf %186, %187 : vector<128x128xf32>
    %189 = vector.extract_strided_slice %188 {offsets = [0, 0], sizes = [96, 128], strides = [1, 1]} : vector<128x128xf32> to vector<96x128xf32>
    %190 = arith.negf %189 : vector<96x128xf32>
    %191 = math.exp %190 : vector<96x128xf32>
    %cst_44 = arith.constant 1.000000e+00 : f32
    %192 = vector.broadcast %cst_44 : f32 to vector<96x128xf32>
    %193 = arith.addf %192, %191 : vector<96x128xf32>
    %194 = arith.divf %192, %193 : vector<96x128xf32>
    %195 = vector.extract_strided_slice %188 {offsets = [96, 0], sizes = [32, 128], strides = [1, 1]} : vector<128x128xf32> to vector<32x128xf32>
    %196 = math.tanh %195 : vector<32x128xf32>
    %197 = vector.extract_strided_slice %194 {offsets = [0, 0], sizes = [32, 128], strides = [1, 1]} : vector<96x128xf32> to vector<32x128xf32>
    %198 = vector.extract_strided_slice %194 {offsets = [32, 0], sizes = [32, 128], strides = [1, 1]} : vector<96x128xf32> to vector<32x128xf32>
    %199 = vector.extract_strided_slice %194 {offsets = [64, 0], sizes = [32, 128], strides = [1, 1]} : vector<96x128xf32> to vector<32x128xf32>
    %200 = arith.mulf %198, %178 : vector<32x128xf32>
    %201 = arith.mulf %197, %196 : vector<32x128xf32>
    %202 = arith.addf %200, %201 : vector<32x128xf32>
    %203 = math.tanh %202 : vector<32x128xf32>
    %204 = arith.mulf %199, %203 : vector<32x128xf32>
    %205 = arith.addf %181, %204 : vector<32x128xf32>
    %cst_45 = arith.constant 1.250000e-01 : f32
    %206 = vector.broadcast %cst_45 : f32 to vector<32x128xf32>
    %207 = arith.mulf %205, %206 : vector<32x128xf32>
    %208 = vector.broadcast %6 : vector<32x1xf32> to vector<32x128xf32>
    %209 = arith.mulf %208, %207 : vector<32x128xf32>
    %cst_46 = arith.constant dense<0.000000e+00> : vector<128xf32>
    %210 = vector.multi_reduction <add>, %209, %cst_46 [0] : vector<32x128xf32> to vector<128xf32>
    %211 = vector.shape_cast %210 : vector<128xf32> to vector<1x128xf32>
    %212 = vector.broadcast %10 : f32 to vector<1x128xf32>
    %213 = arith.addf %211, %212 : vector<1x128xf32>
    %214 = vector.extract_strided_slice %13 {offsets = [0, 1, 0], sizes = [1, 1, 128], strides = [1, 1, 1]} : vector<8x4x128xf32> to vector<1x1x128xf32>
    %215 = vector.shape_cast %214 : vector<1x1x128xf32> to vector<1x128xf32>
    %216 = vector.broadcast %9 : f32 to vector<1x128xf32>
    %217 = arith.mulf %215, %216 : vector<1x128xf32>
    %218 = arith.addf %213, %217 : vector<1x128xf32>
    %219 = vector.broadcast %3 : vector<128x1xf32> to vector<128x128xf32>
    %220 = vector.broadcast %218 : vector<1x128xf32> to vector<128x128xf32>
    %221 = arith.mulf %219, %220 : vector<128x128xf32>
    %222 = vector.broadcast %5 : vector<128x1xf32> to vector<128x128xf32>
    %223 = arith.addf %221, %222 : vector<128x128xf32>
    %cst_47 = arith.constant dense<0.000000e+00> : vector<128x128xf32>
    %224 = tpu.matmul %4, %12, %cst_47 {dimension_numbers = #tpu.dot_dimension_numbers<[1], [0], [0], [1], [0, 0, 1, 1], [], []>} : vector<128x32xf32>, vector<32x128xf32>, vector<128x128xf32> -> vector<128x128xf32>
    %225 = arith.addf %223, %224 : vector<128x128xf32>
    %226 = vector.extract_strided_slice %225 {offsets = [0, 0], sizes = [96, 128], strides = [1, 1]} : vector<128x128xf32> to vector<96x128xf32>
    %227 = arith.negf %226 : vector<96x128xf32>
    %228 = math.exp %227 : vector<96x128xf32>
    %cst_48 = arith.constant 1.000000e+00 : f32
    %229 = vector.broadcast %cst_48 : f32 to vector<96x128xf32>
    %230 = arith.addf %229, %228 : vector<96x128xf32>
    %231 = arith.divf %229, %230 : vector<96x128xf32>
    %232 = vector.extract_strided_slice %225 {offsets = [96, 0], sizes = [32, 128], strides = [1, 1]} : vector<128x128xf32> to vector<32x128xf32>
    %233 = math.tanh %232 : vector<32x128xf32>
    %234 = vector.extract_strided_slice %231 {offsets = [0, 0], sizes = [32, 128], strides = [1, 1]} : vector<96x128xf32> to vector<32x128xf32>
    %235 = vector.extract_strided_slice %231 {offsets = [32, 0], sizes = [32, 128], strides = [1, 1]} : vector<96x128xf32> to vector<32x128xf32>
    %236 = vector.extract_strided_slice %231 {offsets = [64, 0], sizes = [32, 128], strides = [1, 1]} : vector<96x128xf32> to vector<32x128xf32>
    %237 = arith.mulf %235, %12 : vector<32x128xf32>
    %238 = arith.mulf %234, %233 : vector<32x128xf32>
    %239 = arith.addf %237, %238 : vector<32x128xf32>
    %240 = math.tanh %239 : vector<32x128xf32>
    %241 = arith.mulf %236, %240 : vector<32x128xf32>
    %242 = vector.extract_strided_slice %13 {offsets = [1, 1, 0], sizes = [1, 1, 128], strides = [1, 1, 1]} : vector<8x4x128xf32> to vector<1x1x128xf32>
    %243 = vector.shape_cast %242 : vector<1x1x128xf32> to vector<1x128xf32>
    %244 = vector.broadcast %9 : f32 to vector<1x128xf32>
    %245 = arith.mulf %243, %244 : vector<1x128xf32>
    %246 = arith.addf %213, %245 : vector<1x128xf32>
    %247 = vector.broadcast %3 : vector<128x1xf32> to vector<128x128xf32>
    %248 = vector.broadcast %246 : vector<1x128xf32> to vector<128x128xf32>
    %249 = arith.mulf %247, %248 : vector<128x128xf32>
    %250 = vector.broadcast %5 : vector<128x1xf32> to vector<128x128xf32>
    %251 = arith.addf %249, %250 : vector<128x128xf32>
    %cst_49 = arith.constant dense<0.000000e+00> : vector<128x128xf32>
    %252 = tpu.matmul %4, %241, %cst_49 {dimension_numbers = #tpu.dot_dimension_numbers<[1], [0], [0], [1], [0, 0, 1, 1], [], []>} : vector<128x32xf32>, vector<32x128xf32>, vector<128x128xf32> -> vector<128x128xf32>
    %253 = arith.addf %251, %252 : vector<128x128xf32>
    %254 = vector.extract_strided_slice %253 {offsets = [0, 0], sizes = [96, 128], strides = [1, 1]} : vector<128x128xf32> to vector<96x128xf32>
    %255 = arith.negf %254 : vector<96x128xf32>
    %256 = math.exp %255 : vector<96x128xf32>
    %cst_50 = arith.constant 1.000000e+00 : f32
    %257 = vector.broadcast %cst_50 : f32 to vector<96x128xf32>
    %258 = arith.addf %257, %256 : vector<96x128xf32>
    %259 = arith.divf %257, %258 : vector<96x128xf32>
    %260 = vector.extract_strided_slice %253 {offsets = [96, 0], sizes = [32, 128], strides = [1, 1]} : vector<128x128xf32> to vector<32x128xf32>
    %261 = math.tanh %260 : vector<32x128xf32>
    %262 = vector.extract_strided_slice %259 {offsets = [0, 0], sizes = [32, 128], strides = [1, 1]} : vector<96x128xf32> to vector<32x128xf32>
    %263 = vector.extract_strided_slice %259 {offsets = [32, 0], sizes = [32, 128], strides = [1, 1]} : vector<96x128xf32> to vector<32x128xf32>
    %264 = vector.extract_strided_slice %259 {offsets = [64, 0], sizes = [32, 128], strides = [1, 1]} : vector<96x128xf32> to vector<32x128xf32>
    %265 = arith.mulf %263, %239 : vector<32x128xf32>
    %266 = arith.mulf %262, %261 : vector<32x128xf32>
    %267 = arith.addf %265, %266 : vector<32x128xf32>
    %268 = math.tanh %267 : vector<32x128xf32>
    %269 = arith.mulf %264, %268 : vector<32x128xf32>
    %270 = vector.extract_strided_slice %13 {offsets = [2, 1, 0], sizes = [1, 1, 128], strides = [1, 1, 1]} : vector<8x4x128xf32> to vector<1x1x128xf32>
    %271 = vector.shape_cast %270 : vector<1x1x128xf32> to vector<1x128xf32>
    %272 = vector.broadcast %9 : f32 to vector<1x128xf32>
    %273 = arith.mulf %271, %272 : vector<1x128xf32>
    %274 = arith.addf %213, %273 : vector<1x128xf32>
    %275 = vector.broadcast %3 : vector<128x1xf32> to vector<128x128xf32>
    %276 = vector.broadcast %274 : vector<1x128xf32> to vector<128x128xf32>
    %277 = arith.mulf %275, %276 : vector<128x128xf32>
    %278 = vector.broadcast %5 : vector<128x1xf32> to vector<128x128xf32>
    %279 = arith.addf %277, %278 : vector<128x128xf32>
    %cst_51 = arith.constant dense<0.000000e+00> : vector<128x128xf32>
    %280 = tpu.matmul %4, %269, %cst_51 {dimension_numbers = #tpu.dot_dimension_numbers<[1], [0], [0], [1], [0, 0, 1, 1], [], []>} : vector<128x32xf32>, vector<32x128xf32>, vector<128x128xf32> -> vector<128x128xf32>
    %281 = arith.addf %279, %280 : vector<128x128xf32>
    %282 = vector.extract_strided_slice %281 {offsets = [0, 0], sizes = [96, 128], strides = [1, 1]} : vector<128x128xf32> to vector<96x128xf32>
    %283 = arith.negf %282 : vector<96x128xf32>
    %284 = math.exp %283 : vector<96x128xf32>
    %cst_52 = arith.constant 1.000000e+00 : f32
    %285 = vector.broadcast %cst_52 : f32 to vector<96x128xf32>
    %286 = arith.addf %285, %284 : vector<96x128xf32>
    %287 = arith.divf %285, %286 : vector<96x128xf32>
    %288 = vector.extract_strided_slice %281 {offsets = [96, 0], sizes = [32, 128], strides = [1, 1]} : vector<128x128xf32> to vector<32x128xf32>
    %289 = math.tanh %288 : vector<32x128xf32>
    %290 = vector.extract_strided_slice %287 {offsets = [0, 0], sizes = [32, 128], strides = [1, 1]} : vector<96x128xf32> to vector<32x128xf32>
    %291 = vector.extract_strided_slice %287 {offsets = [32, 0], sizes = [32, 128], strides = [1, 1]} : vector<96x128xf32> to vector<32x128xf32>
    %292 = vector.extract_strided_slice %287 {offsets = [64, 0], sizes = [32, 128], strides = [1, 1]} : vector<96x128xf32> to vector<32x128xf32>
    %293 = arith.mulf %291, %267 : vector<32x128xf32>
    %294 = arith.mulf %290, %289 : vector<32x128xf32>
    %295 = arith.addf %293, %294 : vector<32x128xf32>
    %296 = math.tanh %295 : vector<32x128xf32>
    %297 = arith.mulf %292, %296 : vector<32x128xf32>
    %298 = vector.extract_strided_slice %13 {offsets = [3, 1, 0], sizes = [1, 1, 128], strides = [1, 1, 1]} : vector<8x4x128xf32> to vector<1x1x128xf32>
    %299 = vector.shape_cast %298 : vector<1x1x128xf32> to vector<1x128xf32>
    %300 = vector.broadcast %9 : f32 to vector<1x128xf32>
    %301 = arith.mulf %299, %300 : vector<1x128xf32>
    %302 = arith.addf %213, %301 : vector<1x128xf32>
    %303 = vector.broadcast %3 : vector<128x1xf32> to vector<128x128xf32>
    %304 = vector.broadcast %302 : vector<1x128xf32> to vector<128x128xf32>
    %305 = arith.mulf %303, %304 : vector<128x128xf32>
    %306 = vector.broadcast %5 : vector<128x1xf32> to vector<128x128xf32>
    %307 = arith.addf %305, %306 : vector<128x128xf32>
    %cst_53 = arith.constant dense<0.000000e+00> : vector<128x128xf32>
    %308 = tpu.matmul %4, %297, %cst_53 {dimension_numbers = #tpu.dot_dimension_numbers<[1], [0], [0], [1], [0, 0, 1, 1], [], []>} : vector<128x32xf32>, vector<32x128xf32>, vector<128x128xf32> -> vector<128x128xf32>
    %309 = arith.addf %307, %308 : vector<128x128xf32>
    %310 = vector.extract_strided_slice %309 {offsets = [0, 0], sizes = [96, 128], strides = [1, 1]} : vector<128x128xf32> to vector<96x128xf32>
    %311 = arith.negf %310 : vector<96x128xf32>
    %312 = math.exp %311 : vector<96x128xf32>
    %cst_54 = arith.constant 1.000000e+00 : f32
    %313 = vector.broadcast %cst_54 : f32 to vector<96x128xf32>
    %314 = arith.addf %313, %312 : vector<96x128xf32>
    %315 = arith.divf %313, %314 : vector<96x128xf32>
    %316 = vector.extract_strided_slice %309 {offsets = [96, 0], sizes = [32, 128], strides = [1, 1]} : vector<128x128xf32> to vector<32x128xf32>
    %317 = math.tanh %316 : vector<32x128xf32>
    %318 = vector.extract_strided_slice %315 {offsets = [0, 0], sizes = [32, 128], strides = [1, 1]} : vector<96x128xf32> to vector<32x128xf32>
    %319 = vector.extract_strided_slice %315 {offsets = [32, 0], sizes = [32, 128], strides = [1, 1]} : vector<96x128xf32> to vector<32x128xf32>
    %320 = vector.extract_strided_slice %315 {offsets = [64, 0], sizes = [32, 128], strides = [1, 1]} : vector<96x128xf32> to vector<32x128xf32>
    %321 = arith.mulf %319, %295 : vector<32x128xf32>
    %322 = arith.mulf %318, %317 : vector<32x128xf32>
    %323 = arith.addf %321, %322 : vector<32x128xf32>
    %324 = math.tanh %323 : vector<32x128xf32>
    %325 = arith.mulf %320, %324 : vector<32x128xf32>
    %326 = vector.extract_strided_slice %13 {offsets = [4, 1, 0], sizes = [1, 1, 128], strides = [1, 1, 1]} : vector<8x4x128xf32> to vector<1x1x128xf32>
    %327 = vector.shape_cast %326 : vector<1x1x128xf32> to vector<1x128xf32>
    %328 = vector.broadcast %9 : f32 to vector<1x128xf32>
    %329 = arith.mulf %327, %328 : vector<1x128xf32>
    %330 = arith.addf %213, %329 : vector<1x128xf32>
    %331 = vector.broadcast %3 : vector<128x1xf32> to vector<128x128xf32>
    %332 = vector.broadcast %330 : vector<1x128xf32> to vector<128x128xf32>
    %333 = arith.mulf %331, %332 : vector<128x128xf32>
    %334 = vector.broadcast %5 : vector<128x1xf32> to vector<128x128xf32>
    %335 = arith.addf %333, %334 : vector<128x128xf32>
    %cst_55 = arith.constant dense<0.000000e+00> : vector<128x128xf32>
    %336 = tpu.matmul %4, %325, %cst_55 {dimension_numbers = #tpu.dot_dimension_numbers<[1], [0], [0], [1], [0, 0, 1, 1], [], []>} : vector<128x32xf32>, vector<32x128xf32>, vector<128x128xf32> -> vector<128x128xf32>
    %337 = arith.addf %335, %336 : vector<128x128xf32>
    %338 = vector.extract_strided_slice %337 {offsets = [0, 0], sizes = [96, 128], strides = [1, 1]} : vector<128x128xf32> to vector<96x128xf32>
    %339 = arith.negf %338 : vector<96x128xf32>
    %340 = math.exp %339 : vector<96x128xf32>
    %cst_56 = arith.constant 1.000000e+00 : f32
    %341 = vector.broadcast %cst_56 : f32 to vector<96x128xf32>
    %342 = arith.addf %341, %340 : vector<96x128xf32>
    %343 = arith.divf %341, %342 : vector<96x128xf32>
    %344 = vector.extract_strided_slice %337 {offsets = [96, 0], sizes = [32, 128], strides = [1, 1]} : vector<128x128xf32> to vector<32x128xf32>
    %345 = math.tanh %344 : vector<32x128xf32>
    %346 = vector.extract_strided_slice %343 {offsets = [0, 0], sizes = [32, 128], strides = [1, 1]} : vector<96x128xf32> to vector<32x128xf32>
    %347 = vector.extract_strided_slice %343 {offsets = [32, 0], sizes = [32, 128], strides = [1, 1]} : vector<96x128xf32> to vector<32x128xf32>
    %348 = vector.extract_strided_slice %343 {offsets = [64, 0], sizes = [32, 128], strides = [1, 1]} : vector<96x128xf32> to vector<32x128xf32>
    %349 = arith.mulf %347, %323 : vector<32x128xf32>
    %350 = arith.mulf %346, %345 : vector<32x128xf32>
    %351 = arith.addf %349, %350 : vector<32x128xf32>
    %352 = math.tanh %351 : vector<32x128xf32>
    %353 = arith.mulf %348, %352 : vector<32x128xf32>
    %354 = vector.extract_strided_slice %13 {offsets = [5, 1, 0], sizes = [1, 1, 128], strides = [1, 1, 1]} : vector<8x4x128xf32> to vector<1x1x128xf32>
    %355 = vector.shape_cast %354 : vector<1x1x128xf32> to vector<1x128xf32>
    %356 = vector.broadcast %9 : f32 to vector<1x128xf32>
    %357 = arith.mulf %355, %356 : vector<1x128xf32>
    %358 = arith.addf %213, %357 : vector<1x128xf32>
    %359 = vector.broadcast %3 : vector<128x1xf32> to vector<128x128xf32>
    %360 = vector.broadcast %358 : vector<1x128xf32> to vector<128x128xf32>
    %361 = arith.mulf %359, %360 : vector<128x128xf32>
    %362 = vector.broadcast %5 : vector<128x1xf32> to vector<128x128xf32>
    %363 = arith.addf %361, %362 : vector<128x128xf32>
    %cst_57 = arith.constant dense<0.000000e+00> : vector<128x128xf32>
    %364 = tpu.matmul %4, %353, %cst_57 {dimension_numbers = #tpu.dot_dimension_numbers<[1], [0], [0], [1], [0, 0, 1, 1], [], []>} : vector<128x32xf32>, vector<32x128xf32>, vector<128x128xf32> -> vector<128x128xf32>
    %365 = arith.addf %363, %364 : vector<128x128xf32>
    %366 = vector.extract_strided_slice %365 {offsets = [0, 0], sizes = [96, 128], strides = [1, 1]} : vector<128x128xf32> to vector<96x128xf32>
    %367 = arith.negf %366 : vector<96x128xf32>
    %368 = math.exp %367 : vector<96x128xf32>
    %cst_58 = arith.constant 1.000000e+00 : f32
    %369 = vector.broadcast %cst_58 : f32 to vector<96x128xf32>
    %370 = arith.addf %369, %368 : vector<96x128xf32>
    %371 = arith.divf %369, %370 : vector<96x128xf32>
    %372 = vector.extract_strided_slice %365 {offsets = [96, 0], sizes = [32, 128], strides = [1, 1]} : vector<128x128xf32> to vector<32x128xf32>
    %373 = math.tanh %372 : vector<32x128xf32>
    %374 = vector.extract_strided_slice %371 {offsets = [0, 0], sizes = [32, 128], strides = [1, 1]} : vector<96x128xf32> to vector<32x128xf32>
    %375 = vector.extract_strided_slice %371 {offsets = [32, 0], sizes = [32, 128], strides = [1, 1]} : vector<96x128xf32> to vector<32x128xf32>
    %376 = vector.extract_strided_slice %371 {offsets = [64, 0], sizes = [32, 128], strides = [1, 1]} : vector<96x128xf32> to vector<32x128xf32>
    %377 = arith.mulf %375, %351 : vector<32x128xf32>
    %378 = arith.mulf %374, %373 : vector<32x128xf32>
    %379 = arith.addf %377, %378 : vector<32x128xf32>
    %380 = math.tanh %379 : vector<32x128xf32>
    %381 = arith.mulf %376, %380 : vector<32x128xf32>
    %382 = vector.extract_strided_slice %13 {offsets = [6, 1, 0], sizes = [1, 1, 128], strides = [1, 1, 1]} : vector<8x4x128xf32> to vector<1x1x128xf32>
    %383 = vector.shape_cast %382 : vector<1x1x128xf32> to vector<1x128xf32>
    %384 = vector.broadcast %9 : f32 to vector<1x128xf32>
    %385 = arith.mulf %383, %384 : vector<1x128xf32>
    %386 = arith.addf %213, %385 : vector<1x128xf32>
    %387 = vector.broadcast %3 : vector<128x1xf32> to vector<128x128xf32>
    %388 = vector.broadcast %386 : vector<1x128xf32> to vector<128x128xf32>
    %389 = arith.mulf %387, %388 : vector<128x128xf32>
    %390 = vector.broadcast %5 : vector<128x1xf32> to vector<128x128xf32>
    %391 = arith.addf %389, %390 : vector<128x128xf32>
    %cst_59 = arith.constant dense<0.000000e+00> : vector<128x128xf32>
    %392 = tpu.matmul %4, %381, %cst_59 {dimension_numbers = #tpu.dot_dimension_numbers<[1], [0], [0], [1], [0, 0, 1, 1], [], []>} : vector<128x32xf32>, vector<32x128xf32>, vector<128x128xf32> -> vector<128x128xf32>
    %393 = arith.addf %391, %392 : vector<128x128xf32>
    %394 = vector.extract_strided_slice %393 {offsets = [0, 0], sizes = [96, 128], strides = [1, 1]} : vector<128x128xf32> to vector<96x128xf32>
    %395 = arith.negf %394 : vector<96x128xf32>
    %396 = math.exp %395 : vector<96x128xf32>
    %cst_60 = arith.constant 1.000000e+00 : f32
    %397 = vector.broadcast %cst_60 : f32 to vector<96x128xf32>
    %398 = arith.addf %397, %396 : vector<96x128xf32>
    %399 = arith.divf %397, %398 : vector<96x128xf32>
    %400 = vector.extract_strided_slice %393 {offsets = [96, 0], sizes = [32, 128], strides = [1, 1]} : vector<128x128xf32> to vector<32x128xf32>
    %401 = math.tanh %400 : vector<32x128xf32>
    %402 = vector.extract_strided_slice %399 {offsets = [0, 0], sizes = [32, 128], strides = [1, 1]} : vector<96x128xf32> to vector<32x128xf32>
    %403 = vector.extract_strided_slice %399 {offsets = [32, 0], sizes = [32, 128], strides = [1, 1]} : vector<96x128xf32> to vector<32x128xf32>
    %404 = vector.extract_strided_slice %399 {offsets = [64, 0], sizes = [32, 128], strides = [1, 1]} : vector<96x128xf32> to vector<32x128xf32>
    %405 = arith.mulf %403, %379 : vector<32x128xf32>
    %406 = arith.mulf %402, %401 : vector<32x128xf32>
    %407 = arith.addf %405, %406 : vector<32x128xf32>
    %408 = math.tanh %407 : vector<32x128xf32>
    %409 = arith.mulf %404, %408 : vector<32x128xf32>
    %410 = vector.extract_strided_slice %13 {offsets = [7, 1, 0], sizes = [1, 1, 128], strides = [1, 1, 1]} : vector<8x4x128xf32> to vector<1x1x128xf32>
    %411 = vector.shape_cast %410 : vector<1x1x128xf32> to vector<1x128xf32>
    %412 = vector.broadcast %9 : f32 to vector<1x128xf32>
    %413 = arith.mulf %411, %412 : vector<1x128xf32>
    %414 = arith.addf %213, %413 : vector<1x128xf32>
    %415 = vector.broadcast %3 : vector<128x1xf32> to vector<128x128xf32>
    %416 = vector.broadcast %414 : vector<1x128xf32> to vector<128x128xf32>
    %417 = arith.mulf %415, %416 : vector<128x128xf32>
    %418 = vector.broadcast %5 : vector<128x1xf32> to vector<128x128xf32>
    %419 = arith.addf %417, %418 : vector<128x128xf32>
    %cst_61 = arith.constant dense<0.000000e+00> : vector<128x128xf32>
    %420 = tpu.matmul %4, %409, %cst_61 {dimension_numbers = #tpu.dot_dimension_numbers<[1], [0], [0], [1], [0, 0, 1, 1], [], []>} : vector<128x32xf32>, vector<32x128xf32>, vector<128x128xf32> -> vector<128x128xf32>
    %421 = arith.addf %419, %420 : vector<128x128xf32>
    %422 = vector.extract_strided_slice %421 {offsets = [0, 0], sizes = [96, 128], strides = [1, 1]} : vector<128x128xf32> to vector<96x128xf32>
    %423 = arith.negf %422 : vector<96x128xf32>
    %424 = math.exp %423 : vector<96x128xf32>
    %cst_62 = arith.constant 1.000000e+00 : f32
    %425 = vector.broadcast %cst_62 : f32 to vector<96x128xf32>
    %426 = arith.addf %425, %424 : vector<96x128xf32>
    %427 = arith.divf %425, %426 : vector<96x128xf32>
    %428 = vector.extract_strided_slice %421 {offsets = [96, 0], sizes = [32, 128], strides = [1, 1]} : vector<128x128xf32> to vector<32x128xf32>
    %429 = math.tanh %428 : vector<32x128xf32>
    %430 = vector.extract_strided_slice %427 {offsets = [0, 0], sizes = [32, 128], strides = [1, 1]} : vector<96x128xf32> to vector<32x128xf32>
    %431 = vector.extract_strided_slice %427 {offsets = [32, 0], sizes = [32, 128], strides = [1, 1]} : vector<96x128xf32> to vector<32x128xf32>
    %432 = vector.extract_strided_slice %427 {offsets = [64, 0], sizes = [32, 128], strides = [1, 1]} : vector<96x128xf32> to vector<32x128xf32>
    %433 = arith.mulf %431, %407 : vector<32x128xf32>
    %434 = arith.mulf %430, %429 : vector<32x128xf32>
    %435 = arith.addf %433, %434 : vector<32x128xf32>
    %436 = math.tanh %435 : vector<32x128xf32>
    %437 = arith.mulf %432, %436 : vector<32x128xf32>
    %438 = vector.broadcast %7 : vector<32x1xf32> to vector<32x128xf32>
    %439 = arith.mulf %438, %437 : vector<32x128xf32>
    %cst_63 = arith.constant dense<0.000000e+00> : vector<128xf32>
    %440 = vector.multi_reduction <add>, %439, %cst_63 [0] : vector<32x128xf32> to vector<128xf32>
    %441 = vector.shape_cast %440 : vector<128xf32> to vector<1x128xf32>
    %442 = vector.broadcast %8 : vector<32x1xf32> to vector<32x128xf32>
    %443 = arith.mulf %442, %207 : vector<32x128xf32>
    %cst_64 = arith.constant dense<0.000000e+00> : vector<128xf32>
    %444 = vector.multi_reduction <add>, %443, %cst_64 [0] : vector<32x128xf32> to vector<128xf32>
    %445 = vector.shape_cast %444 : vector<128xf32> to vector<1x128xf32>
    %446 = arith.addf %441, %445 : vector<1x128xf32>
    %447 = vector.broadcast %11 : f32 to vector<1x128xf32>
    %448 = arith.addf %446, %447 : vector<1x128xf32>
    %c0_65 = arith.constant 0 : index
    %c0_66 = arith.constant 0 : index
    %449 = vector.load %arg12[%c0_65, %c0_66] : memref<1x128xf32, #tpu.memory_space<vmem>>, vector<1x128xf32>
    tpu.vector_store %arg12[%c0_65, %c0_66], %448 {strides = array<i32>} : memref<1x128xf32, #tpu.memory_space<vmem>>, vector<1x128xf32>,
    return
  }
  func.func @transform_0(%arg0: i32) -> (i32, i32, i32) {
    %c0_i32 = arith.constant 0 : i32
    %c0_i32_0 = arith.constant 0 : i32
    %c0_i32_1 = arith.constant 0 : i32
    return %c0_i32, %c0_i32_0, %arg0 : i32, i32, i32
  }
  func.func @transform_1(%arg0: i32) -> (i32, i32) {
    %c0_i32 = arith.constant 0 : i32
    %c0_i32_0 = arith.constant 0 : i32
    %c0_i32_1 = arith.constant 0 : i32
    return %c0_i32, %c0_i32_0 : i32, i32
  }
  func.func @transform_2(%arg0: i32) -> (i32, i32) {
    %c0_i32 = arith.constant 0 : i32
    %c0_i32_0 = arith.constant 0 : i32
    %c0_i32_1 = arith.constant 0 : i32
    return %c0_i32, %c0_i32_0 : i32, i32
  }
  func.func @transform_3(%arg0: i32) -> (i32, i32) {
    %c0_i32 = arith.constant 0 : i32
    %c0_i32_0 = arith.constant 0 : i32
    %c0_i32_1 = arith.constant 0 : i32
    return %c0_i32, %c0_i32_0 : i32, i32
  }
  func.func @transform_4(%arg0: i32) -> (i32, i32) {
    %c0_i32 = arith.constant 0 : i32
    %c0_i32_0 = arith.constant 0 : i32
    %c0_i32_1 = arith.constant 0 : i32
    return %c0_i32, %c0_i32_0 : i32, i32
  }
  func.func @transform_5(%arg0: i32) -> (i32, i32) {
    %c0_i32 = arith.constant 0 : i32
    %c0_i32_0 = arith.constant 0 : i32
    %c0_i32_1 = arith.constant 0 : i32
    return %c0_i32, %c0_i32_0 : i32, i32
  }
  func.func @transform_6(%arg0: i32) -> (i32, i32) {
    %c0_i32 = arith.constant 0 : i32
    %c0_i32_0 = arith.constant 0 : i32
    %c0_i32_1 = arith.constant 0 : i32
    return %c0_i32, %c0_i32_0 : i32, i32
  }
  func.func @transform_7(%arg0: i32) -> (i32, i32) {
    %c0_i32 = arith.constant 0 : i32
    %c0_i32_0 = arith.constant 0 : i32
    %c0_i32_1 = arith.constant 0 : i32
    return %c0_i32, %c0_i32_0 : i32, i32
  }
  func.func @transform_8(%arg0: i32) -> (i32, i32) {
    %c0_i32 = arith.constant 0 : i32
    %c0_i32_0 = arith.constant 0 : i32
    %c0_i32_1 = arith.constant 0 : i32
    return %c0_i32, %c0_i32_0 : i32, i32
  }
  func.func @transform_9(%arg0: i32) -> (i32, i32) {
    %c0_i32 = arith.constant 0 : i32
    %c0_i32_0 = arith.constant 0 : i32
    %c0_i32_1 = arith.constant 0 : i32
    return %c0_i32, %c0_i32_0 : i32, i32
  }
  func.func @transform_10(%arg0: i32) -> i32 {
    %c0_i32 = arith.constant 0 : i32
    %c0_i32_0 = arith.constant 0 : i32
    return %c0_i32 : i32
  }
  func.func @transform_11(%arg0: i32) -> (i32, i32) {
    %c0_i32 = arith.constant 0 : i32
    %c0_i32_0 = arith.constant 0 : i32
    return %c0_i32, %arg0 : i32, i32
  }
}

</mosaic_0001>

<bundles_post_ra>
// kernel: tpu_custom_call.1
= control target key start
LH: loop header
LB: loop body
LE: loop exit
PB: predicated region body
PF: predicated region fallthrough
CT: control target
= control target key end

     0   :  { %16 = vsyncpa [#allocation4], 0  ;;  %s16624_s0 = inlined_call_operand.vmem [shape: f32[8,4,128], index: 0, kind: input, shape index: {}]   ;;  %s16625_s1 = inlined_call_operand.vmem [shape: f32[128,4], index: 1, kind: input, shape index: {}]   ;;  %s16626_s2 = inlined_call_operand.vmem [shape: f32[128,32], index: 2, kind: input, shape index: {}]   ;;  %s16627_s3 = inlined_call_operand.vmem [shape: f32[128,1], index: 3, kind: input, shape index: {}]   ;;  %s16628_s4 = inlined_call_operand.vmem [shape: f32[128,1], index: 4, kind: input, shape index: {}]   ;;  %s16629_s5 = inlined_call_operand.vmem [shape: f32[128,32], index: 5, kind: input, shape index: {}]   ;;  %s16630_s6 = inlined_call_operand.vmem [shape: f32[128,1], index: 6, kind: input, shape index: {}]   ;;  %s16631_s7 = inlined_call_operand.vmem [shape: f32[32,1], index: 7, kind: input, shape index: {}]   ;;  %s16632_s8 = inlined_call_operand.vmem [shape: f32[32,1], index: 8, kind: input, shape index: {}]   ;;  %s16633_s9 = inlined_call_operand.vmem [shape: f32[32,1], index: 9, kind: input, shape index: {}]   ;;  %s16634_s10 = inlined_call_operand.vmem [shape: f32[3], index: 10, kind: input, shape index: {}]   ;;  %s16635_s11 = inlined_call_operand.hbm [shape: f32[1,128], index: 11, kind: output, shape index: {}]  }
   0x1   :  { %17 = vsyncpa [#allocation3], 0  ;;  %s43_s19 = sshll.u32 %s16634_s10, 4  ;;  %s8677_s20 = smov [#allocation2]   ;;  %s44_s19 = int_to_ptr.vmem [resolvable:$true] %s43_s19 }
   0x2   :  { %46 = dma.vmem_to_smem %s44_s19, 16, %s8677_s20, [#allocation4]  }
   0x3   :  { %8673 = dma.done.wait [#allocation4], 16  }
   0x4   :  { %8674 = vsyncadd [#allocation4], 4294967280 }
   0x5   :  { %51 = sfence }
   0x6   :  { %v163_v0 = vld [vmem:[%s16624_s0] sm:$0xf]  ;;  %vm300_vm0 = vcmask 1043456   ;;  %v8678_v1 = vmov 0   ;;  %v164_v2 = vld [vmem:[%s16624_s0 + $0x4] sm:$0xf] }
   0x7   :  { %7461 = vset.pattern.permute.xlu2 %v8678_v1  ;;  %7460 = vset.pattern.permute.xlu1 %v8678_v1  ;;  %v87_v3 = vld [vmem:[%s16627_s3 + $0x18] sm:$0xff]  ;;  %v86_v4 = vld [vmem:[%s16627_s3 + $0x10] sm:$0xff]  ;;  %v85_v5 = vld [vmem:[%s16627_s3 + $0x8] sm:$0xff]  ;;  %vm251_vm1 = vcmask 31744   ;;  %vm369_vm2 = vcmask 261120   ;;  %v16636_v8 = vmov 0.0  }
   0x8   :  { %7459 = vset.pattern.permute.xlu0 %v8678_v1  ;;  %6871 = vmatpush.msk.msra.mxu0 %vm300_vm0, %v163_v0  ;;  %v8763_v6 = vld [vmem:[%s16625_s1] sm:$0xff]  ;;  %v91_v9 = vld [vmem:[%s16627_s3 + $0x38] sm:$0xff]  ;;  %v90_v10 = vld [vmem:[%s16627_s3 + $0x30] sm:$0xff]  ;;  %s160_s25 = sld [smem:[#allocation2]]  ;;  %s6859_s28 = sshll.u32 %s16635_s11, 4  ;;  %s6860_s28 = int_to_ptr.hbm [resolvable:$true] %s6859_s28 }
   0x9   :  { %6916 = vmatpush.msk.msra.mxu2 %vm300_vm0, %v164_v2  ;;  %188 = vperm.xlu0 %7459, %v87_v3   ;;  %v68_v7 = vld [vmem:[%s16626_s2] sm:$0xff]  ;;  %v89_v11 = vld [vmem:[%s16627_s3 + $0x28] sm:$0xff]  ;;  %v95_v16 = vld [vmem:[%s16627_s3 + $0x58] sm:$0xff]  ;;  %s6869_s10 = sld [smem:[#allocation2 + $0x1]] }
   0xa   :  { %183 = vperm.xlu1 %7460, %v86_v4   ;;  %178 = vperm.xlu2 %7461, %v85_v5   ;;  %v8787_v12 = vld [vmem:[%s16625_s1 + $0x8] sm:$0xff]  ;;  %v84_v14 = vld [vmem:[%s16627_s3] sm:$0xff]  ;;  %v8809_v17 = vld [vmem:[%s16625_s1 + $0x10] sm:$0xff] }
   0xb   :  { %6872 = vmatmul.msk.f32.vlgmr.msra.gmra.mxu0 %vm251_vm1, %v8763_v6  ;;  %6917 = vmatmul.msk.f32.vlgmr.msra.gmra.mxu2 %vm251_vm1, %v8763_v6  ;;  %v69_v13 = vld [vmem:[%s16626_s2 + $0x8] sm:$0xff]  ;;  %v88_v15 = vld [vmem:[%s16627_s3 + $0x20] sm:$0xff]  ;;  %v70_v18 = vld [vmem:[%s16626_s2 + $0x10] sm:$0xff] }
   0xc   :  { %433 = vmatpush.msra.mxu1 %v16636_v8  ;;  %v94_v19 = vld [vmem:[%s16627_s3 + $0x50] sm:$0xff]  ;;  %v93_v20 = vld [vmem:[%s16627_s3 + $0x48] sm:$0xff]  ;;  %v92_v21 = vld [vmem:[%s16627_s3 + $0x40] sm:$0xff] }
   0xd   :  { %6888 = vmatmul.msk.f32.vlgmr.msra.gmra.mxu1 %vm369_vm2, %v68_v7  ;;  %v8831_v22 = vld [vmem:[%s16625_s1 + $0x18] sm:$0xff]  ;;  %v98_v25 = vld [vmem:[%s16627_s3 + $0x70] sm:$0xff]  ;;  %v97_v26 = vld [vmem:[%s16627_s3 + $0x68] sm:$0xff] }
   0xe   :  { %v71_v23 = vld [vmem:[%s16626_s2 + $0x18] sm:$0xff]  ;;  %v8853_v27 = vld [vmem:[%s16625_s1 + $0x20] sm:$0xff]  ;;  %v149_v31 = vld [vmem:[%s16631_s7 + $0x8] sm:$0xff] }
   0xf   :  { %v99_v24 = vld [vmem:[%s16627_s3 + $0x78] sm:$0xff]  ;;  %v72_v28 = vld [vmem:[%s16626_s2 + $0x20] sm:$0xff]  ;;  %v8875_v32 = vld [vmem:[%s16625_s1 + $0x28] sm:$0xff] }
  0x10   :  { %v96_v29 = vld [vmem:[%s16627_s3 + $0x60] sm:$0xff]  ;;  %v73_v33 = vld [vmem:[%s16626_s2 + $0x28] sm:$0xff]  ;;  %v150_v34 = vld [vmem:[%s16631_s7 + $0x10] sm:$0xff] }
  0x11   :  { %208 = vperm.xlu0 %7459, %v91_v9   ;;  %v148_v30 = vld [vmem:[%s16631_s7] sm:$0xff]  ;;  %v151_v35 = vld [vmem:[%s16631_s7 + $0x18] sm:$0xff]  ;;  %v8897_v37 = vld [vmem:[%s16625_s1 + $0x30] sm:$0xff] }
  0x12   :  { %203 = vperm.xlu1 %7460, %v90_v10   ;;  %198 = vperm.xlu2 %7461, %v89_v11   ;;  %v103_v36 = vld [vmem:[%s16628_s4 + $0x18] sm:$0xff]  ;;  %v74_v38 = vld [vmem:[%s16626_s2 + $0x30] sm:$0xff]  ;;  %v101_v46 = vld [vmem:[%s16628_s4 + $0x8] sm:$0xff] }
  0x13   :  { %6873 = vmatmul.msk.f32.gmra.mxu0 %vm251_vm1, %v8787_v12  ;;  %6918 = vmatmul.msk.f32.gmra.mxu2 %vm251_vm1, %v8787_v12  ;;  %v107_v39 = vld [vmem:[%s16628_s4 + $0x38] sm:$0xff]  ;;  %v102_v40 = vld [vmem:[%s16628_s4 + $0x10] sm:$0xff]  ;;  %v8941_v47 = vld [vmem:[%s16625_s1 + $0x40] sm:$0xff] }
  0x14   :  { %v106_v41 = vld [vmem:[%s16628_s4 + $0x30] sm:$0xff]  ;;  %v8919_v42 = vld [vmem:[%s16625_s1 + $0x38] sm:$0xff]  ;;  %v76_v48 = vld [vmem:[%s16626_s2 + $0x40] sm:$0xff] }
  0x15   :  { %6889 = vmatmul.msk.f32.gmra.mxu1 %vm369_vm2, %v69_v13  ;;  %v75_v43 = vld [vmem:[%s16626_s2 + $0x38] sm:$0xff]  ;;  %v105_v49 = vld [vmem:[%s16628_s4 + $0x28] sm:$0xff]  ;;  %v134_v50 = vld [vmem:[%s16630_s6 + $0x10] sm:$0xff] }
  0x16   :  { %v135_v44 = vld [vmem:[%s16630_s6 + $0x18] sm:$0xff]  ;;  %v138_v51 = vld [vmem:[%s16630_s6 + $0x30] sm:$0xff]  ;;  %v8963_v52 = vld [vmem:[%s16625_s1 + $0x48] sm:$0xff] }
  0x17   :  { %v139_v45 = vld [vmem:[%s16630_s6 + $0x38] sm:$0xff]  ;;  %v77_v53 = vld [vmem:[%s16626_s2 + $0x48] sm:$0xff]  ;;  %v100_v54 = vld [vmem:[%s16628_s4] sm:$0xff] }
  0x18   :  { %v104_v55 = vld [vmem:[%s16628_s4 + $0x20] sm:$0xff]  ;;  %v133_v56 = vld [vmem:[%s16630_s6 + $0x8] sm:$0xff]  ;;  %v8985_v57 = vld [vmem:[%s16625_s1 + $0x50] sm:$0xff] }
  0x19   :  { %173 = vperm.xlu0 %7459, %v84_v14   ;;  %v78_v58 = vld [vmem:[%s16626_s2 + $0x50] sm:$0xff]  ;;  %v137_v59 = vld [vmem:[%s16630_s6 + $0x28] sm:$0xff]  ;;  %v132_v60 = vld [vmem:[%s16630_s6] sm:$0xff] }
  0x1a   :  { %193 = vperm.xlu1 %7460, %v88_v15   ;;  %228 = vperm.xlu2 %7461, %v95_v16   ;;  %v136_v61 = vld [vmem:[%s16630_s6 + $0x20] sm:$0xff]  ;;  %v9007_v62 = vld [vmem:[%s16625_s1 + $0x58] sm:$0xff]  ;;  %v110_v1 = vld [vmem:[%s16628_s4 + $0x50] sm:$0xff] }
  0x1b   :  { %6874 = vmatmul.msk.f32.gmra.mxu0 %vm251_vm1, %v8809_v17  ;;  %6919 = vmatmul.msk.f32.gmra.mxu2 %vm251_vm1, %v8809_v17  ;;  %v79_v63 = vld [vmem:[%s16626_s2 + $0x58] sm:$0xff]  ;;  %v9029_v3 = vld [vmem:[%s16625_s1 + $0x60] sm:$0xff]  ;;  %v165_v4 = vld [vmem:[%s16624_s0 + $0x8] sm:$0xf] }
  0x1c   :  { %v111_v0 = vld [vmem:[%s16628_s4 + $0x58] sm:$0xff]  ;;  %v166_v5 = vld [vmem:[%s16624_s0 + $0xc] sm:$0xf]  ;;  %v80_v7 = vld [vmem:[%s16626_s2 + $0x60] sm:$0xff]  ;;  %6961 = vmatpush.msk.msrb.mxu0 %vm300_vm0, %v165_v4 }
  0x1d   :  { %6890 = vmatmul.msk.f32.gmra.mxu1 %vm369_vm2, %v70_v18  ;;  %v143_v2 = vld [vmem:[%s16630_s6 + $0x58] sm:$0xff]  ;;  %7006 = vmatpush.msk.msrb.mxu2 %vm300_vm0, %v166_v5  ;;  %v109_v9 = vld [vmem:[%s16628_s4 + $0x48] sm:$0xff]  ;;  %v142_v10 = vld [vmem:[%s16630_s6 + $0x50] sm:$0xff] }
  0x1e   :  { %v108_v11 = vld [vmem:[%s16628_s4 + $0x40] sm:$0xff]  ;;  %v9059_v13 = vld [vmem:[%s16625_s1 + $0x68] sm:$0xff]  ;;  %v115_v18 = vld [vmem:[%s16628_s4 + $0x78] sm:$0xff] }
  0x1f   :  { %v81_v14 = vld [vmem:[%s16626_s2 + $0x68] sm:$0xff]  ;;  %v140_v16 = vld [vmem:[%s16630_s6 + $0x40] sm:$0xff] }
  0x20   :  { %v141_v15 = vld [vmem:[%s16630_s6 + $0x48] sm:$0xff] }
  0x21   :  { %223 = vperm.xlu0 %7459, %v94_v19   ;;  %v9081_v19 = vld [vmem:[%s16625_s1 + $0x70] sm:$0xff] }
  0x22   :  { %218 = vperm.xlu1 %7460, %v93_v20   ;;  %213 = vperm.xlu2 %7461, %v92_v21   ;;  %v82_v20 = vld [vmem:[%s16626_s2 + $0x70] sm:$0xff] }
  0x23   :  { %6875 = vmatmul.msk.f32.gmra.mxu0 %vm251_vm1, %v8831_v22  ;;  %6920 = vmatmul.msk.f32.gmra.mxu2 %vm251_vm1, %v8831_v22  ;;  %v114_v21 = vld [vmem:[%s16628_s4 + $0x70] sm:$0xff] }
  0x25   :  { %6891 = vmatmul.msk.f32.gmra.mxu1 %vm369_vm2, %v71_v23  ;;  %v147_v23 = vld [vmem:[%s16630_s6 + $0x78] sm:$0xff] }
  0x29   :  { %248 = vperm.xlu0 %7459, %v99_v24   ;;  %v113_v24 = vld [vmem:[%s16628_s4 + $0x68] sm:$0xff] }
  0x2a   :  { %243 = vperm.xlu1 %7460, %v98_v25   ;;  %238 = vperm.xlu2 %7461, %v97_v26   ;;  %v9103_v25 = vld [vmem:[%s16625_s1 + $0x78] sm:$0xff] }
  0x2b   :  { %6876 = vmatmul.msk.f32.gmra.mxu0 %vm251_vm1, %v8853_v27  ;;  %6921 = vmatmul.msk.f32.gmra.mxu2 %vm251_vm1, %v8853_v27  ;;  %v9108_v26 = vld [vmem:[%s16626_s2 + $0x78] sm:$0xff] }
  0x2d   :  { %6892 = vmatmul.msk.f32.gmra.mxu1 %vm369_vm2, %v72_v28  ;;  %v146_v28 = vld [vmem:[%s16630_s6 + $0x70] sm:$0xff] }
  0x31   :  { %233 = vperm.xlu0 %7459, %v96_v29   ;;  %v112_v29 = vld [vmem:[%s16628_s4 + $0x60] sm:$0xff] }
  0x32   :  { %3596 = vperm.xlu1 %7460, %v148_v30   ;;  %3601 = vperm.xlu2 %7461, %v149_v31   ;;  %v145_v30 = vld [vmem:[%s16630_s6 + $0x68] sm:$0xff] }
  0x33   :  { %6877 = vmatmul.msk.f32.gmra.mxu0 %vm251_vm1, %v8875_v32  ;;  %6922 = vmatmul.msk.f32.gmra.mxu2 %vm251_vm1, %v8875_v32 }
  0x35   :  { %6893 = vmatmul.msk.f32.gmra.mxu1 %vm369_vm2, %v73_v33 }
  0x39   :  { %3606 = vperm.xlu0 %7459, %v150_v34  }
  0x3a   :  { %3611 = vperm.xlu1 %7460, %v151_v35   ;;  %3649 = vperm.xlu2 %7461, %v103_v36   ;;  %v144_v35 = vld [vmem:[%s16630_s6 + $0x60] sm:$0xff] }
  0x3b   :  { %6878 = vmatmul.msk.f32.gmra.mxu0 %vm251_vm1, %v8897_v37  ;;  %6923 = vmatmul.msk.f32.gmra.mxu2 %vm251_vm1, %v8897_v37  ;;  %v152_v36 = vld [vmem:[%s16632_s8] sm:$0xff] }
  0x3d   :  { %6894 = vmatmul.msk.f32.gmra.mxu1 %vm369_vm2, %v74_v38  ;;  %v153_v38 = vld [vmem:[%s16632_s8 + $0x8] sm:$0xff] }
  0x41   :  { %3669 = vperm.xlu0 %7459, %v107_v39  }
  0x42   :  { %3644 = vperm.xlu1 %7460, %v102_v40   ;;  %3664 = vperm.xlu2 %7461, %v106_v41   ;;  %v156_v41 = vld [vmem:[%s16633_s9] sm:$0xff] }
  0x43   :  { %6879 = vmatmul.msk.f32.gmra.mxu0 %vm251_vm1, %v8919_v42  ;;  %6924 = vmatmul.msk.f32.gmra.mxu2 %vm251_vm1, %v8919_v42 }
  0x45   :  { %6895 = vmatmul.msk.f32.gmra.mxu1 %vm369_vm2, %v75_v43  ;;  %v157_v43 = vld [vmem:[%s16633_s9 + $0x8] sm:$0xff] }
  0x49   :  { %3746 = vperm.xlu0 %7459, %v135_v44   ;;  %v154_v44 = vld [vmem:[%s16632_s8 + $0x10] sm:$0xff] }
  0x4a   :  { %3766 = vperm.xlu1 %7460, %v139_v45   ;;  %3639 = vperm.xlu2 %7461, %v101_v46  }
  0x4b   :  { %6880 = vmatmul.msk.f32.gmra.mxu0 %vm251_vm1, %v8941_v47  ;;  %6925 = vmatmul.msk.f32.gmra.mxu2 %vm251_vm1, %v8941_v47 }
  0x4d   :  { %6896 = vmatmul.msk.f32.gmra.mxu1 %vm369_vm2, %v76_v48  ;;  %v158_v48 = vld [vmem:[%s16633_s9 + $0x10] sm:$0xff] }
  0x51   :  { %3659 = vperm.xlu0 %7459, %v105_v49   ;;  %v155_v49 = vld [vmem:[%s16632_s8 + $0x18] sm:$0xff] }
  0x52   :  { %3741 = vperm.xlu1 %7460, %v134_v50   ;;  %3761 = vperm.xlu2 %7461, %v138_v51   ;;  %v159_v50 = vld [vmem:[%s16633_s9 + $0x18] sm:$0xff] }
  0x53   :  { %6881 = vmatmul.msk.f32.gmra.mxu0 %vm251_vm1, %v8963_v52  ;;  %6926 = vmatmul.msk.f32.gmra.mxu2 %vm251_vm1, %v8963_v52 }
  0x55   :  { %6897 = vmatmul.msk.f32.gmra.mxu1 %vm369_vm2, %v77_v53 }
  0x59   :  { %3634 = vperm.xlu0 %7459, %v100_v54  }
  0x5a   :  { %3654 = vperm.xlu1 %7460, %v104_v55   ;;  %3736 = vperm.xlu2 %7461, %v133_v56  }
  0x5b   :  { %6882 = vmatmul.msk.f32.gmra.mxu0 %vm251_vm1, %v8985_v57  ;;  %6927 = vmatmul.msk.f32.gmra.mxu2 %vm251_vm1, %v8985_v57 }
  0x5d   :  { %6898 = vmatmul.msk.f32.gmra.mxu1 %vm369_vm2, %v78_v58 }
  0x61   :  { %3756 = vperm.xlu0 %7459, %v137_v59  }
  0x62   :  { %3731 = vperm.xlu1 %7460, %v132_v60   ;;  %3751 = vperm.xlu2 %7461, %v136_v61  }
  0x63   :  { %6883 = vmatmul.msk.f32.gmra.mxu0 %vm251_vm1, %v9007_v62  ;;  %6928 = vmatmul.msk.f32.gmra.mxu2 %vm251_vm1, %v9007_v62 }
  0x64   :  { %v9206_v4 = vpop.permute.xlu2 %178 }
  0x65   :  { %6899 = vmatmul.msk.f32.gmra.mxu1 %vm369_vm2, %v79_v63  ;;  %16811 = vst [vmem:[#allocation13_spill] sm:$0xff] %v9206_v4 }
  0x69   :  { %3689 = vperm.xlu0 %7459, %v111_v0  }
  0x6a   :  { %3684 = vperm.xlu1 %7460, %v110_v1   ;;  %3786 = vperm.xlu2 %7461, %v143_v2  }
  0x6b   :  { %6884 = vmatmul.msk.f32.gmra.mxu0 %vm251_vm1, %v9029_v3  ;;  %6929 = vmatmul.msk.f32.gmra.mxu2 %vm251_vm1, %v9029_v3 }
  0x6d   :  { %6900 = vmatmul.msk.f32.gmra.mxu1 %vm369_vm2, %v80_v7 }
  0x71   :  { %3679 = vperm.xlu0 %7459, %v109_v9  }
  0x72   :  { %3781 = vperm.xlu1 %7460, %v142_v10   ;;  %3674 = vperm.xlu2 %7461, %v108_v11  }
  0x73   :  { %6885 = vmatmul.msk.f32.gmra.mxu0 %vm251_vm1, %v9059_v13  ;;  %6930 = vmatmul.msk.f32.gmra.mxu2 %vm251_vm1, %v9059_v13 }
  0x75   :  { %6901 = vmatmul.msk.f32.gmra.mxu1 %vm369_vm2, %v81_v14 }
  0x79   :  { %3776 = vperm.xlu0 %7459, %v141_v15  }
  0x7a   :  { %3771 = vperm.xlu1 %7460, %v140_v16   ;;  %3709 = vperm.xlu2 %7461, %v115_v18  }
  0x7b   :  { %6886 = vmatmul.msk.f32.gmra.mxu0 %vm251_vm1, %v9081_v19  ;;  %6931 = vmatmul.msk.f32.gmra.mxu2 %vm251_vm1, %v9081_v19  ;;  %v9180_v55 = vpop.permute.xlu0 %188 }
  0x7c   :  { %16807 = vst [vmem:[#allocation9_spill] sm:$0xff] %v9180_v55  ;;  %v9196_v1 = vpop.permute.xlu1 %183 }
  0x7d   :  { %6902 = vmatmul.msk.f32.gmra.mxu1 %vm369_vm2, %v82_v20  ;;  %16809 = vst [vmem:[#allocation11_spill] sm:$0xff] %v9196_v1 }
  0x81   :  { %3704 = vperm.xlu0 %7459, %v114_v21  }
  0x82   :  { %3806 = vperm.xlu1 %7460, %v147_v23   ;;  %3699 = vperm.xlu2 %7461, %v113_v24  }
  0x83   :  { %6887 = vmatmul.msk.f32.gmra.mxu0 %vm251_vm1, %v9103_v25  ;;  %6932 = vmatmul.msk.f32.gmra.mxu2 %vm251_vm1, %v9103_v25 }
  0x84   :  { %v9216_v11 = vpop.permute.xlu1 %203 }
  0x85   :  { %6903 = vmatmul.msk.f32.gmra.mxu1 %vm369_vm2, %v9108_v26  ;;  %16812 = vst [vmem:[#allocation14_spill] sm:$0xff] %v9216_v11 }
  0x88   :  { %v9125_v31 = vpop.f32.mrf.mxu0 }
  0x89   :  { %3801 = vperm.xlu0 %7459, %v146_v28  }
  0x8a   :  { %v9127_v33 = vpop.f32.mrf.mxu1  ;;  %3694 = vperm.xlu1 %7460, %v112_v29   ;;  %3796 = vperm.xlu2 %7461, %v145_v30  }
  0x8b   :  { %6962 = vmatmul.msk.f32.vlgmr.msrb.gmra.mxu0 %vm251_vm1, %v8763_v6  ;;  %7007 = vmatmul.msk.f32.vlgmr.msrb.gmra.mxu2 %vm251_vm1, %v8763_v6 }
  0x8c   :  { %v9232_v30 = vpop.permute.xlu1 %193 }
  0x8d   :  { %16815 = vst [vmem:[#allocation17_spill] sm:$0xff] %v9232_v30 }
  0x8e   :  { %v9133_v34 = vpop.f32.mrf.mxu2 }
  0x90   :  { %v324_v39 = vpop.f32.mrf.mxu0 }
  0x91   :  { %3791 = vperm.xlu0 %7459, %v144_v35   ;;  %v9235_v35 = vpop.permute.xlu2 %198 }
  0x92   :  { %v438_v40 = vpop.f32.mrf.mxu1  ;;  %6784 = vperm.xlu1 %7460, %v152_v36   ;;  %6789 = vperm.xlu2 %7461, %v153_v38   ;;  %16816 = vst [vmem:[#allocation18_spill] sm:$0xff] %v9235_v35 }
  0x93   :  { %6963 = vmatmul.msk.f32.gmra.mxu0 %vm251_vm1, %v8787_v12  ;;  %7008 = vmatmul.msk.f32.gmra.mxu2 %vm251_vm1, %v8787_v12 }
  0x96   :  { %v9148_v6 = vpop.f32.mrf.mxu2 }
  0x98   :  { %v327_v45 = vpop.f32.mrf.mxu0 }
  0x99   :  { %6817 = vperm.xlu0 %7459, %v156_v41   ;;  %v328_v9 = vadd.f32 %v327_v45, %v9196_v1 }
  0x9a   :  { %v441_v46 = vpop.f32.mrf.mxu1  ;;  %6822 = vperm.xlu1 %7460, %v157_v43   ;;  %6794 = vperm.xlu2 %7461, %v154_v44  }
  0x9b   :  { %6964 = vmatmul.msk.f32.gmra.mxu0 %vm251_vm1, %v8809_v17  ;;  %7009 = vmatmul.msk.f32.gmra.mxu2 %vm251_vm1, %v8809_v17  ;;  %v485_v15 = vadd.f32 %v441_v46, %v328_v9 }
  0x9d   :  { %v6906_v23 = vmul.f32 -1.442695, %v485_v15 }
  0x9e   :  { %v9163_v12 = vpop.f32.mrf.mxu2 }
  0xa0   :  { %v330_v51 = vpop.f32.mrf.mxu0 }
  0xa1   :  { %6827 = vperm.xlu0 %7459, %v158_v48   ;;  %v331_v24 = vadd.f32 %v330_v51, %v9180_v55 }
  0xa2   :  { %v444_v53 = vpop.f32.mrf.mxu1  ;;  %6799 = vperm.xlu1 %7460, %v155_v49   ;;  %6832 = vperm.xlu2 %7461, %v159_v50  }
  0xa3   :  { %6965 = vmatmul.msk.f32.gmra.mxu0 %vm251_vm1, %v8831_v22  ;;  %7010 = vmatmul.msk.f32.gmra.mxu2 %vm251_vm1, %v8831_v22  ;;  %v9192_v22 = vpop.permute.xlu0 %208 }
  0xa4   :  { %16808 = vst [vmem:[#allocation10_spill] sm:$0xff] %v9192_v22 }
  0xa6   :  { %v9178_v17 = vpop.f32.mrf.mxu2 }
  0xa7   :  { %16806 = vst [vmem:[#allocation8_spill] sm:$0xff] %v9178_v17 }
  0xa8   :  { %v333_v54 = vpop.f32.mrf.mxu0 }
  0xaa   :  { %v447_v56 = vpop.f32.mrf.mxu1 }
  0xab   :  { %6966 = vmatmul.msk.f32.gmra.mxu0 %vm251_vm1, %v8853_v27  ;;  %7011 = vmatmul.msk.f32.gmra.mxu2 %vm251_vm1, %v8853_v27  ;;  %v9202_v27 = vpop.permute.xlu0 %173 }
  0xac   :  { %16810 = vst [vmem:[#allocation12_spill] sm:$0xff] %v9202_v27  ;;  %v322_v7 = vadd.f32 %v9125_v31, %v9202_v27  ;;  %v334_v31 = vadd.f32 %v333_v54, %v9232_v30 }
  0xae   :  { %v9186_v58 = vpop.f32.mrf.mxu2  ;;  %v483_v14 = vadd.f32 %v9127_v33, %v322_v7  ;;  %v487_v45 = vadd.f32 %v447_v56, %v334_v31  ;;  %v9278_v31 = vpop.permute.xlu1 %218 }
  0xaf   :  { %16821 = vst [vmem:[#allocation23_spill] sm:$0xff] %v9278_v31 }
  0xb0   :  { %v336_v59 = vpop.f32.mrf.mxu0  ;;  %v6904_v21 = vmul.f32 -1.442695, %v483_v14  ;;  %v6908_v54 = vmul.f32 -1.442695, %v487_v45 }
  0xb2   :  { %v450_v60 = vpop.f32.mrf.mxu1 }
  0xb3   :  { %6967 = vmatmul.msk.f32.gmra.mxu0 %vm251_vm1, %v8875_v32  ;;  %7012 = vmatmul.msk.f32.gmra.mxu2 %vm251_vm1, %v8875_v32  ;;  %v325_v32 = vadd.f32 %v324_v39, %v9206_v4  ;;  %v9271_v15 = vpop.permute.xlu0 %223 }
  0xb4   :  { %16819 = vst [vmem:[#allocation21_spill] sm:$0xff] %v9271_v15 }
  0xb6   :  { %v9194_v61 = vpop.f32.mrf.mxu2 }
  0xb8   :  { %v339_v63 = vpop.f32.mrf.mxu0 }
  0xb9   :  { %v340_v36 = vadd.f32 %v339_v63, %v9216_v11 }
  0xba   :  { %v453_v0 = vpop.f32.mrf.mxu1 }
  0xbb   :  { %6968 = vmatmul.msk.f32.gmra.mxu0 %vm251_vm1, %v8897_v37  ;;  %7013 = vmatmul.msk.f32.gmra.mxu2 %vm251_vm1, %v8897_v37  ;;  %v484_v37 = vadd.f32 %v438_v40, %v325_v32  ;;  %v337_v40 = vadd.f32 %v336_v59, %v9235_v35  ;;  %v489_v48 = vadd.f32 %v453_v0, %v340_v36 }
  0xbd   :  { %v6905_v18 = vmul.f32 -1.442695, %v484_v37  ;;  %v488_v50 = vadd.f32 %v450_v60, %v337_v40  ;;  %v6910_v32 = vmul.f32 -1.442695, %v489_v48 }
  0xbe   :  { %v9204_v2 = vpop.f32.mrf.mxu2 }
  0xbf   :  { %7462 = vpow2.f32 %v6905_v18 }
  0xc0   :  { %v342_v5 = vpop.f32.mrf.mxu0  ;;  %7464 = vpow2.f32 %v6904_v21 }
  0xc1   :  { %7466 = vpow2.f32 %v6906_v23  ;;  %v343_v43 = vadd.f32 %v342_v5, %v9192_v22  ;;  %v9256_v5 = vpop.permute.xlu2 %228 }
  0xc2   :  { %v456_v10 = vpop.f32.mrf.mxu1  ;;  %16818 = vst [vmem:[#allocation20_spill] sm:$0xff] %v9256_v5 }
  0xc3   :  { %6969 = vmatmul.msk.f32.gmra.mxu0 %vm251_vm1, %v8919_v42  ;;  %7014 = vmatmul.msk.f32.gmra.mxu2 %vm251_vm1, %v8919_v42  ;;  %v486_v42 = vadd.f32 %v444_v53, %v331_v24  ;;  %v490_v53 = vadd.f32 %v456_v10, %v343_v43 }
  0xc5   :  { %v7463_v38 = vpop.eup %7462  ;;  %v6907_v39 = vmul.f32 -1.442695, %v486_v42  ;;  %v6911_v0 = vmul.f32 -1.442695, %v490_v53 }
  0xc6   :  { %v9219_v16 = vpop.f32.mrf.mxu2  ;;  %v7465_v41 = vpop.eup %7464  ;;  %v9246_v46 = vadd.f32 1.0, %v7463_v38 }
  0xc7   :  { %16813 = vst [vmem:[#allocation15_spill] sm:$0xff] %v9219_v16  ;;  %v7467_v44 = vpop.eup %7466  ;;  %v9248_v49 = vadd.f32 1.0, %v7465_v41  ;;  %7468 = vpow2.f32 %v6907_v39 }
  0xc8   :  { %v9221_v20 = vpop.f32.mrf.mxu0  ;;  %v9250_v51 = vadd.f32 1.0, %v7467_v44  ;;  %7470 = vrcp.f32 %v9246_v46  ;;  %vm567_vm4 = vweird.f32 %v9246_v46 }
  0xc9   :  { %7472 = vrcp.f32 %v9248_v49  ;;  %v9289_v43 = vpop.permute.xlu2 %213  ;;  %vm552_vm6 = vweird.f32 %v9248_v49 }
  0xca   :  { %v9224_v28 = vpop.f32.mrf.mxu1  ;;  %7474 = vrcp.f32 %v9250_v51  ;;  %16822 = vst [vmem:[#allocation24_spill] sm:$0xff] %v9289_v43  ;;  %vm582_vm11 = vweird.f32 %v9250_v51 }
  0xcb   :  { %6970 = vmatmul.msk.f32.gmra.mxu0 %vm251_vm1, %v8941_v47  ;;  %7015 = vmatmul.msk.f32.gmra.mxu2 %vm251_vm1, %v8941_v47  ;;  %7476 = vpow2.f32 %v6908_v54 }
  0xcc   :  { %7478 = vpow2.f32 %v6910_v32 }
  0xcd   :  { %v7469_v60 = vpop.eup %7468 }
  0xce   :  { %v9230_v29 = vpop.f32.mrf.mxu2  ;;  %v9263_v7 = vpop.eup %7470  ;;  %v9265_v9 = vadd.f32 1.0, %v7469_v60 }
  0xcf   :  { %16814 = vst [vmem:[#allocation16_spill] sm:$0xff] %v9230_v29  ;;  %v9267_v10 = vpop.eup %7472  ;;  %vm568_vm3 = vweird.f32 %v9263_v7 }
  0xd0   :  { %v348_v33 = vpop.f32.mrf.mxu0  ;;  %v9269_v14 = vpop.eup %7474  ;;  %v548_v40 = vmul.f32 %v9267_v10, %v9248_v49  ;;  %vm553_vm5 = vweird.f32 %v9267_v10  ;;  %vm9356_vm7 = vmor %vm567_vm4, %vm568_vm3  ;;  %vm597_vm14 = vweird.f32 %v9265_v9 }
  0xd1   :  { %v7477_v21 = vpop.eup %7476  ;;  %v349_v39 = vadd.f32 %v348_v33, %v9278_v31  ;;  %vm9375_vm8 = vmor %vm552_vm6, %vm553_vm5  ;;  %vm583_vm9 = vweird.f32 %v9269_v14 }
  0xd2   :  { %v9239_v47 = vpop.f32.mrf.mxu1  ;;  %v7479_v42 = vpop.eup %7478  ;;  %v9291_v44 = vadd.f32 1.0, %v7477_v21  ;;  %vm9410_vm13 = vmor %vm582_vm11, %vm583_vm9 }
  0xd3   :  { %6971 = vmatmul.msk.f32.gmra.mxu0 %vm251_vm1, %v8963_v52  ;;  %7016 = vmatmul.msk.f32.gmra.mxu2 %vm251_vm1, %v8963_v52  ;;  %v6909_v52 = vmul.f32 -1.442695, %v488_v50  ;;  %v578_v50 = vmul.f32 %v9269_v14, %v9250_v51  ;;  %v9295_v53 = vadd.f32 1.0, %v7479_v42  ;;  %v492_v32 = vadd.f32 %v9239_v47, %v349_v39 }
  0xd4   :  { %vm612_vm3 = vweird.f32 %v9291_v44 }
  0xd5   :  { %7480 = vpow2.f32 %v6909_v52  ;;  %v6913_v42 = vmul.f32 -1.442695, %v492_v32 }
  0xd6   :  { %v9252_v59 = vpop.f32.mrf.mxu2  ;;  %7482 = vpow2.f32 %v6911_v0  ;;  %v549_v0 = vsub.f32 1.0, %v548_v40 }
  0xd7   :  { %16817 = vst [vmem:[#allocation19_spill] sm:$0xff] %v9252_v59  ;;  %7484 = vrcp.f32 %v9265_v9 }
  0xd8   :  { %v351_v63 = vpop.f32.mrf.mxu0  ;;  %7486 = vrcp.f32 %v9291_v44 }
  0xd9   :  { %v352_v36 = vadd.f32 %v351_v63, %v9271_v15  ;;  %7488 = vrcp.f32 %v9295_v53 }
  0xda   :  { %v465_v56 = vpop.f32.mrf.mxu1 }
  0xdb   :  { %6972 = vmatmul.msk.f32.gmra.mxu0 %vm251_vm1, %v8985_v57  ;;  %7017 = vmatmul.msk.f32.gmra.mxu2 %vm251_vm1, %v8985_v57  ;;  %v563_v57 = vmul.f32 %v9263_v7, %v9246_v46  ;;  %v7481_v38 = vpop.eup %7480  ;;  %v493_v33 = vadd.f32 %v465_v56, %v352_v36 }
  0xdc   :  { %v7483_v41 = vpop.eup %7482  ;;  %v9299_v54 = vadd.f32 1.0, %v7481_v38  ;;  %v550_v38 = vmul.f32 %v9267_v10, %v549_v0 }
  0xdd   :  { %v564_v48 = vsub.f32 1.0, %v563_v57  ;;  %v9301_v63 = vadd.f32 1.0, %v7483_v41  ;;  %v9306_v60 = vpop.eup %7484  ;;  %v6914_v47 = vmul.f32 -1.442695, %v493_v33  ;;  %v167_v57 = vld [vmem:[%s16624_s0 + $0x10] sm:$0xf]  ;;  %v9344_v33 = vpop.permute.xlu0 %248 }
  0xde   :  { %v9276_v23 = vpop.f32.mrf.mxu2  ;;  %7490 = vrcp.f32 %v9299_v54  ;;  %7051 = vmatpush.msk.msra.mxu0 %vm300_vm0, %v167_v57  ;;  %v573_v41 = vand.u32 2147483648, %v9246_v46  ;;  %16824 = vst [vmem:[#allocation26_spill] sm:$0xff] %v9344_v33  ;;  %v9347_v0 = vadd.f32 %v9267_v10, %v550_v38  ;;  %vm598_vm15 = vweird.f32 %v9306_v60 }
  0xdf   :  { %16820 = vst [vmem:[#allocation22_spill] sm:$0xff] %v9276_v23  ;;  %v565_v56 = vmul.f32 %v9263_v7, %v564_v48  ;;  %7492 = vrcp.f32 %v9301_v63  ;;  %v571_v48 = vand.u32 2147483647, %v9246_v46  ;;  %vm9457_vm4 = vmor %vm597_vm14, %vm598_vm15  ;;  %vm627_vm5 = vweird.f32 %v9299_v54 }
  0xe0   :  { %v354_v37 = vpop.f32.mrf.mxu0  ;;  %v574_v38 = vor.u32 1.1754944e-38, %v573_v41 }
  0xe1   :  { %v355_v18 = vadd.f32 %v354_v37, %v9256_v5  ;;  %v566_v40 = vadd.f32 %v9263_v7, %v565_v56  ;;  %v586_v56 = vand.u32 2147483647, %v9250_v51  ;;  %vm572_vm10 = vcmp.eq.f32.partialorder %v571_v48, 8.507059e+37 }
  0xe2   :  { %v468_v24 = vpop.f32.mrf.mxu1 }
  0xe3   :  { %6973 = vmatmul.msk.f32.gmra.mxu0 %vm251_vm1, %v9007_v62  ;;  %7018 = vmatmul.msk.f32.gmra.mxu2 %vm251_vm1, %v9007_v62  ;;  %v494_v45 = vadd.f32 %v468_v24, %v355_v18  ;;  %v346_v62 = vadd.f32 %v9221_v20, %v9289_v43  ;;  %v579_v18 = vsub.f32 1.0, %v578_v50  ;;  %v593_v24 = vmul.f32 %v9306_v60, %v9265_v9  ;;  %v9423_v43 = vpop.permute.xlu1 %243 }
  0xe4   :  { %vm9396_vm12 = vcmp.eq.f32.partialorder %v586_v56, 8.507059e+37  ;;  %v9415_v56 = vpop.permute.xlu2 %238  ;;  %16835 = vst [vmem:[#allocation29_spill] sm:$0xff] %v9423_v43 }
  0xe5   :  { %v6915_v37 = vmul.f32 -1.442695, %v494_v45  ;;  %v491_v20 = vadd.f32 %v9224_v28, %v346_v62  ;;  %v168_v28 = vld [vmem:[%s16624_s0 + $0x14] sm:$0xf]  ;;  %v9337_v45 = vpop.eup %7486  ;;  %v580_v50 = vmul.f32 %v9269_v14, %v579_v18  ;;  %v594_v32 = vsub.f32 1.0, %v593_v24  ;;  %16834 = vst [vmem:[#allocation28_spill] sm:$0xff] %v9415_v56 }
  0xe6   :  { %v9328_v36 = vpop.f32.mrf.mxu2  ;;  %7096 = vmatpush.msk.msra.mxu2 %vm300_vm0, %v168_v28  ;;  %v9342_v62 = vpop.eup %7488 }
  0xe7   :  { %16823 = vst [vmem:[#allocation25_spill] sm:$0xff] %v9328_v36  ;;  %7494 = vpow2.f32 %v6915_v37  ;;  %v6912_v39 = vmul.f32 -1.442695, %v491_v20  ;;  %v9350_v20 = vpop.eup %7490  ;;  %v638_v46 = vmul.f32 %v9342_v62, %v9295_v53  ;;  %vm643_vm6 = vweird.f32 %v9342_v62 }
  0xe8   :  { %v9304_v52 = vpop.f32.mrf.mxu0  ;;  %7496 = vpow2.f32 %v6914_v47  ;;  %v588_v47 = vand.u32 2147483648, %v9250_v51  ;;  %v9362_v57 = vpop.eup %7492  ;;  %v623_v18 = vmul.f32 %v9350_v20, %v9299_v54  ;;  %vm628_vm9 = vweird.f32 %v9350_v20 }
  0xe9   :  { %7498 = vpow2.f32 %v6913_v42  ;;  %v570_v42 = vsel %vm9356_vm7, %v9263_v7, %v566_v40  ;;  %v603_v7 = vand.u32 2147483648, %v9265_v9  ;;  %v595_v40 = vmul.f32 %v9306_v60, %v594_v32 }
  0xea   :  { %v9311_v21 = vpop.f32.mrf.mxu1  ;;  %7500 = vpow2.f32 %v6912_v39  ;;  %v9394_v31 = vsel %vm572_vm10, %v574_v38, %v570_v42  ;;  %v589_v23 = vor.u32 1.1754944e-38, %v588_v47  ;;  %v608_v39 = vmul.f32 %v9337_v45, %v9291_v44 }
  0xeb   :  { %6974 = vmatmul.msk.f32.gmra.mxu0 %vm251_vm1, %v9029_v3  ;;  %7019 = vmatmul.msk.f32.gmra.mxu2 %vm251_vm1, %v9029_v3  ;;  %v558_v3 = vand.u32 2147483648, %v9248_v49  ;;  %v653_v51 = vmul.f32 %v9362_v57, %v9301_v63  ;;  %v639_v47 = vsub.f32 1.0, %v638_v46  ;;  %v9421_v29 = vor.u32 1.1754944e-38, %v603_v7  ;;  %v9436_v7 = vpop.permute.xlu0 %233 }
  0xec   :  { %v9429_v22 = vadd.f32 %v9306_v60, %v595_v40  ;;  %v624_v46 = vsub.f32 1.0, %v623_v18  ;;  %16836 = vst [vmem:[#allocation30_spill] sm:$0xff] %v9436_v7  ;;  %v609_v17 = vsub.f32 1.0, %v608_v39  ;;  %vm642_vm7 = vweird.f32 %v9295_v53 }
  0xed   :  { %v9364_v28 = vor.u32 1.1754944e-38, %v558_v3  ;;  %v7495_v8 = vpop.eup %7494  ;;  %v581_v3 = vadd.f32 %v9269_v14, %v580_v50  ;;  %v633_v50 = vand.u32 2147483648, %v9299_v54  ;;  %vm613_vm10 = vweird.f32 %v9337_v45  ;;  %vm9509_vm14 = vmor %vm642_vm7, %vm643_vm6 }
  0xee   :  { %v7497_v41 = vpop.eup %7496  ;;  %v9404_v48 = vadd.f32 1.0, %v7495_v8  ;;  %v9406_v32 = vpop.f32.mrf.mxu2  ;;  %v601_v8 = vand.u32 2147483647, %v9265_v9  ;;  %v625_v39 = vmul.f32 %v9350_v20, %v624_v46  ;;  %vm9529_vm15 = vmor %vm612_vm3, %vm613_vm10  ;;  %vm657_vm6 = vweird.f32 %v9301_v63 }
  0xef   :  { %v7499_v15 = vpop.eup %7498  ;;  %16831 = vst [vmem:[#allocation27_spill] sm:$0xff] %v9406_v32  ;;  %v585_v38 = vsel %vm9410_vm13, %v9269_v14, %v581_v3  ;;  %v9426_v5 = vadd.f32 1.0, %v7497_v41  ;;  %v654_v41 = vsub.f32 1.0, %v653_v51  ;;  %v610_v51 = vmul.f32 %v9337_v45, %v609_v17  ;;  %vm9539_vm7 = vmor %vm627_vm5, %vm628_vm9 }
  0xf0   :  { %v360_v37 = vpop.f32.mrf.mxu0  ;;  %v7501_v32 = vpop.eup %7500  ;;  %v9432_v42 = vadd.f32 1.0, %v7499_v15  ;;  %7502 = vrcp.f32 %v9404_v48  ;;  %v9442_v40 = vsel %vm9396_vm12, %v589_v23, %v585_v38  ;;  %v640_v15 = vmul.f32 %v9342_v62, %v639_v47 }
  0xf1   :  { %v361_v14 = vadd.f32 %v360_v37, %v9415_v56  ;;  %v9445_v18 = vadd.f32 1.0, %v7501_v32  ;;  %7504 = vrcp.f32 %v9426_v5  ;;  %v655_v32 = vmul.f32 %v9362_v57, %v654_v41 }
  0xf2   :  { %v9366_v24 = vpop.f32.mrf.mxu1  ;;  %7506 = vrcp.f32 %v9432_v42  ;;  %v631_v47 = vand.u32 2147483647, %v9299_v54  ;;  %v16840_v41 = vand.u32 2147483647, %v9248_v49  ;;  %vm9494_vm12 = vcmp.eq.f32.partialorder %v601_v8, 8.507059e+37 }
  0xf3   :  { %6975 = vmatmul.msk.f32.gmra.mxu0 %vm251_vm1, %v9059_v13  ;;  %7020 = vmatmul.msk.f32.gmra.mxu2 %vm251_vm1, %v9059_v13  ;;  %v496_v9 = vadd.f32 %v9366_v24, %v361_v14  ;;  %v648_v24 = vand.u32 2147483648, %v9295_v53  ;;  %vm658_vm13 = vweird.f32 %v9362_v57 }
  0xf4   :  { %vm9489_vm11 = vcmp.eq.f32.partialorder %v16840_v41, 8.507059e+37  ;;  %v656_v41 = vadd.f32 %v9362_v57, %v655_v32  ;;  %vm9547_vm3 = vmor %vm657_vm6, %vm658_vm13  ;;  %vm632_vm5 = vcmp.eq.f32.partialorder %v631_v47, 8.507059e+37  ;;  %vm702_vm6 = vweird.f32 %v9426_v5 }
  0xf6   :  { %v9479_v46 = vpop.eup %7502  ;;  %v9483_v17 = vpop.f32.mrf.mxu2 }
  0xf7   :  { %16839 = vst [vmem:[#allocation31_spill] sm:$0xff] %v9483_v17  ;;  %v713_v32 = vmul.f32 %v9479_v46, %v9404_v48 }
  0xf8   :  { %v363_v16 = vpop.f32.mrf.mxu0 }
  0xf9   :  { %v364_v3 = vadd.f32 %v363_v16, %v9423_v43  ;;  %v358_v16 = vadd.f32 %v9304_v52, %v9436_v7  ;;  %v626_v52 = vadd.f32 %v9350_v20, %v625_v39  ;;  %v663_v43 = vand.u32 2147483648, %v9301_v63 }
  0xfa   :  { %v477_v36 = vpop.f32.mrf.mxu1  ;;  %v714_v7 = vsub.f32 1.0, %v713_v32 }
  0xfb   :  { %v497_v37 = vadd.f32 %v477_v36, %v364_v3  ;;  %6976 = vmatmul.msk.f32.gmra.mxu0 %vm251_vm1, %v9081_v19  ;;  %7021 = vmatmul.msk.f32.gmra.mxu2 %vm251_vm1, %v9081_v19  ;;  %v495_v38 = vadd.f32 %v9311_v21, %v358_v16  ;;  %v641_v3 = vadd.f32 %v9342_v62, %v640_v15  ;;  %v9500_v36 = vpop.eup %7504  ;;  %v664_v56 = vor.u32 1.1754944e-38, %v663_v43 }
  0xfc   :  { %v9514_v39 = vpop.eup %7506  ;;  %v630_v54 = vsel %vm9539_vm7, %v9350_v20, %v626_v52  ;;  %v16853_v52 = vand.u32 2147483648, %v9291_v44  ;;  %v16855_v43 = vsel %vm9375_vm8, %v9267_v10, %v9347_v0  ;;  %v9593_v10 = vld [vmem:[%s16625_s1] sm:$0xff]  ;;  %vm718_vm8 = vweird.f32 %v9479_v46 }
  0xfd   :  { %7508 = vtanh.f32 %v497_v37  ;;  %v646_v37 = vand.u32 2147483647, %v9295_v53  ;;  %v645_v53 = vsel %vm9509_vm14, %v9342_v62, %v641_v3  ;;  %v634_v3 = vor.u32 1.1754944e-38, %v633_v50 }
  0xfe   :  { %7510 = vrcp.f32 %v9445_v18  ;;  %v660_v50 = vsel %vm9547_vm3, %v9362_v57, %v656_v41  ;;  %v683_v55 = vmul.f32 %v9514_v39, %v9432_v42  ;;  %vm687_vm14 = vweird.f32 %v9432_v42 }
  0xff   :  { %7512 = vtanh.f32 %v496_v9  ;;  %v611_v9 = vadd.f32 %v9337_v45, %v610_v51  ;;  %vm647_vm10 = vcmp.eq.f32.partialorder %v646_v37, 8.507059e+37  ;;  %v635_v20 = vsel %vm632_vm5, %v634_v3, %v630_v54  ;;  %v9580_v51 = vpop.f32.mrf.mxu2 }
 0x100   :  { %v366_v14 = vpop.f32.mrf.mxu0  ;;  %7514 = vtanh.f32 %v495_v38  ;;  %v732_v0 = vmul.f32 0.0, %v635_v20  ;;  %v721_v54 = vand.u32 2147483647, %v9404_v48  ;;  %v706_v20 = vand.u32 2147483647, %v9426_v5 }
 0x101   :  { %v367_v15 = vadd.f32 %v366_v14, %v9344_v33  ;;  %v619_v33 = vor.u32 1.1754944e-38, %v16853_v52 }
 0x102   :  { %v480_v49 = vpop.f32.mrf.mxu1  ;;  %vm722_vm3 = vcmp.eq.f32.partialorder %v721_v54, 8.507059e+37  ;;  %v9722_v54 = vld [vmem:[%s16626_s2 + $0x8] sm:$0xff] }
 0x103   :  { %v498_v14 = vadd.f32 %v480_v49, %v367_v15  ;;  %6977 = vmatmul.msk.f32.gmra.mxu0 %vm251_vm1, %v9103_v25  ;;  %7022 = vmatmul.msk.f32.gmra.mxu2 %vm251_vm1, %v9103_v25  ;;  %v7509_v38 = vpop.eup %7508  ;;  %v661_v15 = vand.u32 2147483647, %v9301_v63  ;;  %v649_v49 = vor.u32 1.1754944e-38, %v648_v24  ;;  %v698_v63 = vmul.f32 %v9500_v36, %v9426_v5 }
 0x104   :  { %v9543_v8 = vpop.eup %7510  ;;  %v737_v37 = vmul.f32 %v7509_v38, %v9442_v40  ;;  %v560_v40 = vsel %vm9489_vm11, %v9364_v28, %v16855_v43  ;;  %vm703_vm11 = vweird.f32 %v9500_v36 }
 0x105   :  { %7516 = vtanh.f32 %v498_v14  ;;  %v650_v24 = vsel %vm647_vm10, %v649_v49, %v645_v53  ;;  %v615_v14 = vsel %vm9529_vm15, %v9337_v45, %v611_v9  ;;  %v7513_v17 = vpop.eup %7512  ;;  %vm662_vm9 = vcmp.eq.f32.partialorder %v661_v15, 8.507059e+37  ;;  %vm9647_vm7 = vmor %vm702_vm6, %vm703_vm11 }
 0x106   :  { %v668_v57 = vmul.f32 %v9543_v8, %v9445_v18  ;;  %v7515_v47 = vpop.eup %7514  ;;  %v665_v41 = vsel %vm662_vm9, %v664_v56, %v660_v50  ;;  %v699_v53 = vsub.f32 1.0, %v698_v63  ;;  %v733_v45 = vmul.f32 0.0, %v650_v24  ;;  %v9738_v24 = vld [vmem:[%s16626_s2 + $0x10] sm:$0xff] }
 0x107   :  { %v16854_v9 = vand.u32 2147483647, %v9291_v44  ;;  %v736_v32 = vmul.f32 %v7513_v17, %v9394_v31  ;;  %v16856_v56 = vsel %vm9457_vm4, %v9306_v60, %v9429_v22  ;;  %v715_v31 = vmul.f32 %v9479_v46, %v714_v7 }
 0x108   :  { %v605_v59 = vsel %vm9494_vm12, %v9421_v29, %v16856_v56  ;;  %v9600_v22 = vadd.f32 %v737_v37, %v733_v45  ;;  %v684_v60 = vsub.f32 1.0, %v683_v55  ;;  %v735_v29 = vmul.f32 %v7515_v47, %v560_v40  ;;  %v9767_v47 = vld [vmem:[%s16625_s1 + $0x30] sm:$0xff] }
 0x109   :  { %vm617_vm13 = vcmp.eq.f32.partialorder %v16854_v9, 8.507059e+37  ;;  %v734_v23 = vmul.f32 0.0, %v665_v41  ;;  %v669_v17 = vsub.f32 1.0, %v668_v57  ;;  %v700_v21 = vmul.f32 %v9500_v36, %v699_v53 }
 0x10a   :  { %v620_v44 = vsel %vm617_vm13, %v619_v33, %v615_v14  ;;  %v9605_v15 = vadd.f32 %v736_v32, %v732_v0  ;;  %v716_v62 = vadd.f32 %v9479_v46, %v715_v31  ;;  %7518 = vtanh.f32 %v9600_v22  ;;  %v9643_v33 = vpop.f32.mrf.mxu2 }
 0x10b   :  { %v7517_v38 = vpop.eup %7516  ;;  %7052 = vmatmul.msk.f32.vlgmr.msra.gmra.mxu0 %vm251_vm1, %v9593_v10  ;;  %7097 = vmatmul.msk.f32.vlgmr.msra.gmra.mxu2 %vm251_vm1, %v9593_v10  ;;  %v731_v49 = vmul.f32 0.0, %v620_v44  ;;  %v685_v55 = vmul.f32 %v9514_v39, %v684_v60  ;;  %v723_v7 = vand.u32 2147483648, %v9404_v48  ;;  %v670_v3 = vmul.f32 %v9543_v8, %v669_v17  ;;  %v9691_v17 = vpop.f32.mrf.mxu0 }
 0x10c   :  { %v738_v28 = vmul.f32 %v7517_v38, %v605_v59  ;;  %vm717_vm4 = vweird.f32 %v9404_v48  ;;  %v701_v50 = vadd.f32 %v9500_v36, %v700_v21  ;;  %v708_v14 = vand.u32 2147483648, %v9426_v5  ;;  %v9631_v48 = vld [vmem:[%s16625_s1 + $0x8] sm:$0xff] }
 0x10d   :  { %v9614_v63 = vadd.f32 %v735_v29, %v731_v49  ;;  %vm9620_vm12 = vmor %vm717_vm4, %vm718_vm8  ;;  %vm688_vm15 = vweird.f32 %v9514_v39  ;;  %v686_v52 = vadd.f32 %v9514_v39, %v685_v55  ;;  %v724_v57 = vor.u32 1.1754944e-38, %v723_v7  ;;  %v9709_v55 = vld [vmem:[%s16625_s1 + $0x18] sm:$0xff] }
 0x10e   :  { %v9603_v16 = vadd.f32 %v738_v28, %v734_v23  ;;  %v720_v37 = vsel %vm9620_vm12, %v9479_v46, %v716_v62  ;;  %v691_v41 = vand.u32 2147483647, %v9432_v42  ;;  %v693_v53 = vand.u32 2147483648, %v9432_v42  ;;  %vm9663_vm5 = vmor %vm687_vm14, %vm688_vm15  ;;  %v9702_v62 = vld [vmem:[%s16626_s2] sm:$0xff] }
 0x10f   :  { %v705_v5 = vsel %vm9647_vm7, %v9500_v36, %v701_v50  ;;  %v671_v45 = vadd.f32 %v9543_v8, %v670_v3  ;;  %vm673_vm10 = vweird.f32 %v9543_v8  ;;  %v725_v43 = vsel %vm722_vm3, %v724_v57, %v720_v37  ;;  %v9729_v50 = vld [vmem:[%s16625_s1 + $0x20] sm:$0xff] }
 0x110   :  { %7520 = vtanh.f32 %v9603_v16  ;;  %v7519_v46 = vpop.eup %7518  ;;  %v709_v40 = vor.u32 1.1754944e-38, %v708_v14  ;;  %vm672_vm9 = vweird.f32 %v9445_v18  ;;  %v678_v56 = vand.u32 2147483648, %v9445_v18 }
 0x111   :  { %7522 = vtanh.f32 %v9605_v15  ;;  %vm707_vm13 = vcmp.eq.f32.partialorder %v706_v20, 8.507059e+37  ;;  %v690_v59 = vsel %vm9663_vm5, %v9514_v39, %v686_v52  ;;  %v676_v44 = vand.u32 2147483647, %v9445_v18  ;;  %vm674_vm8 = vmor %vm672_vm9, %vm673_vm10  ;;  %v9683_v18 = vld [vmem:[%s16625_s1 + $0x10] sm:$0xff]  ;;  %v9749_v20 = vld [vmem:[%s16625_s1 + $0x28] sm:$0xff] }
 0x112   :  { %7524 = vtanh.f32 %v9614_v63  ;;  %v710_v31 = vsel %vm707_vm13, %v709_v40, %v705_v5  ;;  %v694_v42 = vor.u32 1.1754944e-38, %v693_v53  ;;  %vm692_vm4 = vcmp.eq.f32.partialorder %v691_v41, 8.507059e+37  ;;  %v9696_v49 = vpop.f32.mrf.mxu2  ;;  %v9758_v52 = vld [vmem:[%s16626_s2 + $0x18] sm:$0xff]  ;;  %v9778_v53 = vld [vmem:[%s16626_s2 + $0x20] sm:$0xff] }
 0x113   :  { %7053 = vmatmul.msk.f32.gmra.mxu0 %vm251_vm1, %v9631_v48  ;;  %7098 = vmatmul.msk.f32.gmra.mxu2 %vm251_vm1, %v9631_v48  ;;  %v9676_v60 = vmul.f32 %v7519_v46, %v710_v31  ;;  %v675_v0 = vsel %vm674_vm8, %v9543_v8, %v671_v45  ;;  %v679_v23 = vor.u32 1.1754944e-38, %v678_v56  ;;  %vm677_vm11 = vcmp.eq.f32.partialorder %v676_v44, 8.507059e+37  ;;  %16867 = vst [vmem:[#allocation36_spill] sm:$0xff] %v9696_v49  ;;  %v9715_v7 = vpop.f32.mrf.mxu0  ;;  %v9785_v46 = vld [vmem:[%s16625_s1 + $0x38] sm:$0xff]  ;;  %v9818_v56 = vld [vmem:[%s16626_s2 + $0x30] sm:$0xff] }
 0x114   :  { %v695_v28 = vsel %vm692_vm4, %v694_v42, %v690_v59  ;;  %v9825_v59 = vld [vmem:[%s16625_s1 + $0x48] sm:$0xff]  ;;  %v9834_v44 = vld [vmem:[%s16626_s2 + $0x38] sm:$0xff]  ;;  %v9845_v42 = vld [vmem:[%s16625_s1 + $0x50] sm:$0xff] }
 0x115   :  { %16864 = vst [vmem:[#allocation33_spill] sm:$0xff] %v9676_v60  ;;  %v680_v8 = vsel %vm677_vm11, %v679_v23, %v675_v0  ;;  %v9854_v0 = vld [vmem:[%s16626_s2 + $0x40] sm:$0xff] }
 0x116   :  { %v7521_v9 = vpop.eup %7520 }
 0x117   :  { %v9669_v36 = vmul.f32 %v7521_v9, %v725_v43  ;;  %v7523_v38 = vpop.eup %7522  ;;  %v9798_v9 = vld [vmem:[%s16626_s2 + $0x28] sm:$0xff]  ;;  %v9805_v43 = vld [vmem:[%s16625_s1 + $0x40] sm:$0xff] }
 0x118   :  { %v7525_v29 = vpop.eup %7524  ;;  %v9687_v39 = vmul.f32 %v7523_v38, %v695_v28  ;;  %v9863_v28 = vld [vmem:[%s16625_s1 + $0x58] sm:$0xff] }
 0x119   :  { %16863 = vst [vmem:[#allocation32_spill] sm:$0xff] %v9669_v36  ;;  %835 = vmatpush.msra.mxu3 %v9669_v36  ;;  %v9694_v21 = vmul.f32 %v7525_v29, %v680_v8  ;;  %v9874_v8 = vld [vmem:[%s16626_s2 + $0x48] sm:$0xff] }
 0x11a   :  { %16865 = vst [vmem:[#allocation34_spill] sm:$0xff] %v9687_v39  ;;  %v9717_v3 = vpop.f32.mrf.mxu2 }
 0x11b   :  { %836 = vmatpush.msra.mxu3 %v9676_v60  ;;  %7054 = vmatmul.msk.f32.gmra.mxu0 %vm251_vm1, %v9683_v18  ;;  %16866 = vst [vmem:[#allocation35_spill] sm:$0xff] %v9694_v21  ;;  %v9742_v14 = vpop.f32.mrf.mxu0 }
 0x11c   :  { %7099 = vmatmul.msk.f32.gmra.mxu2 %vm251_vm1, %v9683_v18  ;;  %16868 = vst [vmem:[#allocation37_spill] sm:$0xff] %v9717_v3 }
 0x11d   :  { %837 = vmatpush.msra.mxu3 %v9687_v39  ;;  %16869 = vst [vmem:[#allocation38_spill] sm:$0xff] %v9742_v14 }
 0x11f   :  { %838 = vmatpush.msra.mxu3 %v9694_v21 }
 0x120   :  { %6933 = vmatmul.msk.f32.vlgmr.msra.gmra.mxu3 %vm369_vm2, %v9702_v62 }
 0x122   :  { %v9744_v37 = vpop.f32.mrf.mxu2 }
 0x123   :  { %7055 = vmatmul.msk.f32.gmra.mxu0 %vm251_vm1, %v9709_v55  ;;  %16870 = vst [vmem:[#allocation39_spill] sm:$0xff] %v9744_v37  ;;  %v9762_v57 = vpop.f32.mrf.mxu0 }
 0x124   :  { %7100 = vmatmul.msk.f32.gmra.mxu2 %vm251_vm1, %v9709_v55  ;;  %16871 = vst [vmem:[#allocation40_spill] sm:$0xff] %v9762_v57 }
 0x128   :  { %6934 = vmatmul.msk.f32.gmra.mxu3 %vm369_vm2, %v9722_v54 }
 0x12a   :  { %v9771_v41 = vpop.f32.mrf.mxu2 }
 0x12b   :  { %7056 = vmatmul.msk.f32.gmra.mxu0 %vm251_vm1, %v9729_v50  ;;  %16872 = vst [vmem:[#allocation41_spill] sm:$0xff] %v9771_v41  ;;  %v9791_v5 = vpop.f32.mrf.mxu0  ;;  %v170_v41 = vld [vmem:[%s16624_s0 + $0x1c] sm:$0xf] }
 0x12c   :  { %7101 = vmatmul.msk.f32.gmra.mxu2 %vm251_vm1, %v9729_v50 }
 0x12d   :  { %7186 = vmatpush.msk.msrb.mxu2 %vm300_vm0, %v170_v41  ;;  %v9903_v41 = vld [vmem:[%s16626_s2 + $0x50] sm:$0xff] }
 0x130   :  { %6935 = vmatmul.msk.f32.gmra.mxu3 %vm369_vm2, %v9738_v24 }
 0x132   :  { %v9793_v45 = vpop.f32.mrf.mxu2 }
 0x133   :  { %7057 = vmatmul.msk.f32.gmra.mxu0 %vm251_vm1, %v9749_v20  ;;  %16873 = vst [vmem:[#allocation42_spill] sm:$0xff] %v9793_v45  ;;  %v9811_v40 = vpop.f32.mrf.mxu0 }
 0x134   :  { %7102 = vmatmul.msk.f32.gmra.mxu2 %vm251_vm1, %v9749_v20  ;;  %16874 = vst [vmem:[#allocation43_spill] sm:$0xff] %v9811_v40 }
 0x138   :  { %6936 = vmatmul.msk.f32.gmra.mxu3 %vm369_vm2, %v9758_v52 }
 0x13a   :  { %v9813_v32 = vpop.f32.mrf.mxu2 }
 0x13b   :  { %7058 = vmatmul.msk.f32.gmra.mxu0 %vm251_vm1, %v9767_v47  ;;  %16875 = vst [vmem:[#allocation44_spill] sm:$0xff] %v9813_v32  ;;  %v9838_v38 = vpop.f32.mrf.mxu0  ;;  %v16880_v32 = vmov 0.0  }
 0x13c   :  { %7103 = vmatmul.msk.f32.gmra.mxu2 %vm251_vm1, %v9767_v47  ;;  %16876 = vst [vmem:[#allocation45_spill] sm:$0xff] %v9838_v38  ;;  %v16920_v38 = vld [vmem:[#allocation22_spill] sm:$0xff] }
 0x140   :  { %6937 = vmatmul.msk.f32.gmra.mxu3 %vm369_vm2, %v9778_v53 }
 0x142   :  { %v9840_v31 = vpop.f32.mrf.mxu2 }
 0x143   :  { %7059 = vmatmul.msk.f32.gmra.mxu0 %vm251_vm1, %v9785_v46  ;;  %16877 = vst [vmem:[#allocation46_spill] sm:$0xff] %v9840_v31  ;;  %v9858_v29 = vpop.f32.mrf.mxu0  ;;  %v169_v31 = vld [vmem:[%s16624_s0 + $0x18] sm:$0xf] }
 0x144   :  { %7104 = vmatmul.msk.f32.gmra.mxu2 %vm251_vm1, %v9785_v46  ;;  %16878 = vst [vmem:[#allocation47_spill] sm:$0xff] %v9858_v29  ;;  %7141 = vmatpush.msk.msrb.mxu0 %vm300_vm0, %v169_v31 }
 0x146   :  { %3888 = vmatpush.msra.mxu0 %v16880_v32 }
 0x148   :  { %6938 = vmatmul.msk.f32.gmra.mxu3 %vm369_vm2, %v9798_v9 }
 0x14a   :  { %v9867_v23 = vpop.f32.mrf.mxu2 }
 0x14b   :  { %7060 = vmatmul.msk.f32.gmra.mxu0 %vm251_vm1, %v9805_v43  ;;  %16879 = vst [vmem:[#allocation48_spill] sm:$0xff] %v9867_v23  ;;  %v9889_v23 = vld [vmem:[%s16625_s1 + $0x60] sm:$0xff]  ;;  %v9896_v37 = vpop.f32.mrf.mxu0 }
 0x14c   :  { %7105 = vmatmul.msk.f32.gmra.mxu2 %vm251_vm1, %v9805_v43  ;;  %16881 = vst [vmem:[#allocation49_spill] sm:$0xff] %v9896_v37  ;;  %v16922_v37 = vld [vmem:[#allocation19_spill] sm:$0xff] }
 0x150   :  { %6939 = vmatmul.msk.f32.gmra.mxu3 %vm369_vm2, %v9818_v56 }
 0x152   :  { %v9898_v45 = vpop.f32.mrf.mxu2 }
 0x153   :  { %7061 = vmatmul.msk.f32.gmra.mxu0 %vm251_vm1, %v9825_v59  ;;  %16882 = vst [vmem:[#allocation50_spill] sm:$0xff] %v9898_v45  ;;  %v9911_v31 = vpop.f32.mrf.mxu0  ;;  %v9918_v45 = vld [vmem:[%s16626_s2 + $0x58] sm:$0xff] }
 0x154   :  { %7106 = vmatmul.msk.f32.gmra.mxu2 %vm251_vm1, %v9825_v59  ;;  %16883 = vst [vmem:[#allocation51_spill] sm:$0xff] %v9911_v31  ;;  %v16919_v31 = vld [vmem:[#allocation21_spill] sm:$0xff] }
 0x158   :  { %6940 = vmatmul.msk.f32.gmra.mxu3 %vm369_vm2, %v9834_v44 }
 0x15a   :  { %v9913_v32 = vpop.f32.mrf.mxu2 }
 0x15b   :  { %7062 = vmatmul.msk.f32.gmra.mxu0 %vm251_vm1, %v9845_v42  ;;  %16884 = vst [vmem:[#allocation52_spill] sm:$0xff] %v9913_v32  ;;  %v9933_v32 = vpop.f32.mrf.mxu0 }
 0x15c   :  { %7107 = vmatmul.msk.f32.gmra.mxu2 %vm251_vm1, %v9845_v42  ;;  %16885 = vst [vmem:[#allocation53_spill] sm:$0xff] %v9933_v32 }
 0x160   :  { %6941 = vmatmul.msk.f32.gmra.mxu3 %vm369_vm2, %v9854_v0 }
 0x162   :  { %v9935_v3 = vpop.f32.mrf.mxu2 }
 0x163   :  { %7063 = vmatmul.msk.f32.gmra.mxu0 %vm251_vm1, %v9863_v28  ;;  %16886 = vst [vmem:[#allocation54_spill] sm:$0xff] %v9935_v3  ;;  %v9948_v49 = vpop.f32.mrf.mxu0 }
 0x164   :  { %7108 = vmatmul.msk.f32.gmra.mxu2 %vm251_vm1, %v9863_v28  ;;  %16887 = vst [vmem:[#allocation55_spill] sm:$0xff] %v9948_v49 }
 0x168   :  { %6942 = vmatmul.msk.f32.gmra.mxu3 %vm369_vm2, %v9874_v8 }
 0x16a   :  { %v9952_v3 = vpop.f32.mrf.mxu2 }
 0x16b   :  { %7064 = vmatmul.msk.f32.gmra.mxu0 %vm251_vm1, %v9889_v23  ;;  %16888 = vst [vmem:[#allocation56_spill] sm:$0xff] %v9952_v3  ;;  %v9967_v36 = vpop.f32.mrf.mxu0 }
 0x16c   :  { %7109 = vmatmul.msk.f32.gmra.mxu2 %vm251_vm1, %v9889_v23  ;;  %16889 = vst [vmem:[#allocation57_spill] sm:$0xff] %v9967_v36 }
 0x170   :  { %6943 = vmatmul.msk.f32.gmra.mxu3 %vm369_vm2, %v9903_v41 }
 0x172   :  { %v9969_v3 = vpop.f32.mrf.mxu2 }
 0x173   :  { %7065 = vmatmul.msk.f32.gmra.mxu0 %vm251_vm1, %v9059_v13  ;;  %16890 = vst [vmem:[#allocation58_spill] sm:$0xff] %v9969_v3 }
 0x174   :  { %7110 = vmatmul.msk.f32.gmra.mxu2 %vm251_vm1, %v9059_v13  ;;  %v9929_v13 = vld [vmem:[%s16626_s2 + $0x60] sm:$0xff] }
 0x178   :  { %6944 = vmatmul.msk.f32.gmra.mxu3 %vm369_vm2, %v9918_v45 }
 0x17a   :  { %v9979_v60 = vpop.f32.mrf.mxu2 }
 0x17b   :  { %7066 = vmatmul.msk.f32.gmra.mxu0 %vm251_vm1, %v9081_v19  ;;  %16892 = vst [vmem:[#allocation60_spill] sm:$0xff] %v9979_v60 }
 0x17c   :  { %7111 = vmatmul.msk.f32.gmra.mxu2 %vm251_vm1, %v9081_v19  ;;  %v9944_v19 = vld [vmem:[%s16626_s2 + $0x68] sm:$0xff] }
 0x180   :  { %6945 = vmatmul.msk.f32.gmra.mxu3 %vm369_vm2, %v9929_v13 }
 0x183   :  { %7067 = vmatmul.msk.f32.gmra.mxu0 %vm251_vm1, %v9103_v25 }
 0x184   :  { %7112 = vmatmul.msk.f32.gmra.mxu2 %vm251_vm1, %v9103_v25  ;;  %v9959_v25 = vld [vmem:[%s16626_s2 + $0x70] sm:$0xff] }
 0x188   :  { %6946 = vmatmul.msk.f32.gmra.mxu3 %vm369_vm2, %v9944_v19 }
 0x18b   :  { %7142 = vmatmul.msk.f32.vlgmr.msrb.gmra.mxu0 %vm251_vm1, %v9593_v10 }
 0x18c   :  { %7187 = vmatmul.msk.f32.vlgmr.msrb.gmra.mxu2 %vm251_vm1, %v9593_v10  ;;  %v9977_v10 = vpop.f32.mrf.mxu0 }
 0x18d   :  { %16891 = vst [vmem:[#allocation59_spill] sm:$0xff] %v9977_v10 }
 0x190   :  { %6947 = vmatmul.msk.f32.gmra.mxu3 %vm369_vm2, %v9959_v25 }
 0x193   :  { %7143 = vmatmul.msk.f32.gmra.mxu0 %vm251_vm1, %v9631_v48 }
 0x194   :  { %7188 = vmatmul.msk.f32.gmra.mxu2 %vm251_vm1, %v9631_v48  ;;  %v9985_v48 = vpop.f32.mrf.mxu0 }
 0x195   :  { %16893 = vst [vmem:[#allocation61_spill] sm:$0xff] %v9985_v48 }
 0x198   :  { %6948 = vmatmul.msk.f32.gmra.mxu3 %vm369_vm2, %v9108_v26  ;;  %v9987_v26 = vpop.f32.mrf.mxu2 }
 0x199   :  { %16894 = vst [vmem:[#allocation62_spill] sm:$0xff] %v9987_v26 }
 0x19b   :  { %7144 = vmatmul.msk.f32.gmra.mxu0 %vm251_vm1, %v9683_v18 }
 0x19c   :  { %7189 = vmatmul.msk.f32.gmra.mxu2 %vm251_vm1, %v9683_v18  ;;  %v9993_v18 = vpop.f32.mrf.mxu0 }
 0x19d   :  { %16895 = vst [vmem:[#allocation63_spill] sm:$0xff] %v9993_v18 }
 0x1a0   :  { %v9997_v21 = vpop.f32.mrf.mxu2 }
 0x1a1   :  { %16896 = vst [vmem:[#allocation64_spill] sm:$0xff] %v9997_v21 }
 0x1a3   :  { %v840_v39 = vpop.f32.mrf.mxu3  ;;  %7145 = vmatmul.msk.f32.gmra.mxu0 %vm251_vm1, %v9709_v55 }
 0x1a4   :  { %7190 = vmatmul.msk.f32.gmra.mxu2 %vm251_vm1, %v9709_v55 }
 0x1a8   :  { %v10009_v26 = vpop.f32.mrf.mxu2 }
 0x1a9   :  { %16898 = vst [vmem:[#allocation66_spill] sm:$0xff] %v10009_v26 }
 0x1ab   :  { %v843_v3 = vpop.f32.mrf.mxu3  ;;  %7146 = vmatmul.msk.f32.gmra.mxu0 %vm251_vm1, %v9729_v50 }
 0x1ac   :  { %7191 = vmatmul.msk.f32.gmra.mxu2 %vm251_vm1, %v9729_v50  ;;  %v10007_v50 = vpop.f32.mrf.mxu0 }
 0x1ad   :  { %16897 = vst [vmem:[#allocation65_spill] sm:$0xff] %v10007_v50 }
 0x1b0   :  { %v10017_v21 = vpop.f32.mrf.mxu2 }
 0x1b1   :  { %16900 = vst [vmem:[#allocation68_spill] sm:$0xff] %v10017_v21  ;;  %v788_v21 = vadd.f32 %v9186_v58, %v9232_v30  ;;  %v791_v58 = vadd.f32 %v9194_v61, %v9235_v35 }
 0x1b3   :  { %v846_v60 = vpop.f32.mrf.mxu3  ;;  %7147 = vmatmul.msk.f32.gmra.mxu0 %vm251_vm1, %v9749_v20 }
 0x1b4   :  { %7192 = vmatmul.msk.f32.gmra.mxu2 %vm251_vm1, %v9749_v20  ;;  %v10015_v20 = vpop.f32.mrf.mxu0 }
 0x1b5   :  { %16899 = vst [vmem:[#allocation67_spill] sm:$0xff] %v10015_v20 }
 0x1b8   :  { %v10025_v26 = vpop.f32.mrf.mxu2 }
 0x1b9   :  { %16902 = vst [vmem:[#allocation70_spill] sm:$0xff] %v10025_v26 }
 0x1bb   :  { %v10001_v55 = vpop.f32.mrf.mxu3  ;;  %7148 = vmatmul.msk.f32.gmra.mxu0 %vm251_vm1, %v9767_v47 }
 0x1bc   :  { %7193 = vmatmul.msk.f32.gmra.mxu2 %vm251_vm1, %v9767_v47  ;;  %v10023_v47 = vpop.f32.mrf.mxu0 }
 0x1bd   :  { %16901 = vst [vmem:[#allocation69_spill] sm:$0xff] %v10023_v47 }
 0x1c3   :  { %v852_v18 = vpop.f32.mrf.mxu3  ;;  %7149 = vmatmul.msk.f32.gmra.mxu0 %vm251_vm1, %v9785_v46 }
 0x1c4   :  { %7194 = vmatmul.msk.f32.gmra.mxu2 %vm251_vm1, %v9785_v46  ;;  %v776_v46 = vadd.f32 %v9133_v34, %v9202_v27  ;;  %v892_v47 = vadd.f32 %v852_v18, %v788_v21  ;;  %v10037_v10 = vpop.f32.mrf.mxu0 }
 0x1c5   :  { %16903 = vst [vmem:[#allocation71_spill] sm:$0xff] %v10037_v10 }
 0x1c6   :  { %v888_v20 = vadd.f32 %v840_v39, %v776_v46  ;;  %v6953_v34 = vmul.f32 -1.442695, %v892_v47 }
 0x1c8   :  { %v6949_v49 = vmul.f32 -1.442695, %v888_v20 }
 0x1ca   :  { %7526 = vpow2.f32 %v6949_v49 }
 0x1cb   :  { %v855_v48 = vpop.f32.mrf.mxu3  ;;  %7150 = vmatmul.msk.f32.gmra.mxu0 %vm251_vm1, %v9805_v43  ;;  %7528 = vpow2.f32 %v6953_v34 }
 0x1cc   :  { %7195 = vmatmul.msk.f32.gmra.mxu2 %vm251_vm1, %v9805_v43  ;;  %v779_v43 = vadd.f32 %v9148_v6, %v9206_v4  ;;  %v893_v6 = vadd.f32 %v855_v48, %v791_v58  ;;  %v10055_v18 = vpop.f32.mrf.mxu0  ;;  %v794_v48 = vadd.f32 %v9204_v2, %v9216_v11  ;;  %v16909_v2 = vld [vmem:[#allocation10_spill] sm:$0xff] }
 0x1cd   :  { %16905 = vst [vmem:[#allocation73_spill] sm:$0xff] %v10055_v18  ;;  %v16916_v18 = vld [vmem:[#allocation25_spill] sm:$0xff] }
 0x1ce   :  { %v889_v26 = vadd.f32 %v843_v3, %v779_v43  ;;  %v6954_v3 = vmul.f32 -1.442695, %v893_v6 }
 0x1d0   :  { %v6950_v39 = vmul.f32 -1.442695, %v889_v26  ;;  %v7527_v61 = vpop.eup %7526 }
 0x1d1   :  { %v7529_v49 = vpop.eup %7528  ;;  %v10061_v46 = vadd.f32 1.0, %v7527_v61 }
 0x1d2   :  { %7530 = vpow2.f32 %v6950_v39  ;;  %v10063_v34 = vadd.f32 1.0, %v7529_v49  ;;  %v16908_v39 = vld [vmem:[#allocation8_spill] sm:$0xff] }
 0x1d3   :  { %v858_v50 = vpop.f32.mrf.mxu3  ;;  %7151 = vmatmul.msk.f32.gmra.mxu0 %vm251_vm1, %v9825_v59  ;;  %7532 = vpow2.f32 %v6954_v3  ;;  %vm957_vm0 = vweird.f32 %v10061_v46 }
 0x1d4   :  { %7196 = vmatmul.msk.f32.gmra.mxu2 %vm251_vm1, %v9825_v59  ;;  %v10041_v59 = vpop.f32.mrf.mxu2  ;;  %v894_v43 = vadd.f32 %v858_v50, %v794_v48  ;;  %7534 = vrcp.f32 %v10061_v46  ;;  %v10080_v49 = vpop.f32.mrf.mxu0  ;;  %vm1017_vm6 = vweird.f32 %v10063_v34 }
 0x1d5   :  { %16904 = vst [vmem:[#allocation72_spill] sm:$0xff] %v10041_v59  ;;  %7536 = vrcp.f32 %v10063_v34 }
 0x1d6   :  { %v6955_v50 = vmul.f32 -1.442695, %v894_v43  ;;  %16911 = vst [vmem:[#allocation8_spill] sm:$0xff] %v10080_v49 }
 0x1d8   :  { %v7531_v47 = vpop.eup %7530 }
 0x1d9   :  { %v10071_v59 = vadd.f32 1.0, %v7531_v47 }
 0x1db   :  { %v861_v36 = vpop.f32.mrf.mxu3  ;;  %7152 = vmatmul.msk.f32.gmra.mxu0 %vm251_vm1, %v9845_v42  ;;  %vm972_vm3 = vweird.f32 %v10071_v59 }
 0x1dc   :  { %7197 = vmatmul.msk.f32.gmra.mxu2 %vm251_vm1, %v9845_v42  ;;  %v782_v42 = vadd.f32 %v9163_v12, %v9196_v1  ;;  %v10057_v26 = vpop.f32.mrf.mxu2  ;;  %v16907_v12 = vld [vmem:[#allocation9_spill] sm:$0xff] }
 0x1dd   :  { %16906 = vst [vmem:[#allocation74_spill] sm:$0xff] %v10057_v26  ;;  %v785_v6 = vadd.f32 %v16908_v39, %v16907_v12  ;;  %v16921_v12 = vld [vmem:[#allocation23_spill] sm:$0xff] }
 0x1de   :  { %v890_v20 = vadd.f32 %v846_v60, %v782_v42  ;;  %v16910_v60 = vld [vmem:[#allocation15_spill] sm:$0xff]  ;;  %v7533_v42 = vpop.eup %7532  ;;  %v803_v40 = vadd.f32 %v16922_v37, %v16921_v12  ;;  %v963_v37 = vand.u32 2147483648, %v10061_v46 }
 0x1df   :  { %v797_v3 = vadd.f32 %v16910_v60, %v16909_v2  ;;  %v891_v61 = vadd.f32 %v10001_v55, %v785_v6  ;;  %v10087_v39 = vpop.eup %7534  ;;  %v8514_v55 = vld [vmem:[%s16625_s1 + $0x68] sm:$0xff] }
 0x1e0   :  { %vm958_vm12 = vweird.f32 %v10087_v39 }
 0x1e1   :  { %v895_v48 = vadd.f32 %v861_v36, %v797_v3  ;;  %v6952_v47 = vmul.f32 -1.442695, %v891_v61  ;;  %v953_v3 = vmul.f32 %v10087_v39, %v10061_v46 }
 0x1e3   :  { %v10047_v21 = vpop.f32.mrf.mxu3  ;;  %7153 = vmatmul.msk.f32.gmra.mxu0 %vm251_vm1, %v9863_v28  ;;  %v6956_v43 = vmul.f32 -1.442695, %v895_v48  ;;  %v10105_v48 = vpop.f32.mrf.mxu0 }
 0x1e4   :  { %7198 = vmatmul.msk.f32.gmra.mxu2 %vm251_vm1, %v9863_v28  ;;  %v6951_v28 = vmul.f32 -1.442695, %v890_v20  ;;  %v10083_v20 = vpop.f32.mrf.mxu2  ;;  %16913 = vst [vmem:[#allocation75_spill] sm:$0xff] %v10105_v48 }
 0x1e5   :  { %16912 = vst [vmem:[#allocation15_spill] sm:$0xff] %v10083_v20  ;;  %v954_v20 = vsub.f32 1.0, %v953_v3 }
 0x1e6   :  { %7538 = vpow2.f32 %v6951_v28  ;;  %v10093_v28 = vpop.eup %7536 }
 0x1e7   :  { %7540 = vrcp.f32 %v10071_v59  ;;  %v955_v57 = vmul.f32 %v10087_v39, %v954_v20  ;;  %vm1018_vm15 = vweird.f32 %v10093_v28 }
 0x1e8   :  { %7542 = vpow2.f32 %v6955_v50  ;;  %vm10181_vm7 = vmor %vm1017_vm6, %vm1018_vm15 }
 0x1eb   :  { %v10065_v58 = vpop.f32.mrf.mxu3  ;;  %7154 = vmatmul.msk.f32.gmra.mxu0 %vm251_vm1, %v9889_v23 }
 0x1ec   :  { %7199 = vmatmul.msk.f32.gmra.mxu2 %vm251_vm1, %v9889_v23  ;;  %v10085_v23 = vadd.f32 1.0, %v7533_v42  ;;  %v7539_v36 = vpop.eup %7538  ;;  %v1013_v42 = vmul.f32 %v10093_v28, %v10063_v34  ;;  %v10109_v26 = vpop.f32.mrf.mxu2  ;;  %v897_v12 = vadd.f32 %v10065_v58, %v803_v40  ;;  %v1023_v58 = vand.u32 2147483648, %v10063_v34 }
 0x1ed   :  { %v10097_v6 = vpop.eup %7540  ;;  %v10103_v61 = vadd.f32 1.0, %v7539_v36  ;;  %16914 = vst [vmem:[#allocation76_spill] sm:$0xff] %v10109_v26  ;;  %v16918_v26 = vld [vmem:[#allocation16_spill] sm:$0xff] }
 0x1ee   :  { %7544 = vrcp.f32 %v10085_v23  ;;  %v7543_v50 = vpop.eup %7542  ;;  %v1014_v29 = vsub.f32 1.0, %v1013_v42  ;;  %vm973_vm10 = vweird.f32 %v10097_v6  ;;  %vm1032_vm13 = vweird.f32 %v10085_v23 }
 0x1ef   :  { %7546 = vpow2.f32 %v6952_v47  ;;  %v10111_v10 = vadd.f32 1.0, %v7543_v50  ;;  %v16915_v47 = vld [vmem:[#allocation20_spill] sm:$0xff]  ;;  %vm10221_vm8 = vmor %vm972_vm3, %vm973_vm10  ;;  %vm987_vm6 = vweird.f32 %v10103_v61 }
 0x1f0   :  { %7548 = vpow2.f32 %v6956_v43  ;;  %v809_v32 = vadd.f32 %v16916_v18, %v16915_v47  ;;  %v8515_v43 = vld [vmem:[%s16625_s1 + $0x70] sm:$0xff]  ;;  %v16917_v50 = vld [vmem:[#allocation24_spill] sm:$0xff]  ;;  %v806_v18 = vadd.f32 %v16920_v38, %v16919_v31  ;;  %v1015_v35 = vmul.f32 %v10093_v28, %v1014_v29  ;;  %v16924_v38 = vld [vmem:[#allocation27_spill] sm:$0xff] }
 0x1f1   :  { %7550 = vrcp.f32 %v10103_v61  ;;  %v800_v48 = vadd.f32 %v16918_v26, %v16917_v50  ;;  %v961_v26 = vand.u32 2147483647, %v10061_v46  ;;  %v16923_v50 = vld [vmem:[#allocation30_spill] sm:$0xff]  ;;  %vm1047_vm15 = vweird.f32 %v10111_v10 }
 0x1f2   :  { %7552 = vrcp.f32 %v10111_v10 }
 0x1f3   :  { %v870_v60 = vpop.f32.mrf.mxu3  ;;  %7155 = vmatmul.msk.f32.gmra.mxu0 %vm251_vm1, %v8514_v55  ;;  %vm10157_vm14 = vcmp.eq.f32.partialorder %v961_v26, 8.507059e+37 }
 0x1f4   :  { %7200 = vmatmul.msk.f32.gmra.mxu2 %vm251_vm1, %v8514_v55  ;;  %v968_v55 = vmul.f32 %v10097_v6, %v10071_v59  ;;  %v10113_v49 = vpop.eup %7544  ;;  %v898_v1 = vadd.f32 %v870_v60, %v806_v18  ;;  %v896_v60 = vadd.f32 %v10047_v21, %v800_v48  ;;  %v10170_v21 = vpop.f32.mrf.mxu2 }
 0x1f5   :  { %v7547_v36 = vpop.eup %7546  ;;  %v1028_v11 = vmul.f32 %v10113_v49, %v10085_v23  ;;  %16930 = vst [vmem:[#allocation16_spill] sm:$0xff] %v10170_v21  ;;  %vm1033_vm9 = vweird.f32 %v10113_v49 }
 0x1f6   :  { %v7549_v3 = vpop.eup %7548  ;;  %v969_v47 = vsub.f32 1.0, %v968_v55  ;;  %v16926_v55 = vld [vmem:[#allocation31_spill] sm:$0xff]  ;;  %v6959_v48 = vmul.f32 -1.442695, %v898_v1  ;;  %vm10230_vm4 = vmor %vm1032_vm13, %vm1033_vm9 }
 0x1f7   :  { %v10143_v14 = vadd.f32 1.0, %v7549_v3  ;;  %v10148_v29 = vpop.eup %7550  ;;  %v10154_v3 = vpop.f32.mrf.mxu0 }
 0x1f8   :  { %16927 = vst [vmem:[#allocation25_spill] sm:$0xff] %v10154_v3  ;;  %v10167_v40 = vpop.eup %7552  ;;  %v983_v26 = vmul.f32 %v10148_v29, %v10103_v61 }
 0x1f9   :  { %vm1062_vm13 = vweird.f32 %v10143_v14 }
 0x1fa   :  { %v984_v46 = vsub.f32 1.0, %v983_v26 }
 0x1fb   :  { %v873_v2 = vpop.f32.mrf.mxu3  ;;  %7156 = vmatmul.msk.f32.gmra.mxu0 %vm251_vm1, %v8515_v43 }
 0x1fc   :  { %7201 = vmatmul.msk.f32.gmra.mxu2 %vm251_vm1, %v8515_v43  ;;  %v899_v42 = vadd.f32 %v873_v2, %v809_v32  ;;  %v10133_v43 = vadd.f32 1.0, %v7547_v36  ;;  %v812_v32 = vadd.f32 %v16924_v38, %v16923_v50  ;;  %v16925_v2 = vld [vmem:[#allocation28_spill] sm:$0xff]  ;;  %v1029_v36 = vsub.f32 1.0, %v1028_v11  ;;  %v8516_v11 = vld [vmem:[%s16625_s1 + $0x78] sm:$0xff] }
 0x1fd   :  { %v10141_v31 = vadd.f32 %v16926_v55, %v16925_v2  ;;  %v956_v38 = vadd.f32 %v10087_v39, %v955_v57  ;;  %v970_v55 = vmul.f32 %v10097_v6, %v969_v47  ;;  %v1016_v57 = vadd.f32 %v10093_v28, %v1015_v35 }
 0x1fe   :  { %v6960_v20 = vmul.f32 -1.442695, %v899_v42  ;;  %7554 = vrcp.f32 %v10133_v43  ;;  %v1021_v35 = vand.u32 2147483647, %v10063_v34  ;;  %v1030_v3 = vmul.f32 %v10113_v49, %v1029_v36 }
 0x1ff   :  { %7556 = vrcp.f32 %v10143_v14  ;;  %v6958_v2 = vmul.f32 -1.442695, %v897_v12  ;;  %v964_v50 = vor.u32 1.1754944e-38, %v963_v37  ;;  %v978_v12 = vand.u32 2147483648, %v10071_v59 }
 0x200   :  { %7558 = vpow2.f32 %v6960_v20  ;;  %v1020_v20 = vsel %vm10181_vm7, %v10093_v28, %v1016_v57  ;;  %v1024_v37 = vor.u32 1.1754944e-38, %v1023_v58  ;;  %vm1022_vm5 = vcmp.eq.f32.partialorder %v1021_v35, 8.507059e+37 }
 0x201   :  { %v1031_v28 = vadd.f32 %v10113_v49, %v1030_v3  ;;  %v979_v26 = vor.u32 1.1754944e-38, %v978_v12  ;;  %v985_v12 = vmul.f32 %v10148_v29, %v984_v46  ;;  %v993_v46 = vand.u32 2147483648, %v10103_v61 }
 0x202   :  { %v1025_v57 = vsel %vm1022_vm5, %v1024_v37, %v1020_v20 }
 0x203   :  { %v876_v18 = vpop.f32.mrf.mxu3  ;;  %7157 = vmatmul.msk.f32.gmra.mxu0 %vm251_vm1, %v8516_v11 }
 0x204   :  { %v900_v47 = vadd.f32 %v876_v18, %v812_v32  ;;  %7202 = vmatmul.msk.f32.gmra.mxu2 %vm251_vm1, %v8516_v11  ;;  %v1043_v32 = vmul.f32 %v10167_v40, %v10111_v10  ;;  %v6957_v18 = vmul.f32 -1.442695, %v896_v60  ;;  %vm10191_vm1 = vmor %vm957_vm0, %vm958_vm12  ;;  %v10203_v60 = vpop.eup %7554  ;;  %v971_v11 = vadd.f32 %v10097_v6, %v970_v55 }
 0x205   :  { %v960_v36 = vsel %vm10191_vm1, %v10087_v39, %v956_v38  ;;  %v1038_v55 = vand.u32 2147483648, %v10085_v23  ;;  %v998_v34 = vmul.f32 %v10203_v60, %v10133_v43  ;;  %vm988_vm0 = vweird.f32 %v10148_v29 }
 0x206   :  { %7560 = vtanh.f32 %v900_v47  ;;  %v10207_v47 = vpop.eup %7556  ;;  %v1044_v39 = vsub.f32 1.0, %v1043_v32  ;;  %vm989_vm1 = vmor %vm987_vm6, %vm988_vm0  ;;  %vm1003_vm5 = vweird.f32 %v10203_v60 }
 0x207   :  { %7562 = vpow2.f32 %v6959_v48  ;;  %v7559_v58 = vpop.eup %7558  ;;  %v976_v48 = vand.u32 2147483647, %v10071_v59  ;;  %v1058_v37 = vmul.f32 %v10207_v47, %v10143_v14  ;;  %vm1063_vm9 = vweird.f32 %v10207_v47 }
 0x208   :  { %7564 = vpow2.f32 %v6958_v2  ;;  %v965_v2 = vsel %vm10157_vm14, %v964_v50, %v960_v36  ;;  %v1136_v50 = vmul.f32 %v1025_v57, %v9614_v63  ;;  %v1045_v20 = vmul.f32 %v10167_v40, %v1044_v39 }
 0x209   :  { %7566 = vpow2.f32 %v6957_v18  ;;  %v975_v18 = vsel %vm10221_vm8, %v10097_v6, %v971_v11  ;;  %v1035_v6 = vsel %vm10230_vm4, %v10113_v49, %v1031_v28  ;;  %v10245_v36 = vadd.f32 1.0, %v7559_v58  ;;  %v16939_v11 = vld [vmem:[#allocation29_spill] sm:$0xff]  ;;  %vm1064_vm8 = vmor %vm1062_vm13, %vm1063_vm9 }
 0x20a   :  { %v818_v57 = vadd.f32 %v9580_v51, %v16939_v11  ;;  %vm977_vm11 = vcmp.eq.f32.partialorder %v976_v48, 8.507059e+37  ;;  %v999_v28 = vsub.f32 1.0, %v998_v34  ;;  %v986_v58 = vadd.f32 %v10148_v29, %v985_v12 }
 0x20b   :  { %v879_v38 = vpop.f32.mrf.mxu3  ;;  %v980_v49 = vsel %vm977_vm11, %v979_v26, %v975_v18  ;;  %vm1048_vm14 = vweird.f32 %v10167_v40  ;;  %v1046_v48 = vadd.f32 %v10167_v40, %v1045_v20  ;;  %v1053_v26 = vand.u32 2147483648, %v10111_v10 }
 0x20c   :  { %v7561_v1 = vpop.eup %7560  ;;  %v901_v3 = vadd.f32 %v879_v38, %v10141_v31  ;;  %v1036_v31 = vand.u32 2147483647, %v10085_v23  ;;  %v1039_v38 = vor.u32 1.1754944e-38, %v1038_v55  ;;  %vm10272_vm7 = vmor %vm1047_vm15, %vm1048_vm14  ;;  %v1000_v20 = vmul.f32 %v10203_v60, %v999_v28 }
 0x20d   :  { %v1140_v32 = vmul.f32 %v7561_v1, %v965_v2  ;;  %v7563_v59 = vpop.eup %7562  ;;  %v1068_v28 = vand.u32 2147483648, %v10143_v14  ;;  %vm1002_vm4 = vweird.f32 %v10133_v43  ;;  %vm1122_vm15 = vweird.f32 %v10245_v36 }
 0x20e   :  { %7568 = vtanh.f32 %v901_v3  ;;  %v7565_v63 = vpop.eup %7564  ;;  %v10252_v2 = vadd.f32 1.0, %v7563_v59  ;;  %vm1037_vm12 = vcmp.eq.f32.partialorder %v1036_v31, 8.507059e+37  ;;  %v1059_v3 = vsub.f32 1.0, %v1058_v37  ;;  %vm1004_vm11 = vmor %vm1002_vm4, %vm1003_vm5 }
 0x20f   :  { %v10247_v23 = vadd.f32 %v1140_v32, %v1136_v50  ;;  %v7567_v1 = vpop.eup %7566  ;;  %v1040_v39 = vsel %vm1037_vm12, %v1039_v38, %v1035_v6  ;;  %v10257_v35 = vadd.f32 1.0, %v7565_v63  ;;  %7570 = vrcp.f32 %v10245_v36 }
 0x210   :  { %v10263_v32 = vadd.f32 1.0, %v7567_v1  ;;  %7572 = vrcp.f32 %v10252_v2  ;;  %v1051_v31 = vand.u32 2147483647, %v10111_v10  ;;  %v1137_v50 = vmul.f32 %v1040_v39, %v9605_v15 }
 0x211   :  { %v991_v59 = vand.u32 2147483647, %v10103_v61  ;;  %v1060_v12 = vmul.f32 %v10207_v47, %v1059_v3  ;;  %v1050_v15 = vsel %vm10272_vm7, %v10167_v40, %v1046_v48  ;;  %v1054_v61 = vor.u32 1.1754944e-38, %v1053_v26 }
 0x212   :  { %v990_v6 = vsel %vm989_vm1, %v10148_v29, %v986_v58  ;;  %v994_v63 = vor.u32 1.1754944e-38, %v993_v46  ;;  %vm1052_vm3 = vcmp.eq.f32.partialorder %v1051_v31, 8.507059e+37  ;;  %v1001_v58 = vadd.f32 %v10203_v60, %v1000_v20 }
 0x213   :  { %v882_v51 = vpop.f32.mrf.mxu3  ;;  %vm992_vm10 = vcmp.eq.f32.partialorder %v991_v59, 8.507059e+37  ;;  %v1055_v1 = vsel %vm1052_vm3, %v1054_v61, %v1050_v15  ;;  %v1061_v3 = vadd.f32 %v10207_v47, %v1060_v12  ;;  %vm1092_vm1 = vweird.f32 %v10257_v35 }
 0x214   :  { %v7569_v55 = vpop.eup %7568  ;;  %v902_v18 = vadd.f32 %v882_v51, %v818_v57  ;;  %v16942_v57 = vld [vmem:[#allocation26_spill] sm:$0xff]  ;;  %v995_v40 = vsel %vm992_vm10, %v994_v63, %v990_v6  ;;  %v1138_v26 = vmul.f32 %v1055_v1, %v9600_v22  ;;  %v1005_v15 = vsel %vm1004_vm11, %v10203_v60, %v1001_v58 }
 0x215   :  { %v1141_v42 = vmul.f32 %v7569_v55, %v980_v49  ;;  %v10288_v37 = vpop.eup %7570  ;;  %v821_v38 = vadd.f32 %v9643_v33, %v16942_v57  ;;  %v1066_v55 = vand.u32 2147483647, %v10143_v14  ;;  %v1065_v59 = vsel %vm1064_vm8, %v10207_v47, %v1061_v3 }
 0x216   :  { %7574 = vtanh.f32 %v902_v18  ;;  %v10292_v49 = vpop.eup %7572  ;;  %v1118_v33 = vmul.f32 %v10288_v37, %v10245_v36  ;;  %v1069_v14 = vor.u32 1.1754944e-38, %v1068_v28  ;;  %vm1123_vm14 = vweird.f32 %v10288_v37 }
 0x217   :  { %7576 = vrcp.f32 %v10257_v35  ;;  %v10283_v10 = vadd.f32 %v1141_v42, %v1137_v50  ;;  %v1008_v42 = vand.u32 2147483648, %v10133_v43  ;;  %v1103_v31 = vmul.f32 %v10292_v49, %v10252_v2  ;;  %vm10339_vm7 = vmor %vm1122_vm15, %vm1123_vm14 }
 0x218   :  { %7578 = vrcp.f32 %v10263_v32  ;;  %v1006_v50 = vand.u32 2147483647, %v10133_v43  ;;  %v1119_v22 = vsub.f32 1.0, %v1118_v33  ;;  %vm1067_vm0 = vcmp.eq.f32.partialorder %v1066_v55, 8.507059e+37 }
 0x219   :  { %v1009_v6 = vor.u32 1.1754944e-38, %v1008_v42  ;;  %v1070_v43 = vsel %vm1067_vm0, %v1069_v14, %v1065_v59  ;;  %v1104_v20 = vsub.f32 1.0, %v1103_v31  ;;  %v1128_v58 = vand.u32 2147483648, %v10245_v36  ;;  %v16953_v59 = vld [vmem:[#allocation24_spill] sm:$0xff] }
 0x21a   :  { %vm1007_vm12 = vcmp.eq.f32.partialorder %v1006_v50, 8.507059e+37  ;;  %vm1108_vm6 = vweird.f32 %v10292_v49  ;;  %vm1107_vm10 = vweird.f32 %v10252_v2  ;;  %v1111_v42 = vand.u32 2147483647, %v10252_v2 }
 0x21b   :  { %v885_v39 = vpop.f32.mrf.mxu3  ;;  %v1010_v63 = vsel %vm1007_vm12, %v1009_v6, %v1005_v15  ;;  %v1129_v50 = vor.u32 1.1754944e-38, %v1128_v58  ;;  %vm10353_vm5 = vmor %vm1107_vm10, %vm1108_vm6  ;;  %v1096_v14 = vand.u32 2147483647, %v10257_v35  ;;  %vm1077_vm4 = vweird.f32 %v10263_v32 }
 0x21c   :  { %v7575_v29 = vpop.eup %7574  ;;  %v903_v46 = vadd.f32 %v885_v39, %v821_v38  ;;  %v1120_v38 = vmul.f32 %v10288_v37, %v1119_v22  ;;  %v1139_v39 = vmul.f32 %v1070_v43, %v9603_v16  ;;  %v1126_v16 = vand.u32 2147483647, %v10245_v36 }
 0x21d   :  { %v10301_v51 = vpop.eup %7576  ;;  %v1142_v48 = vmul.f32 %v7575_v29, %v995_v40  ;;  %v1105_v29 = vmul.f32 %v10292_v49, %v1104_v20  ;;  %v1098_v22 = vand.u32 2147483648, %v10257_v35  ;;  %v1083_v20 = vand.u32 2147483648, %v10263_v32 }
 0x21e   :  { %v10306_v18 = vpop.eup %7578  ;;  %7580 = vtanh.f32 %v903_v46  ;;  %v1088_v12 = vmul.f32 %v10301_v51, %v10257_v35  ;;  %v1121_v28 = vadd.f32 %v10288_v37, %v1120_v38  ;;  %vm1093_vm3 = vweird.f32 %v10301_v51 }
 0x21f   :  { %v10314_v34 = vadd.f32 %v1142_v48, %v1138_v26  ;;  %v1073_v61 = vmul.f32 %v10306_v18, %v10263_v32  ;;  %v1106_v48 = vadd.f32 %v10292_v49, %v1105_v29  ;;  %v1113_v26 = vand.u32 2147483648, %v10252_v2  ;;  %vm10369_vm8 = vmor %vm1092_vm1, %vm1093_vm3 }
 0x220   :  { %v1089_v1 = vsub.f32 1.0, %v1088_v12  ;;  %v1125_v36 = vsel %vm10339_vm7, %v10288_v37, %v1121_v28  ;;  %vm1127_vm9 = vcmp.eq.f32.partialorder %v1126_v16, 8.507059e+37  ;;  %vm1078_vm13 = vweird.f32 %v10306_v18  ;;  %v16949_v16 = vld [vmem:[#allocation11_spill] sm:$0xff] }
 0x221   :  { %v1074_v3 = vsub.f32 1.0, %v1073_v61  ;;  %7582 = vtanh.f32 %v10314_v34  ;;  %v1110_v37 = vsel %vm10353_vm5, %v10292_v49, %v1106_v48  ;;  %v1130_v61 = vsel %vm1127_vm9, %v1129_v50, %v1125_v36  ;;  %vm1079_vm0 = vmor %vm1077_vm4, %vm1078_vm13  ;;  %v16950_v48 = vld [vmem:[#allocation38_spill] sm:$0xff] }
 0x222   :  { %v1090_v46 = vmul.f32 %v10301_v51, %v1089_v1  ;;  %v1114_v6 = vor.u32 1.1754944e-38, %v1113_v26  ;;  %vm1112_vm11 = vcmp.eq.f32.partialorder %v1111_v42, 8.507059e+37  ;;  %v1099_v35 = vor.u32 1.1754944e-38, %v1098_v22  ;;  %v16951_v26 = vld [vmem:[#allocation18_spill] sm:$0xff] }
 0x223   :  { %v1075_v33 = vmul.f32 %v10306_v18, %v1074_v3  ;;  %vm1097_vm12 = vcmp.eq.f32.partialorder %v1096_v14, 8.507059e+37  ;;  %v1084_v28 = vor.u32 1.1754944e-38, %v1083_v20  ;;  %v1187_v55 = vadd.f32 %v16950_v48, %v16949_v16  ;;  %v16954_v14 = vld [vmem:[#allocation49_spill] sm:$0xff]  ;;  %v16957_v20 = vld [vmem:[#allocation14_spill] sm:$0xff] }
 0x224   :  { %v7581_v47 = vpop.eup %7580  ;;  %v1091_v31 = vadd.f32 %v10301_v51, %v1090_v46  ;;  %v1115_v1 = vsel %vm1112_vm11, %v1114_v6, %v1110_v37  ;;  %v1205_v22 = vadd.f32 %v16954_v14, %v16953_v59 }
 0x225   :  { %v1143_v40 = vmul.f32 %v7581_v47, %v1010_v63  ;;  %v1076_v2 = vadd.f32 %v10306_v18, %v1075_v33  ;;  %v1081_v63 = vand.u32 2147483647, %v10263_v32 }
 0x226   :  { %v1095_v47 = vsel %vm10369_vm8, %v10301_v51, %v1091_v31 }
 0x227   :  { %v10326_v60 = vadd.f32 %v1143_v40, %v1139_v39  ;;  %v7583_v12 = vpop.eup %7582  ;;  %v1080_v39 = vsel %vm1079_vm0, %v10306_v18, %v1076_v2  ;;  %v1100_v29 = vsel %vm1097_vm12, %v1099_v35, %v1095_v47  ;;  %vm1082_vm14 = vcmp.eq.f32.partialorder %v1081_v63, 8.507059e+37  ;;  %v16955_v2 = vld [vmem:[#allocation9_spill] sm:$0xff] }
 0x228   :  { %v10382_v40 = vmul.f32 %v7583_v12, %v1115_v1  ;;  %v1085_v32 = vsel %vm1082_vm14, %v1084_v28, %v1080_v39  ;;  %v16958_v47 = vld [vmem:[#allocation45_spill] sm:$0xff] }
 0x229   :  { %7584 = vtanh.f32 %v10326_v60  ;;  %v1199_v63 = vadd.f32 %v16958_v47, %v16957_v20  ;;  %v16966_v47 = vld [vmem:[#allocation55_spill] sm:$0xff] }
 0x22a   :  { %7586 = vtanh.f32 %v10283_v10 }
 0x22b   :  { %7588 = vtanh.f32 %v10247_v23 }
 0x22f   :  { %v7585_v15 = vpop.eup %7584 }
 0x230   :  { %v10375_v49 = vmul.f32 %v7585_v15, %v1130_v61  ;;  %v7587_v38 = vpop.eup %7586  ;;  %v16956_v15 = vld [vmem:[#allocation40_spill] sm:$0xff] }
 0x231   :  { %v7589_v3 = vpop.eup %7588  ;;  %v10386_v46 = vmul.f32 %v7587_v38, %v1100_v29  ;;  %v1190_v61 = vadd.f32 %v16956_v15, %v16955_v2 }
 0x232   :  { %1240 = vmatpush.msrb.mxu1 %v10375_v49  ;;  %v10389_v51 = vmul.f32 %v7589_v3, %v1085_v32 }
 0x234   :  { %1241 = vmatpush.msrb.mxu1 %v10382_v40 }
 0x236   :  { %1242 = vmatpush.msrb.mxu1 %v10386_v46 }
 0x238   :  { %1243 = vmatpush.msrb.mxu1 %v10389_v51 }
 0x239   :  { %6978 = vmatmul.msk.f32.vlgmr.msrb.gmra.mxu1 %vm369_vm2, %v9702_v62  ;;  %v10425_v62 = vld [vmem:[%s16626_s2 + $0x78] sm:$0xff] }
 0x241   :  { %6979 = vmatmul.msk.f32.gmra.mxu1 %vm369_vm2, %v9722_v54 }
 0x249   :  { %6980 = vmatmul.msk.f32.gmra.mxu1 %vm369_vm2, %v9738_v24 }
 0x251   :  { %6981 = vmatmul.msk.f32.gmra.mxu1 %vm369_vm2, %v9758_v52 }
 0x259   :  { %6982 = vmatmul.msk.f32.gmra.mxu1 %vm369_vm2, %v9778_v53 }
 0x261   :  { %6983 = vmatmul.msk.f32.gmra.mxu1 %vm369_vm2, %v9798_v9 }
 0x269   :  { %6984 = vmatmul.msk.f32.gmra.mxu1 %vm369_vm2, %v9818_v56  ;;  %v1181_v56 = vadd.f32 %v9691_v17, %v9202_v27  ;;  %v16952_v17 = vld [vmem:[#allocation43_spill] sm:$0xff] }
 0x26a   :  { %v1196_v36 = vadd.f32 %v16952_v17, %v16951_v26 }
 0x271   :  { %6985 = vmatmul.msk.f32.gmra.mxu1 %vm369_vm2, %v9834_v44 }
 0x279   :  { %6986 = vmatmul.msk.f32.gmra.mxu1 %vm369_vm2, %v9854_v0 }
 0x281   :  { %6987 = vmatmul.msk.f32.gmra.mxu1 %vm369_vm2, %v9874_v8  ;;  %v1184_v8 = vadd.f32 %v9715_v7, %v9206_v4 }
 0x289   :  { %6988 = vmatmul.msk.f32.gmra.mxu1 %vm369_vm2, %v9903_v41  ;;  %v1193_v41 = vadd.f32 %v9791_v5, %v9232_v30 }
 0x291   :  { %6989 = vmatmul.msk.f32.gmra.mxu1 %vm369_vm2, %v9918_v45 }
 0x299   :  { %6990 = vmatmul.msk.f32.gmra.mxu1 %vm369_vm2, %v9929_v13 }
 0x2a1   :  { %6991 = vmatmul.msk.f32.gmra.mxu1 %vm369_vm2, %v9944_v19 }
 0x2a9   :  { %6992 = vmatmul.msk.f32.gmra.mxu1 %vm369_vm2, %v9959_v25 }
 0x2b1   :  { %6993 = vmatmul.msk.f32.gmra.mxu1 %vm369_vm2, %v10425_v62 }
 0x2b6   :  { %v1245_v54 = vpop.f32.mrf.mxu1 }
 0x2b7   :  { %v1293_v0 = vadd.f32 %v1245_v54, %v1181_v56  ;;  %v16959_v54 = vld [vmem:[#allocation23_spill] sm:$0xff]  ;;  %v16961_v56 = vld [vmem:[#allocation10_spill] sm:$0xff] }
 0x2b9   :  { %v6994_v19 = vmul.f32 -1.442695, %v1293_v0 }
 0x2bb   :  { %7590 = vpow2.f32 %v6994_v19 }
 0x2be   :  { %v1248_v24 = vpop.f32.mrf.mxu1 }
 0x2bf   :  { %v1294_v13 = vadd.f32 %v1248_v24, %v1184_v8  ;;  %v16960_v24 = vld [vmem:[#allocation51_spill] sm:$0xff] }
 0x2c1   :  { %v6995_v18 = vmul.f32 -1.442695, %v1294_v13  ;;  %v7591_v31 = vpop.eup %7590 }
 0x2c2   :  { %v10443_v6 = vadd.f32 1.0, %v7591_v31  ;;  %v16964_v31 = vld [vmem:[#allocation53_spill] sm:$0xff] }
 0x2c3   :  { %7592 = vpow2.f32 %v6995_v18 }
 0x2c4   :  { %vm1362_vm6 = vweird.f32 %v10443_v6 }
 0x2c6   :  { %v1251_v52 = vpop.f32.mrf.mxu1 }
 0x2c7   :  { %v1295_v42 = vadd.f32 %v1251_v52, %v1187_v55  ;;  %v1208_v52 = vadd.f32 %v16960_v24, %v16959_v54 }
 0x2c9   :  { %v6996_v50 = vmul.f32 -1.442695, %v1295_v42  ;;  %v7593_v37 = vpop.eup %7592 }
 0x2ca   :  { %v10447_v35 = vadd.f32 1.0, %v7593_v37 }
 0x2cc   :  { %vm1377_vm3 = vweird.f32 %v10447_v35 }
 0x2ce   :  { %v1254_v53 = vpop.f32.mrf.mxu1 }
 0x2cf   :  { %v1296_v1 = vadd.f32 %v1254_v53, %v1190_v61  ;;  %v16962_v53 = vld [vmem:[#allocation47_spill] sm:$0xff] }
 0x2d0   :  { %v1202_v0 = vadd.f32 %v16962_v53, %v16961_v56  ;;  %v16972_v53 = vld [vmem:[#allocation63_spill] sm:$0xff] }
 0x2d1   :  { %v6997_v28 = vmul.f32 -1.442695, %v1296_v1  ;;  %v16968_v1 = vld [vmem:[#allocation57_spill] sm:$0xff] }
 0x2d6   :  { %v1257_v45 = vpop.f32.mrf.mxu1 }
 0x2d7   :  { %v1297_v25 = vadd.f32 %v1257_v45, %v1193_v41 }
 0x2d9   :  { %v6998_v33 = vmul.f32 -1.442695, %v1297_v25 }
 0x2db   :  { %7594 = vpow2.f32 %v6998_v33 }
 0x2dc   :  { %7596 = vpow2.f32 %v6996_v50 }
 0x2de   :  { %v1260_v9 = vpop.f32.mrf.mxu1 }
 0x2df   :  { %v1298_v7 = vadd.f32 %v1260_v9, %v1196_v36 }
 0x2e1   :  { %v6999_v12 = vmul.f32 -1.442695, %v1298_v7  ;;  %v7595_v43 = vpop.eup %7594  ;;  %v16963_v7 = vld [vmem:[#allocation21_spill] sm:$0xff] }
 0x2e2   :  { %v10450_v3 = vadd.f32 1.0, %v7595_v43  ;;  %v7597_v9 = vpop.eup %7596  ;;  %v1211_v50 = vadd.f32 %v16964_v31, %v16963_v7  ;;  %v16965_v43 = vld [vmem:[#allocation20_spill] sm:$0xff] }
 0x2e3   :  { %7598 = vpow2.f32 %v6999_v12  ;;  %v10460_v19 = vadd.f32 1.0, %v7597_v9 }
 0x2e4   :  { %7600 = vrcp.f32 %v10443_v6  ;;  %vm1422_vm13 = vweird.f32 %v10450_v3 }
 0x2e5   :  { %7602 = vrcp.f32 %v10447_v35  ;;  %vm1392_vm11 = vweird.f32 %v10460_v19 }
 0x2e6   :  { %v1263_v44 = vpop.f32.mrf.mxu1  ;;  %7604 = vrcp.f32 %v10450_v3 }
 0x2e7   :  { %v1299_v39 = vadd.f32 %v1263_v44, %v1199_v63  ;;  %v1214_v63 = vadd.f32 %v16966_v47, %v16965_v43  ;;  %v1381_v47 = vand.u32 2147483647, %v10447_v35 }
 0x2e9   :  { %v7000_v45 = vmul.f32 -1.442695, %v1299_v39  ;;  %v7599_v44 = vpop.eup %7598  ;;  %vm10552_vm5 = vcmp.eq.f32.partialorder %v1381_v47, 8.507059e+37 }
 0x2ea   :  { %v10458_v41 = vpop.eup %7600  ;;  %v10462_v25 = vadd.f32 1.0, %v7599_v44 }
 0x2eb   :  { %v10464_v18 = vpop.eup %7602  ;;  %v1358_v33 = vmul.f32 %v10458_v41, %v10443_v6  ;;  %vm1363_vm15 = vweird.f32 %v10458_v41 }
 0x2ec   :  { %v10468_v55 = vpop.eup %7604  ;;  %v1373_v12 = vmul.f32 %v10464_v18, %v10447_v35  ;;  %vm10541_vm1 = vmor %vm1362_vm6, %vm1363_vm15  ;;  %vm1378_vm10 = vweird.f32 %v10464_v18  ;;  %vm1437_vm15 = vweird.f32 %v10462_v25 }
 0x2ed   :  { %v1359_v14 = vsub.f32 1.0, %v1358_v33  ;;  %v1418_v37 = vmul.f32 %v10468_v55, %v10450_v3  ;;  %v16973_v33 = vld [vmem:[#allocation35_spill] sm:$0xff]  ;;  %vm1423_vm9 = vweird.f32 %v10468_v55  ;;  %vm10587_vm4 = vmor %vm1377_vm3, %vm1378_vm10 }
 0x2ee   :  { %v1266_v58 = vpop.f32.mrf.mxu1  ;;  %vm10575_vm8 = vmor %vm1422_vm13, %vm1423_vm9 }
 0x2ef   :  { %v1300_v13 = vadd.f32 %v1266_v58, %v1202_v0  ;;  %v10500_v0 = vadd.f32 %v16972_v53, %v16942_v57 }
 0x2f1   :  { %v7001_v17 = vmul.f32 -1.442695, %v1300_v13 }
 0x2f6   :  { %v1269_v5 = vpop.f32.mrf.mxu1 }
 0x2f7   :  { %v1301_v38 = vadd.f32 %v1269_v5, %v1205_v22 }
 0x2f9   :  { %v7002_v29 = vmul.f32 -1.442695, %v1301_v38  ;;  %v16967_v38 = vld [vmem:[#allocation30_spill] sm:$0xff] }
 0x2fa   :  { %v1217_v39 = vadd.f32 %v16968_v1, %v16967_v38  ;;  %v16974_v1 = vld [vmem:[#allocation34_spill] sm:$0xff] }
 0x2fb   :  { %7606 = vpow2.f32 %v7002_v29  ;;  %v16969_v29 = vld [vmem:[#allocation28_spill] sm:$0xff] }
 0x2fc   :  { %7608 = vpow2.f32 %v6997_v28  ;;  %v16970_v28 = vld [vmem:[#allocation59_spill] sm:$0xff] }
 0x2fd   :  { %7610 = vpow2.f32 %v7000_v45  ;;  %v16971_v45 = vld [vmem:[#allocation61_spill] sm:$0xff] }
 0x2fe   :  { %v1272_v32 = vpop.f32.mrf.mxu1  ;;  %7612 = vrcp.f32 %v10460_v19  ;;  %v10496_v9 = vadd.f32 %v16971_v45, %v16939_v11 }
 0x2ff   :  { %v1302_v8 = vadd.f32 %v1272_v32, %v1208_v52  ;;  %7614 = vrcp.f32 %v10462_v25  ;;  %v10488_v32 = vadd.f32 %v16970_v28, %v16969_v29  ;;  %v10524_v28 = vadd.f32 %v10386_v46, %v16974_v1 }
 0x301   :  { %v7003_v48 = vmul.f32 -1.442695, %v1302_v8  ;;  %v7607_v42 = vpop.eup %7606  ;;  %v1360_v8 = vmul.f32 %v10458_v41, %v1359_v14 }
 0x302   :  { %v7609_v58 = vpop.eup %7608  ;;  %v10478_v15 = vadd.f32 1.0, %v7607_v42 }
 0x303   :  { %v7611_v5 = vpop.eup %7610  ;;  %7616 = vpow2.f32 %v7003_v48  ;;  %v10480_v61 = vadd.f32 1.0, %v7609_v58  ;;  %v10507_v48 = vadd.f32 %v10389_v51, %v16973_v33  ;;  %v1368_v58 = vand.u32 2147483648, %v10443_v6 }
 0x304   :  { %7618 = vpow2.f32 %v7001_v17  ;;  %v10490_v24 = vadd.f32 1.0, %v7611_v5  ;;  %v10492_v52 = vpop.eup %7612  ;;  %v1374_v17 = vsub.f32 1.0, %v1373_v12  ;;  %vm1482_vm9 = vweird.f32 %v10478_v15 }
 0x305   :  { %v10503_v13 = vpop.eup %7614  ;;  %7620 = vrcp.f32 %v10478_v15  ;;  %v1388_v14 = vmul.f32 %v10492_v52, %v10460_v19  ;;  %vm1393_vm0 = vweird.f32 %v10492_v52 }
 0x306   :  { %v1275_v36 = vpop.f32.mrf.mxu1  ;;  %7622 = vrcp.f32 %v10480_v61  ;;  %v1433_v12 = vmul.f32 %v10503_v13, %v10462_v25  ;;  %vm1438_vm14 = vweird.f32 %v10503_v13  ;;  %vm10621_vm6 = vmor %vm1392_vm11, %vm1393_vm0  ;;  %vm1452_vm10 = vweird.f32 %v10490_v24 }
 0x307   :  { %v1303_v22 = vadd.f32 %v1275_v36, %v1211_v50  ;;  %v1419_v36 = vsub.f32 1.0, %v1418_v37  ;;  %v1366_v50 = vand.u32 2147483647, %v10443_v6  ;;  %7624 = vrcp.f32 %v10490_v24 }
 0x308   :  { %v1361_v37 = vadd.f32 %v10458_v41, %v1360_v8  ;;  %v1369_v8 = vor.u32 1.1754944e-38, %v1368_v58  ;;  %v1389_v21 = vsub.f32 1.0, %v1388_v14  ;;  %v1434_v6 = vsub.f32 1.0, %v1433_v12 }
 0x309   :  { %v7004_v44 = vmul.f32 -1.442695, %v1303_v22  ;;  %v7617_v31 = vpop.eup %7616  ;;  %v1383_v22 = vand.u32 2147483648, %v10447_v35  ;;  %v1420_v45 = vmul.f32 %v10468_v55, %v1419_v36  ;;  %vm10533_vm7 = vcmp.eq.f32.partialorder %v1366_v50, 8.507059e+37 }
 0x30a   :  { %v7619_v5 = vpop.eup %7618  ;;  %v10527_v53 = vadd.f32 1.0, %v7617_v31  ;;  %v1365_v50 = vsel %vm10541_vm1, %v10458_v41, %v1361_v37  ;;  %v1428_v37 = vand.u32 2147483648, %v10450_v3  ;;  %v1390_v36 = vmul.f32 %v10492_v52, %v1389_v21  ;;  %vm10635_vm1 = vmor %vm1437_vm15, %vm1438_vm14 }
 0x30b   :  { %7626 = vpow2.f32 %v7004_v44  ;;  %v10530_v33 = vadd.f32 1.0, %v7619_v5  ;;  %v1398_v5 = vand.u32 2147483648, %v10460_v19  ;;  %v1421_v12 = vadd.f32 %v10468_v55, %v1420_v45 }
 0x30c   :  { %7628 = vrcp.f32 %v10527_v53  ;;  %v1435_v57 = vmul.f32 %v10503_v13, %v1434_v6  ;;  %v1370_v11 = vsel %vm10533_vm7, %v1369_v8, %v1365_v50  ;;  %v1429_v44 = vor.u32 1.1754944e-38, %v1428_v37 }
 0x30d   :  { %7630 = vrcp.f32 %v10530_v33  ;;  %v1396_v6 = vand.u32 2147483647, %v10460_v19  ;;  %v10602_v35 = vadd.f32 %v10492_v52, %v1390_v36 }
 0x30e   :  { %v1278_v42 = vpop.f32.mrf.mxu1 }
 0x30f   :  { %v1304_v51 = vadd.f32 %v1278_v42, %v1214_v63  ;;  %v1375_v63 = vmul.f32 %v10464_v18, %v1374_v17  ;;  %v10537_v42 = vpop.eup %7620  ;;  %v1384_v17 = vor.u32 1.1754944e-38, %v1383_v22  ;;  %vm10628_vm7 = vcmp.eq.f32.partialorder %v1396_v6, 8.507059e+37 }
 0x310   :  { %v10546_v31 = vpop.eup %7622  ;;  %v1478_v1 = vmul.f32 %v10537_v42, %v10478_v15  ;;  %vm1483_vm3 = vweird.f32 %v10537_v42 }
 0x311   :  { %v7005_v46 = vmul.f32 -1.442695, %v1304_v51  ;;  %v10557_v14 = vpop.eup %7624  ;;  %v1376_v22 = vadd.f32 %v10464_v18, %v1375_v63  ;;  %v1426_v63 = vand.u32 2147483647, %v10450_v3  ;;  %v1403_v45 = vmul.f32 %v10546_v31, %v10480_v61 }
 0x312   :  { %v7627_v41 = vpop.eup %7626  ;;  %v1425_v3 = vsel %vm10575_vm8, %v10468_v55, %v1421_v12  ;;  %v1479_v50 = vsub.f32 1.0, %v1478_v1  ;;  %v1436_v12 = vadd.f32 %v10503_v13, %v1435_v57  ;;  %vm1453_vm13 = vweird.f32 %v10557_v14  ;;  %vm10671_vm8 = vmor %vm1482_vm9, %vm1483_vm3 }
 0x313   :  { %7632 = vpow2.f32 %v7005_v46  ;;  %v1448_v46 = vmul.f32 %v10557_v14, %v10490_v24  ;;  %v1380_v8 = vsel %vm10587_vm4, %v10464_v18, %v1376_v22  ;;  %vm1427_vm12 = vcmp.eq.f32.partialorder %v1426_v63, 8.507059e+37  ;;  %vm10692_vm11 = vmor %vm1452_vm10, %vm1453_vm13 }
 0x314   :  { %v1404_v55 = vsub.f32 1.0, %v1403_v45  ;;  %v1430_v18 = vsel %vm1427_vm12, %v1429_v44, %v1425_v3  ;;  %v1443_v63 = vand.u32 2147483648, %v10462_v25  ;;  %v1480_v21 = vmul.f32 %v10537_v42, %v1479_v50 }
 0x315   :  { %v1449_v37 = vsub.f32 1.0, %v1448_v46  ;;  %v1441_v3 = vand.u32 2147483647, %v10462_v25  ;;  %v1541_v44 = vmul.f32 %v1430_v18, %v10247_v23  ;;  %v1440_v6 = vsel %vm10635_vm1, %v10503_v13, %v1436_v12 }
 0x316   :  { %v1281_v51 = vpop.f32.mrf.mxu1  ;;  %v1444_v18 = vor.u32 1.1754944e-38, %v1443_v63  ;;  %v1488_v13 = vand.u32 2147483648, %v10478_v15  ;;  %v1486_v12 = vand.u32 2147483647, %v10478_v15  ;;  %vm1408_vm4 = vweird.f32 %v10546_v31 }
 0x317   :  { %v1305_v47 = vadd.f32 %v1281_v51, %v1217_v39  ;;  %v10581_v51 = vadd.f32 1.0, %v7627_v41  ;;  %v10599_v41 = vpop.eup %7628  ;;  %v1450_v50 = vmul.f32 %v10557_v14, %v1449_v37  ;;  %vm1407_vm12 = vweird.f32 %v10480_v61 }
 0x318   :  { %v10607_v39 = vpop.eup %7630  ;;  %v1493_v46 = vmul.f32 %v10599_v41, %v10527_v53  ;;  %vm1487_vm0 = vcmp.eq.f32.partialorder %v1486_v12, 8.507059e+37  ;;  %vm1498_vm14 = vweird.f32 %v10599_v41  ;;  %vm10755_vm9 = vmor %vm1407_vm12, %vm1408_vm4 }
 0x319   :  { %7634 = vtanh.f32 %v1305_v47  ;;  %v10605_v47 = vor.u32 1.1754944e-38, %v1398_v5  ;;  %v7633_v22 = vpop.eup %7632  ;;  %v1385_v5 = vsel %vm10552_vm5, %v1384_v17, %v1380_v8  ;;  %v1405_v8 = vmul.f32 %v10546_v31, %v1404_v55 }
 0x31a   :  { %7636 = vrcp.f32 %v10581_v51  ;;  %v10652_v25 = vadd.f32 1.0, %v7633_v22  ;;  %vm1442_vm5 = vcmp.eq.f32.partialorder %v1441_v3, 8.507059e+37  ;;  %v1451_v63 = vadd.f32 %v10557_v14, %v1450_v50 }
 0x31b   :  { %v1445_v55 = vsel %vm1442_vm5, %v1444_v18, %v1440_v6  ;;  %v1489_v50 = vor.u32 1.1754944e-38, %v1488_v13  ;;  %v1406_v13 = vadd.f32 %v10546_v31, %v1405_v8  ;;  %vm1468_vm1 = vweird.f32 %v10607_v39 }
 0x31c   :  { %v1542_v6 = vmul.f32 %v1445_v55, %v10283_v10  ;;  %v1455_v10 = vsel %vm10692_vm11, %v10557_v14, %v1451_v63  ;;  %v1501_v55 = vand.u32 2147483647, %v10527_v53  ;;  %vm1512_vm4 = vweird.f32 %v10581_v51 }
 0x31e   :  { %v1284_v1 = vpop.f32.mrf.mxu1  ;;  %vm1502_vm5 = vcmp.eq.f32.partialorder %v1501_v55, 8.507059e+37 }
 0x31f   :  { %v7635_v36 = vpop.eup %7634  ;;  %v1306_v45 = vadd.f32 %v1284_v1, %v10488_v32  ;;  %v1413_v32 = vand.u32 2147483648, %v10480_v61  ;;  %v1463_v1 = vmul.f32 %v10607_v39, %v10530_v33 }
 0x320   :  { %v1545_v58 = vmul.f32 %v7635_v36, %v1370_v11  ;;  %v1395_v11 = vsel %vm10621_vm6, %v10492_v52, %v10602_v35  ;;  %v1494_v36 = vsub.f32 1.0, %v1493_v46  ;;  %v10658_v52 = vpop.eup %7636  ;;  %v1458_v35 = vand.u32 2147483648, %v10490_v24 }
 0x321   :  { %7638 = vtanh.f32 %v1306_v45  ;;  %v1481_v45 = vadd.f32 %v10537_v42, %v1480_v21  ;;  %v1464_v22 = vsub.f32 1.0, %v1463_v1  ;;  %v1508_v15 = vmul.f32 %v10658_v52, %v10581_v51 }
 0x322   :  { %v10654_v23 = vadd.f32 %v1545_v58, %v1541_v44  ;;  %v1495_v58 = vmul.f32 %v10599_v41, %v1494_v36  ;;  %v1456_v44 = vand.u32 2147483647, %v10490_v24  ;;  %v1459_v1 = vor.u32 1.1754944e-38, %v1458_v35 }
 0x323   :  { %v1485_v19 = vsel %vm10671_vm8, %v10537_v42, %v1481_v45  ;;  %v1465_v18 = vmul.f32 %v10607_v39, %v1464_v22  ;;  %v1503_v35 = vand.u32 2147483648, %v10527_v53  ;;  %vm1497_vm6 = vweird.f32 %v10527_v53 }
 0x324   :  { %7640 = vtanh.f32 %v10654_v23  ;;  %v1490_v17 = vsel %vm1487_vm0, %v1489_v50, %v1485_v19  ;;  %v1496_v24 = vadd.f32 %v10599_v41, %v1495_v58  ;;  %vm1457_vm15 = vcmp.eq.f32.partialorder %v1456_v44, 8.507059e+37  ;;  %vm10724_vm3 = vmor %vm1497_vm6, %vm1498_vm14 }
 0x325   :  { %7642 = vrcp.f32 %v10652_v25  ;;  %v1460_v14 = vsel %vm1457_vm15, %v1459_v1, %v1455_v10  ;;  %v1473_v22 = vand.u32 2147483648, %v10530_v33  ;;  %v1466_v8 = vadd.f32 %v10607_v39, %v1465_v18 }
 0x326   :  { %v1287_v37 = vpop.f32.mrf.mxu1  ;;  %v1471_v58 = vand.u32 2147483647, %v10530_v33  ;;  %v1543_v19 = vmul.f32 %v1460_v14, %v10314_v34  ;;  %v1411_v44 = vand.u32 2147483647, %v10480_v61  ;;  %vm1513_vm13 = vweird.f32 %v10658_v52 }
 0x327   :  { %v7639_v46 = vpop.eup %7638  ;;  %v1307_v21 = vadd.f32 %v1287_v37, %v10496_v9  ;;  %v1400_v9 = vsel %vm10628_vm7, %v10605_v47, %v1395_v11  ;;  %v1509_v11 = vsub.f32 1.0, %v1508_v15  ;;  %vm1467_vm7 = vweird.f32 %v10530_v33  ;;  %vm1514_vm0 = vmor %vm1512_vm4, %vm1513_vm13  ;;  %v10872_v33 = vld [vmem:[%s16626_s2 + $0x58] sm:$0xff] }
 0x328   :  { %v1546_v3 = vmul.f32 %v7639_v46, %v1385_v5  ;;  %vm10742_vm10 = vmor %vm1467_vm7, %vm1468_vm1  ;;  %v1474_v50 = vor.u32 1.1754944e-38, %v1473_v22  ;;  %vm1472_vm8 = vcmp.eq.f32.partialorder %v1471_v58, 8.507059e+37  ;;  %v1518_v18 = vand.u32 2147483648, %v10581_v51 }
 0x329   :  { %7644 = vtanh.f32 %v1307_v21  ;;  %v1510_v46 = vmul.f32 %v10658_v52, %v1509_v11  ;;  %v1500_v21 = vsel %vm10724_vm3, %v10599_v41, %v1496_v24  ;;  %v1470_v34 = vsel %vm10742_vm10, %v10607_v39, %v1466_v8  ;;  %v17001_v8 = vld [vmem:[#allocation33_spill] sm:$0xff] }
 0x32a   :  { %v7641_v5 = vpop.eup %7640  ;;  %v10701_v47 = vadd.f32 %v1546_v3, %v1542_v6  ;;  %v1504_v3 = vor.u32 1.1754944e-38, %v1503_v35  ;;  %v1410_v39 = vsel %vm10755_vm9, %v10546_v31, %v1406_v13  ;;  %v1475_v61 = vsel %vm1472_vm8, %v1474_v50, %v1470_v34  ;;  %v10837_v6 = vld [vmem:[%s16626_s2 + $0x30] sm:$0xff]  ;;  %v10851_v50 = vld [vmem:[%s16626_s2 + $0x40] sm:$0xff]  ;;  %v10858_v34 = vld [vmem:[%s16626_s2 + $0x48] sm:$0xff] }
 0x32b   :  { %v10705_v36 = vmul.f32 %v7641_v5, %v1490_v17  ;;  %v10707_v45 = vpop.eup %7642  ;;  %v1511_v42 = vadd.f32 %v10658_v52, %v1510_v46  ;;  %v1516_v10 = vand.u32 2147483647, %v10581_v51  ;;  %vm1412_vm11 = vcmp.eq.f32.partialorder %v1411_v44, 8.507059e+37  ;;  %v10823_v44 = vld [vmem:[%s16626_s2 + $0x20] sm:$0xff] }
 0x32c   :  { %7646 = vtanh.f32 %v10701_v47  ;;  %v1544_v14 = vmul.f32 %v1475_v61, %v10326_v60  ;;  %v1519_v55 = vor.u32 1.1754944e-38, %v1518_v18  ;;  %vm1528_vm14 = vweird.f32 %v10707_v45 }
 0x32d   :  { %v10716_v12 = vadd.f32 %v10705_v36, %v10507_v48  ;;  %v1523_v48 = vmul.f32 %v10707_v45, %v10652_v25  ;;  %v1515_v31 = vsel %vm1514_vm0, %v10658_v52, %v1511_v42  ;;  %vm1517_vm12 = vcmp.eq.f32.partialorder %v1516_v10, 8.507059e+37  ;;  %v10886_v42 = vld [vmem:[%s16626_s2 + $0x68] sm:$0xff] }
 0x32e   :  { %v1290_v37 = vpop.f32.mrf.mxu1  ;;  %v1520_v51 = vsel %vm1517_vm12, %v1519_v55, %v1515_v31  ;;  %vm1527_vm15 = vweird.f32 %v10652_v25  ;;  %v1531_v60 = vand.u32 2147483647, %v10652_v25  ;;  %v17004_v55 = vld [vmem:[#allocation37_spill] sm:$0xff] }
 0x32f   :  { %v7645_v53 = vpop.eup %7644  ;;  %v1308_v57 = vadd.f32 %v1290_v37, %v10500_v0  ;;  %v1414_v0 = vor.u32 1.1754944e-38, %v1413_v32  ;;  %v1524_v32 = vsub.f32 1.0, %v1523_v48  ;;  %vm1529_vm6 = vmor %vm1527_vm15, %vm1528_vm14 }
 0x330   :  { %v1547_v15 = vmul.f32 %v7645_v53, %v1400_v9  ;;  %v1505_v9 = vsel %vm1502_vm5, %v1504_v3, %v1500_v21  ;;  %vm1532_vm7 = vcmp.eq.f32.partialorder %v1531_v60, 8.507059e+37 }
 0x331   :  { %7648 = vtanh.f32 %v1308_v57  ;;  %v1415_v24 = vsel %vm1412_vm11, %v1414_v0, %v1410_v39  ;;  %v1525_v35 = vmul.f32 %v10707_v45, %v1524_v32  ;;  %v1533_v57 = vand.u32 2147483648, %v10652_v25  ;;  %v10795_v25 = vld [vmem:[%s16626_s2] sm:$0xff]  ;;  %v10830_v0 = vld [vmem:[%s16626_s2 + $0x28] sm:$0xff] }
 0x332   :  { %v7647_v41 = vpop.eup %7646  ;;  %v10749_v1 = vadd.f32 %v1547_v15, %v1543_v19  ;;  %v17002_v15 = vld [vmem:[#allocation32_spill] sm:$0xff] }
 0x333   :  { %v1558_v5 = vmul.f32 %v7647_v41, %v1505_v9  ;;  %v1526_v63 = vadd.f32 %v10707_v45, %v1525_v35  ;;  %v1534_v46 = vor.u32 1.1754944e-38, %v1533_v57  ;;  %v1159_v58 = vadd.f32 %v10375_v49, %v17002_v15  ;;  %v10802_v49 = vld [vmem:[%s16626_s2 + $0x8] sm:$0xff]  ;;  %v10844_v41 = vld [vmem:[%s16626_s2 + $0x38] sm:$0xff]  ;;  %v10865_v9 = vld [vmem:[%s16626_s2 + $0x50] sm:$0xff] }
 0x334   :  { %7650 = vtanh.f32 %v10749_v1  ;;  %v10879_v32 = vld [vmem:[%s16626_s2 + $0x60] sm:$0xff] }
 0x335   :  { %v10769_v17 = vadd.f32 %v1558_v5, %v10524_v28  ;;  %v1158_v28 = vadd.f32 %v10382_v40, %v17001_v8  ;;  %v1530_v48 = vsel %vm1529_vm6, %v10707_v45, %v1526_v63  ;;  %v10816_v45 = vld [vmem:[%s16626_s2 + $0x18] sm:$0xff]  ;;  %v17003_v35 = vld [vmem:[#allocation36_spill] sm:$0xff] }
 0x336   :  { %v1535_v21 = vsel %vm1532_vm7, %v1534_v46, %v1530_v48  ;;  %v1586_v31 = vadd.f32 %v17003_v35, %v9202_v27  ;;  %v17006_v48 = vld [vmem:[#allocation39_spill] sm:$0xff] }
 0x337   :  { %v7649_v11 = vpop.eup %7648  ;;  %v1592_v46 = vadd.f32 %v17006_v48, %v16949_v16 }
 0x338   :  { %v1548_v13 = vmul.f32 %v7649_v11, %v1415_v24 }
 0x33a   :  { %v7651_v22 = vpop.eup %7650  ;;  %v10774_v37 = vadd.f32 %v1548_v13, %v1544_v14 }
 0x33b   :  { %v1559_v53 = vmul.f32 %v7651_v22, %v1520_v51  ;;  %v1589_v22 = vadd.f32 %v17004_v55, %v9206_v4  ;;  %v17005_v51 = vld [vmem:[#allocation42_spill] sm:$0xff]  ;;  %v17009_v55 = vld [vmem:[#allocation41_spill] sm:$0xff] }
 0x33c   :  { %7652 = vtanh.f32 %v10774_v37  ;;  %v1598_v8 = vadd.f32 %v17005_v51, %v9232_v30 }
 0x33d   :  { %v10784_v52 = vadd.f32 %v1559_v53, %v1158_v28 }
 0x342   :  { %v7653_v40 = vpop.eup %7652 }
 0x343   :  { %v1560_v19 = vmul.f32 %v7653_v40, %v1535_v21  ;;  %v17007_v40 = vld [vmem:[#allocation44_spill] sm:$0xff] }
 0x344   :  { %v1601_v21 = vadd.f32 %v17007_v40, %v16951_v26 }
 0x345   :  { %v10789_v3 = vadd.f32 %v1560_v19, %v1159_v58  ;;  %1645 = vmatpush.msrb.mxu3 %v1560_v19 }
 0x347   :  { %1646 = vmatpush.msrb.mxu3 %v1559_v53 }
 0x349   :  { %1647 = vmatpush.msrb.mxu3 %v1558_v5  ;;  %v10893_v5 = vld [vmem:[%s16626_s2 + $0x70] sm:$0xff] }
 0x34b   :  { %1648 = vmatpush.msrb.mxu3 %v10705_v36  ;;  %v10809_v36 = vld [vmem:[%s16626_s2 + $0x10] sm:$0xff] }
 0x34c   :  { %7023 = vmatmul.msk.f32.vlgmr.msrb.gmra.mxu3 %vm369_vm2, %v10795_v25 }
 0x354   :  { %7024 = vmatmul.msk.f32.gmra.mxu3 %vm369_vm2, %v10802_v49 }
 0x35c   :  { %7025 = vmatmul.msk.f32.gmra.mxu3 %vm369_vm2, %v10809_v36 }
 0x364   :  { %7026 = vmatmul.msk.f32.gmra.mxu3 %vm369_vm2, %v10816_v45 }
 0x36c   :  { %7027 = vmatmul.msk.f32.gmra.mxu3 %vm369_vm2, %v10823_v44 }
 0x374   :  { %7028 = vmatmul.msk.f32.gmra.mxu3 %vm369_vm2, %v10830_v0 }
 0x37c   :  { %7029 = vmatmul.msk.f32.gmra.mxu3 %vm369_vm2, %v10837_v6 }
 0x384   :  { %7030 = vmatmul.msk.f32.gmra.mxu3 %vm369_vm2, %v10844_v41 }
 0x38c   :  { %7031 = vmatmul.msk.f32.gmra.mxu3 %vm369_vm2, %v10851_v50 }
 0x394   :  { %7032 = vmatmul.msk.f32.gmra.mxu3 %vm369_vm2, %v10858_v34 }
 0x39c   :  { %7033 = vmatmul.msk.f32.gmra.mxu3 %vm369_vm2, %v10865_v9 }
 0x3a4   :  { %7034 = vmatmul.msk.f32.gmra.mxu3 %vm369_vm2, %v10872_v33 }
 0x3ac   :  { %7035 = vmatmul.msk.f32.gmra.mxu3 %vm369_vm2, %v10879_v32 }
 0x3b4   :  { %7036 = vmatmul.msk.f32.gmra.mxu3 %vm369_vm2, %v10886_v42 }
 0x3bc   :  { %7037 = vmatmul.msk.f32.gmra.mxu3 %vm369_vm2, %v10893_v5 }
 0x3c4   :  { %7038 = vmatmul.msk.f32.gmra.mxu3 %vm369_vm2, %v10425_v62 }
 0x3cf   :  { %v1650_v39 = vpop.f32.mrf.mxu3 }
 0x3d0   :  { %v1698_v14 = vadd.f32 %v1650_v39, %v1586_v31 }
 0x3d2   :  { %v7039_v63 = vmul.f32 -1.442695, %v1698_v14 }
 0x3d4   :  { %7654 = vpow2.f32 %v7039_v63 }
 0x3d7   :  { %v1653_v18 = vpop.f32.mrf.mxu3 }
 0x3d8   :  { %v1699_v28 = vadd.f32 %v1653_v18, %v1589_v22  ;;  %v17008_v18 = vld [vmem:[#allocation50_spill] sm:$0xff]  ;;  %v1595_v22 = vadd.f32 %v17009_v55, %v16955_v2 }
 0x3da   :  { %v7040_v53 = vmul.f32 -1.442695, %v1699_v28  ;;  %v7655_v19 = vpop.eup %7654  ;;  %v17010_v28 = vld [vmem:[#allocation46_spill] sm:$0xff] }
 0x3db   :  { %v10913_v51 = vadd.f32 1.0, %v7655_v19  ;;  %v1604_v63 = vadd.f32 %v17010_v28, %v16957_v20  ;;  %v17020_v20 = vld [vmem:[#allocation64_spill] sm:$0xff] }
 0x3dc   :  { %7656 = vpow2.f32 %v7040_v53 }
 0x3dd   :  { %vm1767_vm3 = vweird.f32 %v10913_v51 }
 0x3df   :  { %v1656_v61 = vpop.f32.mrf.mxu3 }
 0x3e0   :  { %v1700_v15 = vadd.f32 %v1656_v61, %v1592_v46 }
 0x3e2   :  { %v7041_v39 = vmul.f32 -1.442695, %v1700_v15  ;;  %v7657_v14 = vpop.eup %7656 }
 0x3e7   :  { %v1659_v10 = vpop.f32.mrf.mxu3 }
 0x3ef   :  { %v1662_v11 = vpop.f32.mrf.mxu3 }
 0x3f0   :  { %v1702_v62 = vadd.f32 %v1662_v11, %v1598_v8  ;;  %v1610_v11 = vadd.f32 %v17008_v18, %v16953_v59 }
 0x3f2   :  { %v7043_v60 = vmul.f32 -1.442695, %v1702_v62  ;;  %v10917_v62 = vadd.f32 1.0, %v7657_v14 }
 0x3f4   :  { %7658 = vpow2.f32 %v7043_v60  ;;  %vm1782_vm9 = vweird.f32 %v10917_v62 }
 0x3f5   :  { %7660 = vpow2.f32 %v7041_v39 }
 0x3f7   :  { %v1665_v24 = vpop.f32.mrf.mxu3 }
 0x3f8   :  { %v1703_v58 = vadd.f32 %v1665_v24, %v1601_v21  ;;  %v1701_v24 = vadd.f32 %v1659_v10, %v1595_v22  ;;  %v17011_v21 = vld [vmem:[#allocation52_spill] sm:$0xff] }
 0x3f9   :  { %v1613_v15 = vadd.f32 %v17011_v21, %v16959_v54  ;;  %v17012_v10 = vld [vmem:[#allocation48_spill] sm:$0xff] }
 0x3fa   :  { %v7044_v31 = vmul.f32 -1.442695, %v1703_v58  ;;  %v7659_v8 = vpop.eup %7658  ;;  %v7042_v46 = vmul.f32 -1.442695, %v1701_v24  ;;  %v1607_v39 = vadd.f32 %v17012_v10, %v16961_v56 }
 0x3fb   :  { %v10920_v60 = vadd.f32 1.0, %v7659_v8  ;;  %v7661_v19 = vpop.eup %7660 }
 0x3fc   :  { %7662 = vpow2.f32 %v7044_v31  ;;  %v10930_v31 = vadd.f32 1.0, %v7661_v19 }
 0x3fd   :  { %7664 = vrcp.f32 %v10913_v51  ;;  %vm1827_vm11 = vweird.f32 %v10920_v60 }
 0x3fe   :  { %7666 = vrcp.f32 %v10917_v62  ;;  %vm1797_vm14 = vweird.f32 %v10930_v31 }
 0x3ff   :  { %v1668_v13 = vpop.f32.mrf.mxu3  ;;  %7668 = vrcp.f32 %v10920_v60 }
 0x400   :  { %v1704_v53 = vadd.f32 %v1668_v13, %v1604_v63 }
 0x402   :  { %v7045_v58 = vmul.f32 -1.442695, %v1704_v53  ;;  %v7663_v13 = vpop.eup %7662  ;;  %v17013_v53 = vld [vmem:[#allocation54_spill] sm:$0xff] }
 0x403   :  { %v10928_v18 = vpop.eup %7664  ;;  %v10932_v14 = vadd.f32 1.0, %v7663_v13 }
 0x404   :  { %v10934_v55 = vpop.eup %7666  ;;  %v1763_v22 = vmul.f32 %v10928_v18, %v10913_v51  ;;  %vm1768_vm1 = vweird.f32 %v10928_v18 }
 0x405   :  { %v10938_v28 = vpop.eup %7668  ;;  %vm11003_vm5 = vmor %vm1767_vm3, %vm1768_vm1  ;;  %vm1783_vm13 = vweird.f32 %v10934_v55  ;;  %vm1842_vm1 = vweird.f32 %v10932_v14 }
 0x406   :  { %vm1828_vm4 = vweird.f32 %v10938_v28  ;;  %vm11054_vm12 = vmor %vm1782_vm9, %vm1783_vm13 }
 0x407   :  { %v1671_v57 = vpop.f32.mrf.mxu3  ;;  %vm11036_vm0 = vmor %vm1827_vm11, %vm1828_vm4 }
 0x40f   :  { %v1674_v35 = vpop.f32.mrf.mxu3 }
 0x410   :  { %v1706_v61 = vadd.f32 %v1674_v35, %v1610_v11  ;;  %v1705_v11 = vadd.f32 %v1671_v57, %v1607_v39  ;;  %v17014_v39 = vld [vmem:[#allocation56_spill] sm:$0xff] }
 0x411   :  { %v1619_v13 = vadd.f32 %v17014_v39, %v16965_v43 }
 0x412   :  { %v7047_v48 = vmul.f32 -1.442695, %v1706_v61  ;;  %v7046_v63 = vmul.f32 -1.442695, %v1705_v11 }
 0x414   :  { %7670 = vpow2.f32 %v7047_v48  ;;  %v1616_v48 = vadd.f32 %v17013_v53, %v16963_v7  ;;  %v17018_v7 = vld [vmem:[#allocation62_spill] sm:$0xff] }
 0x415   :  { %7672 = vpow2.f32 %v7042_v46 }
 0x416   :  { %7674 = vpow2.f32 %v7045_v58  ;;  %v1823_v58 = vmul.f32 %v10938_v28, %v10920_v60 }
 0x417   :  { %v1677_v40 = vpop.f32.mrf.mxu3  ;;  %7676 = vrcp.f32 %v10930_v31 }
 0x418   :  { %v1707_v35 = vadd.f32 %v1677_v40, %v1613_v15  ;;  %7678 = vrcp.f32 %v10932_v14  ;;  %v1764_v40 = vsub.f32 1.0, %v1763_v22  ;;  %v1778_v15 = vmul.f32 %v10934_v55, %v10917_v62  ;;  %v17015_v22 = vld [vmem:[#allocation58_spill] sm:$0xff] }
 0x419   :  { %v1824_v39 = vsub.f32 1.0, %v1823_v58 }
 0x41a   :  { %v7048_v8 = vmul.f32 -1.442695, %v1707_v35  ;;  %v7671_v24 = vpop.eup %7670 }
 0x41b   :  { %v7673_v57 = vpop.eup %7672  ;;  %v10948_v19 = vadd.f32 1.0, %v7671_v24  ;;  %v1825_v59 = vmul.f32 %v10938_v28, %v1824_v39 }
 0x41c   :  { %v7675_v46 = vpop.eup %7674  ;;  %7680 = vpow2.f32 %v7048_v8  ;;  %v10950_v10 = vadd.f32 1.0, %v7673_v57  ;;  %v1622_v8 = vadd.f32 %v17015_v22, %v16967_v38  ;;  %v17017_v57 = vld [vmem:[#allocation29_spill] sm:$0xff]  ;;  %v17019_v38 = vld [vmem:[#allocation26_spill] sm:$0xff] }
 0x41d   :  { %7682 = vpow2.f32 %v7046_v63  ;;  %v10954_v35 = vadd.f32 1.0, %v7675_v46  ;;  %v10956_v11 = vpop.eup %7676  ;;  %v1765_v63 = vmul.f32 %v10928_v18, %v1764_v40  ;;  %v10969_v56 = vadd.f32 %v17018_v7, %v17017_v57 }
 0x41e   :  { %v10965_v24 = vpop.eup %7678  ;;  %v1779_v46 = vsub.f32 1.0, %v1778_v15  ;;  %7684 = vrcp.f32 %v10948_v19  ;;  %v1773_v40 = vand.u32 2147483648, %v10913_v51  ;;  %v1788_v15 = vand.u32 2147483648, %v10917_v62 }
 0x41f   :  { %v1680_v61 = vpop.f32.mrf.mxu3  ;;  %7686 = vrcp.f32 %v10950_v10  ;;  %v1838_v58 = vmul.f32 %v10965_v24, %v10932_v14  ;;  %v1766_v57 = vadd.f32 %v10928_v18, %v1765_v63  ;;  %v10986_v2 = vadd.f32 %v17020_v20, %v17019_v38 }
 0x420   :  { %v1708_v21 = vadd.f32 %v1680_v61, %v1616_v48  ;;  %v17016_v61 = vld [vmem:[#allocation60_spill] sm:$0xff]  ;;  %7688 = vrcp.f32 %v10954_v35  ;;  %v1774_v63 = vor.u32 1.1754944e-38, %v1773_v40  ;;  %v1831_v38 = vand.u32 2147483647, %v10920_v60 }
 0x421   :  { %v10962_v53 = vadd.f32 %v17016_v61, %v16969_v29  ;;  %v1793_v61 = vmul.f32 %v10956_v11, %v10930_v31  ;;  %v1786_v29 = vand.u32 2147483647, %v10917_v62  ;;  %vm1798_vm6 = vweird.f32 %v10956_v11 }
 0x422   :  { %v7049_v48 = vmul.f32 -1.442695, %v1708_v21  ;;  %v7681_v54 = vpop.eup %7680  ;;  %v1771_v21 = vand.u32 2147483647, %v10913_v51  ;;  %v1839_v51 = vsub.f32 1.0, %v1838_v58  ;;  %vm1832_vm15 = vcmp.eq.f32.partialorder %v1831_v38, 8.507059e+37  ;;  %vm11085_vm3 = vmor %vm1797_vm14, %vm1798_vm6 }
 0x423   :  { %v7683_v22 = vpop.eup %7682  ;;  %v10989_v26 = vadd.f32 1.0, %v7681_v54  ;;  %v1794_v30 = vsub.f32 1.0, %v1793_v61  ;;  %vm11014_vm8 = vcmp.eq.f32.partialorder %v1786_v29, 8.507059e+37  ;;  %vm1843_vm7 = vweird.f32 %v10965_v24 }
 0x424   :  { %7690 = vpow2.f32 %v7049_v48  ;;  %vm10995_vm10 = vcmp.eq.f32.partialorder %v1771_v21, 8.507059e+37  ;;  %v10999_v16 = vpop.eup %7684  ;;  %v1770_v21 = vsel %vm11003_vm5, %v10928_v18, %v1766_v57  ;;  %v1833_v57 = vand.u32 2147483648, %v10920_v60 }
 0x425   :  { %v11008_v39 = vpop.eup %7686  ;;  %7692 = vrcp.f32 %v10989_v26  ;;  %v1883_v54 = vmul.f32 %v10999_v16, %v10948_v19  ;;  %v1795_v4 = vmul.f32 %v10956_v11, %v1794_v30  ;;  %vm1888_vm9 = vweird.f32 %v10999_v16 }
 0x426   :  { %v11019_v61 = vpop.eup %7688  ;;  %v1834_v48 = vor.u32 1.1754944e-38, %v1833_v57  ;;  %vm1857_vm13 = vweird.f32 %v10954_v35  ;;  %vm1887_vm4 = vweird.f32 %v10948_v19  ;;  %vm1812_vm6 = vweird.f32 %v10950_v10 }
 0x427   :  { %v1683_v43 = vpop.f32.mrf.mxu3  ;;  %v1853_v60 = vmul.f32 %v11019_v61, %v10954_v35  ;;  %vm1858_vm11 = vweird.f32 %v11019_v61 }
 0x428   :  { %v1709_v7 = vadd.f32 %v1683_v43, %v1619_v13  ;;  %v1780_v43 = vmul.f32 %v10934_v55, %v1779_v46  ;;  %v10992_v13 = vadd.f32 1.0, %v7683_v22  ;;  %v1789_v46 = vor.u32 1.1754944e-38, %v1788_v15  ;;  %vm11153_vm14 = vmor %vm1857_vm13, %vm1858_vm11 }
 0x429   :  { %v1803_v22 = vand.u32 2147483648, %v10930_v31  ;;  %v1826_v15 = vadd.f32 %v10938_v28, %v1825_v59  ;;  %v1808_v59 = vmul.f32 %v11008_v39, %v10950_v10 }
 0x42a   :  { %v7050_v20 = vmul.f32 -1.442695, %v1709_v7  ;;  %v1781_v58 = vadd.f32 %v10934_v55, %v1780_v43  ;;  %v7691_v18 = vpop.eup %7690  ;;  %7694 = vrcp.f32 %v10992_v13 }
 0x42b   :  { %v1830_v30 = vsel %vm11036_vm0, %v10938_v28, %v1826_v15  ;;  %v11066_v28 = vadd.f32 %v10956_v11, %v1795_v4  ;;  %v11069_v62 = vor.u32 1.1754944e-38, %v1803_v22  ;;  %v1809_v57 = vsub.f32 1.0, %v1808_v59  ;;  %vm11135_vm0 = vmor %vm1887_vm4, %vm1888_vm9 }
 0x42c   :  { %7696 = vpow2.f32 %v7050_v20  ;;  %v11045_v20 = vadd.f32 1.0, %v7691_v18  ;;  %v11063_v18 = vpop.eup %7692  ;;  %v1835_v27 = vsel %vm1832_vm15, %v1834_v48, %v1830_v30  ;;  %v1818_v48 = vand.u32 2147483648, %v10950_v10 }
 0x42f   :  { %v1686_v7 = vpop.f32.mrf.mxu3 }
 0x430   :  { %v1710_v29 = vadd.f32 %v1686_v7, %v1622_v8  ;;  %v1840_v8 = vmul.f32 %v10965_v24, %v1839_v51  ;;  %v1775_v7 = vsel %vm10995_vm10, %v1774_v63, %v1770_v21  ;;  %v1785_v63 = vsel %vm11054_vm12, %v10934_v55, %v1781_v58  ;;  %v11071_v15 = vpop.eup %7694  ;;  %vm11094_vm10 = vmor %vm1842_vm1, %vm1843_vm7 }
 0x431   :  { %v1801_v51 = vand.u32 2147483647, %v10930_v31  ;;  %v1884_v21 = vsub.f32 1.0, %v1883_v54  ;;  %v1790_v38 = vsel %vm11014_vm8, %v1789_v46, %v1785_v63  ;;  %v1848_v54 = vand.u32 2147483648, %v10932_v14 }
 0x432   :  { %7698 = vtanh.f32 %v1710_v29  ;;  %v1841_v55 = vadd.f32 %v10965_v24, %v1840_v8  ;;  %v7697_v58 = vpop.eup %7696  ;;  %v1854_v29 = vsub.f32 1.0, %v1853_v60  ;;  %v1898_v8 = vmul.f32 %v11063_v18, %v10989_v26 }
 0x433   :  { %7700 = vrcp.f32 %v11045_v20  ;;  %v1885_v60 = vmul.f32 %v10999_v16, %v1884_v21  ;;  %v1846_v31 = vand.u32 2147483647, %v10932_v14  ;;  %vm11100_vm5 = vcmp.eq.f32.partialorder %v1801_v51, 8.507059e+37 }
 0x434   :  { %v1845_v63 = vsel %vm11094_vm10, %v10965_v24, %v1841_v55  ;;  %v1800_v21 = vsel %vm11085_vm3, %v10956_v11, %v11066_v28  ;;  %v1855_v14 = vmul.f32 %v11019_v61, %v1854_v29  ;;  %v11116_v51 = vadd.f32 1.0, %v7697_v58 }
 0x435   :  { %v1886_v24 = vadd.f32 %v10999_v16, %v1885_v60  ;;  %vm1847_vm8 = vcmp.eq.f32.partialorder %v1846_v31, 8.507059e+37  ;;  %v1893_v11 = vand.u32 2147483648, %v10948_v19  ;;  %v1863_v28 = vand.u32 2147483648, %v10954_v35 }
 0x436   :  { %v1891_v58 = vand.u32 2147483647, %v10948_v19  ;;  %vm1813_vm12 = vweird.f32 %v11008_v39  ;;  %vm1903_vm7 = vweird.f32 %v11063_v18  ;;  %vm1902_vm3 = vweird.f32 %v10989_v26 }
 0x437   :  { %v1689_v4 = vpop.f32.mrf.mxu3  ;;  %vm1872_vm10 = vweird.f32 %v10992_v13  ;;  %vm11188_vm9 = vmor %vm1902_vm3, %vm1903_vm7 }
 0x438   :  { %v7699_v22 = vpop.eup %7698  ;;  %v1711_v59 = vadd.f32 %v1689_v4, %v10962_v53  ;;  %v1946_v53 = vmul.f32 %v1835_v27, %v10654_v23  ;;  %v1810_v23 = vmul.f32 %v11008_v39, %v1809_v57  ;;  %v1849_v4 = vor.u32 1.1754944e-38, %v1848_v54  ;;  %vm11219_vm4 = vmor %vm1812_vm6, %vm1813_vm12 }
 0x439   :  { %v1950_v40 = vmul.f32 %v7699_v22, %v1775_v7  ;;  %v1868_v7 = vmul.f32 %v11071_v15, %v10992_v13  ;;  %v1899_v22 = vsub.f32 1.0, %v1898_v8  ;;  %v11122_v55 = vpop.eup %7700  ;;  %vm1892_vm15 = vcmp.eq.f32.partialorder %v1891_v58, 8.507059e+37 }
 0x43a   :  { %7702 = vtanh.f32 %v1711_v59  ;;  %v1850_v57 = vsel %vm1847_vm8, %v1849_v4, %v1845_v63  ;;  %v1856_v59 = vadd.f32 %v11019_v61, %v1855_v14  ;;  %v1913_v19 = vmul.f32 %v11122_v55, %v11045_v20 }
 0x43b   :  { %v11118_v27 = vadd.f32 %v1950_v40, %v1946_v53  ;;  %v1869_v29 = vsub.f32 1.0, %v1868_v7  ;;  %v1900_v46 = vmul.f32 %v11063_v18, %v1899_v22  ;;  %v1890_v53 = vsel %vm11135_vm0, %v10999_v16, %v1886_v24 }
 0x43c   :  { %v1947_v40 = vmul.f32 %v1850_v57, %v10701_v47  ;;  %v1861_v63 = vand.u32 2147483647, %v10954_v35  ;;  %v1894_v14 = vor.u32 1.1754944e-38, %v1893_v11  ;;  %v1864_v7 = vor.u32 1.1754944e-38, %v1863_v28 }
 0x43d   :  { %7704 = vtanh.f32 %v11118_v27  ;;  %v1805_v16 = vsel %vm11100_vm5, %v11069_v62, %v1800_v21  ;;  %v1860_v35 = vsel %vm11153_vm14, %v11019_v61, %v1856_v59  ;;  %v1914_v24 = vsub.f32 1.0, %v1913_v19 }
 0x43e   :  { %7706 = vrcp.f32 %v11116_v51  ;;  %v1895_v22 = vsel %vm1892_vm15, %v1894_v14, %v1890_v53  ;;  %v1901_v11 = vadd.f32 %v11063_v18, %v1900_v46  ;;  %vm1862_vm1 = vcmp.eq.f32.partialorder %v1861_v63, 8.507059e+37 }
 0x43f   :  { %v1692_v54 = vpop.f32.mrf.mxu3  ;;  %v1811_v21 = vadd.f32 %v11008_v39, %v1810_v23  ;;  %v1908_v28 = vand.u32 2147483648, %v10989_v26  ;;  %v1865_v61 = vsel %vm1862_vm1, %v1864_v7, %v1860_v35  ;;  %v1906_v57 = vand.u32 2147483647, %v10989_v26 }
 0x440   :  { %v7703_v8 = vpop.eup %7702  ;;  %v1712_v60 = vadd.f32 %v1692_v54, %v10969_v56  ;;  %vm1873_vm5 = vweird.f32 %v11071_v15  ;;  %v1948_v19 = vmul.f32 %v1865_v61, %v10749_v1  ;;  %v1876_v53 = vand.u32 2147483647, %v10992_v13 }
 0x441   :  { %v1951_v31 = vmul.f32 %v7703_v8, %v1790_v38  ;;  %v1870_v38 = vmul.f32 %v11071_v15, %v1869_v29  ;;  %v1878_v29 = vand.u32 2147483648, %v10992_v13  ;;  %v1915_v8 = vmul.f32 %v11122_v55, %v1914_v24  ;;  %vm11203_vm13 = vmor %vm1872_vm10, %vm1873_vm5 }
 0x442   :  { %7708 = vtanh.f32 %v1712_v60  ;;  %v1905_v60 = vsel %vm11188_vm9, %v11063_v18, %v1901_v11  ;;  %v1819_v63 = vor.u32 1.1754944e-38, %v1818_v48  ;;  %vm1907_vm8 = vcmp.eq.f32.partialorder %v1906_v57, 8.507059e+37 }
 0x443   :  { %v7705_v47 = vpop.eup %7704  ;;  %v11161_v4 = vadd.f32 %v1951_v31, %v1947_v40  ;;  %v1871_v54 = vadd.f32 %v11071_v15, %v1870_v38  ;;  %v1909_v40 = vor.u32 1.1754944e-38, %v1908_v28  ;;  %v1879_v14 = vor.u32 1.1754944e-38, %v1878_v29 }
 0x444   :  { %v11169_v62 = vmul.f32 %v7705_v47, %v1895_v22  ;;  %v11171_v30 = vpop.eup %7706  ;;  %v1916_v48 = vadd.f32 %v11122_v55, %v1915_v8  ;;  %vm1918_vm11 = vweird.f32 %v11122_v55  ;;  %v1815_v38 = vsel %vm11219_vm4, %v11008_v39, %v1811_v21 }
 0x445   :  { %7710 = vtanh.f32 %v11161_v4  ;;  %v1875_v56 = vsel %vm11203_vm13, %v11071_v15, %v1871_v54  ;;  %v1910_v13 = vsel %vm1907_vm8, %v1909_v40, %v1905_v60  ;;  %vm1877_vm0 = vcmp.eq.f32.partialorder %v1876_v53, 8.507059e+37 }
 0x446   :  { %v11180_v58 = vadd.f32 %v11169_v62, %v10716_v12  ;;  %v1928_v12 = vmul.f32 %v11171_v30, %v11116_v51  ;;  %v1923_v15 = vand.u32 2147483648, %v11045_v20  ;;  %v1880_v35 = vsel %vm1877_vm0, %v1879_v14, %v1875_v56  ;;  %v17053_v56 = vld [vmem:[#allocation11_spill] sm:$0xff] }
 0x447   :  { %v1695_v23 = vpop.f32.mrf.mxu3  ;;  %vm1917_vm12 = vweird.f32 %v11045_v20  ;;  %v1949_v21 = vmul.f32 %v1880_v35, %v10774_v37  ;;  %vm1933_vm7 = vweird.f32 %v11171_v30  ;;  %v1938_v59 = vand.u32 2147483648, %v11116_v51 }
 0x448   :  { %v7709_v26 = vpop.eup %7708  ;;  %v1713_v43 = vadd.f32 %v1695_v23, %v10986_v2  ;;  %v1816_v2 = vand.u32 2147483647, %v10950_v10  ;;  %v1929_v7 = vsub.f32 1.0, %v1928_v12  ;;  %v1921_v10 = vand.u32 2147483647, %v11045_v20  ;;  %vm1919_vm15 = vmor %vm1917_vm12, %vm1918_vm11 }
 0x449   :  { %v1952_v46 = vmul.f32 %v7709_v26, %v1805_v16  ;;  %v1920_v39 = vsel %vm1919_vm15, %v11122_v55, %v1916_v48  ;;  %v1924_v57 = vor.u32 1.1754944e-38, %v1923_v15  ;;  %vm1932_vm1 = vweird.f32 %v11116_v51  ;;  %v17055_v16 = vld [vmem:[#allocation18_spill] sm:$0xff]  ;;  %v17056_v48 = vld [vmem:[#allocation8_spill] sm:$0xff] }
 0x44a   :  { %7712 = vtanh.f32 %v1713_v43  ;;  %vm1817_vm14 = vcmp.eq.f32.partialorder %v1816_v2, 8.507059e+37  ;;  %v1930_v28 = vmul.f32 %v11171_v30, %v1929_v7  ;;  %vm1922_vm6 = vcmp.eq.f32.partialorder %v1921_v10, 8.507059e+37  ;;  %vm1934_vm3 = vmor %vm1932_vm1, %vm1933_vm7 }
 0x44b   :  { %v7711_v18 = vpop.eup %7710  ;;  %v11210_v1 = vadd.f32 %v1952_v46, %v1948_v19  ;;  %v1820_v11 = vsel %vm1817_vm14, %v1819_v63, %v1815_v38  ;;  %v1925_v20 = vsel %vm1922_vm6, %v1924_v57, %v1920_v39  ;;  %v1936_v37 = vand.u32 2147483647, %v11116_v51  ;;  %v17050_v51 = vld [vmem:[#allocation67_spill] sm:$0xff]  ;;  %v17052_v46 = vld [vmem:[#allocation73_spill] sm:$0xff] }
 0x44c   :  { %v1963_v47 = vmul.f32 %v7711_v18, %v1910_v13  ;;  %v1939_v12 = vor.u32 1.1754944e-38, %v1938_v59  ;;  %v17054_v13 = vld [vmem:[#allocation69_spill] sm:$0xff]  ;;  %v17060_v59 = vld [vmem:[#allocation14_spill] sm:$0xff] }
 0x44d   :  { %7714 = vtanh.f32 %v11210_v1  ;;  %vm1937_vm10 = vcmp.eq.f32.partialorder %v1936_v37, 8.507059e+37  ;;  %v1997_v7 = vadd.f32 %v17054_v13, %v17053_v56  ;;  %v17058_v57 = vld [vmem:[#allocation9_spill] sm:$0xff]  ;;  %v17061_v37 = vld [vmem:[#allocation75_spill] sm:$0xff] }
 0x44e   :  { %v11233_v22 = vadd.f32 %v1963_v47, %v10769_v17  ;;  %v1931_v17 = vadd.f32 %v11171_v30, %v1930_v28  ;;  %v17057_v28 = vld [vmem:[#allocation24_spill] sm:$0xff] }
 0x450   :  { %v7713_v24 = vpop.eup %7712  ;;  %v1935_v26 = vsel %vm1934_vm3, %v11171_v30, %v1931_v17  ;;  %v17051_v30 = vld [vmem:[#allocation17_spill] sm:$0xff] }
 0x451   :  { %v1953_v61 = vmul.f32 %v7713_v24, %v1820_v11  ;;  %v1940_v8 = vsel %vm1937_vm10, %v1939_v12, %v1935_v26  ;;  %v2003_v53 = vadd.f32 %v17052_v46, %v17051_v30  ;;  %v2009_v26 = vadd.f32 %v17061_v37, %v17060_v59 }
 0x453   :  { %v7715_v29 = vpop.eup %7714  ;;  %v11238_v23 = vadd.f32 %v1953_v61, %v1949_v21 }
 0x454   :  { %v1964_v54 = vmul.f32 %v7715_v29, %v1925_v20  ;;  %v17059_v29 = vld [vmem:[#allocation71_spill] sm:$0xff] }
 0x455   :  { %7716 = vtanh.f32 %v11238_v23  ;;  %v2000_v20 = vadd.f32 %v17059_v29, %v17058_v57 }
 0x456   :  { %v11247_v55 = vadd.f32 %v1964_v54, %v10784_v52  ;;  %v11287_v52 = vld [vmem:[%s16626_s2 + $0x78] sm:$0xff] }
 0x45b   :  { %v7717_v43 = vpop.eup %7716 }
 0x45c   :  { %v1965_v60 = vmul.f32 %v7717_v43, %v1940_v8 }
 0x45e   :  { %v11251_v19 = vadd.f32 %v1965_v60, %v10789_v3  ;;  %2050 = vmatpush.msra.mxu1 %v1965_v60 }
 0x460   :  { %2051 = vmatpush.msra.mxu1 %v1964_v54 }
 0x462   :  { %2052 = vmatpush.msra.mxu1 %v1963_v47  ;;  %v2006_v47 = vadd.f32 %v17056_v48, %v17055_v16 }
 0x464   :  { %2053 = vmatpush.msra.mxu1 %v11169_v62 }
 0x465   :  { %7068 = vmatmul.msk.f32.vlgmr.msra.gmra.mxu1 %vm369_vm2, %v10795_v25 }
 0x46d   :  { %7069 = vmatmul.msk.f32.gmra.mxu1 %vm369_vm2, %v10802_v49 }
 0x475   :  { %7070 = vmatmul.msk.f32.gmra.mxu1 %vm369_vm2, %v10809_v36  ;;  %v2014_v36 = vpop.f32.mrf.mxu0 }
 0x476   :  { %v2015_v39 = vadd.f32 %v2014_v36, %v17057_v28 }
 0x47d   :  { %7071 = vmatmul.msk.f32.gmra.mxu1 %vm369_vm2, %v10816_v45 }
 0x485   :  { %7072 = vmatmul.msk.f32.gmra.mxu1 %vm369_vm2, %v10823_v44  ;;  %v2017_v44 = vpop.f32.mrf.mxu0 }
 0x48d   :  { %7073 = vmatmul.msk.f32.gmra.mxu1 %vm369_vm2, %v10830_v0 }
 0x495   :  { %7074 = vmatmul.msk.f32.gmra.mxu1 %vm369_vm2, %v10837_v6  ;;  %v11291_v6 = vpop.f32.mrf.mxu0 }
 0x49d   :  { %7075 = vmatmul.msk.f32.gmra.mxu1 %vm369_vm2, %v10844_v41 }
 0x4a5   :  { %7076 = vmatmul.msk.f32.gmra.mxu1 %vm369_vm2, %v10851_v50  ;;  %v17047_v50 = vld [vmem:[#allocation12_spill] sm:$0xff] }
 0x4ad   :  { %7077 = vmatmul.msk.f32.gmra.mxu1 %vm369_vm2, %v10858_v34  ;;  %v17048_v34 = vld [vmem:[#allocation65_spill] sm:$0xff] }
 0x4b5   :  { %7078 = vmatmul.msk.f32.gmra.mxu1 %vm369_vm2, %v10865_v9  ;;  %v1991_v9 = vadd.f32 %v17048_v34, %v17047_v50 }
 0x4bd   :  { %7079 = vmatmul.msk.f32.gmra.mxu1 %vm369_vm2, %v10872_v33 }
 0x4c5   :  { %7080 = vmatmul.msk.f32.gmra.mxu1 %vm369_vm2, %v10879_v32  ;;  %v11295_v32 = vpop.f32.mrf.mxu0 }
 0x4cd   :  { %7081 = vmatmul.msk.f32.gmra.mxu1 %vm369_vm2, %v10886_v42  ;;  %v11305_v38 = vpop.f32.mrf.mxu0 }
 0x4d5   :  { %7082 = vmatmul.msk.f32.gmra.mxu1 %vm369_vm2, %v10893_v5  ;;  %v17049_v5 = vld [vmem:[#allocation13_spill] sm:$0xff]  ;;  %v2029_v8 = vpop.f32.mrf.mxu0 }
 0x4d6   :  { %v1994_v62 = vadd.f32 %v17050_v51, %v17049_v5  ;;  %v17063_v51 = vld [vmem:[#allocation10_spill] sm:$0xff] }
 0x4dd   :  { %7083 = vmatmul.msk.f32.gmra.mxu1 %vm369_vm2, %v11287_v52 }
 0x4e2   :  { %v2055_v3 = vpop.f32.mrf.mxu1 }
 0x4e3   :  { %v2103_v42 = vadd.f32 %v2055_v3, %v1991_v9 }
 0x4e5   :  { %v7084_v31 = vmul.f32 -1.442695, %v2103_v42 }
 0x4e7   :  { %7718 = vpow2.f32 %v7084_v31 }
 0x4ea   :  { %v2058_v25 = vpop.f32.mrf.mxu1 }
 0x4eb   :  { %v2104_v40 = vadd.f32 %v2058_v25, %v1994_v62 }
 0x4ed   :  { %v7085_v63 = vmul.f32 -1.442695, %v2104_v40  ;;  %v7719_v10 = vpop.eup %7718 }
 0x4ee   :  { %v11310_v17 = vadd.f32 1.0, %v7719_v10 }
 0x4ef   :  { %7720 = vpow2.f32 %v7085_v63  ;;  %v2032_v63 = vpop.f32.mrf.mxu0 }
 0x4f0   :  { %vm2172_vm9 = vweird.f32 %v11310_v17 }
 0x4f2   :  { %v2061_v49 = vpop.f32.mrf.mxu1 }
 0x4f3   :  { %v2105_v15 = vadd.f32 %v2061_v49, %v1997_v7 }
 0x4f5   :  { %v7086_v24 = vmul.f32 -1.442695, %v2105_v15  ;;  %v7721_v61 = vpop.eup %7720 }
 0x4f6   :  { %v11314_v60 = vadd.f32 1.0, %v7721_v61 }
 0x4f8   :  { %vm2187_vm4 = vweird.f32 %v11314_v60 }
 0x4fa   :  { %v2064_v45 = vpop.f32.mrf.mxu1 }
 0x4fb   :  { %v2106_v43 = vadd.f32 %v2064_v45, %v2000_v20  ;;  %v17064_v45 = vld [vmem:[#allocation25_spill] sm:$0xff] }
 0x4fc   :  { %v2012_v62 = vadd.f32 %v17064_v45, %v17063_v51 }
 0x4fd   :  { %v7087_v36 = vmul.f32 -1.442695, %v2106_v43 }
 0x502   :  { %v2067_v0 = vpop.f32.mrf.mxu1 }
 0x503   :  { %v2107_v2 = vadd.f32 %v2067_v0, %v2003_v53 }
 0x505   :  { %v7088_v14 = vmul.f32 -1.442695, %v2107_v2 }
 0x507   :  { %7722 = vpow2.f32 %v7088_v14 }
 0x508   :  { %7724 = vpow2.f32 %v7086_v24 }
 0x50a   :  { %v2070_v41 = vpop.f32.mrf.mxu1 }
 0x50b   :  { %v2108_v35 = vadd.f32 %v2070_v41, %v2006_v47  ;;  %v17062_v41 = vld [vmem:[#allocation23_spill] sm:$0xff] }
 0x50c   :  { %v2018_v34 = vadd.f32 %v2017_v44, %v17062_v41 }
 0x50d   :  { %v7089_v21 = vmul.f32 -1.442695, %v2108_v35  ;;  %v7723_v54 = vpop.eup %7722  ;;  %v17065_v35 = vld [vmem:[#allocation21_spill] sm:$0xff] }
 0x50e   :  { %v11317_v25 = vadd.f32 1.0, %v7723_v54  ;;  %v7725_v42 = vpop.eup %7724 }
 0x50f   :  { %7726 = vpow2.f32 %v7089_v21  ;;  %v11326_v31 = vadd.f32 1.0, %v7725_v42 }
 0x510   :  { %7728 = vrcp.f32 %v11310_v17  ;;  %vm2232_vm14 = vweird.f32 %v11317_v25 }
 0x511   :  { %7730 = vrcp.f32 %v11314_v60  ;;  %vm2202_vm7 = vweird.f32 %v11326_v31 }
 0x512   :  { %v2073_v33 = vpop.f32.mrf.mxu1  ;;  %7732 = vrcp.f32 %v11317_v25 }
 0x513   :  { %v2109_v3 = vadd.f32 %v2073_v33, %v2009_v26 }
 0x515   :  { %v7090_v9 = vmul.f32 -1.442695, %v2109_v3  ;;  %v7727_v46 = vpop.eup %7726  ;;  %v17068_v3 = vld [vmem:[#allocation28_spill] sm:$0xff] }
 0x516   :  { %v11324_v53 = vpop.eup %7728  ;;  %v11328_v44 = vadd.f32 1.0, %v7727_v46 }
 0x517   :  { %v11330_v2 = vpop.eup %7730  ;;  %v2168_v14 = vmul.f32 %v11324_v53, %v11310_v17  ;;  %vm2173_vm5 = vweird.f32 %v11324_v53 }
 0x518   :  { %v11334_v7 = vpop.eup %7732  ;;  %v2183_v21 = vmul.f32 %v11330_v2, %v11314_v60  ;;  %vm11396_vm8 = vmor %vm2172_vm9, %vm2173_vm5  ;;  %vm2188_vm11 = vweird.f32 %v11330_v2  ;;  %vm2247_vm5 = vweird.f32 %v11328_v44 }
 0x519   :  { %v2228_v61 = vmul.f32 %v11334_v7, %v11317_v25  ;;  %vm2233_vm12 = vweird.f32 %v11334_v7  ;;  %vm11447_vm6 = vmor %vm2187_vm4, %vm2188_vm11 }
 0x51a   :  { %v2076_v18 = vpop.f32.mrf.mxu1  ;;  %v2184_v45 = vsub.f32 1.0, %v2183_v21  ;;  %vm11429_vm15 = vmor %vm2232_vm14, %vm2233_vm12 }
 0x51b   :  { %v2110_v40 = vadd.f32 %v2076_v18, %v2012_v62  ;;  %v2021_v18 = vadd.f32 %v11291_v6, %v17065_v35  ;;  %v17066_v6 = vld [vmem:[#allocation20_spill] sm:$0xff] }
 0x51c   :  { %v2024_v54 = vadd.f32 %v11295_v32, %v17066_v6  ;;  %v2229_v32 = vsub.f32 1.0, %v2228_v61 }
 0x51d   :  { %v7091_v48 = vmul.f32 -1.442695, %v2110_v40 }
 0x522   :  { %v2079_v11 = vpop.f32.mrf.mxu1 }
 0x523   :  { %v2111_v12 = vadd.f32 %v2079_v11, %v2015_v39  ;;  %v2169_v11 = vsub.f32 1.0, %v2168_v14 }
 0x525   :  { %v7092_v49 = vmul.f32 -1.442695, %v2111_v12  ;;  %v17067_v12 = vld [vmem:[#allocation30_spill] sm:$0xff] }
 0x526   :  { %v2027_v43 = vadd.f32 %v11305_v38, %v17067_v12  ;;  %v2176_v38 = vand.u32 2147483647, %v11310_v17 }
 0x527   :  { %7734 = vpow2.f32 %v7092_v49  ;;  %v11357_v49 = vadd.f32 %v2029_v8, %v17068_v3  ;;  %v2178_v8 = vand.u32 2147483648, %v11310_v17 }
 0x528   :  { %7736 = vpow2.f32 %v7087_v36  ;;  %vm11388_vm13 = vcmp.eq.f32.partialorder %v2176_v38, 8.507059e+37 }
 0x529   :  { %7738 = vpow2.f32 %v7090_v9  ;;  %v17069_v9 = vld [vmem:[#allocation29_spill] sm:$0xff] }
 0x52a   :  { %v2082_v0 = vpop.f32.mrf.mxu1  ;;  %7740 = vrcp.f32 %v11326_v31  ;;  %v11363_v42 = vadd.f32 %v2032_v63, %v17069_v9 }
 0x52b   :  { %v2112_v33 = vadd.f32 %v2082_v0, %v2018_v34  ;;  %7742 = vrcp.f32 %v11328_v44  ;;  %v2170_v0 = vmul.f32 %v11324_v53, %v2169_v11 }
 0x52d   :  { %v7093_v13 = vmul.f32 -1.442695, %v2112_v33  ;;  %v7735_v15 = vpop.eup %7734  ;;  %v2035_v33 = vpop.f32.mrf.mxu0 }
 0x52e   :  { %v7737_v10 = vpop.eup %7736  ;;  %v11344_v29 = vadd.f32 1.0, %v7735_v15  ;;  %v2191_v15 = vand.u32 2147483647, %v11314_v60 }
 0x52f   :  { %v7739_v24 = vpop.eup %7738  ;;  %7744 = vpow2.f32 %v7093_v13  ;;  %v11346_v20 = vadd.f32 1.0, %v7737_v10  ;;  %v2193_v13 = vand.u32 2147483648, %v11314_v60 }
 0x530   :  { %7746 = vpow2.f32 %v7091_v48  ;;  %v11350_v37 = vadd.f32 1.0, %v7739_v24  ;;  %v11352_v26 = vpop.eup %7740  ;;  %v2230_v24 = vmul.f32 %v11334_v7, %v2229_v32  ;;  %vm11407_vm0 = vcmp.eq.f32.partialorder %v2191_v15, 8.507059e+37 }
 0x531   :  { %v11360_v34 = vpop.eup %7742  ;;  %7748 = vrcp.f32 %v11344_v29  ;;  %v2198_v63 = vmul.f32 %v11352_v26, %v11326_v31  ;;  %v2236_v32 = vand.u32 2147483647, %v11317_v25  ;;  %vm2203_vm3 = vweird.f32 %v11352_v26 }
 0x532   :  { %v2085_v47 = vpop.f32.mrf.mxu1  ;;  %7750 = vrcp.f32 %v11346_v20  ;;  %v2243_v48 = vmul.f32 %v11360_v34, %v11328_v44  ;;  %vm2248_vm10 = vweird.f32 %v11360_v34  ;;  %vm11478_vm9 = vmor %vm2202_vm7, %vm2203_vm3  ;;  %vm2262_vm11 = vweird.f32 %v11350_v37 }
 0x533   :  { %v2113_v39 = vadd.f32 %v2085_v47, %v2021_v18  ;;  %7752 = vrcp.f32 %v11350_v37  ;;  %v2171_v47 = vadd.f32 %v11324_v53, %v2170_v0  ;;  %v17070_v18 = vld [vmem:[#allocation26_spill] sm:$0xff]  ;;  %v2199_v0 = vsub.f32 1.0, %v2198_v63 }
 0x534   :  { %v11379_v10 = vadd.f32 %v2035_v33, %v17070_v18  ;;  %v2244_v17 = vsub.f32 1.0, %v2243_v48  ;;  %v2238_v48 = vand.u32 2147483648, %v11317_v25  ;;  %vm2237_vm1 = vcmp.eq.f32.partialorder %v2236_v32, 8.507059e+37 }
 0x535   :  { %v7094_v36 = vmul.f32 -1.442695, %v2113_v39  ;;  %v7745_v46 = vpop.eup %7744  ;;  %v2185_v39 = vmul.f32 %v11330_v2, %v2184_v45  ;;  %v2194_v45 = vor.u32 1.1754944e-38, %v2193_v13  ;;  %v2175_v33 = vsel %vm11396_vm8, %v11324_v53, %v2171_v47 }
 0x536   :  { %v7747_v40 = vpop.eup %7746  ;;  %v11382_v11 = vadd.f32 1.0, %v7745_v46  ;;  %v2200_v18 = vmul.f32 %v11352_v26, %v2199_v0  ;;  %v2239_v61 = vor.u32 1.1754944e-38, %v2238_v48  ;;  %v2253_v32 = vand.u32 2147483648, %v11328_v44 }
 0x537   :  { %7754 = vpow2.f32 %v7094_v36  ;;  %v11385_v21 = vadd.f32 1.0, %v7747_v40  ;;  %v11392_v36 = vpop.eup %7748  ;;  %v2186_v13 = vadd.f32 %v11330_v2, %v2185_v39  ;;  %vm2292_vm12 = vweird.f32 %v11344_v29 }
 0x538   :  { %v11401_v46 = vpop.eup %7750  ;;  %7756 = vrcp.f32 %v11382_v11  ;;  %v2288_v15 = vmul.f32 %v11392_v36, %v11344_v29  ;;  %vm2293_vm4 = vweird.f32 %v11392_v36  ;;  %vm2217_vm3 = vweird.f32 %v11346_v20 }
 0x539   :  { %v11412_v40 = vpop.eup %7752  ;;  %7758 = vrcp.f32 %v11385_v21 }
 0x53a   :  { %v2088_v62 = vpop.f32.mrf.mxu1  ;;  %v2258_v25 = vmul.f32 %v11412_v40, %v11350_v37  ;;  %vm2263_vm14 = vweird.f32 %v11412_v40 }
 0x53b   :  { %v2114_v14 = vadd.f32 %v2088_v62, %v2024_v54  ;;  %v2179_v54 = vor.u32 1.1754944e-38, %v2178_v8  ;;  %v2208_v8 = vand.u32 2147483648, %v11326_v31  ;;  %vm11546_vm7 = vmor %vm2262_vm11, %vm2263_vm14 }
 0x53d   :  { %v7095_v62 = vmul.f32 -1.442695, %v2114_v14  ;;  %v2231_v14 = vadd.f32 %v11334_v7, %v2230_v24  ;;  %v7755_v53 = vpop.eup %7754  ;;  %v2213_v24 = vmul.f32 %v11401_v46, %v11346_v20  ;;  %v11462_v60 = vor.u32 1.1754944e-38, %v2208_v8 }
 0x53f   :  { %7760 = vpow2.f32 %v7095_v62  ;;  %v11438_v62 = vadd.f32 1.0, %v7755_v53  ;;  %v2235_v0 = vsel %vm11429_vm15, %v11334_v7, %v2231_v14  ;;  %v11456_v53 = vpop.eup %7756  ;;  %v11459_v7 = vadd.f32 %v11352_v26, %v2200_v18  ;;  %vm11528_vm15 = vmor %vm2292_vm12, %vm2293_vm4 }
 0x540   :  { %v11464_v14 = vpop.eup %7758  ;;  %v2214_v48 = vsub.f32 1.0, %v2213_v24  ;;  %v2240_v9 = vsel %vm2237_vm1, %v2239_v61, %v2235_v0  ;;  %v2223_v61 = vand.u32 2147483648, %v11346_v20 }
 0x542   :  { %v2091_v63 = vpop.f32.mrf.mxu1 }
 0x543   :  { %v2115_v47 = vadd.f32 %v2091_v63, %v2027_v43  ;;  %v2245_v43 = vmul.f32 %v11360_v34, %v2244_v17  ;;  %v2180_v63 = vsel %vm11388_vm13, %v2179_v54, %v2175_v33  ;;  %v2190_v54 = vsel %vm11447_vm6, %v11330_v2, %v2186_v13  ;;  %vm11487_vm13 = vmor %vm2247_vm5, %vm2248_vm10 }
 0x544   :  { %v2206_v17 = vand.u32 2147483647, %v11326_v31  ;;  %v2289_v33 = vsub.f32 1.0, %v2288_v15  ;;  %v2195_v15 = vsel %vm11407_vm0, %v2194_v45, %v2190_v54  ;;  %v2251_v31 = vand.u32 2147483647, %v11328_v44 }
 0x545   :  { %7762 = vtanh.f32 %v2115_v47  ;;  %v2246_v2 = vadd.f32 %v11360_v34, %v2245_v43  ;;  %v7761_v13 = vpop.eup %7760  ;;  %v2259_v47 = vsub.f32 1.0, %v2258_v25  ;;  %v2303_v43 = vmul.f32 %v11456_v53, %v11382_v11 }
 0x546   :  { %7764 = vrcp.f32 %v11438_v62  ;;  %v2290_v25 = vmul.f32 %v11392_v36, %v2289_v33  ;;  %vm11493_vm8 = vcmp.eq.f32.partialorder %v2206_v17, 8.507059e+37  ;;  %v2205_v33 = vsel %vm11478_vm9, %v11352_v26, %v11459_v7 }
 0x547   :  { %v2250_v54 = vsel %vm11487_vm13, %v11360_v34, %v2246_v2  ;;  %v2260_v44 = vmul.f32 %v11412_v40, %v2259_v47  ;;  %v11509_v17 = vadd.f32 1.0, %v7761_v13  ;;  %vm2252_vm0 = vcmp.eq.f32.partialorder %v2251_v31, 8.507059e+37 }
 0x548   :  { %v2291_v34 = vadd.f32 %v11392_v36, %v2290_v25  ;;  %v2298_v26 = vand.u32 2147483648, %v11344_v29  ;;  %v2268_v7 = vand.u32 2147483648, %v11350_v37  ;;  %v2296_v13 = vand.u32 2147483647, %v11344_v29 }
 0x549   :  { %vm2218_vm6 = vweird.f32 %v11401_v46  ;;  %vm2308_vm10 = vweird.f32 %v11456_v53  ;;  %vm2307_vm9 = vweird.f32 %v11382_v11  ;;  %vm2277_vm13 = vweird.f32 %v11385_v21 }
 0x54a   :  { %v2094_v18 = vpop.f32.mrf.mxu1  ;;  %vm2297_vm1 = vcmp.eq.f32.partialorder %v2296_v13, 8.507059e+37  ;;  %vm11581_vm4 = vmor %vm2307_vm9, %vm2308_vm10 }
 0x54b   :  { %v7763_v8 = vpop.eup %7762  ;;  %v2116_v24 = vadd.f32 %v2094_v18, %v11357_v49  ;;  %v2351_v49 = vmul.f32 %v2240_v9, %v11118_v27  ;;  %v2215_v27 = vmul.f32 %v11401_v46, %v2214_v48  ;;  %v2254_v18 = vor.u32 1.1754944e-38, %v2253_v32  ;;  %vm11612_vm12 = vmor %vm2217_vm3, %vm2218_vm6 }
 0x54c   :  { %v2355_v38 = vmul.f32 %v7763_v8, %v2180_v63  ;;  %v2273_v63 = vmul.f32 %v11464_v14, %v11385_v21  ;;  %v2304_v8 = vsub.f32 1.0, %v2303_v43  ;;  %v11515_v2 = vpop.eup %7764  ;;  %vm2322_vm6 = vweird.f32 %v11438_v62 }
 0x54d   :  { %7766 = vtanh.f32 %v2116_v24  ;;  %v2255_v48 = vsel %vm2252_vm0, %v2254_v18, %v2250_v54  ;;  %v2261_v24 = vadd.f32 %v11412_v40, %v2260_v44  ;;  %v2318_v29 = vmul.f32 %v11515_v2, %v11438_v62 }
 0x54e   :  { %v11511_v9 = vadd.f32 %v2355_v38, %v2351_v49  ;;  %v2274_v47 = vsub.f32 1.0, %v2273_v63  ;;  %v2305_v45 = vmul.f32 %v11456_v53, %v2304_v8  ;;  %v2295_v49 = vsel %vm11528_vm15, %v11392_v36, %v2291_v34 }
 0x54f   :  { %v2352_v38 = vmul.f32 %v2255_v48, %v11161_v4  ;;  %v2266_v54 = vand.u32 2147483647, %v11350_v37  ;;  %v2299_v44 = vor.u32 1.1754944e-38, %v2298_v26  ;;  %v2269_v63 = vor.u32 1.1754944e-38, %v2268_v7 }
 0x550   :  { %7768 = vtanh.f32 %v11511_v9  ;;  %v2210_v36 = vsel %vm11493_vm8, %v11462_v60, %v2205_v33  ;;  %v2265_v37 = vsel %vm11546_vm7, %v11412_v40, %v2261_v24  ;;  %v2319_v34 = vsub.f32 1.0, %v2318_v29 }
 0x551   :  { %7770 = vrcp.f32 %v11509_v17  ;;  %v2300_v8 = vsel %vm2297_vm1, %v2299_v44, %v2295_v49  ;;  %v2306_v26 = vadd.f32 %v11456_v53, %v2305_v45  ;;  %vm2267_vm5 = vcmp.eq.f32.partialorder %v2266_v54, 8.507059e+37 }
 0x552   :  { %v2097_v32 = vpop.f32.mrf.mxu1  ;;  %v2216_v33 = vadd.f32 %v11401_v46, %v2215_v27  ;;  %v2313_v7 = vand.u32 2147483648, %v11382_v11  ;;  %v2270_v40 = vsel %vm2267_vm5, %v2269_v63, %v2265_v37  ;;  %v2311_v48 = vand.u32 2147483647, %v11382_v11 }
 0x553   :  { %v7767_v43 = vpop.eup %7766  ;;  %v2117_v25 = vadd.f32 %v2097_v32, %v11363_v42  ;;  %vm2278_vm8 = vweird.f32 %v11464_v14  ;;  %v2353_v29 = vmul.f32 %v2270_v40, %v11210_v1  ;;  %v2281_v49 = vand.u32 2147483647, %v11385_v21 }
 0x554   :  { %v2356_v31 = vmul.f32 %v7767_v43, %v2195_v15  ;;  %v2275_v15 = vmul.f32 %v11464_v14, %v2274_v47  ;;  %v2283_v47 = vand.u32 2147483648, %v11385_v21  ;;  %v2320_v43 = vmul.f32 %v11515_v2, %v2319_v34  ;;  %vm11596_vm11 = vmor %vm2277_vm13, %vm2278_vm8 }
 0x555   :  { %7772 = vtanh.f32 %v2117_v25  ;;  %v2310_v25 = vsel %vm11581_vm4, %v11456_v53, %v2306_v26  ;;  %v2224_v54 = vor.u32 1.1754944e-38, %v2223_v61  ;;  %vm2312_vm0 = vcmp.eq.f32.partialorder %v2311_v48, 8.507059e+37 }
 0x556   :  { %v7769_v4 = vpop.eup %7768  ;;  %v11554_v18 = vadd.f32 %v2356_v31, %v2352_v38  ;;  %v2276_v32 = vadd.f32 %v11464_v14, %v2275_v15  ;;  %v2314_v38 = vor.u32 1.1754944e-38, %v2313_v7  ;;  %v2284_v44 = vor.u32 1.1754944e-38, %v2283_v47  ;;  %v11706_v31 = vld [vmem:[%s16626_s2 + $0x40] sm:$0xff] }
 0x557   :  { %v11562_v60 = vmul.f32 %v7769_v4, %v2300_v8  ;;  %v11564_v0 = vpop.eup %7770  ;;  %v2321_v61 = vadd.f32 %v11515_v2, %v2320_v43  ;;  %vm2323_vm14 = vweird.f32 %v11515_v2  ;;  %v2220_v15 = vsel %vm11612_vm12, %v11401_v46, %v2216_v33 }
 0x558   :  { %7774 = vtanh.f32 %v11554_v18  ;;  %v2280_v42 = vsel %vm11596_vm11, %v11464_v14, %v2276_v32  ;;  %v2315_v21 = vsel %vm2312_vm0, %v2314_v38, %v2310_v25  ;;  %vm2282_vm15 = vcmp.eq.f32.partialorder %v2281_v49, 8.507059e+37  ;;  %vm2324_vm1 = vmor %vm2322_vm6, %vm2323_vm14  ;;  %v11692_v49 = vld [vmem:[%s16626_s2 + $0x30] sm:$0xff]  ;;  %v11699_v38 = vld [vmem:[%s16626_s2 + $0x38] sm:$0xff] }
 0x559   :  { %v11573_v13 = vadd.f32 %v11562_v60, %v11180_v58  ;;  %v2333_v58 = vmul.f32 %v11564_v0, %v11509_v17  ;;  %v2328_v14 = vand.u32 2147483648, %v11438_v62  ;;  %v2285_v37 = vsel %vm2282_vm15, %v2284_v44, %v2280_v42  ;;  %v11734_v44 = vld [vmem:[%s16626_s2 + $0x60] sm:$0xff]  ;;  %v11741_v42 = vld [vmem:[%s16626_s2 + $0x68] sm:$0xff] }
 0x55a   :  { %v2100_v27 = vpop.f32.mrf.mxu1  ;;  %v2325_v46 = vsel %vm2324_vm1, %v11515_v2, %v2321_v61  ;;  %v2354_v33 = vmul.f32 %v2285_v37, %v11238_v23  ;;  %vm2338_vm10 = vweird.f32 %v11564_v0  ;;  %v2343_v24 = vand.u32 2147483648, %v11509_v17 }
 0x55b   :  { %v7773_v11 = vpop.eup %7772  ;;  %v2118_v39 = vadd.f32 %v2100_v27, %v11379_v10  ;;  %v2221_v10 = vand.u32 2147483647, %v11346_v20  ;;  %v2334_v63 = vsub.f32 1.0, %v2333_v58  ;;  %v2326_v20 = vand.u32 2147483647, %v11438_v62 }
 0x55c   :  { %v2357_v45 = vmul.f32 %v7773_v11, %v2210_v36  ;;  %v2329_v48 = vor.u32 1.1754944e-38, %v2328_v14  ;;  %vm2337_vm5 = vweird.f32 %v11509_v17  ;;  %v2341_v23 = vand.u32 2147483647, %v11509_v17  ;;  %v11657_v17 = vld [vmem:[%s16626_s2 + $0x8] sm:$0xff] }
 0x55d   :  { %7776 = vtanh.f32 %v2118_v39  ;;  %vm2222_vm7 = vcmp.eq.f32.partialorder %v2221_v10, 8.507059e+37  ;;  %v2335_v7 = vmul.f32 %v11564_v0, %v2334_v63  ;;  %vm2327_vm3 = vcmp.eq.f32.partialorder %v2326_v20, 8.507059e+37  ;;  %vm2339_vm9 = vmor %vm2337_vm5, %vm2338_vm10  ;;  %v11713_v10 = vld [vmem:[%s16626_s2 + $0x48] sm:$0xff] }
 0x55e   :  { %v7775_v53 = vpop.eup %7774  ;;  %v11603_v1 = vadd.f32 %v2357_v45, %v2353_v29  ;;  %v2225_v26 = vsel %vm2222_vm7, %v2224_v54, %v2220_v15  ;;  %v2330_v62 = vsel %vm2327_vm3, %v2329_v48, %v2325_v46  ;;  %v2344_v58 = vor.u32 1.1754944e-38, %v2343_v24  ;;  %v11685_v45 = vld [vmem:[%s16626_s2 + $0x28] sm:$0xff]  ;;  %v11720_v54 = vld [vmem:[%s16626_s2 + $0x50] sm:$0xff] }
 0x55f   :  { %v2368_v4 = vmul.f32 %v7775_v53, %v2315_v21  ;;  %vm2342_vm13 = vcmp.eq.f32.partialorder %v2341_v23, 8.507059e+37  ;;  %v11727_v53 = vld [vmem:[%s16626_s2 + $0x58] sm:$0xff]  ;;  %v11748_v21 = vld [vmem:[%s16626_s2 + $0x70] sm:$0xff]  ;;  %v17098_v48 = vld [vmem:[#allocation68_spill] sm:$0xff] }
 0x560   :  { %7778 = vtanh.f32 %v11603_v1 }
 0x561   :  { %v11626_v8 = vadd.f32 %v2368_v4, %v11233_v22  ;;  %v2336_v22 = vadd.f32 %v11564_v0, %v2335_v7 }
 0x563   :  { %v7777_v34 = vpop.eup %7776  ;;  %v2340_v11 = vsel %vm2339_vm9, %v11564_v0, %v2336_v22  ;;  %v11678_v0 = vld [vmem:[%s16626_s2 + $0x20] sm:$0xff] }
 0x564   :  { %v2358_v40 = vmul.f32 %v7777_v34, %v2225_v26  ;;  %v2345_v43 = vsel %vm2342_vm13, %v2344_v58, %v2340_v11  ;;  %v17097_v26 = vld [vmem:[#allocation66_spill] sm:$0xff] }
 0x565   :  { %v2396_v7 = vadd.f32 %v17097_v26, %v17047_v50 }
 0x566   :  { %v7779_v47 = vpop.eup %7778  ;;  %v11631_v27 = vadd.f32 %v2358_v40, %v2354_v33 }
 0x567   :  { %v2369_v32 = vmul.f32 %v7779_v47, %v2330_v62  ;;  %v17099_v47 = vld [vmem:[#allocation74_spill] sm:$0xff] }
 0x568   :  { %7780 = vtanh.f32 %v11631_v27  ;;  %v2408_v62 = vadd.f32 %v17099_v47, %v17051_v30 }
 0x569   :  { %v11640_v2 = vadd.f32 %v2369_v32, %v11247_v55  ;;  %v11650_v55 = vld [vmem:[%s16626_s2] sm:$0xff] }
 0x56e   :  { %v7781_v39 = vpop.eup %7780 }
 0x56f   :  { %v2370_v25 = vmul.f32 %v7781_v39, %v2345_v43  ;;  %v17100_v39 = vld [vmem:[#allocation70_spill] sm:$0xff] }
 0x570   :  { %v2402_v43 = vadd.f32 %v17100_v39, %v17053_v56 }
 0x571   :  { %v11644_v29 = vadd.f32 %v2370_v25, %v11251_v19  ;;  %2455 = vmatpush.msra.mxu3 %v2370_v25  ;;  %v11664_v19 = vld [vmem:[%s16626_s2 + $0x10] sm:$0xff]  ;;  %v17101_v25 = vld [vmem:[#allocation15_spill] sm:$0xff] }
 0x572   :  { %v2411_v26 = vadd.f32 %v17101_v25, %v17055_v16  ;;  %v17103_v25 = vld [vmem:[#allocation76_spill] sm:$0xff] }
 0x573   :  { %2456 = vmatpush.msra.mxu3 %v2369_v32  ;;  %v2414_v16 = vadd.f32 %v17103_v25, %v17060_v59 }
 0x575   :  { %2457 = vmatpush.msra.mxu3 %v2368_v4  ;;  %v2419_v4 = vpop.f32.mrf.mxu2 }
 0x577   :  { %2458 = vmatpush.msra.mxu3 %v11562_v60  ;;  %v11671_v60 = vld [vmem:[%s16626_s2 + $0x18] sm:$0xff] }
 0x578   :  { %7113 = vmatmul.msk.f32.vlgmr.msra.gmra.mxu3 %vm369_vm2, %v11650_v55 }
 0x57d   :  { %v2422_v14 = vpop.f32.mrf.mxu2 }
 0x580   :  { %7114 = vmatmul.msk.f32.gmra.mxu3 %vm369_vm2, %v11657_v17 }
 0x585   :  { %v11754_v20 = vpop.f32.mrf.mxu2 }
 0x588   :  { %7115 = vmatmul.msk.f32.gmra.mxu3 %vm369_vm2, %v11664_v19 }
 0x58d   :  { %v11758_v33 = vpop.f32.mrf.mxu2 }
 0x590   :  { %7116 = vmatmul.msk.f32.gmra.mxu3 %vm369_vm2, %v11671_v60 }
 0x598   :  { %7117 = vmatmul.msk.f32.gmra.mxu3 %vm369_vm2, %v11678_v0 }
 0x5a0   :  { %7118 = vmatmul.msk.f32.gmra.mxu3 %vm369_vm2, %v11685_v45 }
 0x5a8   :  { %7119 = vmatmul.msk.f32.gmra.mxu3 %vm369_vm2, %v11692_v49 }
 0x5b0   :  { %7120 = vmatmul.msk.f32.gmra.mxu3 %vm369_vm2, %v11699_v38 }
 0x5b8   :  { %7121 = vmatmul.msk.f32.gmra.mxu3 %vm369_vm2, %v11706_v31 }
 0x5c0   :  { %7122 = vmatmul.msk.f32.gmra.mxu3 %vm369_vm2, %v11713_v10 }
 0x5c8   :  { %7123 = vmatmul.msk.f32.gmra.mxu3 %vm369_vm2, %v11720_v54 }
 0x5d0   :  { %7124 = vmatmul.msk.f32.gmra.mxu3 %vm369_vm2, %v11727_v53 }
 0x5d8   :  { %7125 = vmatmul.msk.f32.gmra.mxu3 %vm369_vm2, %v11734_v44 }
 0x5e0   :  { %7126 = vmatmul.msk.f32.gmra.mxu3 %vm369_vm2, %v11741_v42 }
 0x5e8   :  { %7127 = vmatmul.msk.f32.gmra.mxu3 %vm369_vm2, %v11748_v21 }
 0x5f0   :  { %7128 = vmatmul.msk.f32.gmra.mxu3 %vm369_vm2, %v11287_v52  ;;  %v2399_v52 = vadd.f32 %v17098_v48, %v17049_v5 }
 0x5fb   :  { %v2460_v63 = vpop.f32.mrf.mxu3 }
 0x5fc   :  { %v2508_v40 = vadd.f32 %v2460_v63, %v2396_v7  ;;  %v11768_v63 = vpop.f32.mrf.mxu2 }
 0x5fe   :  { %v7129_v32 = vmul.f32 -1.442695, %v2508_v40 }
 0x600   :  { %7782 = vpow2.f32 %v7129_v32 }
 0x603   :  { %v2463_v36 = vpop.f32.mrf.mxu3 }
 0x604   :  { %v2509_v22 = vadd.f32 %v2463_v36, %v2399_v52 }
 0x606   :  { %v7130_v23 = vmul.f32 -1.442695, %v2509_v22  ;;  %v7783_v47 = vpop.eup %7782  ;;  %v17102_v22 = vld [vmem:[#allocation72_spill] sm:$0xff] }
 0x607   :  { %v2405_v32 = vadd.f32 %v17102_v22, %v17058_v57 }
 0x608   :  { %7784 = vpow2.f32 %v7130_v23 }
 0x60b   :  { %v2466_v61 = vpop.f32.mrf.mxu3 }
 0x60c   :  { %v2510_v7 = vadd.f32 %v2466_v61, %v2402_v43 }
 0x60e   :  { %v7131_v36 = vmul.f32 -1.442695, %v2510_v7 }
 0x613   :  { %v2469_v15 = vpop.f32.mrf.mxu3 }
 0x614   :  { %v2511_v61 = vadd.f32 %v2469_v15, %v2405_v32  ;;  %v17104_v15 = vld [vmem:[#allocation16_spill] sm:$0xff] }
 0x616   :  { %v7132_v7 = vmul.f32 -1.442695, %v2511_v61 }
 0x61b   :  { %v2472_v37 = vpop.f32.mrf.mxu3 }
 0x61c   :  { %v2512_v24 = vadd.f32 %v2472_v37, %v2408_v62  ;;  %v2420_v37 = vadd.f32 %v2419_v4, %v17057_v28  ;;  %v7785_v62 = vpop.eup %7784 }
 0x61e   :  { %v7133_v58 = vmul.f32 -1.442695, %v2512_v24  ;;  %v11773_v24 = vadd.f32 1.0, %v7783_v47  ;;  %v2423_v47 = vadd.f32 %v2422_v14, %v17062_v41 }
 0x620   :  { %7786 = vpow2.f32 %v7133_v58  ;;  %v11777_v58 = vadd.f32 1.0, %v7785_v62  ;;  %vm2577_vm4 = vweird.f32 %v11773_v24 }
 0x621   :  { %7788 = vpow2.f32 %v7131_v36  ;;  %v2417_v36 = vadd.f32 %v17104_v15, %v17063_v51 }
 0x622   :  { %vm2592_vm12 = vweird.f32 %v11777_v58 }
 0x623   :  { %v2475_v34 = vpop.f32.mrf.mxu3 }
 0x624   :  { %v2513_v48 = vadd.f32 %v2475_v34, %v2411_v26  ;;  %v2434_v34 = vpop.f32.mrf.mxu2 }
 0x626   :  { %v7134_v52 = vmul.f32 -1.442695, %v2513_v48  ;;  %v7787_v39 = vpop.eup %7786 }
 0x627   :  { %v11780_v4 = vadd.f32 1.0, %v7787_v39 }
 0x628   :  { %7790 = vpow2.f32 %v7134_v52 }
 0x629   :  { %7792 = vrcp.f32 %v11773_v24  ;;  %vm2637_vm7 = vweird.f32 %v11780_v4 }
 0x62a   :  { %7794 = vrcp.f32 %v11777_v58 }
 0x62b   :  { %v2478_v46 = vpop.f32.mrf.mxu3  ;;  %7796 = vrcp.f32 %v11780_v4 }
 0x62c   :  { %v2514_v43 = vadd.f32 %v2478_v46, %v2414_v16  ;;  %v2437_v39 = vpop.f32.mrf.mxu2 }
 0x62e   :  { %v7135_v22 = vmul.f32 -1.442695, %v2514_v43 }
 0x633   :  { %v2481_v11 = vpop.f32.mrf.mxu3 }
 0x634   :  { %v2515_v52 = vadd.f32 %v2481_v11, %v2417_v36  ;;  %v2426_v11 = vadd.f32 %v11754_v20, %v17065_v35  ;;  %v2429_v20 = vadd.f32 %v11758_v33, %v17066_v6  ;;  %v2440_v41 = vpop.f32.mrf.mxu2 }
 0x636   :  { %v7136_v43 = vmul.f32 -1.442695, %v2515_v52 }
 0x63b   :  { %v2484_v40 = vpop.f32.mrf.mxu3 }
 0x63c   :  { %v2516_v23 = vadd.f32 %v2484_v40, %v2420_v37  ;;  %v7789_v40 = vpop.eup %7788 }
 0x63d   :  { %v7791_v37 = vpop.eup %7790  ;;  %v11789_v62 = vadd.f32 1.0, %v7789_v40 }
 0x63e   :  { %v7137_v26 = vmul.f32 -1.442695, %v2516_v23  ;;  %v11787_v46 = vpop.eup %7792  ;;  %v11791_v14 = vadd.f32 1.0, %v7791_v37 }
 0x63f   :  { %v11793_v32 = vpop.eup %7794  ;;  %v2573_v25 = vmul.f32 %v11787_v46, %v11773_v24  ;;  %vm2578_vm8 = vweird.f32 %v11787_v46  ;;  %vm2607_vm10 = vweird.f32 %v11789_v62 }
 0x640   :  { %7798 = vpow2.f32 %v7137_v26  ;;  %v11797_v61 = vpop.eup %7796  ;;  %v2588_v15 = vmul.f32 %v11793_v32, %v11777_v58  ;;  %vm11859_vm0 = vmor %vm2577_vm4, %vm2578_vm8  ;;  %vm2593_vm14 = vweird.f32 %v11793_v32  ;;  %vm2652_vm8 = vweird.f32 %v11791_v14 }
 0x641   :  { %7800 = vpow2.f32 %v7132_v7  ;;  %v2633_v36 = vmul.f32 %v11797_v61, %v11780_v4  ;;  %vm2638_vm6 = vweird.f32 %v11797_v61  ;;  %vm11910_vm3 = vmor %vm2592_vm12, %vm2593_vm14 }
 0x642   :  { %7802 = vpow2.f32 %v7135_v22  ;;  %v2574_v22 = vsub.f32 1.0, %v2573_v25  ;;  %v2432_v25 = vadd.f32 %v11768_v63, %v17067_v12  ;;  %v2589_v51 = vsub.f32 1.0, %v2588_v15  ;;  %v17106_v12 = vld [vmem:[#allocation26_spill] sm:$0xff]  ;;  %vm11892_vm1 = vmor %vm2637_vm7, %vm2638_vm6 }
 0x643   :  { %v2487_v48 = vpop.f32.mrf.mxu3  ;;  %7804 = vrcp.f32 %v11789_v62  ;;  %v2634_v33 = vsub.f32 1.0, %v2633_v36  ;;  %v2581_v63 = vand.u32 2147483647, %v11773_v24  ;;  %v2598_v15 = vand.u32 2147483648, %v11777_v58 }
 0x644   :  { %v2517_v16 = vadd.f32 %v2487_v48, %v2423_v47  ;;  %7806 = vrcp.f32 %v11791_v14  ;;  %v11842_v59 = vadd.f32 %v2440_v41, %v17106_v12  ;;  %v2590_v56 = vmul.f32 %v11793_v32, %v2589_v51 }
 0x645   :  { %v2635_v57 = vmul.f32 %v11797_v61, %v2634_v33  ;;  %vm11851_vm11 = vcmp.eq.f32.partialorder %v2581_v63, 8.507059e+37  ;;  %v2599_v51 = vor.u32 1.1754944e-38, %v2598_v15  ;;  %v2641_v12 = vand.u32 2147483647, %v11780_v4 }
 0x646   :  { %v7138_v23 = vmul.f32 -1.442695, %v2517_v16  ;;  %v7799_v48 = vpop.eup %7798 }
 0x647   :  { %v7801_v7 = vpop.eup %7800  ;;  %v11807_v37 = vadd.f32 1.0, %v7799_v48  ;;  %v2636_v15 = vadd.f32 %v11797_v61, %v2635_v57  ;;  %vm2642_vm5 = vcmp.eq.f32.partialorder %v2641_v12, 8.507059e+37 }
 0x648   :  { %v7803_v47 = vpop.eup %7802  ;;  %7808 = vpow2.f32 %v7138_v23  ;;  %v11809_v16 = vadd.f32 1.0, %v7801_v7  ;;  %v11820_v23 = vadd.f32 %v2434_v34, %v17068_v3  ;;  %v2583_v34 = vand.u32 2147483648, %v11773_v24 }
 0x649   :  { %7810 = vpow2.f32 %v7136_v43  ;;  %v11813_v52 = vadd.f32 1.0, %v7803_v47  ;;  %v11815_v35 = vpop.eup %7804  ;;  %v2575_v43 = vmul.f32 %v11787_v46, %v2574_v22  ;;  %v2596_v3 = vand.u32 2147483647, %v11777_v58 }
 0x64a   :  { %v11823_v48 = vpop.eup %7806  ;;  %7812 = vrcp.f32 %v11807_v37  ;;  %vm2608_vm9 = vweird.f32 %v11815_v35  ;;  %vm2697_vm6 = vweird.f32 %v11807_v37 }
 0x64b   :  { %v2490_v26 = vpop.f32.mrf.mxu3  ;;  %7814 = vrcp.f32 %v11809_v16  ;;  %v2648_v36 = vmul.f32 %v11823_v48, %v11791_v14  ;;  %vm11870_vm15 = vcmp.eq.f32.partialorder %v2596_v3, 8.507059e+37  ;;  %vm2653_vm13 = vweird.f32 %v11823_v48  ;;  %vm11941_vm4 = vmor %vm2607_vm10, %vm2608_vm9 }
 0x64c   :  { %v2518_v40 = vadd.f32 %v2490_v26, %v2426_v11  ;;  %v17105_v11 = vld [vmem:[#allocation29_spill] sm:$0xff]  ;;  %7816 = vrcp.f32 %v11813_v52  ;;  %vm2667_vm14 = vweird.f32 %v11813_v52  ;;  %vm2622_vm9 = vweird.f32 %v11809_v16 }
 0x64d   :  { %v11826_v7 = vadd.f32 %v2437_v39, %v17105_v11  ;;  %v2603_v39 = vmul.f32 %v11815_v35, %v11789_v62  ;;  %v2576_v11 = vadd.f32 %v11787_v46, %v2575_v43  ;;  %v2649_v24 = vsub.f32 1.0, %v2648_v36 }
 0x64e   :  { %v7139_v26 = vmul.f32 -1.442695, %v2518_v40  ;;  %v7809_v6 = vpop.eup %7808  ;;  %v2591_v36 = vadd.f32 %v11793_v32, %v2590_v56 }
 0x64f   :  { %v7811_v22 = vpop.eup %7810  ;;  %v11845_v28 = vadd.f32 1.0, %v7809_v6  ;;  %v2604_v30 = vsub.f32 1.0, %v2603_v39  ;;  %v2580_v63 = vsel %vm11859_vm0, %v11787_v46, %v2576_v11  ;;  %v2643_v11 = vand.u32 2147483648, %v11780_v4 }
 0x650   :  { %7818 = vpow2.f32 %v7139_v26  ;;  %v2584_v26 = vor.u32 1.1754944e-38, %v2583_v34  ;;  %v11855_v43 = vpop.eup %7812 }
 0x651   :  { %v11864_v33 = vpop.eup %7814  ;;  %7820 = vrcp.f32 %v11845_v28  ;;  %v2693_v6 = vmul.f32 %v11855_v43, %v11807_v37  ;;  %v2605_v5 = vmul.f32 %v11815_v35, %v2604_v30  ;;  %v2640_v30 = vsel %vm11892_vm1, %v11797_v61, %v2636_v15 }
 0x652   :  { %v11875_v39 = vpop.eup %7816  ;;  %v2618_v57 = vmul.f32 %v11864_v33, %v11809_v16  ;;  %vm2698_vm12 = vweird.f32 %v11855_v43 }
 0x653   :  { %v2493_v47 = vpop.f32.mrf.mxu3  ;;  %v2663_v4 = vmul.f32 %v11875_v39, %v11813_v52  ;;  %v11922_v61 = vadd.f32 %v11815_v35, %v2605_v5  ;;  %vm2668_vm7 = vweird.f32 %v11875_v39  ;;  %vm11991_vm1 = vmor %vm2697_vm6, %vm2698_vm12 }
 0x654   :  { %v2519_v40 = vadd.f32 %v2493_v47, %v2429_v20  ;;  %v11848_v20 = vadd.f32 1.0, %v7811_v22  ;;  %v2613_v22 = vand.u32 2147483648, %v11789_v62  ;;  %v2644_v47 = vor.u32 1.1754944e-38, %v2643_v11  ;;  %vm12009_vm10 = vmor %vm2667_vm14, %vm2668_vm7 }
 0x655   :  { %v2619_v11 = vsub.f32 1.0, %v2618_v57 }
 0x656   :  { %v7140_v41 = vmul.f32 -1.442695, %v2519_v40  ;;  %v7819_v46 = vpop.eup %7818  ;;  %7822 = vrcp.f32 %v11848_v20  ;;  %v11925_v58 = vor.u32 1.1754944e-38, %v2613_v22  ;;  %v2645_v50 = vsel %vm2642_vm5, %v2644_v47, %v2640_v30 }
 0x657   :  { %v2628_v47 = vand.u32 2147483648, %v11809_v16 }
 0x658   :  { %7824 = vpow2.f32 %v7140_v41  ;;  %v11901_v41 = vadd.f32 1.0, %v7819_v46  ;;  %v11919_v46 = vpop.eup %7820 }
 0x65b   :  { %v2496_v40 = vpop.f32.mrf.mxu3 }
 0x65c   :  { %v2520_v3 = vadd.f32 %v2496_v40, %v2432_v25  ;;  %v2650_v25 = vmul.f32 %v11823_v48, %v2649_v24  ;;  %v2585_v40 = vsel %vm11851_vm11, %v2584_v26, %v2580_v63  ;;  %v2595_v26 = vsel %vm11910_vm3, %v11793_v32, %v2591_v36  ;;  %v11927_v15 = vpop.eup %7822  ;;  %vm11950_vm11 = vmor %vm2652_vm8, %vm2653_vm13 }
 0x65d   :  { %v2611_v24 = vand.u32 2147483647, %v11789_v62  ;;  %v2694_v63 = vsub.f32 1.0, %v2693_v6  ;;  %v2600_v12 = vsel %vm11870_vm15, %v2599_v51, %v2595_v26  ;;  %v2658_v6 = vand.u32 2147483648, %v11791_v14 }
 0x65e   :  { %7826 = vtanh.f32 %v2520_v3  ;;  %v2651_v32 = vadd.f32 %v11823_v48, %v2650_v25  ;;  %v7825_v36 = vpop.eup %7824  ;;  %v2664_v3 = vsub.f32 1.0, %v2663_v4  ;;  %v2708_v25 = vmul.f32 %v11919_v46, %v11845_v28 }
 0x65f   :  { %7828 = vrcp.f32 %v11901_v41  ;;  %v2695_v4 = vmul.f32 %v11855_v43, %v2694_v63  ;;  %v2656_v62 = vand.u32 2147483647, %v11791_v14  ;;  %vm11956_vm0 = vcmp.eq.f32.partialorder %v2611_v24, 8.507059e+37 }
 0x660   :  { %v2655_v26 = vsel %vm11950_vm11, %v11823_v48, %v2651_v32  ;;  %v2610_v63 = vsel %vm11941_vm4, %v11815_v35, %v11922_v61  ;;  %v2665_v14 = vmul.f32 %v11875_v39, %v2664_v3  ;;  %v11972_v24 = vadd.f32 1.0, %v7825_v36 }
 0x661   :  { %v2696_v48 = vadd.f32 %v11855_v43, %v2695_v4  ;;  %vm2657_vm15 = vcmp.eq.f32.partialorder %v2656_v62, 8.507059e+37  ;;  %v2703_v35 = vand.u32 2147483648, %v11807_v37  ;;  %v2673_v61 = vand.u32 2147483648, %v11813_v52 }
 0x662   :  { %v2701_v36 = vand.u32 2147483647, %v11807_v37  ;;  %vm2623_vm3 = vweird.f32 %v11864_v33  ;;  %vm2713_vm13 = vweird.f32 %v11919_v46  ;;  %vm2712_vm4 = vweird.f32 %v11845_v28 }
 0x663   :  { %v2499_v5 = vpop.f32.mrf.mxu3  ;;  %vm2682_vm11 = vweird.f32 %v11848_v20  ;;  %vm12044_vm12 = vmor %vm2712_vm4, %vm2713_vm13 }
 0x664   :  { %v7827_v22 = vpop.eup %7826  ;;  %v2521_v57 = vadd.f32 %v2499_v5, %v11820_v23  ;;  %v2756_v23 = vmul.f32 %v2645_v50, %v11511_v9  ;;  %v2620_v9 = vmul.f32 %v11864_v33, %v2619_v11  ;;  %v2659_v5 = vor.u32 1.1754944e-38, %v2658_v6  ;;  %vm12075_vm6 = vmor %vm2622_vm9, %vm2623_vm3 }
 0x665   :  { %v2760_v34 = vmul.f32 %v7827_v22, %v2585_v40  ;;  %v2678_v40 = vmul.f32 %v11927_v15, %v11848_v20  ;;  %v2709_v22 = vsub.f32 1.0, %v2708_v25  ;;  %v11978_v32 = vpop.eup %7828  ;;  %vm2702_vm5 = vcmp.eq.f32.partialorder %v2701_v36, 8.507059e+37 }
 0x666   :  { %7830 = vtanh.f32 %v2521_v57  ;;  %v2660_v11 = vsel %vm2657_vm15, %v2659_v5, %v2655_v26  ;;  %v2666_v57 = vadd.f32 %v11875_v39, %v2665_v14  ;;  %v2723_v37 = vmul.f32 %v11978_v32, %v11901_v41 }
 0x667   :  { %v11974_v50 = vadd.f32 %v2760_v34, %v2756_v23  ;;  %v2679_v3 = vsub.f32 1.0, %v2678_v40  ;;  %v2710_v51 = vmul.f32 %v11919_v46, %v2709_v22  ;;  %v2700_v23 = vsel %vm11991_vm1, %v11855_v43, %v2696_v48 }
 0x668   :  { %v2757_v34 = vmul.f32 %v2660_v11, %v11554_v18  ;;  %v2671_v26 = vand.u32 2147483647, %v11813_v52  ;;  %v2704_v14 = vor.u32 1.1754944e-38, %v2703_v35  ;;  %v2674_v40 = vor.u32 1.1754944e-38, %v2673_v61 }
 0x669   :  { %7832 = vtanh.f32 %v11974_v50  ;;  %v2615_v43 = vsel %vm11956_vm0, %v11925_v58, %v2610_v63  ;;  %v2670_v52 = vsel %vm12009_vm10, %v11875_v39, %v2666_v57  ;;  %v2724_v48 = vsub.f32 1.0, %v2723_v37 }
 0x66a   :  { %7834 = vrcp.f32 %v11972_v24  ;;  %v2705_v22 = vsel %vm2702_vm5, %v2704_v14, %v2700_v23  ;;  %v2711_v35 = vadd.f32 %v11919_v46, %v2710_v51  ;;  %vm2672_vm8 = vcmp.eq.f32.partialorder %v2671_v26, 8.507059e+37 }
 0x66b   :  { %v2502_v6 = vpop.f32.mrf.mxu3  ;;  %v2621_v63 = vadd.f32 %v11864_v33, %v2620_v9  ;;  %v2718_v61 = vand.u32 2147483648, %v11845_v28  ;;  %v2675_v39 = vsel %vm2672_vm8, %v2674_v40, %v2670_v52  ;;  %v2716_v11 = vand.u32 2147483647, %v11845_v28 }
 0x66c   :  { %v7831_v25 = vpop.eup %7830  ;;  %v2522_v4 = vadd.f32 %v2502_v6, %v11826_v7  ;;  %vm2683_vm0 = vweird.f32 %v11927_v15  ;;  %v2758_v37 = vmul.f32 %v2675_v39, %v11603_v1  ;;  %v2686_v23 = vand.u32 2147483647, %v11848_v20 }
 0x66d   :  { %v2761_v62 = vmul.f32 %v7831_v25, %v2600_v12  ;;  %v2680_v12 = vmul.f32 %v11927_v15, %v2679_v3  ;;  %v2688_v3 = vand.u32 2147483648, %v11848_v20  ;;  %v2725_v25 = vmul.f32 %v11978_v32, %v2724_v48  ;;  %vm12059_vm14 = vmor %vm2682_vm11, %vm2683_vm0 }
 0x66e   :  { %7836 = vtanh.f32 %v2522_v4  ;;  %v2715_v4 = vsel %vm12044_vm12, %v11919_v46, %v2711_v35  ;;  %v2629_v26 = vor.u32 1.1754944e-38, %v2628_v47  ;;  %vm2717_vm15 = vcmp.eq.f32.partialorder %v2716_v11, 8.507059e+37 }
 0x66f   :  { %v7833_v18 = vpop.eup %7832  ;;  %v12017_v5 = vadd.f32 %v2761_v62, %v2757_v34  ;;  %v2681_v6 = vadd.f32 %v11927_v15, %v2680_v12  ;;  %v2719_v34 = vor.u32 1.1754944e-38, %v2718_v61  ;;  %v2689_v14 = vor.u32 1.1754944e-38, %v2688_v3  ;;  %v17134_v62 = vld [vmem:[#allocation13_spill] sm:$0xff] }
 0x670   :  { %v12025_v58 = vmul.f32 %v7833_v18, %v2705_v22  ;;  %v12027_v30 = vpop.eup %7834  ;;  %v2726_v47 = vadd.f32 %v11978_v32, %v2725_v25  ;;  %vm2728_vm7 = vweird.f32 %v11978_v32  ;;  %v2625_v12 = vsel %vm12075_vm6, %v11864_v33, %v2621_v63 }
 0x671   :  { %7838 = vtanh.f32 %v12017_v5  ;;  %v2685_v7 = vsel %vm12059_vm14, %v11927_v15, %v2681_v6  ;;  %v2720_v20 = vsel %vm2717_vm15, %v2719_v34, %v2715_v4  ;;  %vm2687_vm1 = vcmp.eq.f32.partialorder %v2686_v23, 8.507059e+37 }
 0x672   :  { %v12036_v36 = vadd.f32 %v12025_v58, %v11573_v13  ;;  %v2738_v13 = vmul.f32 %v12027_v30, %v11972_v24  ;;  %v2733_v15 = vand.u32 2147483648, %v11901_v41  ;;  %v2690_v52 = vsel %vm2687_vm1, %v2689_v14, %v2685_v7 }
 0x673   :  { %v2505_v9 = vpop.f32.mrf.mxu3  ;;  %vm2727_vm3 = vweird.f32 %v11901_v41  ;;  %v2759_v63 = vmul.f32 %v2690_v52, %v11631_v27  ;;  %vm2743_vm13 = vweird.f32 %v12027_v30  ;;  %v2748_v57 = vand.u32 2147483648, %v11972_v24 }
 0x674   :  { %v7837_v28 = vpop.eup %7836  ;;  %v2523_v56 = vadd.f32 %v2505_v9, %v11842_v59  ;;  %v2626_v59 = vand.u32 2147483647, %v11809_v16  ;;  %v2739_v40 = vsub.f32 1.0, %v2738_v13  ;;  %v2731_v16 = vand.u32 2147483647, %v11901_v41  ;;  %vm2729_vm5 = vmor %vm2727_vm3, %vm2728_vm7 }
 0x675   :  { %v2762_v51 = vmul.f32 %v7837_v28, %v2615_v43  ;;  %v2730_v33 = vsel %vm2729_vm5, %v11978_v32, %v2726_v47  ;;  %v2734_v11 = vor.u32 1.1754944e-38, %v2733_v15  ;;  %vm2742_vm8 = vweird.f32 %v11972_v24  ;;  %v17137_v15 = vld [vmem:[#allocation18_spill] sm:$0xff] }
 0x676   :  { %7840 = vtanh.f32 %v2523_v56  ;;  %vm2627_vm10 = vcmp.eq.f32.partialorder %v2626_v59, 8.507059e+37  ;;  %v2740_v61 = vmul.f32 %v12027_v30, %v2739_v40  ;;  %vm2732_vm9 = vcmp.eq.f32.partialorder %v2731_v16, 8.507059e+37  ;;  %vm2744_vm4 = vmor %vm2742_vm8, %vm2743_vm13 }
 0x677   :  { %v7839_v46 = vpop.eup %7838  ;;  %v12066_v1 = vadd.f32 %v2762_v51, %v2758_v37  ;;  %v2630_v35 = vsel %vm2627_vm10, %v2629_v26, %v2625_v12  ;;  %v2735_v41 = vsel %vm2732_vm9, %v2734_v11, %v2730_v33  ;;  %v2746_v27 = vand.u32 2147483647, %v11972_v24  ;;  %v17135_v26 = vld [vmem:[#allocation17_spill] sm:$0xff] }
 0x678   :  { %v2773_v18 = vmul.f32 %v7839_v46, %v2720_v20  ;;  %v2749_v13 = vor.u32 1.1754944e-38, %v2748_v57 }
 0x679   :  { %7842 = vtanh.f32 %v12066_v1  ;;  %vm2747_vm11 = vcmp.eq.f32.partialorder %v2746_v27, 8.507059e+37 }
 0x67a   :  { %v12089_v22 = vadd.f32 %v2773_v18, %v11626_v8  ;;  %v2741_v8 = vadd.f32 %v12027_v30, %v2740_v61 }
 0x67c   :  { %v7841_v48 = vpop.eup %7840  ;;  %v2745_v28 = vsel %vm2744_vm4, %v12027_v30, %v2741_v8  ;;  %v17139_v8 = vld [vmem:[#allocation9_spill] sm:$0xff] }
 0x67d   :  { %v2763_v39 = vmul.f32 %v7841_v48, %v2630_v35  ;;  %v2750_v25 = vsel %vm2747_vm11, %v2749_v13, %v2745_v28  ;;  %v17140_v28 = vld [vmem:[#allocation14_spill] sm:$0xff] }
 0x67f   :  { %v7843_v3 = vpop.eup %7842  ;;  %v12094_v9 = vadd.f32 %v2763_v39, %v2759_v63  ;;  %v17138_v39 = vld [vmem:[#allocation24_spill] sm:$0xff] }
 0x680   :  { %v2774_v6 = vmul.f32 %v7843_v3, %v2735_v41 }
 0x681   :  { %7844 = vtanh.f32 %v12094_v9 }
 0x682   :  { %v12103_v32 = vadd.f32 %v2774_v6, %v11640_v2  ;;  %v2800_v2 = vpop.f32.mrf.mxu0 }
 0x687   :  { %v7845_v56 = vpop.eup %7844 }
 0x688   :  { %v2775_v4 = vmul.f32 %v7845_v56, %v2750_v25 }
 0x68a   :  { %v12107_v37 = vadd.f32 %v2775_v4, %v11644_v29  ;;  %2860 = vmatpush.msrb.mxu1 %v2775_v4  ;;  %v2803_v29 = vpop.f32.mrf.mxu0 }
 0x68b   :  { %v2804_v59 = vadd.f32 %v2803_v29, %v17134_v62 }
 0x68c   :  { %2861 = vmatpush.msrb.mxu1 %v2774_v6 }
 0x68e   :  { %2862 = vmatpush.msrb.mxu1 %v2773_v18  ;;  %v17136_v18 = vld [vmem:[#allocation11_spill] sm:$0xff] }
 0x690   :  { %2863 = vmatpush.msrb.mxu1 %v12025_v58  ;;  %v17133_v58 = vld [vmem:[#allocation12_spill] sm:$0xff] }
 0x691   :  { %7158 = vmatmul.msk.f32.vlgmr.msrb.gmra.mxu1 %vm369_vm2, %v11650_v55  ;;  %v2801_v30 = vadd.f32 %v2800_v2, %v17133_v58 }
 0x692   :  { %v2806_v55 = vpop.f32.mrf.mxu0 }
 0x693   :  { %v2807_v12 = vadd.f32 %v2806_v55, %v17136_v18 }
 0x699   :  { %7159 = vmatmul.msk.f32.gmra.mxu1 %vm369_vm2, %v11657_v17 }
 0x69a   :  { %v2809_v17 = vpop.f32.mrf.mxu0 }
 0x69b   :  { %v2810_v6 = vadd.f32 %v2809_v17, %v17139_v8 }
 0x6a1   :  { %7160 = vmatmul.msk.f32.gmra.mxu1 %vm369_vm2, %v11664_v19 }
 0x6a2   :  { %v2812_v19 = vpop.f32.mrf.mxu0 }
 0x6a3   :  { %v2813_v46 = vadd.f32 %v2812_v19, %v17135_v26 }
 0x6a9   :  { %7161 = vmatmul.msk.f32.gmra.mxu1 %vm369_vm2, %v11671_v60 }
 0x6aa   :  { %v2815_v60 = vpop.f32.mrf.mxu0 }
 0x6ab   :  { %v2816_v52 = vadd.f32 %v2815_v60, %v17137_v15 }
 0x6b1   :  { %7162 = vmatmul.msk.f32.gmra.mxu1 %vm369_vm2, %v11678_v0  ;;  %v12143_v0 = vld [vmem:[%s16626_s2 + $0x78] sm:$0xff] }
 0x6b9   :  { %7163 = vmatmul.msk.f32.gmra.mxu1 %vm369_vm2, %v11685_v45  ;;  %v2818_v45 = vpop.f32.mrf.mxu0 }
 0x6ba   :  { %v2819_v13 = vadd.f32 %v2818_v45, %v17140_v28 }
 0x6c1   :  { %7164 = vmatmul.msk.f32.gmra.mxu1 %vm369_vm2, %v11692_v49 }
 0x6c9   :  { %7165 = vmatmul.msk.f32.gmra.mxu1 %vm369_vm2, %v11699_v38 }
 0x6d1   :  { %7166 = vmatmul.msk.f32.gmra.mxu1 %vm369_vm2, %v11706_v31  ;;  %v2821_v31 = vpop.f32.mrf.mxu0 }
 0x6d9   :  { %7167 = vmatmul.msk.f32.gmra.mxu1 %vm369_vm2, %v11713_v10 }
 0x6e1   :  { %7168 = vmatmul.msk.f32.gmra.mxu1 %vm369_vm2, %v11720_v54  ;;  %v2824_v54 = vpop.f32.mrf.mxu0 }
 0x6e2   :  { %v2825_v11 = vadd.f32 %v2824_v54, %v17138_v39  ;;  %v17142_v54 = vld [vmem:[#allocation10_spill] sm:$0xff] }
 0x6e9   :  { %7169 = vmatmul.msk.f32.gmra.mxu1 %vm369_vm2, %v11727_v53 }
 0x6f1   :  { %7170 = vmatmul.msk.f32.gmra.mxu1 %vm369_vm2, %v11734_v44  ;;  %v2827_v44 = vpop.f32.mrf.mxu0 }
 0x6f9   :  { %7171 = vmatmul.msk.f32.gmra.mxu1 %vm369_vm2, %v11741_v42  ;;  %v12147_v24 = vpop.f32.mrf.mxu0 }
 0x701   :  { %7172 = vmatmul.msk.f32.gmra.mxu1 %vm369_vm2, %v11748_v21  ;;  %v12150_v23 = vpop.f32.mrf.mxu0 }
 0x709   :  { %7173 = vmatmul.msk.f32.gmra.mxu1 %vm369_vm2, %v12143_v0  ;;  %v12156_v16 = vpop.f32.mrf.mxu0 }
 0x70e   :  { %v2865_v49 = vpop.f32.mrf.mxu1 }
 0x70f   :  { %v2913_v34 = vadd.f32 %v2865_v49, %v2801_v30  ;;  %v17141_v49 = vld [vmem:[#allocation23_spill] sm:$0xff] }
 0x711   :  { %v7174_v7 = vmul.f32 -1.442695, %v2913_v34  ;;  %v2839_v4 = vpop.f32.mrf.mxu0 }
 0x713   :  { %7846 = vpow2.f32 %v7174_v7 }
 0x716   :  { %v2868_v38 = vpop.f32.mrf.mxu1 }
 0x717   :  { %v2914_v14 = vadd.f32 %v2868_v38, %v2804_v59  ;;  %v2828_v38 = vadd.f32 %v2827_v44, %v17141_v49 }
 0x719   :  { %v7175_v40 = vmul.f32 -1.442695, %v2914_v14  ;;  %v7847_v61 = vpop.eup %7846 }
 0x71a   :  { %v12160_v57 = vadd.f32 1.0, %v7847_v61 }
 0x71b   :  { %7848 = vpow2.f32 %v7175_v40 }
 0x71c   :  { %vm2982_vm12 = vweird.f32 %v12160_v57 }
 0x71e   :  { %v2871_v10 = vpop.f32.mrf.mxu1 }
 0x71f   :  { %v2915_v48 = vadd.f32 %v2871_v10, %v2807_v12  ;;  %v17143_v12 = vld [vmem:[#allocation21_spill] sm:$0xff] }
 0x721   :  { %v7176_v33 = vmul.f32 -1.442695, %v2915_v48  ;;  %v7849_v41 = vpop.eup %7848 }
 0x722   :  { %v12163_v2 = vadd.f32 1.0, %v7849_v41 }
 0x724   :  { %vm2997_vm6 = vweird.f32 %v12163_v2 }
 0x726   :  { %v2874_v53 = vpop.f32.mrf.mxu1 }
 0x727   :  { %v2916_v25 = vadd.f32 %v2874_v53, %v2810_v6  ;;  %v2822_v53 = vadd.f32 %v2821_v31, %v17142_v54 }
 0x729   :  { %v7177_v60 = vmul.f32 -1.442695, %v2916_v25  ;;  %v17146_v25 = vld [vmem:[#allocation28_spill] sm:$0xff] }
 0x72e   :  { %v2877_v42 = vpop.f32.mrf.mxu1 }
 0x72f   :  { %v2917_v20 = vadd.f32 %v2877_v42, %v2813_v46  ;;  %v2842_v46 = vpop.f32.mrf.mxu0 }
 0x731   :  { %v7178_v47 = vmul.f32 -1.442695, %v2917_v20 }
 0x733   :  { %7850 = vpow2.f32 %v7178_v47 }
 0x734   :  { %7852 = vpow2.f32 %v7176_v33 }
 0x736   :  { %v2880_v21 = vpop.f32.mrf.mxu1 }
 0x737   :  { %v2918_v35 = vadd.f32 %v2880_v21, %v2816_v52 }
 0x739   :  { %v7179_v3 = vmul.f32 -1.442695, %v2918_v35  ;;  %v7851_v27 = vpop.eup %7850 }
 0x73a   :  { %v12166_v55 = vadd.f32 1.0, %v7851_v27  ;;  %v7853_v10 = vpop.eup %7852 }
 0x73b   :  { %7854 = vpow2.f32 %v7179_v3  ;;  %v12174_v34 = vadd.f32 1.0, %v7853_v10 }
 0x73c   :  { %7856 = vrcp.f32 %v12160_v57  ;;  %vm3042_vm10 = vweird.f32 %v12166_v55 }
 0x73d   :  { %7858 = vrcp.f32 %v12163_v2  ;;  %vm3012_vm13 = vweird.f32 %v12174_v34 }
 0x73e   :  { %v2883_v51 = vpop.f32.mrf.mxu1  ;;  %7860 = vrcp.f32 %v12166_v55 }
 0x73f   :  { %v2919_v29 = vadd.f32 %v2883_v51, %v2819_v13  ;;  %v17145_v13 = vld [vmem:[#allocation30_spill] sm:$0xff] }
 0x741   :  { %v7180_v45 = vmul.f32 -1.442695, %v2919_v29  ;;  %v7855_v42 = vpop.eup %7854  ;;  %v12205_v29 = vadd.f32 %v2839_v4, %v17146_v25  ;;  %v2988_v4 = vand.u32 2147483648, %v12160_v57 }
 0x742   :  { %v12172_v30 = vpop.eup %7856  ;;  %v12176_v59 = vadd.f32 1.0, %v7855_v42 }
 0x743   :  { %v12178_v44 = vpop.eup %7858  ;;  %v2978_v31 = vmul.f32 %v12172_v30, %v12160_v57  ;;  %vm2983_vm0 = vweird.f32 %v12172_v30 }
 0x744   :  { %v12182_v7 = vpop.eup %7860  ;;  %v2993_v33 = vmul.f32 %v12178_v44, %v12163_v2  ;;  %vm12244_vm15 = vmor %vm2982_vm12, %vm2983_vm0  ;;  %vm2998_vm7 = vweird.f32 %v12178_v44  ;;  %vm3057_vm0 = vweird.f32 %v12176_v59 }
 0x745   :  { %v2979_v35 = vsub.f32 1.0, %v2978_v31  ;;  %vm3043_vm3 = vweird.f32 %v12182_v7  ;;  %vm12295_vm9 = vmor %vm2997_vm6, %vm2998_vm7 }
 0x746   :  { %v2886_v43 = vpop.f32.mrf.mxu1  ;;  %v2994_v10 = vsub.f32 1.0, %v2993_v33  ;;  %vm12277_vm5 = vmor %vm3042_vm10, %vm3043_vm3 }
 0x747   :  { %v2920_v51 = vadd.f32 %v2886_v43, %v2822_v53  ;;  %v2831_v43 = vadd.f32 %v12147_v24, %v17143_v12  ;;  %v17144_v24 = vld [vmem:[#allocation20_spill] sm:$0xff] }
 0x748   :  { %v2834_v41 = vadd.f32 %v12150_v23, %v17144_v24 }
 0x749   :  { %v7181_v20 = vmul.f32 -1.442695, %v2920_v51 }
 0x74e   :  { %v2889_v63 = vpop.f32.mrf.mxu1 }
 0x74f   :  { %v2921_v56 = vadd.f32 %v2889_v63, %v2825_v11  ;;  %v3038_v63 = vmul.f32 %v12182_v7, %v12166_v55 }
 0x751   :  { %v7182_v19 = vmul.f32 -1.442695, %v2921_v56  ;;  %v2837_v56 = vadd.f32 %v12156_v16, %v17145_v13  ;;  %v3039_v23 = vsub.f32 1.0, %v3038_v63  ;;  %v2986_v16 = vand.u32 2147483647, %v12160_v57 }
 0x753   :  { %7862 = vpow2.f32 %v7182_v19  ;;  %vm12236_vm14 = vcmp.eq.f32.partialorder %v2986_v16, 8.507059e+37 }
 0x754   :  { %7864 = vpow2.f32 %v7177_v60  ;;  %v2980_v60 = vmul.f32 %v12172_v30, %v2979_v35 }
 0x755   :  { %7866 = vpow2.f32 %v7180_v45 }
 0x756   :  { %v2892_v17 = vpop.f32.mrf.mxu1  ;;  %7868 = vrcp.f32 %v12174_v34 }
 0x757   :  { %v2922_v21 = vadd.f32 %v2892_v17, %v2828_v38  ;;  %7870 = vrcp.f32 %v12176_v59  ;;  %v17147_v38 = vld [vmem:[#allocation29_spill] sm:$0xff] }
 0x758   :  { %v12211_v45 = vadd.f32 %v2842_v46, %v17147_v38 }
 0x759   :  { %v7183_v14 = vmul.f32 -1.442695, %v2922_v21  ;;  %v7863_v47 = vpop.eup %7862  ;;  %v2845_v21 = vpop.f32.mrf.mxu0 }
 0x75a   :  { %v7865_v52 = vpop.eup %7864  ;;  %v12192_v11 = vadd.f32 1.0, %v7863_v47  ;;  %v3001_v47 = vand.u32 2147483647, %v12163_v2 }
 0x75b   :  { %v7867_v48 = vpop.eup %7866  ;;  %7872 = vpow2.f32 %v7183_v14  ;;  %v12194_v3 = vadd.f32 1.0, %v7865_v52  ;;  %v3003_v14 = vand.u32 2147483648, %v12163_v2 }
 0x75c   :  { %7874 = vpow2.f32 %v7181_v20  ;;  %v12198_v6 = vadd.f32 1.0, %v7867_v48  ;;  %v12200_v27 = vpop.eup %7868  ;;  %v3040_v48 = vmul.f32 %v12182_v7, %v3039_v23  ;;  %vm12255_vm1 = vcmp.eq.f32.partialorder %v3001_v47, 8.507059e+37 }
 0x75d   :  { %v12208_v17 = vpop.eup %7870  ;;  %7876 = vrcp.f32 %v12192_v11  ;;  %v3008_v46 = vmul.f32 %v12200_v27, %v12174_v34  ;;  %v3046_v23 = vand.u32 2147483647, %v12166_v55  ;;  %vm3013_vm4 = vweird.f32 %v12200_v27 }
 0x75e   :  { %v2895_v40 = vpop.f32.mrf.mxu1  ;;  %7878 = vrcp.f32 %v12194_v3  ;;  %v3053_v20 = vmul.f32 %v12208_v17, %v12176_v59  ;;  %vm3058_vm11 = vweird.f32 %v12208_v17  ;;  %vm12326_vm12 = vmor %vm3012_vm13, %vm3013_vm4  ;;  %vm3072_vm7 = vweird.f32 %v12198_v6 }
 0x75f   :  { %v2923_v61 = vadd.f32 %v2895_v40, %v2831_v43  ;;  %7880 = vrcp.f32 %v12198_v6  ;;  %v2981_v40 = vadd.f32 %v12172_v30, %v2980_v60  ;;  %v17148_v43 = vld [vmem:[#allocation26_spill] sm:$0xff]  ;;  %v3009_v60 = vsub.f32 1.0, %v3008_v46 }
 0x760   :  { %v12227_v52 = vadd.f32 %v2845_v21, %v17148_v43  ;;  %v3054_v57 = vsub.f32 1.0, %v3053_v20  ;;  %v3048_v20 = vand.u32 2147483648, %v12166_v55  ;;  %vm3047_vm8 = vcmp.eq.f32.partialorder %v3046_v23, 8.507059e+37 }
 0x761   :  { %v7184_v19 = vmul.f32 -1.442695, %v2923_v61  ;;  %v7873_v42 = vpop.eup %7872  ;;  %v2995_v61 = vmul.f32 %v12178_v44, %v2994_v10  ;;  %v3004_v10 = vor.u32 1.1754944e-38, %v3003_v14  ;;  %v2985_v21 = vsel %vm12244_vm15, %v12172_v30, %v2981_v40 }
 0x762   :  { %v7875_v51 = vpop.eup %7874  ;;  %v12230_v35 = vadd.f32 1.0, %v7873_v42  ;;  %v3010_v43 = vmul.f32 %v12200_v27, %v3009_v60  ;;  %v3049_v63 = vor.u32 1.1754944e-38, %v3048_v20  ;;  %v3063_v23 = vand.u32 2147483648, %v12176_v59 }
 0x763   :  { %7882 = vpow2.f32 %v7184_v19  ;;  %v12233_v33 = vadd.f32 1.0, %v7875_v51  ;;  %v12240_v19 = vpop.eup %7876  ;;  %v2996_v14 = vadd.f32 %v12178_v44, %v2995_v61  ;;  %vm3102_vm3 = vweird.f32 %v12192_v11 }
 0x764   :  { %v12249_v42 = vpop.eup %7878  ;;  %7884 = vrcp.f32 %v12230_v35  ;;  %v3098_v47 = vmul.f32 %v12240_v19, %v12192_v11  ;;  %vm3103_vm6 = vweird.f32 %v12240_v19  ;;  %vm3027_vm4 = vweird.f32 %v12194_v3 }
 0x765   :  { %v12260_v51 = vpop.eup %7880  ;;  %7886 = vrcp.f32 %v12233_v33 }
 0x766   :  { %v2898_v53 = vpop.f32.mrf.mxu1  ;;  %v3068_v55 = vmul.f32 %v12260_v51, %v12198_v6  ;;  %vm3073_vm10 = vweird.f32 %v12260_v51 }
 0x767   :  { %v2924_v31 = vadd.f32 %v2898_v53, %v2834_v41  ;;  %v2989_v41 = vor.u32 1.1754944e-38, %v2988_v4  ;;  %v3018_v4 = vand.u32 2147483648, %v12174_v34  ;;  %vm12394_vm13 = vmor %vm3072_vm7, %vm3073_vm10 }
 0x769   :  { %v7185_v53 = vmul.f32 -1.442695, %v2924_v31  ;;  %v3041_v31 = vadd.f32 %v12182_v7, %v3040_v48  ;;  %v7883_v30 = vpop.eup %7882  ;;  %v3023_v48 = vmul.f32 %v12249_v42, %v12194_v3  ;;  %v12310_v2 = vor.u32 1.1754944e-38, %v3018_v4 }
 0x76b   :  { %7888 = vpow2.f32 %v7185_v53  ;;  %v12286_v53 = vadd.f32 1.0, %v7883_v30  ;;  %v3045_v60 = vsel %vm12277_vm5, %v12182_v7, %v3041_v31  ;;  %v12304_v30 = vpop.eup %7884  ;;  %v12307_v7 = vadd.f32 %v12200_v27, %v3010_v43  ;;  %vm12376_vm5 = vmor %vm3102_vm3, %vm3103_vm6 }
 0x76c   :  { %v12312_v31 = vpop.eup %7886  ;;  %v3024_v20 = vsub.f32 1.0, %v3023_v48  ;;  %v3050_v38 = vsel %vm3047_vm8, %v3049_v63, %v3045_v60  ;;  %v3033_v63 = vand.u32 2147483648, %v12194_v3 }
 0x76e   :  { %v2901_v46 = vpop.f32.mrf.mxu1 }
 0x76f   :  { %v2925_v40 = vadd.f32 %v2901_v46, %v2837_v56  ;;  %v3055_v56 = vmul.f32 %v12208_v17, %v3054_v57  ;;  %v2990_v46 = vsel %vm12236_vm14, %v2989_v41, %v2985_v21  ;;  %v3000_v41 = vsel %vm12295_vm9, %v12178_v44, %v2996_v14  ;;  %vm12335_vm14 = vmor %vm3057_vm0, %vm3058_vm11 }
 0x770   :  { %v3016_v57 = vand.u32 2147483647, %v12174_v34  ;;  %v3099_v21 = vsub.f32 1.0, %v3098_v47  ;;  %v3005_v47 = vsel %vm12255_vm1, %v3004_v10, %v3000_v41  ;;  %v3061_v34 = vand.u32 2147483647, %v12176_v59 }
 0x771   :  { %7890 = vtanh.f32 %v2925_v40  ;;  %v3056_v44 = vadd.f32 %v12208_v17, %v3055_v56  ;;  %v7889_v14 = vpop.eup %7888  ;;  %v3069_v40 = vsub.f32 1.0, %v3068_v55  ;;  %v3113_v56 = vmul.f32 %v12304_v30, %v12230_v35 }
 0x772   :  { %7892 = vrcp.f32 %v12286_v53  ;;  %v3100_v55 = vmul.f32 %v12240_v19, %v3099_v21  ;;  %vm12341_vm15 = vcmp.eq.f32.partialorder %v3016_v57, 8.507059e+37  ;;  %v3015_v21 = vsel %vm12326_vm12, %v12200_v27, %v12307_v7 }
 0x773   :  { %v3060_v41 = vsel %vm12335_vm14, %v12208_v17, %v3056_v44  ;;  %v3070_v59 = vmul.f32 %v12260_v51, %v3069_v40  ;;  %v12357_v57 = vadd.f32 1.0, %v7889_v14  ;;  %vm3062_vm1 = vcmp.eq.f32.partialorder %v3061_v34, 8.507059e+37 }
 0x774   :  { %v3101_v17 = vadd.f32 %v12240_v19, %v3100_v55  ;;  %v3108_v27 = vand.u32 2147483648, %v12192_v11  ;;  %v3078_v7 = vand.u32 2147483648, %v12198_v6  ;;  %v3106_v14 = vand.u32 2147483647, %v12192_v11 }
 0x775   :  { %vm3028_vm9 = vweird.f32 %v12249_v42  ;;  %vm3118_vm11 = vweird.f32 %v12304_v30  ;;  %vm3117_vm12 = vweird.f32 %v12230_v35  ;;  %vm3087_vm14 = vweird.f32 %v12233_v33 }
 0x776   :  { %v2904_v43 = vpop.f32.mrf.mxu1  ;;  %vm3107_vm8 = vcmp.eq.f32.partialorder %v3106_v14, 8.507059e+37  ;;  %vm12429_vm6 = vmor %vm3117_vm12, %vm3118_vm11 }
 0x777   :  { %v7891_v4 = vpop.eup %7890  ;;  %v2926_v48 = vadd.f32 %v2904_v43, %v12205_v29  ;;  %v3161_v29 = vmul.f32 %v3050_v38, %v11974_v50  ;;  %v3025_v50 = vmul.f32 %v12249_v42, %v3024_v20  ;;  %v3064_v43 = vor.u32 1.1754944e-38, %v3063_v23  ;;  %vm12460_vm3 = vmor %vm3027_vm4, %vm3028_vm9 }
 0x778   :  { %v3165_v16 = vmul.f32 %v7891_v4, %v2990_v46  ;;  %v3083_v46 = vmul.f32 %v12312_v31, %v12233_v33  ;;  %v3114_v4 = vsub.f32 1.0, %v3113_v56  ;;  %v12363_v44 = vpop.eup %7892  ;;  %vm3132_vm9 = vweird.f32 %v12286_v53 }
 0x779   :  { %7894 = vtanh.f32 %v2926_v48  ;;  %v3065_v20 = vsel %vm3062_vm1, %v3064_v43, %v3060_v41  ;;  %v3071_v48 = vadd.f32 %v12260_v51, %v3070_v59  ;;  %v3128_v11 = vmul.f32 %v12363_v44, %v12286_v53 }
 0x77a   :  { %v12359_v38 = vadd.f32 %v3165_v16, %v3161_v29  ;;  %v3084_v40 = vsub.f32 1.0, %v3083_v46  ;;  %v3115_v10 = vmul.f32 %v12304_v30, %v3114_v4  ;;  %v3105_v29 = vsel %vm12376_vm5, %v12240_v19, %v3101_v17 }
 0x77b   :  { %v3162_v16 = vmul.f32 %v3065_v20, %v12017_v5  ;;  %v3076_v41 = vand.u32 2147483647, %v12198_v6  ;;  %v3109_v59 = vor.u32 1.1754944e-38, %v3108_v27  ;;  %v3079_v46 = vor.u32 1.1754944e-38, %v3078_v7 }
 0x77c   :  { %7896 = vtanh.f32 %v12359_v38  ;;  %v3020_v19 = vsel %vm12341_vm15, %v12310_v2, %v3015_v21  ;;  %v3075_v6 = vsel %vm12394_vm13, %v12260_v51, %v3071_v48  ;;  %v3129_v17 = vsub.f32 1.0, %v3128_v11 }
 0x77d   :  { %7898 = vrcp.f32 %v12357_v57  ;;  %v3110_v4 = vsel %vm3107_vm8, %v3109_v59, %v3105_v29  ;;  %v3116_v27 = vadd.f32 %v12304_v30, %v3115_v10  ;;  %vm3077_vm0 = vcmp.eq.f32.partialorder %v3076_v41, 8.507059e+37 }
 0x77e   :  { %v2907_v23 = vpop.f32.mrf.mxu1  ;;  %v3026_v21 = vadd.f32 %v12249_v42, %v3025_v50  ;;  %v3123_v7 = vand.u32 2147483648, %v12230_v35  ;;  %v3080_v51 = vsel %vm3077_vm0, %v3079_v46, %v3075_v6  ;;  %v3121_v20 = vand.u32 2147483647, %v12230_v35 }
 0x77f   :  { %v7895_v56 = vpop.eup %7894  ;;  %v2927_v55 = vadd.f32 %v2907_v23, %v12211_v45  ;;  %vm3088_vm15 = vweird.f32 %v12312_v31  ;;  %v3163_v11 = vmul.f32 %v3080_v51, %v12066_v1  ;;  %v3091_v29 = vand.u32 2147483647, %v12233_v33 }
 0x780   :  { %v3166_v34 = vmul.f32 %v7895_v56, %v3005_v47  ;;  %v3085_v47 = vmul.f32 %v12312_v31, %v3084_v40  ;;  %v3093_v40 = vand.u32 2147483648, %v12233_v33  ;;  %v3130_v56 = vmul.f32 %v12363_v44, %v3129_v17  ;;  %vm12444_vm7 = vmor %vm3087_vm14, %vm3088_vm15 }
 0x781   :  { %7900 = vtanh.f32 %v2927_v55  ;;  %v3120_v55 = vsel %vm12429_vm6, %v12304_v30, %v3116_v27  ;;  %v3034_v41 = vor.u32 1.1754944e-38, %v3033_v63  ;;  %vm3122_vm1 = vcmp.eq.f32.partialorder %v3121_v20, 8.507059e+37 }
 0x782   :  { %v7897_v5 = vpop.eup %7896  ;;  %v12402_v43 = vadd.f32 %v3166_v34, %v3162_v16  ;;  %v3086_v23 = vadd.f32 %v12312_v31, %v3085_v47  ;;  %v3124_v16 = vor.u32 1.1754944e-38, %v3123_v7  ;;  %v3094_v59 = vor.u32 1.1754944e-38, %v3093_v40  ;;  %v118_v34 = vld [vmem:[%s16629_s5 + $0x10] sm:$0xff] }
 0x783   :  { %v12410_v2 = vmul.f32 %v7897_v5, %v3110_v4  ;;  %v12412_v60 = vpop.eup %7898  ;;  %v3131_v63 = vadd.f32 %v12363_v44, %v3130_v56  ;;  %vm3133_vm10 = vweird.f32 %v12363_v44  ;;  %v3030_v47 = vsel %vm12460_vm3, %v12249_v42, %v3026_v21 }
 0x784   :  { %7902 = vtanh.f32 %v12402_v43  ;;  %v3090_v45 = vsel %vm12444_vm7, %v12312_v31, %v3086_v23  ;;  %v3125_v33 = vsel %vm3122_vm1, %v3124_v16, %v3120_v55  ;;  %vm3092_vm5 = vcmp.eq.f32.partialorder %v3091_v29, 8.507059e+37  ;;  %vm3134_vm8 = vmor %vm3132_vm9, %vm3133_vm10  ;;  %v117_v29 = vld [vmem:[%s16629_s5 + $0x8] sm:$0xff] }
 0x785   :  { %v12421_v14 = vadd.f32 %v12410_v2, %v12036_v36  ;;  %v3143_v36 = vmul.f32 %v12412_v60, %v12357_v57  ;;  %v3138_v31 = vand.u32 2147483648, %v12286_v53  ;;  %v3095_v6 = vsel %vm3092_vm5, %v3094_v59, %v3090_v45  ;;  %v8555_v16 = vld [vmem:[%s16626_s2 + $0x28] sm:$0xff]  ;;  %v120_v59 = vld [vmem:[%s16629_s5 + $0x20] sm:$0xff] }
 0x786   :  { %v2910_v50 = vpop.f32.mrf.mxu1  ;;  %v3135_v42 = vsel %vm3134_vm8, %v12363_v44, %v3131_v63  ;;  %v3164_v21 = vmul.f32 %v3095_v6, %v12094_v9  ;;  %vm3148_vm11 = vweird.f32 %v12412_v60  ;;  %v3153_v48 = vand.u32 2147483648, %v12357_v57  ;;  %v8558_v45 = vld [vmem:[%s16626_s2 + $0x40] sm:$0xff]  ;;  %v122_v63 = vld [vmem:[%s16629_s5 + $0x30] sm:$0xff]  ;;  %v8561_v6 = vld [vmem:[%s16626_s2 + $0x58] sm:$0xff] }
 0x787   :  { %v7901_v35 = vpop.eup %7900  ;;  %v2928_v61 = vadd.f32 %v2910_v50, %v12227_v52  ;;  %v3031_v52 = vand.u32 2147483647, %v12194_v3  ;;  %v3144_v46 = vsub.f32 1.0, %v3143_v36  ;;  %v3136_v3 = vand.u32 2147483647, %v12286_v53 }
 0x788   :  { %v3167_v10 = vmul.f32 %v7901_v35, %v3020_v19  ;;  %v3139_v20 = vor.u32 1.1754944e-38, %v3138_v31  ;;  %vm3147_vm0 = vweird.f32 %v12357_v57  ;;  %v3151_v9 = vand.u32 2147483647, %v12357_v57  ;;  %v8551_v57 = vld [vmem:[%s16626_s2 + $0x8] sm:$0xff] }
 0x789   :  { %7904 = vtanh.f32 %v2928_v61  ;;  %vm3032_vm13 = vcmp.eq.f32.partialorder %v3031_v52, 8.507059e+37  ;;  %v3145_v7 = vmul.f32 %v12412_v60, %v3144_v46  ;;  %vm3137_vm4 = vcmp.eq.f32.partialorder %v3136_v3, 8.507059e+37  ;;  %vm3149_vm12 = vmor %vm3147_vm0, %vm3148_vm11  ;;  %v8556_v52 = vld [vmem:[%s16626_s2 + $0x30] sm:$0xff]  ;;  %v3205_v46 = vpop.f32.mrf.mxu2  ;;  %v8559_v19 = vld [vmem:[%s16626_s2 + $0x48] sm:$0xff] }
 0x78a   :  { %v7903_v30 = vpop.eup %7902  ;;  %v12451_v1 = vadd.f32 %v3167_v10, %v3163_v11  ;;  %v3035_v27 = vsel %vm3032_vm13, %v3034_v41, %v3030_v47  ;;  %v3140_v53 = vsel %vm3137_vm4, %v3139_v20, %v3135_v42  ;;  %v3154_v36 = vor.u32 1.1754944e-38, %v3153_v48  ;;  %v8554_v10 = vld [vmem:[%s16626_s2 + $0x20] sm:$0xff]  ;;  %v119_v41 = vld [vmem:[%s16629_s5 + $0x18] sm:$0xff] }
 0x78b   :  { %v3178_v5 = vmul.f32 %v7903_v30, %v3125_v33  ;;  %vm3152_vm14 = vcmp.eq.f32.partialorder %v3151_v9, 8.507059e+37  ;;  %v8557_v30 = vld [vmem:[%s16626_s2 + $0x38] sm:$0xff]  ;;  %v121_v33 = vld [vmem:[%s16629_s5 + $0x28] sm:$0xff]  ;;  %v124_v3 = vld [vmem:[%s16629_s5 + $0x40] sm:$0xff] }
 0x78c   :  { %7906 = vtanh.f32 %v12451_v1  ;;  %v123_v47 = vld [vmem:[%s16629_s5 + $0x38] sm:$0xff] }
 0x78d   :  { %v12474_v4 = vadd.f32 %v3178_v5, %v12089_v22  ;;  %v3146_v22 = vadd.f32 %v12412_v60, %v3145_v7  ;;  %v8562_v7 = vld [vmem:[%s16626_s2 + $0x60] sm:$0xff] }
 0x78f   :  { %v7905_v17 = vpop.eup %7904  ;;  %v3150_v35 = vsel %vm3149_vm12, %v12412_v60, %v3146_v22  ;;  %v116_v60 = vld [vmem:[%s16629_s5] sm:$0xff] }
 0x790   :  { %v3168_v51 = vmul.f32 %v7905_v17, %v3035_v27  ;;  %v3155_v56 = vsel %vm3152_vm14, %v3154_v36, %v3150_v35  ;;  %7231 = vmatmul.msk.f32.vlgmr.msra.gmra.mxu0 %vm369_vm2, %v116_v60  ;;  %v125_v27 = vld [vmem:[%s16629_s5 + $0x48] sm:$0xff] }
 0x791   :  { %v3208_v31 = vpop.f32.mrf.mxu2  ;;  %v129_v35 = vld [vmem:[%s16629_s5 + $0x68] sm:$0xff] }
 0x792   :  { %v7907_v40 = vpop.eup %7906  ;;  %v12479_v50 = vadd.f32 %v3168_v51, %v3164_v21  ;;  %v8563_v21 = vld [vmem:[%s16626_s2 + $0x68] sm:$0xff]  ;;  %v126_v51 = vld [vmem:[%s16629_s5 + $0x50] sm:$0xff] }
 0x793   :  { %v3179_v23 = vmul.f32 %v7907_v40, %v3140_v53  ;;  %v8564_v40 = vld [vmem:[%s16626_s2 + $0x70] sm:$0xff]  ;;  %v127_v53 = vld [vmem:[%s16629_s5 + $0x58] sm:$0xff] }
 0x794   :  { %7908 = vtanh.f32 %v12479_v50 }
 0x795   :  { %v12488_v44 = vadd.f32 %v3179_v23, %v12103_v32  ;;  %v8550_v32 = vld [vmem:[%s16626_s2] sm:$0xff] }
 0x798   :  { %7232 = vmatmul.msk.f32.gmra.mxu0 %vm369_vm2, %v117_v29  ;;  %v3206_v29 = vadd.f32 %v3205_v46, %v17133_v58 }
 0x799   :  { %v3211_v17 = vpop.f32.mrf.mxu2 }
 0x79a   :  { %v7909_v61 = vpop.eup %7908 }
 0x79b   :  { %v3180_v55 = vmul.f32 %v7909_v61, %v3155_v56 }
 0x79d   :  { %v12492_v11 = vadd.f32 %v3180_v55, %v12107_v37  ;;  %3265 = vmatpush.msrb.mxu3 %v3180_v55  ;;  %v8552_v37 = vld [vmem:[%s16626_s2 + $0x10] sm:$0xff]  ;;  %v131_v55 = vld [vmem:[%s16629_s5 + $0x78] sm:$0xff] }
 0x79f   :  { %3266 = vmatpush.msrb.mxu3 %v3179_v23  ;;  %v128_v23 = vld [vmem:[%s16629_s5 + $0x60] sm:$0xff] }
 0x7a0   :  { %7233 = vmatmul.msk.f32.gmra.mxu0 %vm369_vm2, %v118_v34 }
 0x7a1   :  { %3267 = vmatpush.msrb.mxu3 %v3178_v5  ;;  %v8560_v5 = vld [vmem:[%s16626_s2 + $0x50] sm:$0xff]  ;;  %v3214_v42 = vpop.f32.mrf.mxu2 }
 0x7a3   :  { %3268 = vmatpush.msrb.mxu3 %v12410_v2  ;;  %v8553_v2 = vld [vmem:[%s16626_s2 + $0x18] sm:$0xff] }
 0x7a4   :  { %7203 = vmatmul.msk.f32.vlgmr.msrb.gmra.mxu3 %vm369_vm2, %v8550_v32 }
 0x7a8   :  { %7234 = vmatmul.msk.f32.gmra.mxu0 %vm369_vm2, %v119_v41 }
 0x7a9   :  { %v3217_v20 = vpop.f32.mrf.mxu2 }
 0x7aa   :  { %v3218_v58 = vadd.f32 %v3217_v20, %v17135_v26 }
 0x7ac   :  { %7204 = vmatmul.msk.f32.gmra.mxu3 %vm369_vm2, %v8551_v57 }
 0x7b0   :  { %7235 = vmatmul.msk.f32.gmra.mxu0 %vm369_vm2, %v120_v59 }
 0x7b1   :  { %v3220_v22 = vpop.f32.mrf.mxu2 }
 0x7b4   :  { %7205 = vmatmul.msk.f32.gmra.mxu3 %vm369_vm2, %v8552_v37 }
 0x7b8   :  { %7236 = vmatmul.msk.f32.gmra.mxu0 %vm369_vm2, %v121_v33 }
 0x7b9   :  { %v3223_v48 = vpop.f32.mrf.mxu2 }
 0x7bc   :  { %7206 = vmatmul.msk.f32.gmra.mxu3 %vm369_vm2, %v8553_v2 }
 0x7c0   :  { %7237 = vmatmul.msk.f32.gmra.mxu0 %vm369_vm2, %v122_v63  ;;  %v3212_v63 = vadd.f32 %v3211_v17, %v17136_v18 }
 0x7c1   :  { %v3226_v61 = vpop.f32.mrf.mxu2 }
 0x7c4   :  { %7207 = vmatmul.msk.f32.gmra.mxu3 %vm369_vm2, %v8554_v10 }
 0x7c8   :  { %7238 = vmatmul.msk.f32.gmra.mxu0 %vm369_vm2, %v123_v47 }
 0x7c9   :  { %v3229_v32 = vpop.f32.mrf.mxu2 }
 0x7cc   :  { %7208 = vmatmul.msk.f32.gmra.mxu3 %vm369_vm2, %v8555_v16 }
 0x7d0   :  { %7239 = vmatmul.msk.f32.gmra.mxu0 %vm369_vm2, %v124_v3 }
 0x7d1   :  { %v3232_v37 = vpop.f32.mrf.mxu2 }
 0x7d4   :  { %7209 = vmatmul.msk.f32.gmra.mxu3 %vm369_vm2, %v8556_v52  ;;  %v3209_v52 = vadd.f32 %v3208_v31, %v17134_v62 }
 0x7d8   :  { %7240 = vmatmul.msk.f32.gmra.mxu0 %vm369_vm2, %v125_v27 }
 0x7d9   :  { %v12621_v60 = vpop.f32.mrf.mxu2 }
 0x7dc   :  { %7210 = vmatmul.msk.f32.gmra.mxu3 %vm369_vm2, %v8557_v30 }
 0x7e0   :  { %7241 = vmatmul.msk.f32.gmra.mxu0 %vm369_vm2, %v126_v51 }
 0x7e1   :  { %v12625_v41 = vpop.f32.mrf.mxu2 }
 0x7e4   :  { %7211 = vmatmul.msk.f32.gmra.mxu3 %vm369_vm2, %v8558_v45 }
 0x7e8   :  { %7242 = vmatmul.msk.f32.gmra.mxu0 %vm369_vm2, %v127_v53 }
 0x7e9   :  { %v12632_v46 = vpop.f32.mrf.mxu2 }
 0x7ec   :  { %7212 = vmatmul.msk.f32.gmra.mxu3 %vm369_vm2, %v8559_v19 }
 0x7f0   :  { %7243 = vmatmul.msk.f32.gmra.mxu0 %vm369_vm2, %v128_v23 }
 0x7f4   :  { %7213 = vmatmul.msk.f32.gmra.mxu3 %vm369_vm2, %v8560_v5  ;;  %v3221_v5 = vadd.f32 %v3220_v22, %v17137_v15  ;;  %v3215_v15 = vadd.f32 %v3214_v42, %v17139_v8  ;;  %v3244_v22 = vpop.f32.mrf.mxu2  ;;  %v3227_v8 = vadd.f32 %v3226_v61, %v17142_v54  ;;  %v3230_v54 = vadd.f32 %v3229_v32, %v17138_v39  ;;  %v12667_v32 = vpop.permute.xlu1 %3596 }
 0x7f8   :  { %7244 = vmatmul.msk.f32.gmra.mxu0 %vm369_vm2, %v129_v35 }
 0x7fc   :  { %7214 = vmatmul.msk.f32.gmra.mxu3 %vm369_vm2, %v8561_v6 }
 0x804   :  { %7215 = vmatmul.msk.f32.gmra.mxu3 %vm369_vm2, %v8562_v7 }
 0x80c   :  { %7216 = vmatmul.msk.f32.gmra.mxu3 %vm369_vm2, %v8563_v21  ;;  %v3224_v21 = vadd.f32 %v3223_v48, %v17140_v28 }
 0x80d   :  { %v12627_v33 = vpop.f32.mrf.mxu0 }
 0x814   :  { %7217 = vmatmul.msk.f32.gmra.mxu3 %vm369_vm2, %v8564_v40 }
 0x815   :  { %v12637_v17 = vpop.f32.mrf.mxu0 }
 0x81c   :  { %7218 = vmatmul.msk.f32.gmra.mxu3 %vm369_vm2, %v12143_v0  ;;  %v130_v0 = vld [vmem:[%s16629_s5 + $0x70] sm:$0xff] }
 0x81d   :  { %7245 = vmatmul.msk.f32.gmra.mxu0 %vm369_vm2, %v130_v0 }
 0x825   :  { %7246 = vmatmul.msk.f32.gmra.mxu0 %vm369_vm2, %v131_v55  ;;  %v3233_v55 = vadd.f32 %v3232_v37, %v17141_v49  ;;  %v3236_v49 = vadd.f32 %v12621_v60, %v17143_v12 }
 0x827   :  { %v3270_v9 = vpop.f32.mrf.mxu3 }
 0x828   :  { %v3318_v16 = vadd.f32 %v3270_v9, %v3206_v29 }
 0x82a   :  { %v7219_v30 = vmul.f32 -1.442695, %v3318_v16 }
 0x82c   :  { %7910 = vpow2.f32 %v7219_v30 }
 0x82f   :  { %v3273_v36 = vpop.f32.mrf.mxu3 }
 0x830   :  { %v3319_v59 = vadd.f32 %v3273_v36, %v3209_v52 }
 0x832   :  { %v7220_v45 = vmul.f32 -1.442695, %v3319_v59  ;;  %v7911_v47 = vpop.eup %7910 }
 0x833   :  { %v12634_v3 = vadd.f32 1.0, %v7911_v47 }
 0x834   :  { %7912 = vpow2.f32 %v7220_v45 }
 0x835   :  { %7914 = vrcp.f32 %v12634_v3  ;;  %vm3387_vm6 = vweird.f32 %v12634_v3 }
 0x837   :  { %v3276_v56 = vpop.f32.mrf.mxu3 }
 0x838   :  { %v3320_v62 = vadd.f32 %v3276_v56, %v3212_v63  ;;  %v12647_v56 = vpop.f32.mrf.mxu0 }
 0x83a   :  { %v7221_v27 = vmul.f32 -1.442695, %v3320_v62  ;;  %v7913_v40 = vpop.eup %7912 }
 0x83b   :  { %v12641_v20 = vadd.f32 1.0, %v7913_v40  ;;  %v12643_v28 = vpop.eup %7914  ;;  %v12687_v40 = vadd.f32 %v12632_v46, %v17145_v13 }
 0x83c   :  { %7916 = vpow2.f32 %v7221_v27  ;;  %v12679_v27 = vpop.permute.xlu0 %3606  ;;  %vm3388_vm15 = vweird.f32 %v12643_v28 }
 0x83d   :  { %vm12724_vm7 = vmor %vm3387_vm6, %vm3388_vm15  ;;  %vm3402_vm10 = vweird.f32 %v12641_v20 }
 0x83f   :  { %v3279_v57 = vpop.f32.mrf.mxu3 }
 0x840   :  { %v3321_v53 = vadd.f32 %v3279_v57, %v3215_v15  ;;  %v12674_v62 = vpop.f32.mrf.mxu0 }
 0x841   :  { %17175 = vst [vmem:[#allocation22_spill] sm:$0xff] %v12674_v62 }
 0x842   :  { %v7222_v48 = vmul.f32 -1.442695, %v3321_v53  ;;  %v7917_v35 = vpop.eup %7916  ;;  %v3391_v53 = vand.u32 2147483647, %v12634_v3 }
 0x843   :  { %v12650_v57 = vadd.f32 1.0, %v7917_v35  ;;  %v17176_v35 = vld [vmem:[#allocation29_spill] sm:$0xff] }
 0x844   :  { %vm12728_vm1 = vcmp.eq.f32.partialorder %v3391_v53, 8.507059e+37  ;;  %v12751_v53 = vpop.permute.xlu0 %3669 }
 0x845   :  { %17184 = vst [vmem:[#allocation19_spill] sm:$0xff] %v12751_v53  ;;  %vm3417_vm13 = vweird.f32 %v12650_v57 }
 0x847   :  { %v3282_v2 = vpop.f32.mrf.mxu3 }
 0x848   :  { %v3322_v6 = vadd.f32 %v3282_v2, %v3218_v58  ;;  %v3383_v2 = vmul.f32 %v12643_v28, %v12634_v3 }
 0x84a   :  { %v7223_v18 = vmul.f32 -1.442695, %v3322_v6  ;;  %v3384_v45 = vsub.f32 1.0, %v3383_v2  ;;  %v17177_v2 = vld [vmem:[#allocation26_spill] sm:$0xff] }
 0x84f   :  { %v3285_v10 = vpop.f32.mrf.mxu3 }
 0x850   :  { %v3323_v31 = vadd.f32 %v3285_v10, %v3221_v5 }
 0x852   :  { %v7224_v51 = vmul.f32 -1.442695, %v3323_v31  ;;  %v3385_v31 = vmul.f32 %v12643_v28, %v3384_v45 }
 0x854   :  { %7918 = vpow2.f32 %v7224_v51  ;;  %v3239_v51 = vadd.f32 %v12625_v41, %v17144_v24  ;;  %v3386_v41 = vadd.f32 %v12643_v28, %v3385_v31 }
 0x855   :  { %7920 = vpow2.f32 %v7223_v18 }
 0x856   :  { %7922 = vrcp.f32 %v12641_v20 }
 0x857   :  { %v3288_v34 = vpop.f32.mrf.mxu3 }
 0x858   :  { %v3324_v26 = vadd.f32 %v3288_v34, %v3224_v21  ;;  %v3247_v34 = vpop.f32.mrf.mxu2 }
 0x85a   :  { %v7225_v23 = vmul.f32 -1.442695, %v3324_v26  ;;  %v7919_v42 = vpop.eup %7918  ;;  %v12693_v26 = vadd.f32 %v3244_v22, %v17146_v25 }
 0x85b   :  { %v7921_v36 = vpop.eup %7920  ;;  %v12654_v10 = vadd.f32 1.0, %v7919_v42  ;;  %v3406_v42 = vand.u32 2147483647, %v12641_v20 }
 0x85c   :  { %7924 = vpow2.f32 %v7225_v23  ;;  %v12656_v29 = vpop.eup %7922  ;;  %v12659_v61 = vadd.f32 1.0, %v7921_v36  ;;  %v3408_v36 = vand.u32 2147483648, %v12641_v20 }
 0x85d   :  { %7926 = vpow2.f32 %v7222_v48  ;;  %v3393_v48 = vand.u32 2147483648, %v12634_v3  ;;  %vm3403_vm3 = vweird.f32 %v12656_v29  ;;  %vm12746_vm5 = vcmp.eq.f32.partialorder %v3406_v42, 8.507059e+37 }
 0x85e   :  { %7928 = vrcp.f32 %v12650_v57  ;;  %vm12760_vm9 = vmor %vm3402_vm10, %vm3403_vm3  ;;  %vm3462_vm0 = vweird.f32 %v12654_v10  ;;  %vm3447_vm14 = vweird.f32 %v12659_v61 }
 0x85f   :  { %v3291_v19 = vpop.f32.mrf.mxu3  ;;  %7930 = vrcp.f32 %v12654_v10 }
 0x860   :  { %v3325_v0 = vadd.f32 %v3291_v19, %v3227_v8  ;;  %v3398_v19 = vmul.f32 %v12656_v29, %v12641_v20  ;;  %7932 = vrcp.f32 %v12659_v61  ;;  %v3250_v24 = vpop.f32.mrf.mxu2  ;;  %v12708_v8 = vadd.f32 %v3247_v34, %v17176_v35 }
 0x861   :  { %v3421_v35 = vand.u32 2147483647, %v12650_v57 }
 0x862   :  { %v7226_v52 = vmul.f32 -1.442695, %v3325_v0  ;;  %v7925_v59 = vpop.eup %7924  ;;  %v3399_v60 = vsub.f32 1.0, %v3398_v19 }
 0x863   :  { %v7927_v39 = vpop.eup %7926  ;;  %v12670_v47 = vadd.f32 1.0, %v7925_v59 }
 0x864   :  { %7934 = vpow2.f32 %v7226_v52  ;;  %v12672_v58 = vadd.f32 1.0, %v7927_v39  ;;  %v12677_v6 = vpop.eup %7928  ;;  %v3400_v46 = vmul.f32 %v12656_v29, %v3399_v60  ;;  %v12744_v60 = vpop.f32.mrf.mxu0 }
 0x865   :  { %v12681_v21 = vpop.eup %7930  ;;  %v3413_v13 = vmul.f32 %v12677_v6, %v12650_v57  ;;  %vm3418_vm8 = vweird.f32 %v12677_v6 }
 0x866   :  { %v12690_v15 = vpop.eup %7932  ;;  %v3458_v25 = vmul.f32 %v12681_v21, %v12654_v10  ;;  %vm3463_vm4 = vweird.f32 %v12681_v21  ;;  %vm12815_vm12 = vmor %vm3417_vm13, %vm3418_vm8 }
 0x867   :  { %v3294_v7 = vpop.f32.mrf.mxu3  ;;  %v3414_v59 = vsub.f32 1.0, %v3413_v13  ;;  %vm3448_vm11 = vweird.f32 %v12690_v15  ;;  %vm12824_vm15 = vmor %vm3462_vm0, %vm3463_vm4 }
 0x868   :  { %v3326_v37 = vadd.f32 %v3294_v7, %v3230_v54  ;;  %v12716_v54 = vadd.f32 %v3250_v24, %v17177_v2  ;;  %v3459_v19 = vsub.f32 1.0, %v3458_v25  ;;  %vm12848_vm6 = vmor %vm3447_vm14, %vm3448_vm11 }
 0x869   :  { %v3415_v25 = vmul.f32 %v12677_v6, %v3414_v59 }
 0x86a   :  { %v7227_v12 = vmul.f32 -1.442695, %v3326_v37  ;;  %v7935_v23 = vpop.eup %7934  ;;  %v3401_v37 = vadd.f32 %v12656_v29, %v3400_v46 }
 0x86b   :  { %v12720_v52 = vadd.f32 1.0, %v7935_v23  ;;  %v12794_v59 = vadd.f32 %v12677_v6, %v3415_v25  ;;  %v12837_v25 = vpop.permute.xlu0 %3746 }
 0x86c   :  { %v3405_v46 = vsel %vm12760_vm9, %v12656_v29, %v3401_v37  ;;  %17193 = vst [vmem:[#allocation38_spill] sm:$0xff] %v12837_v25  ;;  %vm3477_vm9 = vweird.f32 %v12670_v47 }
 0x86d   :  { %v3498_v62 = vand.u32 2147483648, %v12720_v52 }
 0x86f   :  { %v3297_v9 = vpop.f32.mrf.mxu3 }
 0x870   :  { %v3327_v16 = vadd.f32 %v3297_v9, %v3233_v55  ;;  %v12697_v9 = vpop.permute.xlu2 %3601  ;;  %v12713_v55 = vpop.permute.xlu1 %3611 }
 0x872   :  { %v7228_v63 = vmul.f32 -1.442695, %v3327_v16  ;;  %v3443_v16 = vmul.f32 %v12690_v15, %v12659_v61 }
 0x874   :  { %7936 = vpow2.f32 %v7228_v63  ;;  %v3394_v63 = vor.u32 1.1754944e-38, %v3393_v48  ;;  %v3444_v23 = vsub.f32 1.0, %v3443_v16  ;;  %v3460_v48 = vmul.f32 %v12681_v21, %v3459_v19 }
 0x875   :  { %7938 = vrcp.f32 %v12670_v47 }
 0x876   :  { %7940 = vpow2.f32 %v7227_v12  ;;  %v3445_v29 = vmul.f32 %v12690_v15, %v3444_v23 }
 0x877   :  { %v3300_v30 = vpop.f32.mrf.mxu3  ;;  %7942 = vrcp.f32 %v12672_v58 }
 0x878   :  { %v3328_v5 = vadd.f32 %v3300_v30, %v3236_v49  ;;  %v3390_v49 = vsel %vm12724_vm7, %v12643_v28, %v3386_v41  ;;  %v3409_v28 = vor.u32 1.1754944e-38, %v3408_v36  ;;  %v12777_v42 = vpop.permute.xlu2 %3649  ;;  %vm12855_vm7 = vcmp.eq.f32.partialorder %v3421_v35, 8.507059e+37 }
 0x879   :  { %v12756_v20 = vsel %vm12728_vm1, %v3394_v63, %v3390_v49  ;;  %17187 = vst [vmem:[#allocation27_spill] sm:$0xff] %v12777_v42  ;;  %v3468_v63 = vand.u32 2147483648, %v12654_v10  ;;  %vm3432_vm1 = vweird.f32 %v12672_v58 }
 0x87a   :  { %v7229_v7 = vmul.f32 -1.442695, %v3328_v5  ;;  %v7937_v0 = vpop.eup %7936  ;;  %v12789_v16 = vsel %vm12746_vm5, %v3409_v28, %v3405_v46  ;;  %v3446_v28 = vadd.f32 %v12690_v15, %v3445_v29  ;;  %v3420_v46 = vsel %vm12815_vm12, %v12677_v6, %v12794_v59 }
 0x87b   :  { %v12732_v30 = vpop.eup %7938  ;;  %v12742_v12 = vadd.f32 1.0, %v7937_v0  ;;  %v3469_v6 = vor.u32 1.1754944e-38, %v3468_v63  ;;  %v3483_v59 = vand.u32 2147483648, %v12670_v47  ;;  %vm3492_vm12 = vweird.f32 %v12720_v52 }
 0x87c   :  { %7944 = vpow2.f32 %v7229_v7  ;;  %v7941_v45 = vpop.eup %7940  ;;  %v3473_v13 = vmul.f32 %v12732_v30, %v12670_v47  ;;  %vm3478_vm5 = vweird.f32 %v12732_v30 }
 0x87d   :  { %v12740_v5 = vpop.eup %7942  ;;  %7946 = vrcp.f32 %v12720_v52  ;;  %v12767_v41 = vadd.f32 1.0, %v7941_v45  ;;  %v12799_v45 = vpop.permute.xlu1 %3644  ;;  %vm12884_vm8 = vmor %vm3477_vm9, %vm3478_vm5 }
 0x87e   :  { %v3474_v3 = vsub.f32 1.0, %v3473_v13  ;;  %17188 = vst [vmem:[#allocation31_spill] sm:$0xff] %v12799_v45  ;;  %vm3433_vm3 = vweird.f32 %v12740_v5 }
 0x87f   :  { %v3303_v18 = vpop.f32.mrf.mxu3  ;;  %vm12917_vm11 = vmor %vm3432_vm1, %vm3433_vm3  ;;  %vm3522_vm3 = vweird.f32 %v12742_v12 }
 0x880   :  { %v3329_v22 = vadd.f32 %v3303_v18, %v3239_v51  ;;  %v3423_v51 = vand.u32 2147483648, %v12650_v57  ;;  %v12831_v57 = vpop.f32.mrf.mxu0 }
 0x882   :  { %v7230_v39 = vmul.f32 -1.442695, %v3329_v22  ;;  %v7945_v18 = vpop.eup %7944  ;;  %v3428_v22 = vmul.f32 %v12740_v5, %v12672_v58  ;;  %v12783_v0 = vor.u32 1.1754944e-38, %v3423_v51 }
 0x883   :  { %v12780_v36 = vadd.f32 1.0, %v7945_v18  ;;  %v12797_v37 = vpop.eup %7946  ;;  %v3466_v18 = vand.u32 2147483647, %v12654_v10  ;;  %v3475_v10 = vmul.f32 %v12732_v30, %v3474_v3 }
 0x884   :  { %7948 = vpow2.f32 %v7230_v39  ;;  %v3429_v19 = vsub.f32 1.0, %v3428_v22  ;;  %v3461_v39 = vadd.f32 %v12681_v21, %v3460_v48  ;;  %v3451_v22 = vand.u32 2147483647, %v12659_v61 }
 0x885   :  { %7950 = vrcp.f32 %v12742_v12  ;;  %vm3467_vm10 = vcmp.eq.f32.partialorder %v3466_v18, 8.507059e+37  ;;  %v3476_v23 = vadd.f32 %v12732_v30, %v3475_v10  ;;  %vm3493_vm0 = vweird.f32 %v12797_v37 }
 0x886   :  { %7952 = vrcp.f32 %v12767_v41  ;;  %v3465_v48 = vsel %vm12824_vm15, %v12681_v21, %v3461_v39  ;;  %v3430_v29 = vmul.f32 %v12740_v5, %v3429_v19  ;;  %v3450_v39 = vsel %vm12848_vm6, %v12690_v15, %v3446_v28  ;;  %vm12948_vm1 = vmor %vm3492_vm12, %vm3493_vm0 }
 0x887   :  { %v3306_v31 = vpop.f32.mrf.mxu3  ;;  %7954 = vrcp.f32 %v12780_v36  ;;  %vm3452_vm13 = vcmp.eq.f32.partialorder %v3451_v22, 8.507059e+37  ;;  %v3484_v28 = vor.u32 1.1754944e-38, %v3483_v59  ;;  %v3480_v49 = vsel %vm12884_vm8, %v12732_v30, %v3476_v23 }
 0x888   :  { %v3330_v2 = vadd.f32 %v3306_v31, %v12687_v40  ;;  %v3453_v40 = vand.u32 2147483648, %v12659_v61  ;;  %v12876_v15 = vadd.f32 %v12740_v5, %v3430_v29 }
 0x88a   :  { %v7949_v7 = vpop.eup %7948  ;;  %7956 = vtanh.f32 %v3330_v2  ;;  %v3454_v21 = vor.u32 1.1754944e-38, %v3453_v40  ;;  %v3435_v61 = vsel %vm12917_vm11, %v12740_v5, %v12876_v15 }
 0x88b   :  { %v12819_v24 = vpop.eup %7950 }
 0x88c   :  { %v12844_v2 = vpop.eup %7952  ;;  %v3518_v19 = vmul.f32 %v12819_v24, %v12742_v12  ;;  %v3455_v18 = vsel %vm3452_vm13, %v3454_v21, %v3450_v39 }
 0x88d   :  { %v12866_v63 = vpop.eup %7954  ;;  %v3503_v40 = vmul.f32 %v12844_v2, %v12767_v41  ;;  %vm3508_vm6 = vweird.f32 %v12844_v2 }
 0x88e   :  { %v3519_v22 = vsub.f32 1.0, %v3518_v19  ;;  %v3533_v29 = vmul.f32 %v12866_v63, %v12780_v36  ;;  %vm3538_vm9 = vweird.f32 %v12866_v63 }
 0x88f   :  { %v3309_v31 = vpop.f32.mrf.mxu3  ;;  %v3504_v19 = vsub.f32 1.0, %v3503_v40 }
 0x890   :  { %v3331_v51 = vadd.f32 %v3309_v31, %v12693_v26  ;;  %v3488_v26 = vmul.f32 %v12797_v37, %v12720_v52  ;;  %v12853_v31 = vadd.f32 1.0, %v7949_v7  ;;  %v12868_v7 = vpop.permute.xlu2 %3664  ;;  %v7957_v13 = vpop.eup %7956  ;;  %v3520_v30 = vmul.f32 %v12819_v24, %v3519_v22 }
 0x891   :  { %17198 = vst [vmem:[#allocation43_spill] sm:$0xff] %v12868_v7  ;;  %v3534_v23 = vsub.f32 1.0, %v3533_v29  ;;  %v3528_v29 = vand.u32 2147483648, %v12742_v12 }
 0x892   :  { %7958 = vtanh.f32 %v3331_v51  ;;  %v3489_v35 = vsub.f32 1.0, %v3488_v26  ;;  %v3470_v51 = vsel %vm3467_vm10, %v3469_v6, %v3465_v48  ;;  %v3481_v26 = vand.u32 2147483647, %v12670_v47  ;;  %v12880_v6 = vpop.permute.xlu1 %3766 }
 0x893   :  { %7960 = vrcp.f32 %v12853_v31  ;;  %17199 = vst [vmem:[#allocation49_spill] sm:$0xff] %v12880_v6  ;;  %v3567_v59 = vmul.f32 %v3470_v51, %v12402_v43  ;;  %v3570_v47 = vmul.f32 %v7957_v13, %v12756_v20  ;;  %v3496_v6 = vand.u32 2147483647, %v12720_v52  ;;  %v12901_v51 = vpop.f32.mrf.mxu0 }
 0x894   :  { %v3490_v39 = vmul.f32 %v12797_v37, %v3489_v35  ;;  %v3566_v43 = vmul.f32 %v3455_v18, %v12359_v38  ;;  %vm3482_vm4 = vcmp.eq.f32.partialorder %v3481_v26, 8.507059e+37  ;;  %v17202_v20 = vand.u32 2147483648, %v12672_v58 }
 0x895   :  { %v3425_v13 = vsel %vm12855_vm7, %v12783_v0, %v3420_v46  ;;  %v3485_v40 = vsel %vm3482_vm4, %v3484_v28, %v3480_v49  ;;  %v3499_v49 = vor.u32 1.1754944e-38, %v3498_v62  ;;  %v3505_v46 = vmul.f32 %v12844_v2, %v3504_v19 }
 0x896   :  { %v12905_v35 = vor.u32 1.1754944e-38, %v17202_v20  ;;  %v3574_v18 = vadd.f32 %v3570_v47, %v3566_v43  ;;  %v3491_v0 = vadd.f32 %v12797_v37, %v3490_v39  ;;  %v17206_v28 = vand.u32 2147483647, %v12672_v58 }
 0x897   :  { %v3312_v3 = vpop.f32.mrf.mxu3  ;;  %vm12937_vm15 = vcmp.eq.f32.partialorder %v3496_v6, 8.507059e+37  ;;  %vm3523_vm7 = vweird.f32 %v12819_v24  ;;  %v3568_v62 = vmul.f32 %v3485_v40, %v12451_v1  ;;  %v3521_v15 = vadd.f32 %v12819_v24, %v3520_v30 }
 0x898   :  { %v7959_v48 = vpop.eup %7958  ;;  %v3332_v21 = vadd.f32 %v3312_v3, %v12708_v8  ;;  %vm12933_vm14 = vcmp.eq.f32.partialorder %v17206_v28, 8.507059e+37  ;;  %v3535_v6 = vmul.f32 %v12866_v63, %v3534_v23  ;;  %v3506_v39 = vadd.f32 %v12844_v2, %v3505_v46  ;;  %vm12971_vm5 = vmor %vm3522_vm3, %vm3523_vm7 }
 0x899   :  { %v3571_v34 = vmul.f32 %v7959_v48, %v12789_v16  ;;  %v12907_v16 = vpop.permute.xlu0 %3659  ;;  %v12941_v48 = vpop.permute.xlu2 %3639  ;;  %v3526_v47 = vand.u32 2147483647, %v12742_v12  ;;  %vm3507_vm10 = vweird.f32 %v12767_v41  ;;  %v3513_v19 = vand.u32 2147483648, %v12767_v41 }
 0x89a   :  { %7962 = vtanh.f32 %v3332_v21  ;;  %17203 = vst [vmem:[#allocation40_spill] sm:$0xff] %v12907_v16  ;;  %v12961_v21 = vpop.permute.xlu1 %3741  ;;  %v3536_v12 = vadd.f32 %v12866_v63, %v3535_v6  ;;  %vm12982_vm13 = vmor %vm3507_vm10, %vm3508_vm6  ;;  %v3529_v23 = vor.u32 1.1754944e-38, %v3528_v29  ;;  %vm3537_vm4 = vweird.f32 %v12780_v36 }
 0x89b   :  { %v3575_v8 = vadd.f32 %v3571_v34, %v3567_v59  ;;  %v12921_v34 = vpop.eup %7960  ;;  %17211 = vst [vmem:[#allocation45_spill] sm:$0xff] %v12941_v48  ;;  %v3495_v59 = vsel %vm12948_vm1, %v12797_v37, %v3491_v0  ;;  %v12987_v40 = vpop.f32.mrf.mxu0  ;;  %vm3527_vm8 = vcmp.eq.f32.partialorder %v3526_v47, 8.507059e+37  ;;  %v3541_v0 = vand.u32 2147483647, %v12780_v36  ;;  %vm13000_vm11 = vmor %vm3537_vm4, %vm3538_vm9 }
 0x89c   :  { %v3548_v10 = vmul.f32 %v12921_v34, %v12853_v31  ;;  %17214 = vst [vmem:[#allocation51_spill] sm:$0xff] %v12961_v21  ;;  %v3514_v28 = vor.u32 1.1754944e-38, %v3513_v19  ;;  %v3440_v26 = vsel %vm12933_vm14, %v12905_v35, %v3435_v61  ;;  %vm3553_vm14 = vweird.f32 %v12921_v34 }
 0x89d   :  { %7964 = vtanh.f32 %v3575_v8  ;;  %v3525_v8 = vsel %vm12971_vm5, %v12819_v24, %v3521_v15  ;;  %v3500_v24 = vsel %vm12937_vm15, %v3499_v49, %v3495_v59  ;;  %vm3542_vm12 = vcmp.eq.f32.partialorder %v3541_v0, 8.507059e+37 }
 0x89e   :  { %7966 = vtanh.f32 %v3574_v18  ;;  %v3549_v20 = vsub.f32 1.0, %v3548_v10  ;;  %v3510_v18 = vsel %vm12982_vm13, %v12844_v2, %v3506_v39  ;;  %v3530_v49 = vsel %vm3527_vm8, %v3529_v23, %v3525_v8 }
 0x89f   :  { %v3315_v52 = vpop.f32.mrf.mxu3  ;;  %v3540_v2 = vsel %vm13000_vm11, %v12866_v63, %v3536_v12  ;;  %v3569_v10 = vmul.f32 %v3500_v24, %v12479_v50  ;;  %v3558_v47 = vand.u32 2147483648, %v12853_v31  ;;  %vm3552_vm15 = vweird.f32 %v12853_v31 }
 0x8a0   :  { %v7963_v5 = vpop.eup %7962  ;;  %v3333_v22 = vadd.f32 %v3315_v52, %v12716_v54  ;;  %v3511_v54 = vand.u32 2147483647, %v12767_v41  ;;  %v3556_v50 = vand.u32 2147483647, %v12853_v31  ;;  %vm3554_vm6 = vmor %vm3552_vm15, %vm3553_vm14 }
 0x8a1   :  { %v3572_v1 = vmul.f32 %v7963_v5, %v3425_v13  ;;  %v3543_v13 = vand.u32 2147483648, %v12780_v36  ;;  %v12991_v38 = vpop.permute.xlu0 %3634  ;;  %v3550_v36 = vmul.f32 %v12921_v34, %v3549_v20  ;;  %v13011_v58 = vpop.permute.xlu2 %3761  ;;  %v3559_v12 = vor.u32 1.1754944e-38, %v3558_v47 }
 0x8a2   :  { %7968 = vtanh.f32 %v3333_v22  ;;  %17219 = vst [vmem:[#allocation47_spill] sm:$0xff] %v12991_v38  ;;  %vm3512_vm0 = vcmp.eq.f32.partialorder %v3511_v54, 8.507059e+37  ;;  %vm3557_vm7 = vcmp.eq.f32.partialorder %v3556_v50, 8.507059e+37 }
 0x8a3   :  { %v3576_v37 = vadd.f32 %v3572_v1, %v3568_v62  ;;  %v7965_v30 = vpop.eup %7964  ;;  %17222 = vst [vmem:[#allocation53_spill] sm:$0xff] %v13011_v58  ;;  %v3544_v15 = vor.u32 1.1754944e-38, %v3543_v13  ;;  %v3515_v6 = vsel %vm3512_vm0, %v3514_v28, %v3510_v18  ;;  %v13014_v1 = vpop.permute.xlu1 %3654  ;;  %v3551_v59 = vadd.f32 %v12921_v34, %v3550_v36 }
 0x8a4   :  { %v7967_v46 = vpop.eup %7966  ;;  %v3583_v5 = vmul.f32 %v7965_v30, %v3530_v49  ;;  %17223 = vst [vmem:[#allocation55_spill] sm:$0xff] %v13014_v1  ;;  %v13024_v43 = vpop.f32.mrf.mxu0 }
 0x8a5   :  { %7970 = vtanh.f32 %v3576_v37  ;;  %v3582_v29 = vmul.f32 %v7967_v46, %v3515_v6  ;;  %v3545_v35 = vsel %vm3542_vm12, %v3544_v15, %v3540_v2  ;;  %v3555_v8 = vsel %vm3554_vm6, %v12921_v34, %v3551_v59  ;;  %v8567_v59 = vld [vmem:[%s16624_s0 + $0x8] sm:$0xf] }
 0x8a6   :  { %v3587_v63 = vadd.f32 %v3583_v5, %v12474_v4  ;;  %v3629_v5 = vstv %s160_s25 }
 0x8a7   :  { %v3586_v54 = vadd.f32 %v3582_v29, %v12421_v14  ;;  %v3560_v14 = vsel %vm3557_vm7, %v3559_v12, %v3555_v8  ;;  %v8570_v8 = vld [vmem:[%s16624_s0 + $0x14] sm:$0xf] }
 0x8a8   :  { %v7969_v52 = vpop.eup %7968  ;;  %v13029_v4 = vmul.f32 0.125, %v3587_v63  ;;  %v4574_v63 = vmul.f32 %v8567_v59, %v3629_v5  ;;  %v5678_v12 = vmul.f32 %v8570_v8, %v3629_v5 }
 0x8a9   :  { %v3573_v22 = vmul.f32 %v7969_v52, %v3440_v26  ;;  %v13026_v37 = vpop.permute.xlu0 %3756  ;;  %v13031_v20 = vmul.f32 0.125, %v3586_v54  ;;  %v13035_v41 = vpop.permute.xlu2 %3736  ;;  %v8569_v54 = vld [vmem:[%s16624_s0 + $0x10] sm:$0xf] }
 0x8aa   :  { %17224 = vst [vmem:[#allocation57_spill] sm:$0xff] %v13026_v37 }
 0x8ab   :  { %v7971_v3 = vpop.eup %7970  ;;  %v3577_v61 = vadd.f32 %v3573_v22, %v3569_v10  ;;  %17225 = vst [vmem:[#allocation59_spill] sm:$0xff] %v13029_v4  ;;  %v13039_v13 = vpop.permute.xlu1 %3731  ;;  %v3614_v34 = vmul.f32 %v12667_v32, %v13031_v20 }
 0x8ac   :  { %v3584_v39 = vmul.f32 %v7971_v3, %v3545_v35  ;;  %17226 = vst [vmem:[#allocation61_spill] sm:$0xff] %v13031_v20  ;;  %v13048_v28 = vpop.f32.mrf.mxu0  ;;  %v3627_v3 = vstv %s6869_s10  ;;  %v8566_v35 = vld [vmem:[%s16624_s0 + $0x4] sm:$0xf]  ;;  %s8680_s10 = smov [#allocation5]  }
 0x8ad   :  { %7972 = vtanh.f32 %v3577_v61  ;;  %17228 = vst [vmem:[#allocation35_spill] sm:$0xff] %v13035_v41  ;;  %v4206_v61 = vmul.f32 %v8566_v35, %v3629_v5  ;;  %s6857_s26 = sshll.u32 %s8680_s10, 4  ;;  %s6858_s26 = int_to_ptr.vmem [resolvable:$true] %s6857_s26 }
 0x8ae   :  { %v3588_v19 = vadd.f32 %v3584_v39, %v12488_v44  ;;  %v3615_v44 = vmul.f32 %v12697_v9, %v13029_v4  ;;  %17229 = vst [vmem:[#allocation34_spill] sm:$0xff] %v13039_v13  ;;  %v8568_v39 = vld [vmem:[%s16624_s0 + $0xc] sm:$0xf] }
 0x8af   :  { %v4942_v47 = vmul.f32 %v8568_v39, %v3629_v5 }
 0x8b0   :  { %v13033_v30 = vmul.f32 0.125, %v3588_v19  ;;  %v3618_v0 = vadd.f32 %v3615_v44, %v3614_v34  ;;  %v5310_v19 = vmul.f32 %v8569_v54, %v3629_v5  ;;  %v8572_v44 = vld [vmem:[%s16624_s0 + $0x1c] sm:$0xf] }
 0x8b1   :  { %v13050_v62 = vpop.permute.xlu0 %3689  ;;  %v13054_v52 = vpop.permute.xlu2 %3751 }
 0x8b2   :  { %17227 = vst [vmem:[#allocation63_spill] sm:$0xff] %v13033_v30  ;;  %v3616_v24 = vmul.f32 %v12679_v27, %v13033_v30 }
 0x8b3   :  { %v7973_v31 = vpop.eup %7972  ;;  %17231 = vst [vmem:[#allocation32_spill] sm:$0xff] %v13050_v62  ;;  %v13056_v27 = vpop.permute.xlu1 %3684 }
 0x8b4   :  { %v3585_v23 = vmul.f32 %v7973_v31, %v3560_v14  ;;  %v3619_v49 = vadd.f32 %v3618_v0, %v3616_v24  ;;  %17232 = vst [vmem:[#allocation36_spill] sm:$0xff] %v13054_v52  ;;  %v13058_v36 = vpop.f32.mrf.mxu0  ;;  %v8571_v31 = vld [vmem:[%s16624_s0 + $0x18] sm:$0xf] }
 0x8b5   :  { %17233 = vst [vmem:[#allocation37_spill] sm:$0xff] %v13056_v27  ;;  %v6046_v14 = vmul.f32 %v8571_v31, %v3629_v5 }
 0x8b6   :  { %v3589_v18 = vadd.f32 %v3585_v23, %v12492_v11  ;;  %v6414_v23 = vmul.f32 %v8572_v44, %v3629_v5 }
 0x8b8   :  { %v13046_v46 = vmul.f32 0.125, %v3589_v18 }
 0x8b9   :  { %v13060_v15 = vpop.permute.xlu0 %3679  ;;  %v13065_v29 = vpop.permute.xlu2 %3786 }
 0x8ba   :  { %17230 = vst [vmem:[#allocation33_spill] sm:$0xff] %v13046_v46  ;;  %v3617_v9 = vmul.f32 %v12713_v55, %v13046_v46  ;;  %v8565_v55 = vld [vmem:[%s16624_s0] sm:$0xf] }
 0x8bb   :  { %17234 = vst [vmem:[#allocation42_spill] sm:$0xff] %v13060_v15  ;;  %v3630_v22 = vmul.f32 %v8565_v55, %v3629_v5  ;;  %v13088_v34 = vpop.permute.xlu1 %3781 }
 0x8bc   :  { %v3620_v26 = vadd.f32 %v3619_v49, %v3617_v9  ;;  %17235 = vst [vmem:[#allocation39_spill] sm:$0xff] %v13065_v29 }
 0x8bd   :  { %17236 = vst [vmem:[#allocation44_spill] sm:$0xff] %v13088_v34 }
 0x8be   :  { %v3621_v32 = vrot.slane %v3620_v26, 4 }
 0x8c0   :  { %v3622_v11 = vadd.f32 %v3621_v32, %v3620_v26 }
 0x8c1   :  { %v13104_v5 = vpop.permute.xlu0 %3776 }
 0x8c2   :  { %v3623_v2 = vrot.slane %v3622_v11, 2  ;;  %17243 = vst [vmem:[#allocation56_spill] sm:$0xff] %v13104_v5 }
 0x8c4   :  { %v3624_v6 = vadd.f32 %v3623_v2, %v3622_v11 }
 0x8c6   :  { %v3625_v10 = vrot.slane %v3624_v6, 1 }
 0x8c8   :  { %v3626_v50 = vadd.f32 %v3625_v10, %v3624_v6  ;;  %v3923_v6 = vpop.f32.mrf.mxu0 }
 0x8c9   :  { %v13131_v31 = vpop.permute.xlu0 %3704 }
 0x8ca   :  { %v3628_v24 = vadd.f32 %v3627_v3, %v3626_v50  ;;  %17246 = vst [vmem:[#allocation62_spill] sm:$0xff] %v13131_v31 }
 0x8cc   :  { %v3631_v18 = vadd.f32 %v3630_v22, %v3628_v24  ;;  %v13090_v0 = vadd.f32 %v4206_v61, %v3628_v24  ;;  %v13092_v49 = vadd.f32 %v4574_v63, %v3628_v24  ;;  %v13094_v9 = vadd.f32 %v4942_v47, %v3628_v24  ;;  %v13110_v22 = vpop.permute.xlu2 %3674  ;;  %v13119_v63 = vpop.permute.xlu1 %3771 }
 0x8cd   :  { %v13096_v26 = vadd.f32 %v5310_v19, %v3628_v24  ;;  %v13098_v32 = vadd.f32 %v5678_v12, %v3628_v24  ;;  %v13100_v11 = vadd.f32 %v6046_v14, %v3628_v24  ;;  %v13102_v2 = vadd.f32 %v6414_v23, %v3628_v24  ;;  %17244 = vst [vmem:[#allocation58_spill] sm:$0xff] %v13110_v22 }
 0x8ce   :  { %17237 = vst [vmem:[#allocation50_spill] sm:$0xff] %v13092_v49  ;;  %v13106_v10 = vperm.slane %v3631_v18, 1 }
 0x8cf   :  { %17238 = vst [vmem:[#allocation41_spill] sm:$0xff] %v13094_v9 }
 0x8d0   :  { %17239 = vst [vmem:[#allocation46_spill] sm:$0xff] %v13096_v26  ;;  %v3713_v55 = vmul.f32 %v13106_v10, %v12991_v38  ;;  %v3717_v3 = vmul.f32 %v13106_v10, %v13014_v1  ;;  %v3714_v35 = vmul.f32 %v13106_v10, %v12941_v48  ;;  %v3718_v59 = vmul.f32 %v13106_v10, %v12907_v16  ;;  %v13129_v12 = vpop.f32.mrf.mxu0 }
 0x8d1   :  { %17240 = vst [vmem:[#allocation52_spill] sm:$0xff] %v13098_v32  ;;  %v3722_v47 = vmul.f32 %v13106_v10, %v13060_v15  ;;  %v3724_v54 = vmul.f32 %v13106_v10, %v13050_v62  ;;  %v3723_v14 = vmul.f32 %v13106_v10, %v13056_v27  ;;  %v3715_v23 = vmul.f32 %v13106_v10, %v12799_v45 }
 0x8d2   :  { %17241 = vst [vmem:[#allocation48_spill] sm:$0xff] %v13100_v11  ;;  %v3809_v61 = vadd.f32 %v13039_v13, %v3713_v55  ;;  %v3810_v39 = vadd.f32 %v13035_v41, %v3714_v35  ;;  %v3813_v50 = vadd.f32 %v13054_v52, %v3717_v3  ;;  %v3814_v8 = vadd.f32 %v13026_v37, %v3718_v59 }
 0x8d3   :  { %17242 = vst [vmem:[#allocation54_spill] sm:$0xff] %v13102_v2  ;;  %v3818_v24 = vadd.f32 %v13104_v5, %v3722_v47  ;;  %v3820_v55 = vadd.f32 %v13065_v29, %v3724_v54 }
 0x8d4   :  { %17245 = vst [vmem:[#allocation60_spill] sm:$0xff] %v13119_v63  ;;  %v3938_v19 = vadd.f32 %v12627_v33, %v3809_v61  ;;  %v3939_v44 = vadd.f32 %v12637_v17, %v3810_v39  ;;  %v3942_v18 = vadd.f32 %v12744_v60, %v3813_v50  ;;  %v3719_v33 = vmul.f32 %v13106_v10, %v12868_v7  ;;  %v13145_v59 = vpop.permute.xlu2 %3709  ;;  %v13151_v30 = vpop.permute.xlu1 %3806 }
 0x8d5   :  { %v3943_v35 = vadd.f32 %v12831_v57, %v3814_v8  ;;  %v3811_v61 = vadd.f32 %v12961_v21, %v3715_v23  ;;  %17247 = vst [vmem:[#allocation64_spill] sm:$0xff] %v13145_v59  ;;  %v3819_v39 = vadd.f32 %v13088_v34, %v3723_v14  ;;  %v3947_v60 = vadd.f32 %v13048_v28, %v3818_v24 }
 0x8d6   :  { %v7247_v3 = vmul.f32 -1.442695, %v3938_v19  ;;  %v3815_v17 = vadd.f32 %v13011_v58, %v3719_v33  ;;  %v7248_v46 = vmul.f32 -1.442695, %v3939_v44  ;;  %v7251_v50 = vmul.f32 -1.442695, %v3942_v18  ;;  %v13155_v44 = vpop.permute.xlu0 %3801 }
 0x8d7   :  { %v3940_v47 = vadd.f32 %v12647_v56, %v3811_v61  ;;  %17248 = vst [vmem:[#allocation65_spill] sm:$0xff] %v13151_v30  ;;  %v3949_v54 = vadd.f32 %v3923_v6, %v3820_v55  ;;  %v7252_v19 = vmul.f32 -1.442695, %v3943_v35  ;;  %v3948_v23 = vadd.f32 %v13058_v36, %v3819_v39 }
 0x8d8   :  { %7974 = vpow2.f32 %v7247_v3  ;;  %v3944_v57 = vadd.f32 %v12901_v51, %v3815_v17  ;;  %v7256_v33 = vmul.f32 -1.442695, %v3947_v60  ;;  %v3929_v14 = vpop.f32.mrf.mxu0  ;;  %17249 = vst [vmem:[#allocation67_spill] sm:$0xff] %v13155_v44  ;;  %v3720_v60 = vmul.f32 %v13106_v10, %v12751_v53 }
 0x8d9   :  { %v7249_v8 = vmul.f32 -1.442695, %v3940_v47  ;;  %7976 = vpow2.f32 %v7248_v46  ;;  %v7258_v56 = vmul.f32 -1.442695, %v3949_v54  ;;  %v7257_v18 = vmul.f32 -1.442695, %v3948_v23 }
 0x8da   :  { %7978 = vpow2.f32 %v7251_v50  ;;  %v7253_v28 = vmul.f32 -1.442695, %v3944_v57  ;;  %v3716_v46 = vmul.f32 %v13106_v10, %v12777_v42 }
 0x8db   :  { %7980 = vpow2.f32 %v7252_v19 }
 0x8dc   :  { %7982 = vpow2.f32 %v7249_v8  ;;  %v13157_v6 = vpop.permute.xlu2 %3699  ;;  %v13163_v35 = vpop.permute.xlu1 %3694  ;;  %v3812_v57 = vadd.f32 %v12837_v25, %v3716_v46  ;;  %v17253_v46 = vld [vmem:[#allocation49_spill] sm:$0xff] }
 0x8dd   :  { %17250 = vst [vmem:[#allocation73_spill] sm:$0xff] %v13157_v6  ;;  %7984 = vpow2.f32 %v7256_v33  ;;  %v3725_v17 = vmul.f32 %v13106_v10, %v13163_v35  ;;  %v3726_v33 = vmul.f32 %v13106_v10, %v13157_v6 }
 0x8de   :  { %v7975_v24 = vpop.eup %7974  ;;  %7986 = vpow2.f32 %v7258_v56  ;;  %17251 = vst [vmem:[#allocation69_spill] sm:$0xff] %v13163_v35  ;;  %v13177_v23 = vpop.permute.xlu0 %3791 }
 0x8df   :  { %v7977_v55 = vpop.eup %7976  ;;  %v13159_v3 = vadd.f32 1.0, %v7975_v24  ;;  %7988 = vpow2.f32 %v7253_v28  ;;  %17252 = vst [vmem:[#allocation8_spill] sm:$0xff] %v13177_v23  ;;  %v3821_v24 = vadd.f32 %v13177_v23, %v3725_v17 }
 0x8e0   :  { %v7979_v51 = vpop.eup %7978  ;;  %7990 = vpow2.f32 %v7257_v18  ;;  %v13167_v39 = vadd.f32 1.0, %v7977_v55  ;;  %v3932_v19 = vpop.f32.mrf.mxu0 }
 0x8e1   :  { %v7981_v36 = vpop.eup %7980  ;;  %v13169_v47 = vadd.f32 1.0, %v7979_v51  ;;  %7992 = vrcp.f32 %v13159_v3  ;;  %vm4007_vm1 = vweird.f32 %v13159_v3 }
 0x8e2   :  { %v7983_v61 = vpop.eup %7982  ;;  %v13174_v54 = vadd.f32 1.0, %v7981_v36  ;;  %7994 = vrcp.f32 %v13167_v39  ;;  %v3816_v36 = vadd.f32 %v17253_v46, %v3720_v60  ;;  %v4028_v35 = vand.u32 2147483648, %v13167_v39 }
 0x8e3   :  { %v7985_v50 = vpop.eup %7984  ;;  %v13181_v56 = vadd.f32 1.0, %v7983_v61  ;;  %7996 = vrcp.f32 %v13169_v47  ;;  %v17255_v61 = vld [vmem:[#allocation22_spill] sm:$0xff]  ;;  %vm4067_vm3 = vweird.f32 %v13169_v47  ;;  %vm4022_vm10 = vweird.f32 %v13167_v39 }
 0x8e4   :  { %v7987_v8 = vpop.eup %7986  ;;  %v13185_v55 = vadd.f32 1.0, %v7985_v50  ;;  %v13191_v4 = vpop.permute.xlu2 %3796  ;;  %7998 = vrcp.f32 %v13174_v54  ;;  %v3941_v2 = vadd.f32 %v17255_v61, %v3812_v57  ;;  %v3727_v50 = vmul.f32 %v13106_v10, %v13131_v31 }
 0x8e5   :  { %v7989_v28 = vpop.eup %7988  ;;  %17254 = vst [vmem:[#allocation71_spill] sm:$0xff] %v13191_v4  ;;  %v13193_v20 = vadd.f32 1.0, %v7987_v8  ;;  %v3822_v17 = vadd.f32 %v13191_v4, %v3726_v33  ;;  %8000 = vrcp.f32 %v13181_v56  ;;  %v3950_v57 = vadd.f32 %v13129_v12, %v3821_v24 }
 0x8e6   :  { %v7991_v18 = vpop.eup %7990  ;;  %v13188_v51 = vadd.f32 1.0, %v7989_v28  ;;  %v3728_v28 = vmul.f32 %v13106_v10, %v13145_v59  ;;  %v3945_v8 = vadd.f32 %v12987_v40, %v3816_v36  ;;  %v7250_v61 = vmul.f32 -1.442695, %v3941_v2 }
 0x8e7   :  { %v13203_v11 = vpop.eup %7992  ;;  %v13205_v60 = vadd.f32 1.0, %v7991_v18  ;;  %v3951_v18 = vadd.f32 %v3929_v14, %v3822_v17  ;;  %v3823_v9 = vadd.f32 %v13155_v44, %v3727_v50  ;;  %v3721_v12 = vmul.f32 %v13106_v10, %v13110_v22 }
 0x8e8   :  { %8002 = vrcp.f32 %v13188_v51  ;;  %v13211_v33 = vpop.eup %7994  ;;  %v4003_v26 = vmul.f32 %v13203_v11, %v13159_v3  ;;  %v3824_v49 = vadd.f32 %v13151_v30, %v3728_v28  ;;  %v3935_v40 = vpop.f32.mrf.mxu0  ;;  %v7254_v36 = vmul.f32 -1.442695, %v3945_v8 }
 0x8e9   :  { %8004 = vrcp.f32 %v13185_v55  ;;  %v13214_v32 = vpop.eup %7996  ;;  %v4018_v2 = vmul.f32 %v13211_v33, %v13167_v39  ;;  %v4013_v17 = vand.u32 2147483648, %v13159_v3  ;;  %v4073_v28 = vand.u32 2147483648, %v13169_v47 }
 0x8ea   :  { %8006 = vrcp.f32 %v13193_v20  ;;  %v13220_v4 = vpop.eup %7998  ;;  %v4063_v50 = vmul.f32 %v13214_v32, %v13169_v47  ;;  %v4004_v10 = vsub.f32 1.0, %v4003_v26  ;;  %v13237_v44 = vadd.f32 %v3932_v19, %v3823_v9 }
 0x8eb   :  { %8008 = vrcp.f32 %v13205_v60  ;;  %v13225_v24 = vpop.eup %8000  ;;  %v4011_v8 = vand.u32 2147483647, %v13159_v3  ;;  %v4019_v26 = vsub.f32 1.0, %v4018_v2  ;;  %v13257_v6 = vor.u32 1.1754944e-38, %v4073_v28 }
 0x8ec   :  { %8010 = vtanh.f32 %v3950_v57  ;;  %v13239_v57 = vadd.f32 %v3935_v40, %v3824_v49  ;;  %v4033_v59 = vmul.f32 %v13225_v24, %v13181_v56  ;;  %v4078_v49 = vmul.f32 %v13220_v4, %v13174_v54 }
 0x8ed   :  { %8012 = vpow2.f32 %v7250_v61  ;;  %v13249_v61 = vadd.f32 %v13119_v63, %v3721_v12  ;;  %v4064_v40 = vsub.f32 1.0, %v4063_v50  ;;  %v4026_v9 = vand.u32 2147483647, %v13167_v39 }
 0x8ee   :  { %v13229_v14 = vpop.eup %8002  ;;  %8014 = vtanh.f32 %v3951_v18  ;;  %v4014_v18 = vor.u32 1.1754944e-38, %v4013_v17  ;;  %v4088_v50 = vand.u32 2147483648, %v13174_v54  ;;  %v4034_v28 = vsub.f32 1.0, %v4033_v59 }
 0x8ef   :  { %v13235_v30 = vpop.eup %8004  ;;  %v4093_v31 = vmul.f32 %v13229_v14, %v13188_v51  ;;  %8016 = vpow2.f32 %v7254_v36  ;;  %v4005_v36 = vmul.f32 %v13203_v11, %v4004_v10  ;;  %vm13281_vm5 = vcmp.eq.f32.partialorder %v4011_v8, 8.507059e+37 }
 0x8f0   :  { %v13241_v23 = vpop.eup %8006  ;;  %v13264_v12 = vmul.f32 %v13235_v30, %v13185_v55  ;;  %v4020_v10 = vmul.f32 %v13211_v33, %v4019_v26  ;;  %v4079_v22 = vsub.f32 1.0, %v4078_v49  ;;  %vm4008_vm9 = vweird.f32 %v13203_v11 }
 0x8f1   :  { %v13255_v19 = vpop.eup %8008  ;;  %v13268_v2 = vmul.f32 %v13241_v23, %v13193_v20  ;;  %v4094_v63 = vsub.f32 1.0, %v4093_v31  ;;  %v4065_v59 = vmul.f32 %v13214_v32, %v4064_v40  ;;  %v4029_v31 = vor.u32 1.1754944e-38, %v4028_v35  ;;  %vm13312_vm0 = vmor %vm4007_vm1, %vm4008_vm9 }
 0x8f2   :  { %v13260_v5 = vpop.eup %8010  ;;  %v13279_v29 = vmul.f32 %v13255_v19, %v13205_v60  ;;  %v4086_v62 = vand.u32 2147483647, %v13174_v54  ;;  %v4006_v8 = vadd.f32 %v13203_v11, %v4005_v36  ;;  %vm4068_vm13 = vweird.f32 %v13214_v32 }
 0x8f3   :  { %v8013_v17 = vpop.eup %8012  ;;  %vm13294_vm8 = vcmp.eq.f32.partialorder %v4026_v9, 8.507059e+37  ;;  %vm4082_vm4 = vweird.f32 %v13174_v54  ;;  %v4089_v26 = vor.u32 1.1754944e-38, %v4088_v50  ;;  %v4035_v35 = vmul.f32 %v13225_v24, %v4034_v28  ;;  %vm13346_vm1 = vmor %vm4067_vm3, %vm4068_vm13 }
 0x8f4   :  { %v13275_v34 = vpop.eup %8014  ;;  %v13286_v27 = vadd.f32 1.0, %v8013_v17  ;;  %v4095_v49 = vmul.f32 %v13229_v14, %v4094_v63  ;;  %v4021_v17 = vadd.f32 %v13211_v33, %v4020_v10  ;;  %vm4023_vm11 = vweird.f32 %v13211_v33 }
 0x8f5   :  { %v8017_v46 = vpop.eup %8016  ;;  %v4080_v9 = vmul.f32 %v13220_v4, %v4079_v22  ;;  %v4041_v36 = vand.u32 2147483647, %v13181_v56  ;;  %v13317_v63 = vadd.f32 %v13214_v32, %v4065_v59  ;;  %vm4037_vm12 = vweird.f32 %v13181_v56  ;;  %vm13334_vm6 = vmor %vm4022_vm10, %vm4023_vm11 }
 0x8f6   :  { %8018 = vrcp.f32 %v13286_v27  ;;  %v13302_v40 = vadd.f32 1.0, %v8017_v46  ;;  %v4043_v46 = vand.u32 2147483648, %v13181_v56  ;;  %v4010_v22 = vsel %vm13312_vm0, %v13203_v11, %v4006_v8 }
 0x8f7   :  { %vm13325_vm14 = vcmp.eq.f32.partialorder %v4086_v62, 8.507059e+37  ;;  %vm4038_vm15 = vweird.f32 %v13225_v24  ;;  %v4101_v3 = vand.u32 2147483647, %v13188_v51  ;;  %v4103_v10 = vand.u32 2147483648, %v13188_v51 }
 0x8f8   :  { %8020 = vrcp.f32 %v13302_v40  ;;  %v4036_v37 = vadd.f32 %v13225_v24, %v4035_v35  ;;  %v4096_v11 = vadd.f32 %v13229_v14, %v4095_v49  ;;  %vm4098_vm7 = vweird.f32 %v13229_v14  ;;  %vm13367_vm3 = vmor %vm4037_vm12, %vm4038_vm15 }
 0x8f9   :  { %8022 = vtanh.f32 %v13237_v44  ;;  %v4025_v39 = vsel %vm13334_vm6, %v13211_v33, %v4021_v17  ;;  %v4081_v35 = vadd.f32 %v13220_v4, %v4080_v9  ;;  %vm4083_vm10 = vweird.f32 %v13220_v4 }
 0x8fa   :  { %vm13355_vm9 = vcmp.eq.f32.partialorder %v4041_v36, 8.507059e+37  ;;  %v13361_v44 = vsel %vm13281_vm5, %v4014_v18, %v4010_v22  ;;  %v4044_v33 = vor.u32 1.1754944e-38, %v4043_v46  ;;  %vm4097_vm13 = vweird.f32 %v13188_v51  ;;  %vm13401_vm12 = vmor %vm4082_vm4, %vm4083_vm10 }
 0x8fb   :  { %v4070_v15 = vsel %vm13346_vm1, %v13214_v32, %v13317_v63  ;;  %v17272_v18 = vand.u32 2147483647, %v13169_v47  ;;  %vm13385_vm11 = vmor %vm4097_vm13, %vm4098_vm7  ;;  %vm13389_vm0 = vcmp.eq.f32.partialorder %v4101_v3, 8.507059e+37  ;;  %v4104_v36 = vor.u32 1.1754944e-38, %v4103_v10 }
 0x8fc   :  { %v8019_v62 = vpop.eup %8018  ;;  %v3946_v32 = vadd.f32 %v13024_v43, %v13249_v61  ;;  %v4030_v47 = vsel %vm13294_vm8, %v4029_v31, %v4025_v39  ;;  %v4040_v22 = vsel %vm13367_vm3, %v13225_v24, %v4036_v37  ;;  %v4100_v43 = vsel %vm13385_vm11, %v13229_v14, %v4096_v11 }
 0x8fd   :  { %v4048_v17 = vmul.f32 %v8019_v62, %v13286_v27  ;;  %vm13379_vm5 = vcmp.eq.f32.partialorder %v17272_v18, 8.507059e+37  ;;  %v4085_v58 = vsel %vm13401_vm12, %v13220_v4, %v4081_v35  ;;  %v4058_v31 = vand.u32 2147483648, %v13286_v27 }
 0x8fe   :  { %v8021_v63 = vpop.eup %8020  ;;  %v7255_v3 = vmul.f32 -1.442695, %v3946_v32  ;;  %vm4053_vm8 = vweird.f32 %v8019_v62  ;;  %v4056_v8 = vand.u32 2147483647, %v13286_v27  ;;  %8024 = vtanh.f32 %v13239_v57 }
 0x8ff   :  { %v4049_v61 = vsub.f32 1.0, %v4048_v17  ;;  %v4108_v54 = vmul.f32 %v8021_v63, %v13302_v40  ;;  %v8023_v10 = vpop.eup %8022  ;;  %v4045_v37 = vsel %vm13355_vm9, %v4044_v33, %v4040_v22  ;;  %v4105_v24 = vsel %vm13389_vm0, %v4104_v36, %v4100_v43 }
 0x900   :  { %8026 = vpow2.f32 %v7255_v3  ;;  %v4090_v4 = vsel %vm13325_vm14, %v4089_v26, %v4085_v58  ;;  %vm4052_vm4 = vweird.f32 %v13286_v27  ;;  %v4118_v39 = vand.u32 2147483648, %v13302_v40 }
 0x901   :  { %v4050_v59 = vmul.f32 %v8019_v62, %v4049_v61  ;;  %v4109_v14 = vsub.f32 1.0, %v4108_v54  ;;  %vm4054_vm15 = vmor %vm4052_vm4, %vm4053_vm8  ;;  %v4059_v35 = vor.u32 1.1754944e-38, %v4058_v31  ;;  %vm4113_vm6 = vweird.f32 %v8021_v63 }
 0x902   :  { %v4116_v57 = vand.u32 2147483647, %v13302_v40  ;;  %v4188_v49 = vmul.f32 0.0, %v4105_v24  ;;  %v4192_v33 = vmul.f32 %v8023_v10, %v4045_v37  ;;  %vm4057_vm7 = vcmp.eq.f32.partialorder %v4056_v8, 8.507059e+37 }
 0x903   :  { %v4051_v11 = vadd.f32 %v8019_v62, %v4050_v59  ;;  %v4110_v50 = vmul.f32 %v8021_v63, %v4109_v14  ;;  %vm4112_vm1 = vweird.f32 %v13302_v40  ;;  %v4154_v26 = vsub.f32 1.0, %v13279_v29  ;;  %v13584_v59 = vld [vmem:[%s16629_s5 + $0x68] sm:$0xff] }
 0x904   :  { %v8025_v28 = vpop.eup %8024  ;;  %v4075_v27 = vsel %vm13379_vm5, %v13257_v6, %v4070_v15  ;;  %v4191_v51 = vmul.f32 %v13275_v34, %v4030_v47  ;;  %vm4114_vm14 = vmor %vm4112_vm1, %vm4113_vm6  ;;  %v4119_v36 = vor.u32 1.1754944e-38, %v4118_v39  ;;  %v17281_v32 = vsub.f32 1.0, %v13268_v2 }
 0x905   :  { %v4055_v17 = vsel %vm4054_vm15, %v8019_v62, %v4051_v11  ;;  %v4111_v56 = vadd.f32 %v8021_v63, %v4110_v50  ;;  %v4187_v22 = vmul.f32 0.0, %v4090_v4  ;;  %vm4117_vm10 = vcmp.eq.f32.partialorder %v4116_v57, 8.507059e+37 }
 0x906   :  { %v4060_v18 = vsel %vm4057_vm7, %v4059_v35, %v4055_v17  ;;  %v4170_v62 = vmul.f32 %v13241_v23, %v17281_v32  ;;  %v8027_v46 = vpop.eup %8026  ;;  %v13436_v61 = vadd.f32 %v4192_v33, %v4188_v49  ;;  %v4139_v58 = vsub.f32 1.0, %v13264_v12 }
 0x907   :  { %v4115_v43 = vsel %vm4114_vm14, %v8021_v63, %v4111_v56  ;;  %v4193_v40 = vmul.f32 %v8025_v28, %v4060_v18  ;;  %v13439_v9 = vadd.f32 1.0, %v8027_v46  ;;  %v4155_v34 = vmul.f32 %v13255_v19, %v4154_v26 }
 0x908   :  { %v4120_v29 = vsel %vm4117_vm10, %v4119_v36, %v4115_v43  ;;  %v4186_v15 = vmul.f32 0.0, %v4075_v27  ;;  %v4190_v2 = vmul.f32 %v13260_v5, %v13361_v44  ;;  %v13445_v47 = vadd.f32 %v4191_v51, %v4187_v22 }
 0x909   :  { %v4189_v6 = vmul.f32 0.0, %v4120_v29  ;;  %8028 = vrcp.f32 %v13439_v9  ;;  %v4171_v31 = vadd.f32 %v13241_v23, %v4170_v62  ;;  %vm4173_vm9 = vweird.f32 %v13241_v23  ;;  %v13493_v29 = vld [vmem:[%s16629_s5] sm:$0xff] }
 0x90a   :  { %v4176_v12 = vand.u32 2147483647, %v13193_v20  ;;  %8030 = vtanh.f32 %v13436_v61  ;;  %v4140_v54 = vmul.f32 %v13235_v30, %v4139_v58  ;;  %v4178_v5 = vand.u32 2147483648, %v13193_v20  ;;  %v13500_v58 = vld [vmem:[%s16629_s5 + $0x8] sm:$0xff] }
 0x90b   :  { %v13447_v63 = vadd.f32 %v4193_v40, %v4189_v6  ;;  %v4156_v44 = vadd.f32 %v13255_v19, %v4155_v34  ;;  %vm4158_vm3 = vweird.f32 %v13255_v19  ;;  %v13458_v3 = vadd.f32 %v4190_v2, %v4186_v15  ;;  %v13514_v6 = vld [vmem:[%s16629_s5 + $0x18] sm:$0xff]  ;;  %v13521_v34 = vld [vmem:[%s16629_s5 + $0x20] sm:$0xff]  ;;  %v13528_v15 = vld [vmem:[%s16629_s5 + $0x28] sm:$0xff] }
 0x90c   :  { %vm4172_vm13 = vweird.f32 %v13193_v20  ;;  %v4163_v10 = vand.u32 2147483648, %v13205_v60  ;;  %vm4157_vm11 = vweird.f32 %v13205_v60  ;;  %v4161_v8 = vand.u32 2147483647, %v13205_v60  ;;  %v13535_v2 = vld [vmem:[%s16629_s5 + $0x30] sm:$0xff] }
 0x90d   :  { %8032 = vtanh.f32 %v13447_v63  ;;  %vm13462_vm5 = vmor %vm4172_vm13, %vm4173_vm9  ;;  %vm4177_vm0 = vcmp.eq.f32.partialorder %v4176_v12, 8.507059e+37  ;;  %v4141_v14 = vadd.f32 %v13235_v30, %v4140_v54  ;;  %vm4143_vm8 = vweird.f32 %v13235_v30  ;;  %v13549_v12 = vld [vmem:[%s16629_s5 + $0x40] sm:$0xff]  ;;  %v13556_v54 = vld [vmem:[%s16629_s5 + $0x48] sm:$0xff] }
 0x90e   :  { %8034 = vtanh.f32 %v13445_v47  ;;  %v4175_v24 = vsel %vm13462_vm5, %v13241_v23, %v4171_v31  ;;  %vm13472_vm12 = vmor %vm4157_vm11, %vm4158_vm3  ;;  %v4179_v4 = vor.u32 1.1754944e-38, %v4178_v5  ;;  %v4148_v11 = vand.u32 2147483648, %v13185_v55  ;;  %v13542_v31 = vld [vmem:[%s16629_s5 + $0x38] sm:$0xff]  ;;  %v13563_v5 = vld [vmem:[%s16629_s5 + $0x50] sm:$0xff] }
 0x90f   :  { %v8029_v37 = vpop.eup %8028  ;;  %v4160_v60 = vsel %vm13472_vm12, %v13255_v19, %v4156_v44  ;;  %v4164_v23 = vor.u32 1.1754944e-38, %v4163_v10  ;;  %vm4142_vm4 = vweird.f32 %v13185_v55  ;;  %v4146_v50 = vand.u32 2147483647, %v13185_v55  ;;  %v13570_v44 = vld [vmem:[%s16629_s5 + $0x58] sm:$0xff]  ;;  %v13577_v10 = vld [vmem:[%s16629_s5 + $0x60] sm:$0xff] }
 0x910   :  { %v4123_v39 = vmul.f32 %v8029_v37, %v13439_v9  ;;  %v8031_v35 = vpop.eup %8030  ;;  %8036 = vtanh.f32 %v13458_v3  ;;  %v4180_v49 = vsel %vm4177_vm0, %v4179_v4, %v4175_v24  ;;  %vm4162_vm15 = vcmp.eq.f32.partialorder %v4161_v8, 8.507059e+37  ;;  %vm4144_vm6 = vmor %vm4142_vm4, %vm4143_vm8  ;;  %v13591_v8 = vld [vmem:[%s16629_s5 + $0x70] sm:$0xff] }
 0x911   :  { %v4165_v18 = vsel %vm4162_vm15, %v4164_v23, %v4160_v60  ;;  %v4145_v19 = vsel %vm4144_vm6, %v13235_v30, %v4141_v14  ;;  %v4133_v56 = vand.u32 2147483648, %v13439_v9  ;;  %v4149_v28 = vor.u32 1.1754944e-38, %v4148_v11  ;;  %17286 = vst [vmem:[#allocation75_spill] sm:$0xff] %v13591_v8 }
 0x912   :  { %v4124_v33 = vsub.f32 1.0, %v4123_v39  ;;  %vm4128_vm7 = vweird.f32 %v8029_v37  ;;  %v4131_v51 = vand.u32 2147483647, %v13439_v9  ;;  %v4204_v55 = vmul.f32 %v8031_v35, %v4165_v18 }
 0x913   :  { %v8033_v57 = vpop.eup %8032  ;;  %vm4147_vm1 = vcmp.eq.f32.partialorder %v4146_v50, 8.507059e+37  ;;  %vm4127_vm14 = vweird.f32 %v13439_v9  ;;  %v4134_v30 = vor.u32 1.1754944e-38, %v4133_v56  ;;  %v13507_v9 = vld [vmem:[%s16629_s5 + $0x10] sm:$0xff]  ;;  %v13603_v39 = vperm.slane %v13090_v0, 1 }
 0x914   :  { %v4205_v17 = vmul.f32 %v8033_v57, %v4180_v49  ;;  %v8035_v26 = vpop.eup %8034  ;;  %v4125_v27 = vmul.f32 %v8029_v37, %v4124_v33  ;;  %v4150_v36 = vsel %vm4147_vm1, %v4149_v28, %v4145_v19  ;;  %vm4129_vm10 = vmor %vm4127_vm14, %vm4128_vm7  ;;  %vm4132_vm9 = vcmp.eq.f32.partialorder %v4131_v51, 8.507059e+37 }
 0x915   :  { %v4203_v46 = vmul.f32 %v8035_v26, %v4150_v36  ;;  %v4209_v23 = vmul.f32 %v13603_v39, %v12991_v38  ;;  %v4210_v50 = vmul.f32 %v13603_v39, %v12941_v48  ;;  %v4211_v57 = vmul.f32 %v13603_v39, %v12799_v45 }
 0x916   :  { %4253 = vmatpush.msra.mxu1 %v4205_v17  ;;  %v4126_v32 = vadd.f32 %v8029_v37, %v4125_v27  ;;  %v8037_v62 = vpop.eup %8036  ;;  %v4213_v36 = vmul.f32 %v13603_v39, %v13014_v1 }
 0x917   :  { %v4225_v49 = vadd.f32 %v4209_v23, %v13039_v13  ;;  %v4226_v33 = vadd.f32 %v4210_v50, %v13035_v41  ;;  %v4227_v0 = vadd.f32 %v4211_v57, %v12961_v21 }
 0x918   :  { %4254 = vmatpush.msra.mxu1 %v4204_v55  ;;  %v4130_v22 = vsel %vm4129_vm10, %v8029_v37, %v4126_v32  ;;  %v13598_v37 = vld [vmem:[%s16629_s5 + $0x78] sm:$0xff]  ;;  %v4212_v55 = vmul.f32 %v13603_v39, %v12777_v42  ;;  %v4215_v32 = vmul.f32 %v13603_v39, %v12868_v7 }
 0x919   :  { %v4135_v43 = vsel %vm4132_vm9, %v4134_v30, %v4130_v22  ;;  %17287 = vst [vmem:[#allocation25_spill] sm:$0xff] %v13598_v37  ;;  %v4216_v22 = vmul.f32 %v13603_v39, %v12751_v53 }
 0x91a   :  { %4255 = vmatpush.msra.mxu1 %v4203_v46  ;;  %v4202_v40 = vmul.f32 %v8037_v62, %v4135_v43  ;;  %v4228_v62 = vadd.f32 %v4212_v55, %v12837_v25  ;;  %v4214_v46 = vmul.f32 %v13603_v39, %v12907_v16  ;;  %v17299_v25 = vld [vmem:[#allocation69_spill] sm:$0xff] }
 0x91b   :  { %v4221_v16 = vmul.f32 %v13603_v39, %v17299_v25  ;;  %v17302_v25 = vld [vmem:[#allocation64_spill] sm:$0xff] }
 0x91c   :  { %4256 = vmatpush.msra.mxu1 %v4202_v40 }
 0x91d   :  { %7259 = vmatmul.msk.f32.vlgmr.msra.gmra.mxu1 %vm369_vm2, %v13493_v29 }
 0x925   :  { %7260 = vmatmul.msk.f32.gmra.mxu1 %vm369_vm2, %v13500_v58 }
 0x92d   :  { %7261 = vmatmul.msk.f32.gmra.mxu1 %vm369_vm2, %v13507_v9 }
 0x935   :  { %7262 = vmatmul.msk.f32.gmra.mxu1 %vm369_vm2, %v13514_v6 }
 0x93d   :  { %7263 = vmatmul.msk.f32.gmra.mxu1 %vm369_vm2, %v13521_v34 }
 0x945   :  { %7264 = vmatmul.msk.f32.gmra.mxu1 %vm369_vm2, %v13528_v15 }
 0x94d   :  { %7265 = vmatmul.msk.f32.gmra.mxu1 %vm369_vm2, %v13535_v2 }
 0x955   :  { %7266 = vmatmul.msk.f32.gmra.mxu1 %vm369_vm2, %v13542_v31 }
 0x95d   :  { %7267 = vmatmul.msk.f32.gmra.mxu1 %vm369_vm2, %v13549_v12 }
 0x965   :  { %7268 = vmatmul.msk.f32.gmra.mxu1 %vm369_vm2, %v13556_v54 }
 0x96d   :  { %7269 = vmatmul.msk.f32.gmra.mxu1 %vm369_vm2, %v13563_v5 }
 0x975   :  { %7270 = vmatmul.msk.f32.gmra.mxu1 %vm369_vm2, %v13570_v44 }
 0x97d   :  { %7271 = vmatmul.msk.f32.gmra.mxu1 %vm369_vm2, %v13577_v10 }
 0x985   :  { %7272 = vmatmul.msk.f32.gmra.mxu1 %vm369_vm2, %v13584_v59 }
 0x98d   :  { %7273 = vmatmul.msk.f32.gmra.mxu1 %vm369_vm2, %v13591_v8 }
 0x995   :  { %7274 = vmatmul.msk.f32.gmra.mxu1 %vm369_vm2, %v13598_v37 }
 0x99a   :  { %v4258_v24 = vpop.f32.mrf.mxu1 }
 0x99b   :  { %v4306_v18 = vadd.f32 %v4258_v24, %v4225_v49  ;;  %v4229_v24 = vadd.f32 %v4213_v36, %v13054_v52  ;;  %v17298_v52 = vld [vmem:[#allocation56_spill] sm:$0xff] }
 0x99d   :  { %v7275_v26 = vmul.f32 -1.442695, %v4306_v18 }
 0x99f   :  { %8038 = vpow2.f32 %v7275_v26 }
 0x9a2   :  { %v4261_v20 = vpop.f32.mrf.mxu1 }
 0x9a3   :  { %v4307_v19 = vadd.f32 %v4261_v20, %v4226_v33  ;;  %v17289_v33 = vld [vmem:[#allocation57_spill] sm:$0xff] }
 0x9a4   :  { %v4230_v18 = vadd.f32 %v4214_v46, %v17289_v33 }
 0x9a5   :  { %v7276_v28 = vmul.f32 -1.442695, %v4307_v19  ;;  %v8039_v30 = vpop.eup %8038 }
 0x9a6   :  { %v13629_v57 = vadd.f32 1.0, %v8039_v30 }
 0x9a7   :  { %8040 = vpow2.f32 %v7276_v28 }
 0x9a8   :  { %vm4375_vm13 = vweird.f32 %v13629_v57 }
 0x9aa   :  { %v4264_v14 = vpop.f32.mrf.mxu1 }
 0x9ab   :  { %v4308_v56 = vadd.f32 %v4264_v14, %v4227_v0  ;;  %v17288_v14 = vld [vmem:[#allocation53_spill] sm:$0xff] }
 0x9ac   :  { %v4231_v23 = vadd.f32 %v4215_v32, %v17288_v14  ;;  %v17297_v14 = vld [vmem:[#allocation60_spill] sm:$0xff] }
 0x9ad   :  { %v7277_v27 = vmul.f32 -1.442695, %v4308_v56  ;;  %v8041_v43 = vpop.eup %8040  ;;  %v17290_v56 = vld [vmem:[#allocation49_spill] sm:$0xff] }
 0x9ae   :  { %v13632_v19 = vadd.f32 1.0, %v8041_v43  ;;  %v4232_v26 = vadd.f32 %v4216_v22, %v17290_v56 }
 0x9af   :  { %8042 = vpow2.f32 %v7277_v27 }
 0x9b0   :  { %8044 = vrcp.f32 %v13629_v57  ;;  %vm4390_vm11 = vweird.f32 %v13632_v19 }
 0x9b1   :  { %8046 = vrcp.f32 %v13632_v19 }
 0x9b2   :  { %v4267_v4 = vpop.f32.mrf.mxu1 }
 0x9b3   :  { %v4309_v40 = vadd.f32 %v4267_v4, %v4228_v62 }
 0x9b5   :  { %v8043_v50 = vpop.eup %8042  ;;  %v7278_v28 = vmul.f32 -1.442695, %v4309_v40  ;;  %v17292_v40 = vld [vmem:[#allocation37_spill] sm:$0xff] }
 0x9b6   :  { %v13635_v55 = vadd.f32 1.0, %v8043_v50  ;;  %v17293_v50 = vld [vmem:[#allocation58_spill] sm:$0xff] }
 0x9b7   :  { %8048 = vpow2.f32 %v7278_v28 }
 0x9b8   :  { %8050 = vrcp.f32 %v13635_v55  ;;  %vm4405_vm15 = vweird.f32 %v13635_v55 }
 0x9ba   :  { %v4270_v60 = vpop.f32.mrf.mxu1 }
 0x9bb   :  { %v4310_v49 = vadd.f32 %v4270_v60, %v4229_v24  ;;  %v4219_v24 = vmul.f32 %v13603_v39, %v17292_v40 }
 0x9bd   :  { %v7279_v36 = vmul.f32 -1.442695, %v4310_v49  ;;  %v4217_v49 = vmul.f32 %v13603_v39, %v17293_v50  ;;  %v17296_v50 = vld [vmem:[#allocation44_spill] sm:$0xff] }
 0x9be   :  { %v4235_v56 = vadd.f32 %v4219_v24, %v17296_v50 }
 0x9bf   :  { %8052 = vpow2.f32 %v7279_v36 }
 0x9c2   :  { %v4273_v11 = vpop.f32.mrf.mxu1 }
 0x9c3   :  { %v4311_v27 = vadd.f32 %v4273_v11, %v4230_v18  ;;  %v17294_v18 = vld [vmem:[#allocation42_spill] sm:$0xff] }
 0x9c5   :  { %v7280_v60 = vmul.f32 -1.442695, %v4311_v27 }
 0x9ca   :  { %v4276_v35 = vpop.f32.mrf.mxu1 }
 0x9cb   :  { %v4312_v0 = vadd.f32 %v4276_v35, %v4231_v23  ;;  %v13640_v35 = vpop.eup %8044 }
 0x9cc   :  { %v13642_v11 = vpop.eup %8046  ;;  %v4371_v40 = vmul.f32 %v13640_v35, %v13629_v57  ;;  %vm4376_vm5 = vweird.f32 %v13640_v35 }
 0x9cd   :  { %v7281_v32 = vmul.f32 -1.442695, %v4312_v0  ;;  %v8049_v22 = vpop.eup %8048  ;;  %v4218_v0 = vmul.f32 %v13603_v39, %v17294_v18  ;;  %vm4391_vm3 = vweird.f32 %v13642_v11  ;;  %vm13749_vm8 = vmor %vm4375_vm13, %vm4376_vm5 }
 0x9ce   :  { %v13646_v43 = vpop.eup %8050  ;;  %v13654_v27 = vadd.f32 1.0, %v8049_v22  ;;  %v4233_v22 = vadd.f32 %v4217_v49, %v17297_v14  ;;  %v17304_v14 = vld [vmem:[#allocation71_spill] sm:$0xff]  ;;  %vm13736_vm0 = vmor %vm4390_vm11, %vm4391_vm3 }
 0x9cf   :  { %8054 = vpow2.f32 %v7281_v32  ;;  %v8053_v23 = vpop.eup %8052  ;;  %v4234_v53 = vadd.f32 %v4218_v0, %v17298_v52  ;;  %v17300_v0 = vld [vmem:[#allocation73_spill] sm:$0xff]  ;;  %vm4406_vm4 = vweird.f32 %v13646_v43 }
 0x9d0   :  { %8056 = vpow2.f32 %v7280_v60  ;;  %v4386_v60 = vmul.f32 %v13642_v11, %v13632_v19  ;;  %v4426_v45 = vand.u32 2147483648, %v13654_v27  ;;  %vm13780_vm7 = vmor %vm4405_vm15, %vm4406_vm4  ;;  %vm4420_vm1 = vweird.f32 %v13654_v27 }
 0x9d2   :  { %v4279_v17 = vpop.f32.mrf.mxu1  ;;  %v4387_v7 = vsub.f32 1.0, %v4386_v60  ;;  %v13795_v8 = vor.u32 1.1754944e-38, %v4426_v45 }
 0x9d3   :  { %v4313_v4 = vadd.f32 %v4279_v17, %v4232_v26  ;;  %v17291_v17 = vld [vmem:[#allocation32_spill] sm:$0xff] }
 0x9d4   :  { %v4220_v30 = vmul.f32 %v13603_v39, %v17291_v17  ;;  %v13661_v17 = vadd.f32 1.0, %v8053_v23  ;;  %v4401_v23 = vmul.f32 %v13646_v43, %v13635_v55 }
 0x9d5   :  { %v7282_v46 = vmul.f32 -1.442695, %v4313_v4  ;;  %v8055_v28 = vpop.eup %8054  ;;  %v17295_v4 = vld [vmem:[#allocation39_spill] sm:$0xff] }
 0x9d6   :  { %v4236_v36 = vadd.f32 %v4220_v30, %v17295_v4  ;;  %v8057_v32 = vpop.eup %8056  ;;  %v13664_v18 = vadd.f32 1.0, %v8055_v28  ;;  %v4372_v28 = vsub.f32 1.0, %v4371_v40  ;;  %v4388_v40 = vmul.f32 %v13642_v11, %v4387_v7 }
 0x9d7   :  { %8058 = vpow2.f32 %v7282_v46  ;;  %v13669_v30 = vadd.f32 1.0, %v8057_v32  ;;  %v17301_v32 = vld [vmem:[#allocation62_spill] sm:$0xff]  ;;  %vm4435_vm14 = vweird.f32 %v13661_v17 }
 0x9d8   :  { %8060 = vrcp.f32 %v13654_v27  ;;  %v4223_v60 = vmul.f32 %v13603_v39, %v17301_v32  ;;  %v4373_v32 = vmul.f32 %v13640_v35, %v4372_v28  ;;  %v4396_v28 = vand.u32 2147483648, %v13632_v19 }
 0x9d9   :  { %8062 = vrcp.f32 %v13661_v17  ;;  %vm4450_vm10 = vweird.f32 %v13669_v30  ;;  %vm4465_vm11 = vweird.f32 %v13664_v18 }
 0x9da   :  { %v13614_v51 = vpop.f32.mrf.mxu1  ;;  %8064 = vrcp.f32 %v13664_v18 }
 0x9db   :  { %8066 = vrcp.f32 %v13669_v30 }
 0x9dd   :  { %v8059_v46 = vpop.eup %8058 }
 0x9de   :  { %v13675_v24 = vadd.f32 1.0, %v8059_v46  ;;  %v4224_v46 = vmul.f32 %v13603_v39, %v17302_v25 }
 0x9e0   :  { %8068 = vrcp.f32 %v13675_v24 }
 0x9e2   :  { %v4285_v20 = vpop.f32.mrf.mxu1 }
 0x9ea   :  { %v4288_v62 = vpop.f32.mrf.mxu1 }
 0x9eb   :  { %v4316_v4 = vadd.f32 %v4288_v62, %v4235_v56  ;;  %v4314_v56 = vadd.f32 %v13614_v51, %v4233_v22  ;;  %v17303_v51 = vld [vmem:[#allocation8_spill] sm:$0xff] }
 0x9ec   :  { %v13694_v22 = vadd.f32 %v4221_v16, %v17303_v51  ;;  %v4394_v16 = vand.u32 2147483647, %v13632_v19 }
 0x9ee   :  { %vm13740_vm12 = vcmp.eq.f32.partialorder %v4394_v16, 8.507059e+37 }
 0x9f2   :  { %v4291_v26 = vpop.f32.mrf.mxu1 }
 0x9f3   :  { %v4317_v33 = vadd.f32 %v4291_v26, %v4236_v36  ;;  %v4315_v26 = vadd.f32 %v4285_v20, %v4234_v53  ;;  %v4222_v36 = vmul.f32 %v13603_v39, %v17300_v0  ;;  %v7285_v53 = vmul.f32 -1.442695, %v4316_v4  ;;  %v13691_v0 = vpop.eup %8060 }
 0x9f4   :  { %v4402_v20 = vsub.f32 1.0, %v4401_v23  ;;  %v7283_v39 = vmul.f32 -1.442695, %v4314_v56  ;;  %v4381_v4 = vand.u32 2147483648, %v13629_v57  ;;  %v17305_v23 = vld [vmem:[#allocation67_spill] sm:$0xff]  ;;  %v13707_v7 = vpop.eup %8062  ;;  %v4389_v56 = vadd.f32 %v13642_v11, %v4388_v40 }
 0x9f5   :  { %v7286_v49 = vmul.f32 -1.442695, %v4317_v33  ;;  %v7284_v33 = vmul.f32 -1.442695, %v4315_v26  ;;  %v13698_v52 = vadd.f32 %v4222_v36, %v17304_v14  ;;  %v13702_v25 = vadd.f32 %v4223_v60, %v17305_v23  ;;  %v17306_v26 = vld [vmem:[#allocation65_spill] sm:$0xff] }
 0x9f6   :  { %v13705_v50 = vadd.f32 %v4224_v46, %v17306_v26  ;;  %v4416_v36 = vmul.f32 %v13691_v0, %v13654_v27  ;;  %v4403_v60 = vmul.f32 %v13646_v43, %v4402_v20  ;;  %v13728_v14 = vor.u32 1.1754944e-38, %v4381_v4 }
 0x9f7   :  { %8070 = vpow2.f32 %v7286_v49  ;;  %v13712_v49 = vpop.eup %8064  ;;  %v4409_v20 = vand.u32 2147483647, %v13635_v55  ;;  %v4411_v4 = vand.u32 2147483648, %v13635_v55  ;;  %v4393_v42 = vsel %vm13736_vm0, %v13642_v11, %v4389_v56 }
 0x9f8   :  { %8072 = vpow2.f32 %v7285_v53  ;;  %v13718_v46 = vpop.eup %8066  ;;  %v13721_v53 = vadd.f32 %v13640_v35, %v4373_v32  ;;  %v4461_v32 = vmul.f32 %v13712_v49, %v13664_v18  ;;  %v4417_v19 = vsub.f32 1.0, %v4416_v36 }
 0x9f9   :  { %8074 = vpow2.f32 %v7284_v33  ;;  %v13726_v23 = vpop.eup %8068  ;;  %v4404_v16 = vadd.f32 %v13646_v43, %v4403_v60  ;;  %v4446_v36 = vmul.f32 %v13718_v46, %v13669_v30  ;;  %v4431_v11 = vmul.f32 %v13707_v7, %v13661_v17 }
 0x9fa   :  { %v13682_v62 = vpop.f32.mrf.mxu1  ;;  %8076 = vpow2.f32 %v7283_v39  ;;  %v4397_v39 = vor.u32 1.1754944e-38, %v4396_v28  ;;  %v4476_v51 = vmul.f32 %v13726_v23, %v13675_v24  ;;  %vm13772_vm6 = vcmp.eq.f32.partialorder %v4409_v20, 8.507059e+37 }
 0x9fb   :  { %v4462_v13 = vsub.f32 1.0, %v4461_v32  ;;  %v4412_v48 = vor.u32 1.1754944e-38, %v4411_v4  ;;  %v4408_v20 = vsel %vm13780_vm7, %v13646_v43, %v4404_v16  ;;  %v4424_v26 = vand.u32 2147483647, %v13654_v27 }
 0x9fc   :  { %v13778_v21 = vsel %vm13740_vm12, %v4397_v39, %v4393_v42  ;;  %v4447_v32 = vsub.f32 1.0, %v4446_v36  ;;  %v4432_v4 = vsub.f32 1.0, %v4431_v11  ;;  %vm4421_vm9 = vweird.f32 %v13691_v0 }
 0x9fd   :  { %v8071_v40 = vpop.eup %8070  ;;  %vm4436_vm3 = vweird.f32 %v13707_v7  ;;  %v4318_v11 = vadd.f32 %v13682_v62, %v13694_v22  ;;  %vm4466_vm13 = vweird.f32 %v13712_v49  ;;  %vm13826_vm5 = vmor %vm4420_vm1, %vm4421_vm9  ;;  %v4471_v60 = vand.u32 2147483648, %v13664_v18 }
 0x9fe   :  { %v8073_v28 = vpop.eup %8072  ;;  %v13770_v56 = vadd.f32 1.0, %v8071_v40  ;;  %v4418_v40 = vmul.f32 %v13691_v0, %v4417_v19  ;;  %v4463_v19 = vmul.f32 %v13712_v49, %v4462_v13  ;;  %v4448_v36 = vmul.f32 %v13718_v46, %v4447_v32  ;;  %vm13858_vm15 = vmor %vm4465_vm11, %vm4466_vm13 }
 0x9ff   :  { %v8075_v41 = vpop.eup %8074  ;;  %v13785_v37 = vadd.f32 1.0, %v8073_v28  ;;  %v4477_v28 = vsub.f32 1.0, %v4476_v51  ;;  %v4456_v13 = vand.u32 2147483648, %v13669_v30  ;;  %v17319_v22 = vand.u32 2147483647, %v13629_v57  ;;  %vm13872_vm7 = vmor %vm4435_vm14, %vm4436_vm3 }
 0xa00   :  { %v8077_v38 = vpop.eup %8076  ;;  %v13793_v39 = vadd.f32 1.0, %v8075_v41  ;;  %8078 = vrcp.f32 %v13770_v56  ;;  %v4413_v41 = vsel %vm13772_vm6, %v4412_v48, %v4408_v20  ;;  %v13809_v45 = vadd.f32 %v13691_v0, %v4418_v40 }
 0xa01   :  { %v13801_v16 = vadd.f32 1.0, %v8077_v38  ;;  %8080 = vrcp.f32 %v13785_v37  ;;  %v4433_v38 = vmul.f32 %v13707_v7, %v4432_v4  ;;  %v4478_v48 = vmul.f32 %v13726_v23, %v4477_v28 }
 0xa02   :  { %v4297_v33 = vpop.f32.mrf.mxu1  ;;  %8082 = vrcp.f32 %v13793_v39  ;;  %v4464_v51 = vadd.f32 %v13712_v49, %v4463_v19  ;;  %v4454_v20 = vand.u32 2147483647, %v13669_v30  ;;  %v4423_v62 = vsel %vm13826_vm5, %v13691_v0, %v13809_v45 }
 0xa03   :  { %vm13841_vm0 = vcmp.eq.f32.partialorder %v17319_v22, 8.507059e+37  ;;  %v4449_v40 = vadd.f32 %v13718_v46, %v4448_v36  ;;  %vm4451_vm12 = vweird.f32 %v13718_v46  ;;  %vm13848_vm4 = vcmp.eq.f32.partialorder %v4424_v26, 8.507059e+37 }
 0xa04   :  { %v4486_v0 = vand.u32 2147483648, %v13675_v24  ;;  %v4434_v57 = vadd.f32 %v13707_v7, %v4433_v38  ;;  %v4479_v19 = vadd.f32 %v13726_v23, %v4478_v48  ;;  %vm4481_vm6 = vweird.f32 %v13726_v23  ;;  %vm13885_vm9 = vmor %vm4450_vm10, %vm4451_vm12 }
 0xa05   :  { %v4468_v36 = vsel %vm13858_vm15, %v13712_v49, %v4464_v51  ;;  %vm4480_vm1 = vweird.f32 %v13675_v24  ;;  %vm13889_vm14 = vcmp.eq.f32.partialorder %v4454_v20, 8.507059e+37  ;;  %v4484_v49 = vand.u32 2147483647, %v13675_v24 }
 0xa06   :  { %v4453_v30 = vsel %vm13885_vm9, %v13718_v46, %v4449_v40  ;;  %vm13903_vm3 = vmor %vm4480_vm1, %vm4481_vm6  ;;  %v4438_v24 = vsel %vm13872_vm7, %v13707_v7, %v4434_v57  ;;  %v4487_v48 = vor.u32 1.1754944e-38, %v4486_v0  ;;  %v17334_v55 = vand.u32 2147483648, %v13661_v17 }
 0xa07   :  { %v4483_v28 = vsel %vm13903_vm3, %v13726_v23, %v4479_v19  ;;  %vm4485_vm13 = vcmp.eq.f32.partialorder %v4484_v49, 8.507059e+37  ;;  %v17335_v23 = vand.u32 2147483647, %v13661_v17  ;;  %v4428_v17 = vsel %vm13848_vm4, %v13795_v8, %v4423_v62 }
 0xa08   :  { %v4442_v45 = vor.u32 1.1754944e-38, %v17334_v55  ;;  %v4488_v19 = vsel %vm4485_vm13, %v4487_v48, %v4483_v28  ;;  %vm4540_vm11 = vweird.f32 %v13770_v56  ;;  %vm4525_vm6 = vweird.f32 %v13785_v37 }
 0xa09   :  { %vm4440_vm5 = vcmp.eq.f32.partialorder %v17335_v23, 8.507059e+37  ;;  %vm4510_vm1 = vweird.f32 %v13793_v39  ;;  %v4501_v23 = vand.u32 2147483648, %v13801_v16 }
 0xa0a   :  { %v4300_v43 = vpop.f32.mrf.mxu1  ;;  %v4443_v0 = vsel %vm4440_vm5, %v4442_v45, %v4438_v24 }
 0xa0b   :  { %v4320_v42 = vadd.f32 %v4300_v43, %v13702_v25  ;;  %v4319_v25 = vadd.f32 %v4297_v33, %v13698_v52  ;;  %v13830_v33 = vpop.eup %8078 }
 0xa0c   :  { %v13852_v4 = vpop.eup %8080  ;;  %v4536_v26 = vmul.f32 %v13830_v33, %v13770_v56 }
 0xa0d   :  { %8084 = vtanh.f32 %v4320_v42  ;;  %v4469_v42 = vand.u32 2147483647, %v13664_v18  ;;  %v13864_v18 = vpop.eup %8082 }
 0xa0e   :  { %8086 = vrcp.f32 %v13801_v16  ;;  %v4506_v46 = vmul.f32 %v13864_v18, %v13793_v39  ;;  %v4537_v40 = vsub.f32 1.0, %v4536_v26  ;;  %vm4511_vm4 = vweird.f32 %v13864_v18 }
 0xa0f   :  { %8088 = vtanh.f32 %v4319_v25  ;;  %vm4470_vm10 = vcmp.eq.f32.partialorder %v4469_v42, 8.507059e+37 }
 0xa10   :  { %8090 = vtanh.f32 %v4318_v11  ;;  %v4472_v11 = vor.u32 1.1754944e-38, %v4471_v60  ;;  %v4457_v60 = vor.u32 1.1754944e-38, %v4456_v13  ;;  %v4538_v1 = vmul.f32 %v13830_v33, %v4537_v40 }
 0xa11   :  { %v4516_v40 = vand.u32 2147483648, %v13793_v39 }
 0xa12   :  { %v4303_v43 = vpop.f32.mrf.mxu1  ;;  %v4473_v22 = vsel %vm4470_vm10, %v4472_v11, %v4468_v36  ;;  %v4458_v7 = vsel %vm13889_vm14, %v4457_v60, %v4453_v30  ;;  %v4507_v11 = vsub.f32 1.0, %v4506_v46  ;;  %v4544_v30 = vand.u32 2147483647, %v13770_v56  ;;  %vm13988_vm14 = vmor %vm4510_vm1, %vm4511_vm4 }
 0xa13   :  { %v4321_v25 = vadd.f32 %v4303_v43, %v13705_v50  ;;  %v8085_v38 = vpop.eup %8084  ;;  %v4521_v50 = vmul.f32 %v13852_v4, %v13785_v37  ;;  %v4556_v57 = vmul.f32 %v4473_v22, %v13436_v61  ;;  %v4555_v61 = vmul.f32 %v4458_v7, %v13445_v47 }
 0xa14   :  { %v13894_v51 = vpop.eup %8086  ;;  %v4560_v42 = vmul.f32 %v8085_v38, %v4413_v41  ;;  %v17336_v41 = vsel %vm13749_vm8, %v13640_v35, %v13721_v53  ;;  %v4557_v53 = vmul.f32 %v4488_v19, %v13447_v63  ;;  %v4539_v47 = vadd.f32 %v13830_v33, %v4538_v1  ;;  %v17348_v1 = vld [vmem:[#allocation34_spill] sm:$0xff] }
 0xa15   :  { %8092 = vtanh.f32 %v4321_v25  ;;  %v8089_v43 = vpop.eup %8088  ;;  %v4491_v25 = vmul.f32 %v13894_v51, %v13801_v16  ;;  %v4522_v26 = vsub.f32 1.0, %v4521_v50  ;;  %v4383_v55 = vsel %vm13841_vm0, %v13728_v14, %v17336_v41 }
 0xa16   :  { %v8091_v13 = vpop.eup %8090  ;;  %v4559_v36 = vmul.f32 %v8089_v43, %v13778_v21  ;;  %v13937_v52 = vadd.f32 %v4560_v42, %v4556_v57  ;;  %v4554_v21 = vmul.f32 %v4443_v0, %v13458_v3  ;;  %vm4541_vm8 = vweird.f32 %v13830_v33 }
 0xa17   :  { %v4558_v35 = vmul.f32 %v8091_v13, %v4383_v55  ;;  %v4492_v14 = vsub.f32 1.0, %v4491_v25  ;;  %v4523_v49 = vmul.f32 %v13852_v4, %v4522_v26  ;;  %v4508_v62 = vmul.f32 %v13864_v18, %v4507_v11  ;;  %vm13960_vm12 = vmor %vm4540_vm11, %vm4541_vm8  ;;  %v17358_v13 = vld [vmem:[#allocation36_spill] sm:$0xff] }
 0xa18   :  { %v13943_v50 = vadd.f32 %v4559_v36, %v4555_v61  ;;  %8094 = vtanh.f32 %v13937_v52  ;;  %v4546_v63 = vand.u32 2147483648, %v13770_v56  ;;  %vm4526_vm0 = vweird.f32 %v13852_v4 }
 0xa19   :  { %v13951_v32 = vadd.f32 %v4558_v35, %v4554_v21  ;;  %v4493_v3 = vmul.f32 %v13894_v51, %v4492_v14  ;;  %v4524_v20 = vadd.f32 %v13852_v4, %v4523_v49  ;;  %v4531_v60 = vand.u32 2147483648, %v13785_v37  ;;  %vm13974_vm7 = vmor %vm4525_vm6, %vm4526_vm0  ;;  %v17350_v21 = vld [vmem:[#allocation31_spill] sm:$0xff] }
 0xa1a   :  { %vm4496_vm15 = vweird.f32 %v13894_v51  ;;  %v4543_v56 = vsel %vm13960_vm12, %v13830_v33, %v4539_v47  ;;  %v4529_v22 = vand.u32 2147483647, %v13785_v37  ;;  %v4509_v28 = vadd.f32 %v13864_v18, %v4508_v62 }
 0xa1b   :  { %v8093_v38 = vpop.eup %8092  ;;  %v4547_v43 = vor.u32 1.1754944e-38, %v4546_v63  ;;  %vm4545_vm9 = vcmp.eq.f32.partialorder %v4544_v30, 8.507059e+37  ;;  %v4528_v33 = vsel %vm13974_vm7, %v13852_v4, %v4524_v20  ;;  %v4514_v37 = vand.u32 2147483647, %v13793_v39 }
 0xa1c   :  { %v4561_v27 = vmul.f32 %v8093_v38, %v4428_v17  ;;  %v4494_v48 = vadd.f32 %v13894_v51, %v4493_v3  ;;  %v4532_v7 = vor.u32 1.1754944e-38, %v4531_v60  ;;  %vm4495_vm10 = vweird.f32 %v13801_v16  ;;  %v17351_v3 = vld [vmem:[#allocation51_spill] sm:$0xff] }
 0xa1d   :  { %v4548_v45 = vsel %vm4545_vm9, %v4547_v43, %v4543_v56  ;;  %vm4530_vm3 = vcmp.eq.f32.partialorder %v4529_v22, 8.507059e+37  ;;  %v4513_v39 = vsel %vm13988_vm14, %v13864_v18, %v4509_v28  ;;  %v4499_v4 = vand.u32 2147483647, %v13801_v16  ;;  %vm4497_vm13 = vmor %vm4495_vm10, %vm4496_vm15  ;;  %v17352_v60 = vld [vmem:[#allocation27_spill] sm:$0xff] }
 0xa1e   :  { %v13945_v8 = vadd.f32 %v4561_v27, %v4557_v53  ;;  %v8095_v42 = vpop.eup %8094  ;;  %v4533_v26 = vsel %vm4530_vm3, %v4532_v7, %v4528_v33  ;;  %v4517_v41 = vor.u32 1.1754944e-38, %v4516_v40  ;;  %vm4515_vm5 = vcmp.eq.f32.partialorder %v4514_v37, 8.507059e+37  ;;  %v17349_v53 = vld [vmem:[#allocation35_spill] sm:$0xff]  ;;  %v17356_v37 = vld [vmem:[#allocation38_spill] sm:$0xff] }
 0xa1f   :  { %v4572_v55 = vmul.f32 %v8095_v42, %v4533_v26  ;;  %v4498_v0 = vsel %vm4497_vm13, %v13894_v51, %v4494_v48  ;;  %v4502_v38 = vor.u32 1.1754944e-38, %v4501_v23  ;;  %vm4500_vm8 = vcmp.eq.f32.partialorder %v4499_v4, 8.507059e+37  ;;  %v17353_v22 = vld [vmem:[#allocation55_spill] sm:$0xff]  ;;  %v17355_v42 = vld [vmem:[#allocation40_spill] sm:$0xff] }
 0xa20   :  { %8096 = vtanh.f32 %v13945_v8  ;;  %v4518_v17 = vsel %vm4515_vm5, %v4517_v41, %v4513_v39  ;;  %v17354_v43 = vld [vmem:[#allocation43_spill] sm:$0xff] }
 0xa21   :  { %8098 = vtanh.f32 %v13943_v50  ;;  %v4503_v18 = vsel %vm4500_vm8, %v4502_v38, %v4498_v0  ;;  %v17361_v38 = vld [vmem:[#allocation49_spill] sm:$0xff] }
 0xa22   :  { %8100 = vtanh.f32 %v13951_v32 }
 0xa26   :  { %v8097_v25 = vpop.eup %8096 }
 0xa27   :  { %v4573_v57 = vmul.f32 %v8097_v25, %v4548_v45  ;;  %v8099_v19 = vpop.eup %8098  ;;  %v17357_v25 = vld [vmem:[#allocation19_spill] sm:$0xff] }
 0xa28   :  { %v8101_v36 = vpop.eup %8100  ;;  %v4571_v61 = vmul.f32 %v8099_v19, %v4518_v17  ;;  %v17359_v19 = vld [vmem:[#allocation53_spill] sm:$0xff] }
 0xa29   :  { %4621 = vmatpush.msra.mxu2 %v4573_v57  ;;  %v4570_v16 = vmul.f32 %v8101_v36, %v4503_v18 }
 0xa2b   :  { %4622 = vmatpush.msra.mxu2 %v4572_v55  ;;  %v17360_v55 = vld [vmem:[#allocation57_spill] sm:$0xff] }
 0xa2d   :  { %4623 = vmatpush.msra.mxu2 %v4571_v61 }
 0xa2f   :  { %4624 = vmatpush.msra.mxu2 %v4570_v16 }
 0xa30   :  { %7287 = vmatmul.msk.f32.vlgmr.msra.gmra.mxu2 %vm369_vm2, %v13493_v29  ;;  %v17343_v29 = vld [vmem:[#allocation75_spill] sm:$0xff] }
 0xa38   :  { %7288 = vmatmul.msk.f32.gmra.mxu2 %vm369_vm2, %v13500_v58  ;;  %v17344_v58 = vld [vmem:[#allocation25_spill] sm:$0xff] }
 0xa40   :  { %7289 = vmatmul.msk.f32.gmra.mxu2 %vm369_vm2, %v13507_v9 }
 0xa48   :  { %7290 = vmatmul.msk.f32.gmra.mxu2 %vm369_vm2, %v13514_v6 }
 0xa50   :  { %7291 = vmatmul.msk.f32.gmra.mxu2 %vm369_vm2, %v13521_v34 }
 0xa58   :  { %7292 = vmatmul.msk.f32.gmra.mxu2 %vm369_vm2, %v13528_v15 }
 0xa60   :  { %7293 = vmatmul.msk.f32.gmra.mxu2 %vm369_vm2, %v13535_v2 }
 0xa68   :  { %7294 = vmatmul.msk.f32.gmra.mxu2 %vm369_vm2, %v13542_v31 }
 0xa70   :  { %7295 = vmatmul.msk.f32.gmra.mxu2 %vm369_vm2, %v13549_v12  ;;  %v17345_v12 = vld [vmem:[#allocation50_spill] sm:$0xff] }
 0xa78   :  { %7296 = vmatmul.msk.f32.gmra.mxu2 %vm369_vm2, %v13556_v54  ;;  %v14034_v54 = vperm.slane %v17345_v12, 1 }
 0xa7a   :  { %v4579_v47 = vmul.f32 %v14034_v54, %v17350_v21  ;;  %v4580_v56 = vmul.f32 %v14034_v54, %v17352_v60  ;;  %v4581_v28 = vmul.f32 %v14034_v54, %v17353_v22  ;;  %v4583_v46 = vmul.f32 %v14034_v54, %v17354_v43 }
 0xa7b   :  { %v4582_v33 = vmul.f32 %v14034_v54, %v17355_v42  ;;  %v4584_v45 = vmul.f32 %v14034_v54, %v17357_v25 }
 0xa7c   :  { %v4595_v30 = vadd.f32 %v4579_v47, %v17351_v3  ;;  %v4596_v48 = vadd.f32 %v4580_v56, %v17356_v37  ;;  %v4597_v23 = vadd.f32 %v4581_v28, %v17358_v13  ;;  %v4599_v26 = vadd.f32 %v4583_v46, %v17359_v19  ;;  %v17364_v47 = vld [vmem:[#allocation42_spill] sm:$0xff]  ;;  %v17366_v28 = vld [vmem:[#allocation39_spill] sm:$0xff] }
 0xa7d   :  { %v4598_v0 = vadd.f32 %v4582_v33, %v17360_v55  ;;  %v4600_v61 = vadd.f32 %v4584_v45, %v17361_v38 }
 0xa80   :  { %7297 = vmatmul.msk.f32.gmra.mxu2 %vm369_vm2, %v13563_v5 }
 0xa88   :  { %7298 = vmatmul.msk.f32.gmra.mxu2 %vm369_vm2, %v13570_v44  ;;  %v17346_v44 = vld [vmem:[#allocation47_spill] sm:$0xff] }
 0xa90   :  { %7299 = vmatmul.msk.f32.gmra.mxu2 %vm369_vm2, %v13577_v10  ;;  %v4577_v10 = vmul.f32 %v14034_v54, %v17346_v44 }
 0xa92   :  { %v4593_v11 = vadd.f32 %v4577_v10, %v17348_v1 }
 0xa98   :  { %7300 = vmatmul.msk.f32.gmra.mxu2 %vm369_vm2, %v13584_v59  ;;  %v17347_v59 = vld [vmem:[#allocation45_spill] sm:$0xff] }
 0xa99   :  { %v4578_v51 = vmul.f32 %v14034_v54, %v17347_v59 }
 0xa9b   :  { %v4594_v27 = vadd.f32 %v4578_v51, %v17349_v53 }
 0xaa0   :  { %7301 = vmatmul.msk.f32.gmra.mxu2 %vm369_vm2, %v17343_v29 }
 0xaa8   :  { %7302 = vmatmul.msk.f32.gmra.mxu2 %vm369_vm2, %v17344_v58 }
 0xab3   :  { %v4626_v9 = vpop.f32.mrf.mxu2 }
 0xab4   :  { %v4674_v14 = vadd.f32 %v4626_v9, %v4593_v11 }
 0xab6   :  { %v7303_v62 = vmul.f32 -1.442695, %v4674_v14 }
 0xab8   :  { %8102 = vpow2.f32 %v7303_v62  ;;  %v4586_v62 = vmul.f32 %v14034_v54, %v17364_v47 }
 0xabb   :  { %v4629_v6 = vpop.f32.mrf.mxu2 }
 0xabc   :  { %v4675_v49 = vadd.f32 %v4629_v6, %v4594_v27  ;;  %v17363_v27 = vld [vmem:[#allocation37_spill] sm:$0xff] }
 0xabd   :  { %v4587_v14 = vmul.f32 %v14034_v54, %v17363_v27 }
 0xabe   :  { %v7304_v63 = vmul.f32 -1.442695, %v4675_v49  ;;  %v8103_v7 = vpop.eup %8102 }
 0xabf   :  { %v14061_v36 = vadd.f32 1.0, %v8103_v7 }
 0xac0   :  { %8104 = vpow2.f32 %v7304_v63 }
 0xac1   :  { %vm4743_vm0 = vweird.f32 %v14061_v36 }
 0xac3   :  { %v4632_v34 = vpop.f32.mrf.mxu2 }
 0xac4   :  { %v4676_v24 = vadd.f32 %v4632_v34, %v4595_v30 }
 0xac6   :  { %v7305_v40 = vmul.f32 -1.442695, %v4676_v24  ;;  %v8105_v39 = vpop.eup %8104  ;;  %v17365_v24 = vld [vmem:[#allocation58_spill] sm:$0xff] }
 0xac7   :  { %v14064_v18 = vadd.f32 1.0, %v8105_v39  ;;  %v4585_v56 = vmul.f32 %v14034_v54, %v17365_v24  ;;  %v17367_v39 = vld [vmem:[#allocation44_spill] sm:$0xff] }
 0xac8   :  { %8106 = vpow2.f32 %v7305_v40 }
 0xac9   :  { %8108 = vrcp.f32 %v14061_v36  ;;  %vm4758_vm4 = vweird.f32 %v14064_v18 }
 0xaca   :  { %8110 = vrcp.f32 %v14064_v18 }
 0xacb   :  { %v4635_v15 = vpop.f32.mrf.mxu2 }
 0xacc   :  { %v4677_v4 = vadd.f32 %v4635_v15, %v4596_v48 }
 0xace   :  { %v7306_v29 = vmul.f32 -1.442695, %v4677_v4  ;;  %v8107_v34 = vpop.eup %8106  ;;  %v4603_v4 = vadd.f32 %v4587_v14, %v17367_v39 }
 0xacf   :  { %v14070_v10 = vpop.eup %8108 }
 0xad0   :  { %8112 = vpow2.f32 %v7306_v29  ;;  %v14074_v11 = vpop.eup %8110  ;;  %v4739_v33 = vmul.f32 %v14070_v10, %v14061_v36  ;;  %v17369_v29 = vld [vmem:[#allocation60_spill] sm:$0xff]  ;;  %vm4744_vm11 = vweird.f32 %v14070_v10 }
 0xad1   :  { %v4754_v7 = vmul.f32 %v14074_v11, %v14064_v18  ;;  %vm4759_vm12 = vweird.f32 %v14074_v11  ;;  %vm14166_vm15 = vmor %vm4743_vm0, %vm4744_vm11 }
 0xad2   :  { %vm14180_vm6 = vmor %vm4758_vm4, %vm4759_vm12 }
 0xad3   :  { %v4638_v2 = vpop.f32.mrf.mxu2 }
 0xad4   :  { %v4678_v41 = vadd.f32 %v4638_v2, %v4597_v23 }
 0xad6   :  { %v7307_v9 = vmul.f32 -1.442695, %v4678_v41 }
 0xad8   :  { %8114 = vpow2.f32 %v7307_v9 }
 0xadb   :  { %v4641_v31 = vpop.f32.mrf.mxu2 }
 0xadc   :  { %v4679_v16 = vadd.f32 %v4641_v31, %v4598_v0  ;;  %v17362_v31 = vld [vmem:[#allocation32_spill] sm:$0xff] }
 0xadd   :  { %v4588_v51 = vmul.f32 %v14034_v54, %v17362_v31  ;;  %v17368_v0 = vld [vmem:[#allocation56_spill] sm:$0xff] }
 0xade   :  { %v7308_v15 = vmul.f32 -1.442695, %v4679_v16 }
 0xadf   :  { %v4604_v46 = vadd.f32 %v4588_v51, %v17366_v28 }
 0xae3   :  { %v4644_v5 = vpop.f32.mrf.mxu2 }
 0xae4   :  { %v4680_v17 = vadd.f32 %v4644_v5, %v4599_v26  ;;  %v14068_v5 = vadd.f32 1.0, %v8107_v34 }
 0xae6   :  { %v7309_v6 = vmul.f32 -1.442695, %v4680_v17  ;;  %v4602_v17 = vadd.f32 %v4586_v62, %v17368_v0  ;;  %vm4773_vm1 = vweird.f32 %v14068_v5 }
 0xae8   :  { %8116 = vpow2.f32 %v7309_v6  ;;  %v4740_v6 = vsub.f32 1.0, %v4739_v33 }
 0xae9   :  { %8118 = vpow2.f32 %v7308_v15 }
 0xaeb   :  { %v4647_v35 = vpop.f32.mrf.mxu2 }
 0xaec   :  { %v4681_v58 = vadd.f32 %v4647_v35, %v4600_v61  ;;  %v8113_v35 = vpop.eup %8112 }
 0xaed   :  { %v8115_v49 = vpop.eup %8114  ;;  %v14086_v48 = vadd.f32 1.0, %v8113_v35  ;;  %v17370_v35 = vld [vmem:[#allocation69_spill] sm:$0xff] }
 0xaee   :  { %v7310_v12 = vmul.f32 -1.442695, %v4681_v58  ;;  %v8117_v30 = vpop.eup %8116  ;;  %v14090_v23 = vadd.f32 1.0, %v8115_v49  ;;  %v4601_v58 = vadd.f32 %v4585_v56, %v17369_v29  ;;  %v4589_v14 = vmul.f32 %v14034_v54, %v17370_v35 }
 0xaef   :  { %v8119_v40 = vpop.eup %8118  ;;  %v14093_v41 = vadd.f32 1.0, %v8117_v30  ;;  %v17372_v30 = vld [vmem:[#allocation62_spill] sm:$0xff]  ;;  %vm4788_vm3 = vweird.f32 %v14086_v48 }
 0xaf0   :  { %8120 = vpow2.f32 %v7310_v12  ;;  %v14098_v16 = vadd.f32 1.0, %v8119_v40  ;;  %v4755_v12 = vsub.f32 1.0, %v4754_v7  ;;  %v17373_v40 = vld [vmem:[#allocation64_spill] sm:$0xff]  ;;  %v4741_v7 = vmul.f32 %v14070_v10, %v4740_v6 }
 0xaf1   :  { %8122 = vrcp.f32 %v14068_v5  ;;  %v4592_v33 = vmul.f32 %v14034_v54, %v17373_v40  ;;  %vm4803_vm5 = vweird.f32 %v14090_v23  ;;  %vm4833_vm11 = vweird.f32 %v14093_v41 }
 0xaf2   :  { %8124 = vrcp.f32 %v14086_v48  ;;  %vm4818_vm13 = vweird.f32 %v14098_v16 }
 0xaf3   :  { %v14045_v20 = vpop.f32.mrf.mxu2  ;;  %8126 = vrcp.f32 %v14090_v23 }
 0xaf4   :  { %8128 = vrcp.f32 %v14093_v41  ;;  %v4682_v56 = vadd.f32 %v14045_v20, %v4601_v58  ;;  %v4749_v20 = vand.u32 2147483648, %v14061_v36  ;;  %v17375_v58 = vld [vmem:[#allocation71_spill] sm:$0xff] }
 0xaf5   :  { %8130 = vrcp.f32 %v14098_v16 }
 0xaf6   :  { %v8121_v45 = vpop.eup %8120  ;;  %v7311_v6 = vmul.f32 -1.442695, %v4682_v56 }
 0xaf7   :  { %v14096_v61 = vpop.eup %8122  ;;  %v14102_v34 = vadd.f32 1.0, %v8121_v45 }
 0xaf8   :  { %v4769_v49 = vmul.f32 %v14096_v61, %v14068_v5  ;;  %vm4774_vm9 = vweird.f32 %v14096_v61 }
 0xaf9   :  { %8132 = vrcp.f32 %v14102_v34  ;;  %vm14216_vm10 = vmor %vm4773_vm1, %vm4774_vm9 }
 0xafb   :  { %v4653_v57 = vpop.f32.mrf.mxu2 }
 0xafc   :  { %v4683_v15 = vadd.f32 %v4653_v57, %v4602_v17  ;;  %v4591_v57 = vmul.f32 %v14034_v54, %v17372_v30  ;;  %v4756_v17 = vmul.f32 %v14074_v11, %v4755_v12  ;;  %v14126_v30 = vpop.eup %8124 }
 0xafd   :  { %v4784_v56 = vmul.f32 %v14126_v30, %v14086_v48  ;;  %vm4789_vm8 = vweird.f32 %v14126_v30 }
 0xafe   :  { %v7312_v45 = vmul.f32 -1.442695, %v4683_v15  ;;  %v14135_v15 = vpop.eup %8126 }
 0xaff   :  { %v14141_v12 = vpop.eup %8128  ;;  %v4785_v24 = vsub.f32 1.0, %v4784_v56  ;;  %vm4804_vm12 = vweird.f32 %v14135_v15  ;;  %v4822_v56 = vand.u32 2147483647, %v14098_v16 }
 0xb00   :  { %v4829_v29 = vmul.f32 %v14141_v12, %v14093_v41  ;;  %vm4834_vm0 = vweird.f32 %v14141_v12 }
 0xb01   :  { %vm14288_vm9 = vmor %vm4833_vm11, %vm4834_vm0 }
 0xb02   :  { %vm14339_vm0 = vmor %vm4803_vm5, %vm4804_vm12 }
 0xb03   :  { %v4656_v2 = vpop.f32.mrf.mxu2 }
 0xb04   :  { %v4684_v9 = vadd.f32 %v4656_v2, %v4603_v4  ;;  %v17371_v2 = vld [vmem:[#allocation73_spill] sm:$0xff]  ;;  %v17374_v4 = vld [vmem:[#allocation8_spill] sm:$0xff] }
 0xb0b   :  { %v4659_v63 = vpop.f32.mrf.mxu2 }
 0xb0c   :  { %v4685_v26 = vadd.f32 %v4659_v63, %v4604_v46  ;;  %v4590_v63 = vmul.f32 %v14034_v54, %v17371_v2  ;;  %v7313_v46 = vmul.f32 -1.442695, %v4684_v9  ;;  %v4770_v2 = vsub.f32 1.0, %v4769_v49  ;;  %v17376_v54 = vld [vmem:[#allocation67_spill] sm:$0xff] }
 0xb0d   :  { %v14133_v40 = vadd.f32 %v4591_v57, %v17376_v54  ;;  %v14144_v49 = vadd.f32 %v14070_v10, %v4741_v7  ;;  %v4764_v57 = vand.u32 2147483648, %v14064_v18  ;;  %v14148_v54 = vpop.eup %8130  ;;  %v14158_v7 = vor.u32 1.1754944e-38, %v4749_v20 }
 0xb0e   :  { %v7314_v51 = vmul.f32 -1.442695, %v4685_v26  ;;  %v14123_v26 = vadd.f32 %v4589_v14, %v17374_v4  ;;  %v14130_v9 = vadd.f32 %v4590_v63, %v17375_v58  ;;  %v4762_v63 = vand.u32 2147483647, %v14064_v18 }
 0xb0f   :  { %v4771_v58 = vmul.f32 %v14096_v61, %v4770_v2  ;;  %v4779_v20 = vand.u32 2147483648, %v14068_v5  ;;  %v4799_v18 = vmul.f32 %v14135_v15, %v14090_v23  ;;  %v4765_v0 = vor.u32 1.1754944e-38, %v4764_v57 }
 0xb10   :  { %8134 = vpow2.f32 %v7314_v51  ;;  %v17377_v51 = vld [vmem:[#allocation65_spill] sm:$0xff]  ;;  %vm14184_vm7 = vcmp.eq.f32.partialorder %v4762_v63, 8.507059e+37  ;;  %v4814_v28 = vmul.f32 %v14148_v54, %v14098_v16  ;;  %v4830_v57 = vsub.f32 1.0, %v4829_v29 }
 0xb11   :  { %8136 = vpow2.f32 %v7313_v46  ;;  %v14139_v14 = vadd.f32 %v4592_v33, %v17377_v51  ;;  %v4757_v46 = vadd.f32 %v14074_v11, %v4756_v17  ;;  %v14155_v33 = vpop.eup %8132  ;;  %v4772_v31 = vadd.f32 %v14096_v61, %v4771_v58 }
 0xb12   :  { %8138 = vpow2.f32 %v7312_v45  ;;  %v4777_v45 = vand.u32 2147483647, %v14068_v5  ;;  %v4844_v27 = vmul.f32 %v14155_v33, %v14102_v34  ;;  %v4780_v38 = vor.u32 1.1754944e-38, %v4779_v20 }
 0xb13   :  { %v14110_v62 = vpop.f32.mrf.mxu2  ;;  %8140 = vpow2.f32 %v7311_v6  ;;  %v4761_v2 = vsel %vm14180_vm6, %v14074_v11, %v4757_v46  ;;  %v4794_v11 = vand.u32 2147483648, %v14086_v48  ;;  %v4800_v46 = vsub.f32 1.0, %v4799_v18 }
 0xb14   :  { %vm14200_vm14 = vcmp.eq.f32.partialorder %v4777_v45, 8.507059e+37  ;;  %v4809_v6 = vand.u32 2147483648, %v14090_v23  ;;  %v4815_v19 = vsub.f32 1.0, %v4814_v28  ;;  %v4792_v45 = vand.u32 2147483647, %v14086_v48 }
 0xb15   :  { %v4776_v28 = vsel %vm14216_vm10, %v14096_v61, %v4772_v31  ;;  %v4824_v5 = vand.u32 2147483648, %v14098_v16  ;;  %v14231_v18 = vor.u32 1.1754944e-38, %v4794_v11  ;;  %v4807_v31 = vand.u32 2147483647, %v14090_v23 }
 0xb16   :  { %v8135_v4 = vpop.eup %8134  ;;  %vm4819_vm6 = vweird.f32 %v14148_v54  ;;  %vm14277_vm1 = vcmp.eq.f32.partialorder %v4792_v45, 8.507059e+37  ;;  %vm4848_vm10 = vweird.f32 %v14102_v34 }
 0xb17   :  { %v8137_v39 = vpop.eup %8136  ;;  %v14196_v63 = vadd.f32 1.0, %v8135_v4  ;;  %v14210_v4 = vsel %vm14184_vm7, %v4765_v0, %v4761_v2  ;;  %v4831_v0 = vmul.f32 %v14141_v12, %v4830_v57  ;;  %v4781_v57 = vsel %vm14200_vm14, %v4780_v38, %v4776_v28  ;;  %vm14273_vm7 = vmor %vm4788_vm3, %vm4789_vm8 }
 0xb18   :  { %v8139_v47 = vpop.eup %8138  ;;  %v14206_v55 = vadd.f32 1.0, %v8137_v39  ;;  %v4845_v39 = vsub.f32 1.0, %v4844_v27  ;;  %v4801_v27 = vmul.f32 %v14135_v15, %v4800_v46  ;;  %v17388_v46 = vand.u32 2147483647, %v14061_v36  ;;  %vm14312_vm3 = vmor %vm4818_vm13, %vm4819_vm6 }
 0xb19   :  { %v8141_v58 = vpop.eup %8140  ;;  %v14212_v25 = vadd.f32 1.0, %v8139_v47  ;;  %8142 = vrcp.f32 %v14196_v63  ;;  %v4786_v47 = vmul.f32 %v14126_v30, %v4785_v24  ;;  %v4816_v24 = vmul.f32 %v14148_v54, %v4815_v19 }
 0xb1a   :  { %v14234_v2 = vadd.f32 1.0, %v8141_v58  ;;  %8144 = vrcp.f32 %v14206_v55  ;;  %v4686_v19 = vadd.f32 %v14110_v62, %v14123_v26  ;;  %vm14262_vm4 = vcmp.eq.f32.partialorder %v17388_v46, 8.507059e+37 }
 0xb1b   :  { %v4665_v51 = vpop.f32.mrf.mxu2  ;;  %8146 = vrcp.f32 %v14212_v25  ;;  %v14246_v11 = vadd.f32 %v14126_v30, %v4786_v47  ;;  %v4817_v62 = vadd.f32 %v14148_v54, %v4816_v24  ;;  %v4837_v26 = vand.u32 2147483647, %v14093_v41 }
 0xb1c   :  { %v4687_v61 = vadd.f32 %v4665_v51, %v14130_v9  ;;  %v4832_v9 = vadd.f32 %v14141_v12, %v4831_v0  ;;  %v4839_v51 = vand.u32 2147483648, %v14093_v41  ;;  %vm4849_vm14 = vweird.f32 %v14155_v33 }
 0xb1d   :  { %v4791_v45 = vsel %vm14273_vm7, %v14126_v30, %v14246_v11  ;;  %v4802_v30 = vadd.f32 %v14135_v15, %v4801_v27  ;;  %vm4838_vm8 = vcmp.eq.f32.partialorder %v4837_v26, 8.507059e+37  ;;  %vm14324_vm11 = vmor %vm4848_vm10, %vm4849_vm14  ;;  %vm4823_vm13 = vcmp.eq.f32.partialorder %v4822_v56, 8.507059e+37 }
 0xb1e   :  { %v4836_v41 = vsel %vm14288_vm9, %v14141_v12, %v4832_v9  ;;  %v4840_v11 = vor.u32 1.1754944e-38, %v4839_v51  ;;  %v4825_v9 = vor.u32 1.1754944e-38, %v4824_v5  ;;  %vm4808_vm5 = vcmp.eq.f32.partialorder %v4807_v31, 8.507059e+37 }
 0xb1f   :  { %v14254_v38 = vpop.eup %8142  ;;  %v4806_v29 = vsel %vm14339_vm0, %v14135_v15, %v4802_v30  ;;  %vm4908_vm12 = vweird.f32 %v14196_v63  ;;  %v4899_v27 = vand.u32 2147483648, %v14206_v55  ;;  %vm4893_vm14 = vweird.f32 %v14206_v55 }
 0xb23   :  { %v4668_v35 = vpop.f32.mrf.mxu2 }
 0xb24   :  { %v4688_v20 = vadd.f32 %v4668_v35, %v14133_v40  ;;  %v4846_v40 = vmul.f32 %v14155_v33, %v4845_v39  ;;  %v14281_v39 = vpop.eup %8144  ;;  %v4854_v35 = vand.u32 2147483648, %v14102_v34 }
 0xb25   :  { %v14298_v0 = vpop.eup %8146  ;;  %v4889_v12 = vmul.f32 %v14281_v39, %v14206_v55 }
 0xb26   :  { %8148 = vtanh.f32 %v4688_v20  ;;  %v4847_v47 = vadd.f32 %v14155_v33, %v4846_v40  ;;  %v4904_v20 = vmul.f32 %v14254_v38, %v14196_v63  ;;  %v4855_v5 = vor.u32 1.1754944e-38, %v4854_v35 }
 0xb27   :  { %8150 = vrcp.f32 %v14234_v2 }
 0xb28   :  { %8152 = vtanh.f32 %v4687_v61  ;;  %v4851_v51 = vsel %vm14324_vm11, %v14155_v33, %v4847_v47  ;;  %v4810_v33 = vor.u32 1.1754944e-38, %v4809_v6 }
 0xb29   :  { %8154 = vtanh.f32 %v4686_v19  ;;  %v4852_v19 = vand.u32 2147483647, %v14102_v34  ;;  %v4841_v34 = vsel %vm4838_vm8, %v4840_v11, %v4836_v41 }
 0xb2b   :  { %v4671_v48 = vpop.f32.mrf.mxu2  ;;  %vm4853_vm6 = vcmp.eq.f32.partialorder %v4852_v19, 8.507059e+37 }
 0xb2c   :  { %v4689_v24 = vadd.f32 %v4671_v48, %v14139_v14  ;;  %v8149_v61 = vpop.eup %8148  ;;  %v4821_v14 = vsel %vm14312_vm3, %v14148_v54, %v4817_v62  ;;  %v4874_v54 = vmul.f32 %v14298_v0, %v14212_v25  ;;  %v4905_v62 = vsub.f32 1.0, %v4904_v20 }
 0xb2d   :  { %v14328_v16 = vpop.eup %8150  ;;  %v4928_v56 = vmul.f32 %v8149_v61, %v4781_v57  ;;  %v4826_v28 = vsel %vm4823_vm13, %v4825_v9, %v4821_v14  ;;  %v4924_v20 = vmul.f32 %v4841_v34, %v13937_v52  ;;  %v4856_v41 = vsel %vm4853_vm6, %v4855_v5, %v4851_v51 }
 0xb2e   :  { %8156 = vtanh.f32 %v4689_v24  ;;  %v8153_v46 = vpop.eup %8152  ;;  %v4859_v47 = vmul.f32 %v14328_v16, %v14234_v2  ;;  %v4890_v24 = vsub.f32 1.0, %v4889_v12  ;;  %v17403_v57 = vsel %vm14166_vm15, %v14070_v10, %v14144_v49 }
 0xb2f   :  { %v8155_v48 = vpop.eup %8154  ;;  %v4751_v15 = vsel %vm14262_vm4, %v14158_v7, %v17403_v57  ;;  %v4927_v6 = vmul.f32 %v8153_v46, %v14210_v4  ;;  %v4796_v52 = vsel %vm14277_vm1, %v14231_v18, %v4791_v45  ;;  %v4811_v61 = vsel %vm4808_vm5, %v4810_v33, %v4806_v29 }
 0xb30   :  { %v14365_v30 = vadd.f32 %v4928_v56, %v4924_v20  ;;  %v4906_v17 = vmul.f32 %v14254_v38, %v4905_v62  ;;  %v4875_v10 = vsub.f32 1.0, %v4874_v54  ;;  %v4926_v49 = vmul.f32 %v8155_v48, %v4751_v15 }
 0xb31   :  { %v4923_v58 = vmul.f32 %v4826_v28, %v13943_v50  ;;  %v4925_v7 = vmul.f32 %v4856_v41, %v13945_v8  ;;  %v4891_v31 = vmul.f32 %v14281_v39, %v4890_v24  ;;  %v4860_v4 = vsub.f32 1.0, %v4859_v47 }
 0xb32   :  { %v4922_v40 = vmul.f32 %v4811_v61, %v13951_v32  ;;  %v4907_v45 = vadd.f32 %v14254_v38, %v4906_v17  ;;  %vm4909_vm15 = vweird.f32 %v14254_v38  ;;  %8158 = vtanh.f32 %v14365_v30  ;;  %v14433_v61 = vld [vmem:[%s16629_s5] sm:$0xff]  ;;  %v14447_v17 = vld [vmem:[%s16629_s5 + $0x10] sm:$0xff] }
 0xb33   :  { %v14372_v36 = vadd.f32 %v4927_v6, %v4923_v58  ;;  %v4876_v50 = vmul.f32 %v14298_v0, %v4875_v10  ;;  %v4914_v8 = vand.u32 2147483648, %v14196_v63  ;;  %v4912_v32 = vand.u32 2147483647, %v14196_v63  ;;  %vm14389_vm7 = vmor %vm4908_vm12, %vm4909_vm15  ;;  %v14454_v10 = vld [vmem:[%s16629_s5 + $0x18] sm:$0xff]  ;;  %v14468_v58 = vld [vmem:[%s16629_s5 + $0x28] sm:$0xff] }
 0xb34   :  { %v8157_v35 = vpop.eup %8156  ;;  %v14380_v11 = vadd.f32 %v4926_v49, %v4922_v40  ;;  %v4892_v19 = vadd.f32 %v14281_v39, %v4891_v31  ;;  %vm4894_vm4 = vweird.f32 %v14281_v39  ;;  %v4861_v12 = vmul.f32 %v14328_v16, %v4860_v4  ;;  %v14461_v49 = vld [vmem:[%s16629_s5 + $0x20] sm:$0xff]  ;;  %v14496_v4 = vld [vmem:[%s16629_s5 + $0x48] sm:$0xff]  ;;  %v14503_v40 = vld [vmem:[%s16629_s5 + $0x50] sm:$0xff] }
 0xb35   :  { %v4929_v23 = vmul.f32 %v8157_v35, %v4796_v52  ;;  %vm4879_vm1 = vweird.f32 %v14298_v0  ;;  %vm4864_vm9 = vweird.f32 %v14328_v16  ;;  %v4911_v63 = vsel %vm14389_vm7, %v14254_v38, %v4907_v45  ;;  %vm14403_vm10 = vmor %vm4893_vm14, %vm4894_vm4  ;;  %v14489_v31 = vld [vmem:[%s16629_s5 + $0x40] sm:$0xff]  ;;  %v14510_v45 = vld [vmem:[%s16629_s5 + $0x58] sm:$0xff] }
 0xb36   :  { %v4897_v9 = vand.u32 2147483647, %v14206_v55  ;;  %v4877_v34 = vadd.f32 %v14298_v0, %v4876_v50  ;;  %v4915_v51 = vor.u32 1.1754944e-38, %v4914_v8  ;;  %vm4878_vm3 = vweird.f32 %v14212_v25  ;;  %v14517_v50 = vld [vmem:[%s16629_s5 + $0x60] sm:$0xff]  ;;  %v14524_v8 = vld [vmem:[%s16629_s5 + $0x68] sm:$0xff] }
 0xb37   :  { %v14374_v18 = vadd.f32 %v4929_v23, %v4925_v7  ;;  %v4884_v54 = vand.u32 2147483648, %v14212_v25  ;;  %vm4913_vm8 = vcmp.eq.f32.partialorder %v4912_v32, 8.507059e+37  ;;  %v4896_v38 = vsel %vm14403_vm10, %v14281_v39, %v4892_v19  ;;  %vm14417_vm11 = vmor %vm4878_vm3, %vm4879_vm1  ;;  %v14475_v7 = vld [vmem:[%s16629_s5 + $0x30] sm:$0xff]  ;;  %v14482_v23 = vld [vmem:[%s16629_s5 + $0x38] sm:$0xff]  ;;  %17410 = vst [vmem:[#allocation66_spill] sm:$0xff] %v14524_v8 }
 0xb38   :  { %v8159_v62 = vpop.eup %8158  ;;  %v4882_v55 = vand.u32 2147483647, %v14212_v25  ;;  %v4862_v26 = vadd.f32 %v14328_v16, %v4861_v12  ;;  %v4916_v5 = vsel %vm4913_vm8, %v4915_v51, %v4911_v63  ;;  %v4900_v29 = vor.u32 1.1754944e-38, %v4899_v27  ;;  %v14531_v32 = vld [vmem:[%s16629_s5 + $0x70] sm:$0xff]  ;;  %v14538_v19 = vld [vmem:[%s16629_s5 + $0x78] sm:$0xff] }
 0xb39   :  { %8160 = vtanh.f32 %v14374_v18  ;;  %vm4863_vm13 = vweird.f32 %v14234_v2  ;;  %v4869_v28 = vand.u32 2147483648, %v14234_v2  ;;  %vm4898_vm0 = vcmp.eq.f32.partialorder %v4897_v9, 8.507059e+37  ;;  %17411 = vst [vmem:[#allocation68_spill] sm:$0xff] %v14531_v32  ;;  %v17413_v51 = vld [vmem:[#allocation41_spill] sm:$0xff] }
 0xb3a   :  { %8162 = vtanh.f32 %v14372_v36  ;;  %v4881_v25 = vsel %vm14417_vm11, %v14298_v0, %v4877_v34  ;;  %v4867_v39 = vand.u32 2147483647, %v14234_v2  ;;  %v4901_v20 = vsel %vm4898_vm0, %v4900_v29, %v4896_v38  ;;  %vm4865_vm6 = vmor %vm4863_vm13, %vm4864_vm9  ;;  %17412 = vst [vmem:[#allocation74_spill] sm:$0xff] %v14538_v19 }
 0xb3b   :  { %8164 = vtanh.f32 %v14380_v11  ;;  %v4885_v41 = vor.u32 1.1754944e-38, %v4884_v54  ;;  %v4940_v24 = vmul.f32 %v8159_v62, %v4901_v20  ;;  %vm4883_vm5 = vcmp.eq.f32.partialorder %v4882_v55, 8.507059e+37 }
 0xb3c   :  { %v4866_v57 = vsel %vm4865_vm6, %v14328_v16, %v4862_v26  ;;  %v4870_v52 = vor.u32 1.1754944e-38, %v4869_v28  ;;  %vm4868_vm15 = vcmp.eq.f32.partialorder %v4867_v39, 8.507059e+37  ;;  %v14440_v16 = vld [vmem:[%s16629_s5 + $0x8] sm:$0xff]  ;;  %v14543_v46 = vperm.slane %v17413_v51, 1 }
 0xb3d   :  { %v4886_v6 = vsel %vm4883_vm5, %v4885_v41, %v4881_v25  ;;  %v17415_v51 = vld [vmem:[#allocation53_spill] sm:$0xff] }
 0xb3e   :  { %v4871_v0 = vsel %vm4868_vm15, %v4870_v52, %v4866_v57  ;;  %v4945_v62 = vmul.f32 %v14543_v46, %v17346_v44  ;;  %v4946_v38 = vmul.f32 %v14543_v46, %v17347_v59  ;;  %v4947_v33 = vmul.f32 %v14543_v46, %v17350_v21 }
 0xb3f   :  { %v8161_v56 = vpop.eup %8160  ;;  %v4948_v41 = vmul.f32 %v14543_v46, %v17352_v60 }
 0xb40   :  { %v4941_v48 = vmul.f32 %v8161_v56, %v4916_v5  ;;  %v8163_v47 = vpop.eup %8162  ;;  %v4961_v55 = vadd.f32 %v4945_v62, %v17348_v1  ;;  %v4962_v5 = vadd.f32 %v4946_v38, %v17349_v53  ;;  %v4963_v39 = vadd.f32 %v4947_v33, %v17351_v3  ;;  %v17416_v38 = vld [vmem:[#allocation57_spill] sm:$0xff] }
 0xb41   :  { %v8165_v15 = vpop.eup %8164  ;;  %v4939_v35 = vmul.f32 %v8163_v47, %v4886_v6  ;;  %v4949_v47 = vmul.f32 %v14543_v46, %v17353_v22  ;;  %v4964_v52 = vadd.f32 %v4948_v41, %v17356_v37  ;;  %v17417_v33 = vld [vmem:[#allocation49_spill] sm:$0xff] }
 0xb42   :  { %4989 = vmatpush.msra.mxu3 %v4941_v48  ;;  %v4938_v2 = vmul.f32 %v8165_v15, %v4871_v0  ;;  %v4950_v15 = vmul.f32 %v14543_v46, %v17355_v42  ;;  %v17429_v42 = vld [vmem:[#allocation64_spill] sm:$0xff] }
 0xb43   :  { %v4965_v57 = vadd.f32 %v4949_v47, %v17358_v13 }
 0xb44   :  { %4990 = vmatpush.msra.mxu3 %v4940_v24  ;;  %v4951_v24 = vmul.f32 %v14543_v46, %v17354_v43 }
 0xb46   :  { %4991 = vmatpush.msra.mxu3 %v4939_v35  ;;  %v17414_v35 = vld [vmem:[#allocation19_spill] sm:$0xff]  ;;  %v4967_v62 = vadd.f32 %v4951_v24, %v17415_v51 }
 0xb47   :  { %v4952_v0 = vmul.f32 %v14543_v46, %v17414_v35  ;;  %v17424_v35 = vld [vmem:[#allocation56_spill] sm:$0xff] }
 0xb48   :  { %4992 = vmatpush.msra.mxu3 %v4938_v2 }
 0xb49   :  { %7315 = vmatmul.msk.f32.vlgmr.msra.gmra.mxu3 %vm369_vm2, %v14433_v61 }
 0xb51   :  { %7316 = vmatmul.msk.f32.gmra.mxu3 %vm369_vm2, %v14440_v16 }
 0xb59   :  { %7317 = vmatmul.msk.f32.gmra.mxu3 %vm369_vm2, %v14447_v17 }
 0xb61   :  { %7318 = vmatmul.msk.f32.gmra.mxu3 %vm369_vm2, %v14454_v10 }
 0xb69   :  { %7319 = vmatmul.msk.f32.gmra.mxu3 %vm369_vm2, %v14461_v49 }
 0xb71   :  { %7320 = vmatmul.msk.f32.gmra.mxu3 %vm369_vm2, %v14468_v58 }
 0xb79   :  { %7321 = vmatmul.msk.f32.gmra.mxu3 %vm369_vm2, %v14475_v7 }
 0xb81   :  { %7322 = vmatmul.msk.f32.gmra.mxu3 %vm369_vm2, %v14482_v23 }
 0xb89   :  { %7323 = vmatmul.msk.f32.gmra.mxu3 %vm369_vm2, %v14489_v31 }
 0xb91   :  { %7324 = vmatmul.msk.f32.gmra.mxu3 %vm369_vm2, %v14496_v4 }
 0xb99   :  { %7325 = vmatmul.msk.f32.gmra.mxu3 %vm369_vm2, %v14503_v40 }
 0xba1   :  { %7326 = vmatmul.msk.f32.gmra.mxu3 %vm369_vm2, %v14510_v45 }
 0xba9   :  { %7327 = vmatmul.msk.f32.gmra.mxu3 %vm369_vm2, %v14517_v50 }
 0xbb1   :  { %7328 = vmatmul.msk.f32.gmra.mxu3 %vm369_vm2, %v14524_v8 }
 0xbb9   :  { %7329 = vmatmul.msk.f32.gmra.mxu3 %vm369_vm2, %v14531_v32 }
 0xbc1   :  { %7330 = vmatmul.msk.f32.gmra.mxu3 %vm369_vm2, %v14538_v19 }
 0xbcc   :  { %v4994_v12 = vpop.f32.mrf.mxu3 }
 0xbcd   :  { %v5042_v56 = vadd.f32 %v4994_v12, %v4961_v55  ;;  %v4966_v55 = vadd.f32 %v4950_v15, %v17416_v38 }
 0xbcf   :  { %v7331_v28 = vmul.f32 -1.442695, %v5042_v56 }
 0xbd1   :  { %8166 = vpow2.f32 %v7331_v28  ;;  %v4968_v28 = vadd.f32 %v4952_v0, %v17417_v33 }
 0xbd4   :  { %v4997_v14 = vpop.f32.mrf.mxu3 }
 0xbd5   :  { %v5043_v29 = vadd.f32 %v4997_v14, %v4962_v5 }
 0xbd7   :  { %v7332_v25 = vmul.f32 -1.442695, %v5043_v29  ;;  %v8167_v2 = vpop.eup %8166 }
 0xbd8   :  { %v14570_v5 = vadd.f32 1.0, %v8167_v2  ;;  %v17419_v2 = vld [vmem:[#allocation37_spill] sm:$0xff] }
 0xbd9   :  { %8168 = vpow2.f32 %v7332_v25 }
 0xbda   :  { %v5117_v13 = vand.u32 2147483648, %v14570_v5  ;;  %vm5111_vm12 = vweird.f32 %v14570_v5 }
 0xbdc   :  { %v5000_v27 = vpop.f32.mrf.mxu3 }
 0xbdd   :  { %v5044_v20 = vadd.f32 %v5000_v27, %v4963_v39 }
 0xbdf   :  { %v7333_v6 = vmul.f32 -1.442695, %v5044_v20  ;;  %v8169_v56 = vpop.eup %8168 }
 0xbe0   :  { %v14573_v41 = vadd.f32 1.0, %v8169_v56 }
 0xbe1   :  { %8170 = vpow2.f32 %v7333_v6 }
 0xbe2   :  { %8172 = vrcp.f32 %v14570_v5  ;;  %vm5126_vm7 = vweird.f32 %v14573_v41 }
 0xbe4   :  { %v5003_v63 = vpop.f32.mrf.mxu3 }
 0xbe5   :  { %v5045_v27 = vadd.f32 %v5003_v63, %v4964_v52 }
 0xbe7   :  { %v7334_v47 = vmul.f32 -1.442695, %v5045_v27 }
 0xbec   :  { %v5006_v9 = vpop.f32.mrf.mxu3 }
 0xbed   :  { %v5046_v12 = vadd.f32 %v5006_v9, %v4965_v57  ;;  %v8171_v57 = vpop.eup %8170 }
 0xbef   :  { %v7335_v25 = vmul.f32 -1.442695, %v5046_v12  ;;  %v4955_v12 = vmul.f32 %v14543_v46, %v17419_v2  ;;  %v17423_v2 = vld [vmem:[#allocation44_spill] sm:$0xff] }
 0xbf1   :  { %8174 = vpow2.f32 %v7335_v25  ;;  %v17421_v25 = vld [vmem:[#allocation39_spill] sm:$0xff] }
 0xbf2   :  { %8176 = vpow2.f32 %v7334_v47 }
 0xbf3   :  { %8178 = vrcp.f32 %v14573_v41 }
 0xbf4   :  { %v5009_v34 = vpop.f32.mrf.mxu3 }
 0xbf5   :  { %v5047_v39 = vadd.f32 %v5009_v34, %v4966_v55  ;;  %v14579_v34 = vpop.eup %8172 }
 0xbf6   :  { %vm5112_vm4 = vweird.f32 %v14579_v34 }
 0xbf7   :  { %v7336_v9 = vmul.f32 -1.442695, %v5047_v39  ;;  %v8175_v52 = vpop.eup %8174  ;;  %vm14684_vm14 = vmor %vm5111_vm12, %vm5112_vm4 }
 0xbf8   :  { %v8177_v0 = vpop.eup %8176 }
 0xbf9   :  { %v14585_v27 = vpop.eup %8178 }
 0xbfa   :  { %vm5127_vm1 = vweird.f32 %v14585_v27 }
 0xbfb   :  { %vm14700_vm10 = vmor %vm5126_vm7, %vm5127_vm1 }
 0xbfc   :  { %v5012_v54 = vpop.f32.mrf.mxu3 }
 0xbfd   :  { %v5048_v29 = vadd.f32 %v5012_v54, %v4967_v62  ;;  %v14577_v54 = vadd.f32 1.0, %v8171_v57  ;;  %v17420_v62 = vld [vmem:[#allocation42_spill] sm:$0xff] }
 0xbfe   :  { %v4954_v55 = vmul.f32 %v14543_v46, %v17420_v62  ;;  %v17422_v57 = vld [vmem:[#allocation58_spill] sm:$0xff]  ;;  %v5122_v62 = vmul.f32 %v14585_v27, %v14573_v41 }
 0xbff   :  { %v7337_v63 = vmul.f32 -1.442695, %v5048_v29  ;;  %v5145_v3 = vand.u32 2147483647, %v14577_v54  ;;  %vm5141_vm3 = vweird.f32 %v14577_v54 }
 0xc01   :  { %8180 = vpow2.f32 %v7337_v63  ;;  %vm14718_vm11 = vcmp.eq.f32.partialorder %v5145_v3, 8.507059e+37 }
 0xc02   :  { %8182 = vpow2.f32 %v7336_v9  ;;  %v5107_v9 = vmul.f32 %v14579_v34, %v14570_v5 }
 0xc04   :  { %v5015_v26 = vpop.f32.mrf.mxu3 }
 0xc05   :  { %v5049_v20 = vadd.f32 %v5015_v26, %v4968_v28  ;;  %v17418_v26 = vld [vmem:[#allocation32_spill] sm:$0xff]  ;;  %v14590_v28 = vadd.f32 1.0, %v8175_v52 }
 0xc06   :  { %v4956_v6 = vmul.f32 %v14543_v46, %v17418_v26  ;;  %v4971_v26 = vadd.f32 %v4955_v12, %v17423_v2  ;;  %v5108_v2 = vsub.f32 1.0, %v5107_v9 }
 0xc07   :  { %v7338_v15 = vmul.f32 -1.442695, %v5049_v20  ;;  %v8181_v29 = vpop.eup %8180  ;;  %v14593_v20 = vadd.f32 1.0, %v8177_v0  ;;  %vm5171_vm15 = vweird.f32 %v14590_v28 }
 0xc08   :  { %v4972_v39 = vadd.f32 %v4956_v6, %v17421_v25  ;;  %v8183_v47 = vpop.eup %8182  ;;  %v14602_v52 = vadd.f32 1.0, %v8181_v29  ;;  %v4970_v6 = vadd.f32 %v4954_v55, %v17424_v35  ;;  %v17426_v29 = vld [vmem:[#allocation60_spill] sm:$0xff]  ;;  %v17427_v55 = vld [vmem:[#allocation73_spill] sm:$0xff] }
 0xc09   :  { %8184 = vpow2.f32 %v7338_v15  ;;  %v4953_v15 = vmul.f32 %v14543_v46, %v17422_v57  ;;  %v14606_v0 = vadd.f32 1.0, %v8183_v47  ;;  %v4958_v35 = vmul.f32 %v14543_v46, %v17427_v55 }
 0xc0a   :  { %8186 = vrcp.f32 %v14577_v54  ;;  %v5123_v47 = vsub.f32 1.0, %v5122_v62  ;;  %vm5156_vm0 = vweird.f32 %v14593_v20  ;;  %vm5201_vm5 = vweird.f32 %v14602_v52 }
 0xc0b   :  { %8188 = vrcp.f32 %v14590_v28  ;;  %v4969_v43 = vadd.f32 %v4953_v15, %v17426_v29  ;;  %v17430_v29 = vld [vmem:[#allocation8_spill] sm:$0xff]  ;;  %vm5186_vm6 = vweird.f32 %v14606_v0 }
 0xc0c   :  { %v14553_v48 = vpop.f32.mrf.mxu3  ;;  %8190 = vrcp.f32 %v14593_v20 }
 0xc0d   :  { %8192 = vrcp.f32 %v14602_v52 }
 0xc0e   :  { %8194 = vrcp.f32 %v14606_v0 }
 0xc0f   :  { %v8185_v63 = vpop.eup %8184 }
 0xc10   :  { %v14608_v51 = vpop.eup %8186  ;;  %v14611_v57 = vadd.f32 1.0, %v8185_v63 }
 0xc11   :  { %v5137_v9 = vmul.f32 %v14608_v51, %v14577_v54  ;;  %vm5142_vm8 = vweird.f32 %v14608_v51 }
 0xc12   :  { %8196 = vrcp.f32 %v14611_v57  ;;  %vm14732_vm13 = vmor %vm5141_vm3, %vm5142_vm8  ;;  %vm5216_vm7 = vweird.f32 %v14611_v57 }
 0xc14   :  { %v5021_v14 = vpop.f32.mrf.mxu3 }
 0xc15   :  { %v5051_v12 = vadd.f32 %v5021_v14, %v4970_v6  ;;  %v4960_v14 = vmul.f32 %v14543_v46, %v17429_v42  ;;  %v14630_v6 = vpop.eup %8188 }
 0xc16   :  { %vm5172_vm3 = vweird.f32 %v14630_v6 }
 0xc17   :  { %v7340_v62 = vmul.f32 -1.442695, %v5051_v12  ;;  %v17433_v12 = vld [vmem:[#allocation65_spill] sm:$0xff] }
 0xc18   :  { %v14647_v22 = vadd.f32 %v4960_v14, %v17433_v12  ;;  %v14667_v12 = vor.u32 1.1754944e-38, %v5117_v13 }
 0xc1c   :  { %v5024_v24 = vpop.f32.mrf.mxu3 }
 0xc1d   :  { %v5052_v25 = vadd.f32 %v5024_v24, %v4971_v26  ;;  %v17428_v26 = vld [vmem:[#allocation62_spill] sm:$0xff] }
 0xc1e   :  { %v4959_v63 = vmul.f32 %v14543_v46, %v17428_v26  ;;  %v5109_v26 = vmul.f32 %v14579_v34, %v5108_v2  ;;  %v5130_v2 = vand.u32 2147483647, %v14573_v41 }
 0xc1f   :  { %v7341_v15 = vmul.f32 -1.442695, %v5052_v25 }
 0xc20   :  { %vm14674_vm9 = vcmp.eq.f32.partialorder %v5130_v2, 8.507059e+37 }
 0xc24   :  { %v5027_v56 = vpop.f32.mrf.mxu3 }
 0xc25   :  { %v5053_v33 = vadd.f32 %v5027_v56, %v4972_v39  ;;  %v17425_v56 = vld [vmem:[#allocation69_spill] sm:$0xff] }
 0xc26   :  { %v4957_v39 = vmul.f32 %v14543_v46, %v17425_v56  ;;  %v17431_v46 = vld [vmem:[#allocation71_spill] sm:$0xff]  ;;  %v14639_v56 = vpop.eup %8190 }
 0xc27   :  { %v7342_v38 = vmul.f32 -1.442695, %v5053_v33  ;;  %v5050_v33 = vadd.f32 %v14553_v48, %v4969_v43  ;;  %v14637_v42 = vadd.f32 %v4958_v35, %v17431_v46  ;;  %v5124_v43 = vmul.f32 %v14585_v27, %v5123_v47  ;;  %v17432_v48 = vld [vmem:[#allocation67_spill] sm:$0xff] }
 0xc28   :  { %v14633_v55 = vadd.f32 %v4957_v39, %v17430_v29  ;;  %v14644_v25 = vadd.f32 %v4959_v63, %v17432_v48  ;;  %v14650_v29 = vpop.eup %8192  ;;  %v5167_v35 = vmul.f32 %v14630_v6, %v14590_v28  ;;  %v5152_v14 = vmul.f32 %v14639_v56, %v14593_v20 }
 0xc29   :  { %8198 = vpow2.f32 %v7342_v38  ;;  %v5138_v38 = vsub.f32 1.0, %v5137_v9  ;;  %v7339_v39 = vmul.f32 -1.442695, %v5050_v33  ;;  %v14656_v63 = vpop.eup %8194  ;;  %v14661_v9 = vadd.f32 %v14579_v34, %v5109_v26 }
 0xc2a   :  { %8200 = vpow2.f32 %v7341_v15  ;;  %v5132_v33 = vand.u32 2147483648, %v14573_v41  ;;  %v14665_v15 = vpop.eup %8196  ;;  %v5125_v48 = vadd.f32 %v14585_v27, %v5124_v43  ;;  %v5197_v26 = vmul.f32 %v14650_v29, %v14602_v52 }
 0xc2b   :  { %8202 = vpow2.f32 %v7340_v62  ;;  %v5139_v37 = vmul.f32 %v14608_v51, %v5138_v38  ;;  %v5168_v13 = vsub.f32 1.0, %v5167_v35  ;;  %v5153_v21 = vsub.f32 1.0, %v5152_v14 }
 0xc2c   :  { %v14619_v24 = vpop.f32.mrf.mxu3  ;;  %8204 = vpow2.f32 %v7339_v39  ;;  %v5147_v39 = vand.u32 2147483648, %v14577_v54  ;;  %v5182_v38 = vmul.f32 %v14656_v63, %v14606_v0  ;;  %v5133_v53 = vor.u32 1.1754944e-38, %v5132_v33 }
 0xc2d   :  { %v5212_v14 = vmul.f32 %v14665_v15, %v14611_v57  ;;  %v5129_v44 = vsel %vm14700_vm10, %v14585_v27, %v5125_v48  ;;  %v5198_v41 = vsub.f32 1.0, %v5197_v26  ;;  %v5140_v19 = vadd.f32 %v14608_v51, %v5139_v37 }
 0xc2e   :  { %v5169_v33 = vmul.f32 %v14630_v6, %v5168_v13  ;;  %v5148_v8 = vor.u32 1.1754944e-38, %v5147_v39  ;;  %v5183_v27 = vsub.f32 1.0, %v5182_v38  ;;  %v14726_v26 = vsel %vm14674_vm9, %v5133_v53, %v5129_v44 }
 0xc2f   :  { %v8199_v47 = vpop.eup %8198  ;;  %v5162_v37 = vand.u32 2147483648, %v14593_v20  ;;  %v5213_v35 = vsub.f32 1.0, %v5212_v14  ;;  %v5199_v44 = vmul.f32 %v14650_v29, %v5198_v41  ;;  %v5144_v54 = vsel %vm14732_vm13, %v14608_v51, %v5140_v19 }
 0xc30   :  { %v8201_v2 = vpop.eup %8200  ;;  %v14706_v1 = vadd.f32 1.0, %v8199_v47  ;;  %v5207_v46 = vand.u32 2147483648, %v14602_v52  ;;  %v5184_v38 = vmul.f32 %v14656_v63, %v5183_v27  ;;  %v5175_v51 = vand.u32 2147483647, %v14590_v28 }
 0xc31   :  { %v8203_v59 = vpop.eup %8202  ;;  %v14716_v32 = vadd.f32 1.0, %v8201_v2  ;;  %v5154_v2 = vmul.f32 %v14639_v56, %v5153_v21  ;;  %v14753_v41 = vor.u32 1.1754944e-38, %v5162_v37  ;;  %v5214_v19 = vmul.f32 %v14665_v15, %v5213_v35 }
 0xc32   :  { %v8205_v60 = vpop.eup %8204  ;;  %v14722_v48 = vadd.f32 1.0, %v8203_v59  ;;  %8206 = vrcp.f32 %v14706_v1  ;;  %v5160_v59 = vand.u32 2147483647, %v14593_v20  ;;  %v5054_v21 = vadd.f32 %v14619_v24, %v14633_v55 }
 0xc33   :  { %v14746_v39 = vadd.f32 1.0, %v8205_v60  ;;  %8208 = vrcp.f32 %v14716_v32  ;;  %v5200_v60 = vadd.f32 %v14650_v29, %v5199_v44  ;;  %vm5202_vm12 = vweird.f32 %v14650_v29 }
 0xc34   :  { %v5033_v62 = vpop.f32.mrf.mxu3  ;;  %8210 = vrcp.f32 %v14722_v48  ;;  %vm5157_vm4 = vweird.f32 %v14639_v56  ;;  %v17444_v35 = vand.u32 2147483647, %v14570_v5  ;;  %v5185_v24 = vadd.f32 %v14656_v63, %v5184_v38  ;;  %vm14792_vm8 = vmor %vm5201_vm5, %vm5202_vm12 }
 0xc35   :  { %v5055_v14 = vadd.f32 %v5033_v62, %v14637_v42  ;;  %v5222_v62 = vand.u32 2147483648, %v14611_v57  ;;  %vm5187_vm9 = vweird.f32 %v14656_v63  ;;  %v5205_v47 = vand.u32 2147483647, %v14602_v52  ;;  %vm14810_vm13 = vmor %vm5156_vm0, %vm5157_vm4 }
 0xc36   :  { %vm14773_vm1 = vcmp.eq.f32.partialorder %v17444_v35, 8.507059e+37  ;;  %vm14780_vm10 = vcmp.eq.f32.partialorder %v5160_v59, 8.507059e+37  ;;  %v5190_v5 = vand.u32 2147483647, %v14606_v0  ;;  %v5215_v59 = vadd.f32 %v14665_v15, %v5214_v19  ;;  %vm14819_vm5 = vmor %vm5186_vm6, %vm5187_vm9 }
 0xc37   :  { %vm5206_vm0 = vcmp.eq.f32.partialorder %v5205_v47, 8.507059e+37  ;;  %vm14853_vm4 = vmor %vm5171_vm15, %vm5172_vm3  ;;  %vm5176_vm15 = vcmp.eq.f32.partialorder %v5175_v51, 8.507059e+37 }
 0xc38   :  { %v14765_v42 = vpop.eup %8206  ;;  %vm5191_vm12 = vcmp.eq.f32.partialorder %v5190_v5, 8.507059e+37  ;;  %v5223_v5 = vor.u32 1.1754944e-38, %v5222_v62 }
 0xc39   :  { %v14784_v37 = vpop.eup %8208 }
 0xc3a   :  { %v14798_v44 = vpop.eup %8210  ;;  %vm5262_vm9 = vweird.f32 %v14784_v37 }
 0xc3c   :  { %v5036_v13 = vpop.f32.mrf.mxu3 }
 0xc3d   :  { %v5056_v53 = vadd.f32 %v5036_v13, %v14644_v25  ;;  %v5149_v25 = vsel %vm14718_vm11, %v5148_v8, %v5144_v54  ;;  %v5155_v8 = vadd.f32 %v14639_v56, %v5154_v2  ;;  %vm5217_vm11 = vweird.f32 %v14665_v15 }
 0xc3e   :  { %v5204_v54 = vsel %vm14792_vm8, %v14650_v29, %v5200_v60  ;;  %v5220_v29 = vand.u32 2147483647, %v14611_v57  ;;  %vm14836_vm6 = vmor %vm5216_vm7, %vm5217_vm11  ;;  %v17457_v60 = vand.u32 2147483648, %v14606_v0  ;;  %v5242_v57 = vmul.f32 %v14798_v44, %v14722_v48 }
 0xc3f   :  { %8212 = vtanh.f32 %v5056_v53  ;;  %v5272_v53 = vmul.f32 %v14765_v42, %v14706_v1  ;;  %v5159_v20 = vsel %vm14810_vm13, %v14639_v56, %v5155_v8  ;;  %vm5261_vm8 = vweird.f32 %v14716_v32 }
 0xc40   :  { %8214 = vrcp.f32 %v14746_v39  ;;  %v5193_v8 = vor.u32 1.1754944e-38, %v17457_v60  ;;  %vm5221_vm7 = vcmp.eq.f32.partialorder %v5220_v29, 8.507059e+37  ;;  %vm5247_vm11 = vweird.f32 %v14798_v44  ;;  %vm14920_vm13 = vmor %vm5261_vm8, %vm5262_vm9 }
 0xc41   :  { %8216 = vtanh.f32 %v5055_v14  ;;  %v5170_v14 = vadd.f32 %v14630_v6, %v5169_v33  ;;  %v5189_v33 = vsel %vm14819_vm5, %v14656_v63, %v5185_v24  ;;  %v5219_v63 = vsel %vm14836_vm6, %v14665_v15, %v5215_v59 }
 0xc42   :  { %8218 = vtanh.f32 %v5054_v21  ;;  %v5257_v21 = vmul.f32 %v14784_v37, %v14716_v32  ;;  %v5273_v47 = vsub.f32 1.0, %v5272_v53  ;;  %v17460_v15 = vand.u32 2147483648, %v14590_v28 }
 0xc43   :  { %v5224_v19 = vsel %vm5221_vm7, %v5223_v5, %v5219_v63  ;;  %v5267_v63 = vand.u32 2147483648, %v14716_v32 }
 0xc44   :  { %v5039_v3 = vpop.f32.mrf.mxu3  ;;  %v5178_v59 = vor.u32 1.1754944e-38, %v17460_v15  ;;  %v5274_v43 = vmul.f32 %v14765_v42, %v5273_v47 }
 0xc45   :  { %v5057_v52 = vadd.f32 %v5039_v3, %v14647_v22  ;;  %v8213_v38 = vpop.eup %8212  ;;  %v5208_v22 = vor.u32 1.1754944e-38, %v5207_v46  ;;  %v5174_v3 = vsel %vm14853_vm4, %v14630_v6, %v5170_v14 }
 0xc46   :  { %v14840_v56 = vpop.eup %8214  ;;  %v5296_v0 = vmul.f32 %v8213_v38, %v5149_v25  ;;  %v17461_v25 = vsel %vm14684_vm14, %v14579_v34, %v14661_v9  ;;  %v5179_v14 = vsel %vm5176_vm15, %v5178_v59, %v5174_v3  ;;  %v5243_v34 = vsub.f32 1.0, %v5242_v57 }
 0xc47   :  { %8220 = vtanh.f32 %v5057_v52  ;;  %v5209_v35 = vsel %vm5206_vm0, %v5208_v22, %v5204_v54  ;;  %v8217_v24 = vpop.eup %8216  ;;  %v5194_v54 = vsel %vm5191_vm12, %v5193_v8, %v5189_v33  ;;  %v5227_v52 = vmul.f32 %v14840_v56, %v14746_v39 }
 0xc48   :  { %v8219_v53 = vpop.eup %8218  ;;  %v5292_v2 = vmul.f32 %v5209_v35, %v14365_v30  ;;  %v5258_v22 = vsub.f32 1.0, %v5257_v21  ;;  %v5119_v6 = vsel %vm14773_vm1, %v14667_v12, %v17461_v25  ;;  %v5295_v62 = vmul.f32 %v8217_v24, %v14726_v26  ;;  %v17482_v35 = vld [vmem:[#allocation55_spill] sm:$0xff] }
 0xc49   :  { %v5164_v30 = vsel %vm14780_vm10, %v14753_v41, %v5159_v20  ;;  %v5294_v9 = vmul.f32 %v8219_v53, %v5119_v6  ;;  %v5291_v55 = vmul.f32 %v5194_v54, %v14372_v36  ;;  %v5293_v12 = vmul.f32 %v5224_v19, %v14374_v18 }
 0xc4a   :  { %v14879_v29 = vadd.f32 %v5296_v0, %v5292_v2  ;;  %v5259_v51 = vmul.f32 %v14784_v37, %v5258_v22  ;;  %v5228_v26 = vsub.f32 1.0, %v5227_v52  ;;  %v5290_v21 = vmul.f32 %v5179_v14, %v14380_v11 }
 0xc4b   :  { %v14886_v27 = vadd.f32 %v5295_v62, %v5291_v55  ;;  %v5280_v20 = vand.u32 2147483647, %v14706_v1  ;;  %v5275_v33 = vadd.f32 %v14765_v42, %v5274_v43  ;;  %vm5277_vm14 = vweird.f32 %v14765_v42 }
 0xc4c   :  { %8222 = vtanh.f32 %v14879_v29  ;;  %v5244_v36 = vmul.f32 %v14798_v44, %v5243_v34  ;;  %v14895_v18 = vadd.f32 %v5294_v9, %v5290_v21  ;;  %v5282_v11 = vand.u32 2147483648, %v14706_v1 }
 0xc4d   :  { %v8221_v38 = vpop.eup %8220  ;;  %vm5276_vm1 = vweird.f32 %v14706_v1  ;;  %v5260_v46 = vadd.f32 %v14784_v37, %v5259_v51  ;;  %v5229_v60 = vmul.f32 %v14840_v56, %v5228_v26  ;;  %vm14907_vm3 = vcmp.eq.f32.partialorder %v5280_v20, 8.507059e+37  ;;  %v17479_v51 = vld [vmem:[#allocation51_spill] sm:$0xff] }
 0xc4e   :  { %v5297_v28 = vmul.f32 %v8221_v38, %v5164_v30  ;;  %vm14903_vm10 = vmor %vm5276_vm1, %vm5277_vm14  ;;  %v5265_v24 = vand.u32 2147483647, %v14716_v32  ;;  %v5245_v57 = vadd.f32 %v14798_v44, %v5244_v36  ;;  %v5283_v47 = vor.u32 1.1754944e-38, %v5282_v11  ;;  %v17481_v11 = vld [vmem:[#allocation38_spill] sm:$0xff] }
 0xc4f   :  { %v5279_v1 = vsel %vm14903_vm10, %v14765_v42, %v5275_v33  ;;  %v5252_v0 = vand.u32 2147483648, %v14722_v48  ;;  %vm5232_vm5 = vweird.f32 %v14840_v56  ;;  %v5264_v32 = vsel %vm14920_vm13, %v14784_v37, %v5260_v46  ;;  %v17480_v33 = vld [vmem:[#allocation27_spill] sm:$0xff] }
 0xc50   :  { %v14888_v41 = vadd.f32 %v5297_v28, %v5293_v12  ;;  %vm5246_vm0 = vweird.f32 %v14722_v48  ;;  %v5250_v42 = vand.u32 2147483647, %v14722_v48  ;;  %v5230_v3 = vadd.f32 %v14840_v56, %v5229_v60  ;;  %v17478_v12 = vld [vmem:[#allocation31_spill] sm:$0xff] }
 0xc51   :  { %v5284_v59 = vsel %vm14907_vm3, %v5283_v47, %v5279_v1  ;;  %v5268_v54 = vor.u32 1.1754944e-38, %v5267_v63  ;;  %vm14935_vm6 = vmor %vm5246_vm0, %vm5247_vm11  ;;  %vm5231_vm12 = vweird.f32 %v14746_v39  ;;  %v5237_v52 = vand.u32 2147483648, %v14746_v39  ;;  %v17483_v1 = vld [vmem:[#allocation36_spill] sm:$0xff] }
 0xc52   :  { %8224 = vtanh.f32 %v14888_v41  ;;  %v8223_v5 = vpop.eup %8222  ;;  %vm5266_vm4 = vcmp.eq.f32.partialorder %v5265_v24, 8.507059e+37  ;;  %v5249_v48 = vsel %vm14935_vm6, %v14798_v44, %v5245_v57  ;;  %v5235_v2 = vand.u32 2147483647, %v14746_v39  ;;  %vm5233_vm7 = vmor %vm5231_vm12, %vm5232_vm5 }
 0xc53   :  { %8226 = vtanh.f32 %v14886_v27  ;;  %v5269_v22 = vsel %vm5266_vm4, %v5268_v54, %v5264_v32  ;;  %v5253_v25 = vor.u32 1.1754944e-38, %v5252_v0  ;;  %vm5251_vm15 = vcmp.eq.f32.partialorder %v5250_v42, 8.507059e+37 }
 0xc54   :  { %8228 = vtanh.f32 %v14895_v18  ;;  %v5308_v6 = vmul.f32 %v8223_v5, %v5269_v22  ;;  %v5234_v62 = vsel %vm5233_vm7, %v14840_v56, %v5230_v3  ;;  %v5238_v14 = vor.u32 1.1754944e-38, %v5237_v52  ;;  %v17477_v56 = vld [vmem:[#allocation35_spill] sm:$0xff]  ;;  %v17484_v5 = vld [vmem:[#allocation40_spill] sm:$0xff] }
 0xc55   :  { %v5254_v38 = vsel %vm5251_vm15, %v5253_v25, %v5249_v48  ;;  %vm5236_vm14 = vcmp.eq.f32.partialorder %v5235_v2, 8.507059e+37  ;;  %v17487_v25 = vld [vmem:[#allocation53_spill] sm:$0xff] }
 0xc56   :  { %v5239_v44 = vsel %vm5236_vm14, %v5238_v14, %v5234_v62  ;;  %v17488_v14 = vld [vmem:[#allocation19_spill] sm:$0xff] }
 0xc58   :  { %v8225_v15 = vpop.eup %8224 }
 0xc59   :  { %v5309_v37 = vmul.f32 %v8225_v15, %v5284_v59  ;;  %v8227_v19 = vpop.eup %8226  ;;  %v17485_v59 = vld [vmem:[#allocation57_spill] sm:$0xff] }
 0xc5a   :  { %v8229_v30 = vpop.eup %8228  ;;  %v5307_v43 = vmul.f32 %v8227_v19, %v5254_v38 }
 0xc5b   :  { %5357 = vmatpush.msrb.mxu0 %v5309_v37  ;;  %v5306_v39 = vmul.f32 %v8229_v30, %v5239_v44  ;;  %v17486_v37 = vld [vmem:[#allocation43_spill] sm:$0xff] }
 0xc5d   :  { %5358 = vmatpush.msrb.mxu0 %v5308_v6 }
 0xc5f   :  { %5359 = vmatpush.msrb.mxu0 %v5307_v43 }
 0xc61   :  { %5360 = vmatpush.msrb.mxu0 %v5306_v39 }
 0xc62   :  { %7343 = vmatmul.msk.f32.vlgmr.msrb.gmra.mxu0 %vm369_vm2, %v14433_v61  ;;  %v17470_v61 = vld [vmem:[#allocation66_spill] sm:$0xff] }
 0xc6a   :  { %7344 = vmatmul.msk.f32.gmra.mxu0 %vm369_vm2, %v14440_v16  ;;  %v17471_v16 = vld [vmem:[#allocation68_spill] sm:$0xff] }
 0xc72   :  { %7345 = vmatmul.msk.f32.gmra.mxu0 %vm369_vm2, %v14447_v17  ;;  %v17472_v17 = vld [vmem:[#allocation46_spill] sm:$0xff] }
 0xc7a   :  { %7346 = vmatmul.msk.f32.gmra.mxu0 %vm369_vm2, %v14454_v10  ;;  %v14979_v10 = vperm.slane %v17472_v17, 1 }
 0xc7c   :  { %v5315_v28 = vmul.f32 %v14979_v10, %v17478_v12  ;;  %v5316_v36 = vmul.f32 %v14979_v10, %v17480_v33  ;;  %v5317_v63 = vmul.f32 %v14979_v10, %v17482_v35  ;;  %v5318_v32 = vmul.f32 %v14979_v10, %v17484_v5 }
 0xc7d   :  { %v5319_v48 = vmul.f32 %v14979_v10, %v17486_v37  ;;  %v5320_v43 = vmul.f32 %v14979_v10, %v17488_v14 }
 0xc7e   :  { %v5331_v26 = vadd.f32 %v5315_v28, %v17479_v51  ;;  %v5332_v46 = vadd.f32 %v5316_v36, %v17481_v11  ;;  %v5333_v24 = vadd.f32 %v5317_v63, %v17483_v1  ;;  %v5334_v54 = vadd.f32 %v5318_v32, %v17485_v59 }
 0xc7f   :  { %v5335_v6 = vadd.f32 %v5319_v48, %v17487_v25 }
 0xc82   :  { %7347 = vmatmul.msk.f32.gmra.mxu0 %vm369_vm2, %v14461_v49  ;;  %v17473_v49 = vld [vmem:[#allocation74_spill] sm:$0xff] }
 0xc8a   :  { %7348 = vmatmul.msk.f32.gmra.mxu0 %vm369_vm2, %v14468_v58  ;;  %v17474_v58 = vld [vmem:[#allocation47_spill] sm:$0xff] }
 0xc92   :  { %7349 = vmatmul.msk.f32.gmra.mxu0 %vm369_vm2, %v14475_v7  ;;  %v5313_v7 = vmul.f32 %v14979_v10, %v17474_v58 }
 0xc9a   :  { %7350 = vmatmul.msk.f32.gmra.mxu0 %vm369_vm2, %v14482_v23  ;;  %v17475_v23 = vld [vmem:[#allocation34_spill] sm:$0xff] }
 0xca2   :  { %7351 = vmatmul.msk.f32.gmra.mxu0 %vm369_vm2, %v14489_v31  ;;  %v5329_v31 = vadd.f32 %v5313_v7, %v17475_v23  ;;  %v17489_v7 = vld [vmem:[#allocation49_spill] sm:$0xff] }
 0xcaa   :  { %7352 = vmatmul.msk.f32.gmra.mxu0 %vm369_vm2, %v14496_v4 }
 0xcb2   :  { %7353 = vmatmul.msk.f32.gmra.mxu0 %vm369_vm2, %v14503_v40 }
 0xcba   :  { %7354 = vmatmul.msk.f32.gmra.mxu0 %vm369_vm2, %v14510_v45  ;;  %v17476_v45 = vld [vmem:[#allocation45_spill] sm:$0xff] }
 0xcc2   :  { %7355 = vmatmul.msk.f32.gmra.mxu0 %vm369_vm2, %v14517_v50  ;;  %v5314_v50 = vmul.f32 %v14979_v10, %v17476_v45 }
 0xcc4   :  { %v5330_v34 = vadd.f32 %v5314_v50, %v17477_v56 }
 0xcca   :  { %7356 = vmatmul.msk.f32.gmra.mxu0 %vm369_vm2, %v17470_v61 }
 0xcd2   :  { %7357 = vmatmul.msk.f32.gmra.mxu0 %vm369_vm2, %v17471_v16 }
 0xcda   :  { %7358 = vmatmul.msk.f32.gmra.mxu0 %vm369_vm2, %v17473_v49 }
 0xcdf   :  { %v5362_v4 = vpop.f32.mrf.mxu0 }
 0xce0   :  { %v5410_v40 = vadd.f32 %v5362_v4, %v5329_v31  ;;  %v5336_v31 = vadd.f32 %v5320_v43, %v17489_v7 }
 0xce2   :  { %v7359_v15 = vmul.f32 -1.442695, %v5410_v40 }
 0xce7   :  { %v5365_v9 = vpop.f32.mrf.mxu0 }
 0xce8   :  { %v5411_v55 = vadd.f32 %v5365_v9, %v5330_v34 }
 0xcea   :  { %v7360_v52 = vmul.f32 -1.442695, %v5411_v55 }
 0xcef   :  { %v5368_v21 = vpop.f32.mrf.mxu0 }
 0xcf0   :  { %v5412_v20 = vadd.f32 %v5368_v21, %v5331_v26 }
 0xcf2   :  { %v7361_v2 = vmul.f32 -1.442695, %v5412_v20 }
 0xcf7   :  { %v5371_v60 = vpop.f32.mrf.mxu0 }
 0xcf8   :  { %v5413_v8 = vadd.f32 %v5371_v60, %v5332_v46  ;;  %v17490_v60 = vld [vmem:[#allocation32_spill] sm:$0xff] }
 0xcfa   :  { %v7362_v4 = vmul.f32 -1.442695, %v5413_v8  ;;  %v5324_v8 = vmul.f32 %v14979_v10, %v17490_v60 }
 0xcff   :  { %v5374_v57 = vpop.f32.mrf.mxu0 }
 0xd00   :  { %v5414_v47 = vadd.f32 %v5374_v57, %v5333_v24  ;;  %v17491_v24 = vld [vmem:[#allocation58_spill] sm:$0xff] }
 0xd01   :  { %v5321_v57 = vmul.f32 %v14979_v10, %v17491_v24 }
 0xd02   :  { %v7363_v3 = vmul.f32 -1.442695, %v5414_v47 }
 0xd04   :  { %8230 = vpow2.f32 %v7363_v3 }
 0xd05   :  { %8232 = vpow2.f32 %v7359_v15  ;;  %v17493_v15 = vld [vmem:[#allocation37_spill] sm:$0xff] }
 0xd06   :  { %8234 = vpow2.f32 %v7360_v52 }
 0xd07   :  { %v5377_v13 = vpop.f32.mrf.mxu0  ;;  %8236 = vpow2.f32 %v7361_v2 }
 0xd08   :  { %v5415_v53 = vadd.f32 %v5377_v13, %v5334_v54  ;;  %v5323_v54 = vmul.f32 %v14979_v10, %v17493_v15 }
 0xd0a   :  { %v7364_v22 = vmul.f32 -1.442695, %v5415_v53  ;;  %v8231_v62 = vpop.eup %8230  ;;  %v17494_v53 = vld [vmem:[#allocation69_spill] sm:$0xff] }
 0xd0b   :  { %v8233_v30 = vpop.eup %8232  ;;  %v15008_v44 = vadd.f32 1.0, %v8231_v62  ;;  %v5325_v52 = vmul.f32 %v14979_v10, %v17494_v53 }
 0xd0c   :  { %8238 = vpow2.f32 %v7364_v22  ;;  %v15010_v39 = vadd.f32 1.0, %v8233_v30  ;;  %v8235_v16 = vpop.eup %8234  ;;  %v17495_v22 = vld [vmem:[#allocation39_spill] sm:$0xff]  ;;  %v17496_v30 = vld [vmem:[#allocation73_spill] sm:$0xff] }
 0xd0d   :  { %v8237_v49 = vpop.eup %8236  ;;  %8240 = vrcp.f32 %v15008_v44  ;;  %v15017_v50 = vadd.f32 1.0, %v8235_v16  ;;  %vm5539_vm9 = vweird.f32 %v15008_v44 }
 0xd0e   :  { %8242 = vrcp.f32 %v15010_v39  ;;  %v15019_v9 = vadd.f32 1.0, %v8237_v49  ;;  %vm5479_vm1 = vweird.f32 %v15010_v39 }
 0xd0f   :  { %v5380_v0 = vpop.f32.mrf.mxu0  ;;  %vm5494_vm0 = vweird.f32 %v15017_v50 }
 0xd10   :  { %v5416_v38 = vadd.f32 %v5380_v0, %v5335_v6  ;;  %v5340_v6 = vadd.f32 %v5324_v8, %v17495_v22  ;;  %v17501_v22 = vld [vmem:[#allocation62_spill] sm:$0xff] }
 0xd11   :  { %v15070_v53 = vmul.f32 %v14979_v10, %v17501_v22 }
 0xd12   :  { %v7365_v17 = vmul.f32 -1.442695, %v5416_v38  ;;  %v8239_v40 = vpop.eup %8238  ;;  %v5326_v38 = vmul.f32 %v14979_v10, %v17496_v30 }
 0xd13   :  { %v15021_v55 = vadd.f32 1.0, %v8239_v40  ;;  %v15024_v21 = vpop.eup %8240 }
 0xd14   :  { %8244 = vpow2.f32 %v7365_v17  ;;  %v15027_v20 = vpop.eup %8242  ;;  %v5535_v46 = vmul.f32 %v15024_v21, %v15008_v44  ;;  %v17497_v17 = vld [vmem:[#allocation60_spill] sm:$0xff]  ;;  %vm5540_vm10 = vweird.f32 %v15024_v21 }
 0xd15   :  { %8246 = vpow2.f32 %v7362_v4  ;;  %v5475_v13 = vmul.f32 %v15027_v20, %v15010_v39  ;;  %v5337_v49 = vadd.f32 %v5321_v57, %v17497_v17  ;;  %v17502_v17 = vld [vmem:[#allocation71_spill] sm:$0xff]  ;;  %vm5480_vm3 = vweird.f32 %v15027_v20  ;;  %vm15104_vm8 = vmor %vm5539_vm9, %vm5540_vm10 }
 0xd16   :  { %8248 = vrcp.f32 %v15017_v50  ;;  %v5536_v2 = vsub.f32 1.0, %v5535_v46  ;;  %v17499_v46 = vld [vmem:[#allocation44_spill] sm:$0xff]  ;;  %v5342_v15 = vadd.f32 %v5326_v38, %v17502_v17  ;;  %v5483_v38 = vand.u32 2147483647, %v15010_v39  ;;  %vm15125_vm13 = vmor %vm5479_vm1, %vm5480_vm3 }
 0xd17   :  { %v5383_v42 = vpop.f32.mrf.mxu0  ;;  %8250 = vrcp.f32 %v15019_v9  ;;  %v5476_v4 = vsub.f32 1.0, %v5475_v13  ;;  %v5339_v8 = vadd.f32 %v5323_v54, %v17499_v46  ;;  %v17503_v54 = vld [vmem:[#allocation64_spill] sm:$0xff]  ;;  %vm5554_vm4 = vweird.f32 %v15021_v55 }
 0xd18   :  { %v5417_v34 = vadd.f32 %v5383_v42, %v5336_v31  ;;  %8252 = vrcp.f32 %v15021_v55  ;;  %v17492_v42 = vld [vmem:[#allocation42_spill] sm:$0xff]  ;;  %v5537_v57 = vmul.f32 %v15024_v21, %v5536_v2  ;;  %vm15112_vm11 = vcmp.eq.f32.partialorder %v5483_v38, 8.507059e+37 }
 0xd19   :  { %v5322_v3 = vmul.f32 %v14979_v10, %v17492_v42  ;;  %v5477_v46 = vmul.f32 %v15027_v20, %v5476_v4 }
 0xd1a   :  { %v7366_v28 = vmul.f32 -1.442695, %v5417_v34  ;;  %v8245_v36 = vpop.eup %8244  ;;  %v5538_v4 = vadd.f32 %v15024_v21, %v5537_v57 }
 0xd1b   :  { %v8247_v63 = vpop.eup %8246  ;;  %v15040_v0 = vadd.f32 1.0, %v8245_v36 }
 0xd1c   :  { %8254 = vpow2.f32 %v7366_v28  ;;  %v15036_v47 = vpop.eup %8248  ;;  %v15050_v48 = vadd.f32 1.0, %v8247_v63  ;;  %v17498_v28 = vld [vmem:[#allocation56_spill] sm:$0xff] }
 0xd1d   :  { %v15042_v32 = vpop.eup %8250  ;;  %v5490_v16 = vmul.f32 %v15036_v47, %v15017_v50  ;;  %8256 = vrcp.f32 %v15040_v0  ;;  %v5338_v36 = vadd.f32 %v5322_v3, %v17498_v28  ;;  %v17500_v63 = vld [vmem:[#allocation8_spill] sm:$0xff]  ;;  %vm5495_vm6 = vweird.f32 %v15036_v47 }
 0xd1e   :  { %v15055_v43 = vpop.eup %8252  ;;  %v15062_v40 = vmul.f32 %v15042_v32, %v15019_v9  ;;  %v5341_v30 = vadd.f32 %v5325_v52, %v17500_v63  ;;  %8258 = vrcp.f32 %v15050_v48  ;;  %v15081_v52 = vmul.f32 %v14979_v10, %v17503_v54  ;;  %vm15150_vm7 = vmor %vm5494_vm0, %vm5495_vm6 }
 0xd1f   :  { %v15003_v19 = vpop.f32.mrf.mxu0  ;;  %v5550_v13 = vmul.f32 %v15055_v43, %v15021_v55  ;;  %v5478_v54 = vadd.f32 %v15027_v20, %v5477_v46  ;;  %vm5555_vm12 = vweird.f32 %v15055_v43  ;;  %vm5569_vm14 = vweird.f32 %v15040_v0 }
 0xd20   :  { %vm15157_vm15 = vmor %vm5554_vm4, %vm5555_vm12  ;;  %vm5510_vm3 = vweird.f32 %v15042_v32 }
 0xd21   :  { %v5551_v10 = vsub.f32 1.0, %v5550_v13  ;;  %v5543_v13 = vand.u32 2147483647, %v15008_v44  ;;  %v5482_v38 = vsel %vm15125_vm13, %v15027_v20, %v5478_v54 }
 0xd22   :  { %v8255_v31 = vpop.eup %8254 }
 0xd23   :  { %vm5544_vm5 = vcmp.eq.f32.partialorder %v5543_v13, 8.507059e+37 }
 0xd27   :  { %v15012_v61 = vpop.f32.mrf.mxu0 }
 0xd28   :  { %v5419_v2 = vadd.f32 %v15012_v61, %v5338_v36 }
 0xd2a   :  { %v7368_v57 = vmul.f32 -1.442695, %v5419_v2 }
 0xd2f   :  { %v5392_v26 = vpop.f32.mrf.mxu0 }
 0xd30   :  { %v5420_v3 = vadd.f32 %v5392_v26, %v5339_v8  ;;  %v15090_v26 = vpop.eup %8256  ;;  %v5545_v8 = vand.u32 2147483648, %v15008_v44  ;;  %v5542_v44 = vsel %vm15104_vm8, %v15024_v21, %v5538_v4  ;;  %v5498_v4 = vand.u32 2147483647, %v15017_v50 }
 0xd31   :  { %v15097_v36 = vpop.eup %8258  ;;  %vm5570_vm10 = vweird.f32 %v15090_v26 }
 0xd32   :  { %v7369_v22 = vmul.f32 -1.442695, %v5420_v3  ;;  %v5546_v17 = vor.u32 1.1754944e-38, %v5545_v8  ;;  %v5560_v8 = vand.u32 2147483648, %v15021_v55  ;;  %vm5499_vm1 = vcmp.eq.f32.partialorder %v5498_v4, 8.507059e+37  ;;  %vm15200_vm8 = vmor %vm5569_vm14, %vm5570_vm10 }
 0xd33   :  { %vm5525_vm4 = vweird.f32 %v15097_v36 }
 0xd37   :  { %v5395_v62 = vpop.f32.mrf.mxu0 }
 0xd38   :  { %v5421_v34 = vadd.f32 %v5395_v62, %v5340_v6  ;;  %v5491_v6 = vsub.f32 1.0, %v5490_v16  ;;  %v15077_v62 = vadd.f32 1.0, %v8255_v31  ;;  %v5485_v16 = vand.u32 2147483648, %v15010_v39 }
 0xd39   :  { %v5418_v31 = vadd.f32 %v15003_v19, %v5337_v49  ;;  %v5565_v49 = vmul.f32 %v15090_v26, %v15040_v0 }
 0xd3a   :  { %v7370_v63 = vmul.f32 -1.442695, %v5421_v34  ;;  %8260 = vrcp.f32 %v15077_v62  ;;  %v5486_v2 = vor.u32 1.1754944e-38, %v5485_v16  ;;  %vm5584_vm6 = vweird.f32 %v15077_v62 }
 0xd3b   :  { %v7367_v46 = vmul.f32 -1.442695, %v5418_v31 }
 0xd3c   :  { %8262 = vpow2.f32 %v7370_v63  ;;  %v5552_v63 = vmul.f32 %v15055_v43, %v5551_v10  ;;  %v5566_v10 = vsub.f32 1.0, %v5565_v49 }
 0xd3e   :  { %v5553_v20 = vadd.f32 %v15055_v43, %v5552_v63 }
 0xd3f   :  { %v5398_v34 = vpop.f32.mrf.mxu0 }
 0xd40   :  { %v5422_v61 = vadd.f32 %v5398_v34, %v5341_v30  ;;  %v5492_v30 = vmul.f32 %v15036_v47, %v5491_v6  ;;  %v15121_v34 = vmul.f32 %v15097_v36, %v15050_v48  ;;  %v15134_v21 = vpop.eup %8260 }
 0xd41   :  { %vm5585_vm12 = vweird.f32 %v15134_v21 }
 0xd42   :  { %8264 = vtanh.f32 %v5422_v61  ;;  %v5493_v39 = vadd.f32 %v15036_v47, %v5492_v30  ;;  %v8263_v31 = vpop.eup %8262  ;;  %v5487_v61 = vsel %vm15112_vm11, %v5486_v2, %v5482_v38  ;;  %v5558_v30 = vand.u32 2147483647, %v15021_v55 }
 0xd43   :  { %8266 = vpow2.f32 %v7369_v22  ;;  %v5547_v22 = vsel %vm5544_vm5, %v5546_v17, %v5542_v44  ;;  %v5500_v17 = vand.u32 2147483648, %v15017_v50  ;;  %v17514_v50 = vld [vmem:[#allocation67_spill] sm:$0xff]  ;;  %v5580_v55 = vmul.f32 %v15134_v21, %v15077_v62 }
 0xd44   :  { %8268 = vpow2.f32 %v7368_v57  ;;  %v5658_v19 = vmul.f32 %v5547_v22, %v14895_v18  ;;  %v5567_v18 = vmul.f32 %v15090_v26, %v5566_v10  ;;  %v5343_v3 = vadd.f32 %v15070_v53, %v17514_v50 }
 0xd45   :  { %8270 = vpow2.f32 %v7367_v46  ;;  %v5497_v46 = vsel %vm15150_vm7, %v15036_v47, %v5493_v39  ;;  %v15169_v44 = vadd.f32 1.0, %v8263_v31  ;;  %v5557_v2 = vsel %vm15157_vm15, %v15055_v43, %v5553_v20  ;;  %vm15245_vm7 = vmor %vm5584_vm6, %vm5585_vm12 }
 0xd46   :  { %v5521_v10 = vsub.f32 1.0, %v15121_v34  ;;  %v5561_v22 = vor.u32 1.1754944e-38, %v5560_v8  ;;  %v5501_v47 = vor.u32 1.1754944e-38, %v5500_v17  ;;  %v17515_v39 = vsub.f32 1.0, %v15062_v40 }
 0xd47   :  { %v5401_v16 = vpop.f32.mrf.mxu0  ;;  %vm5559_vm9 = vcmp.eq.f32.partialorder %v5558_v30, 8.507059e+37  ;;  %v5575_v43 = vand.u32 2147483648, %v15040_v0  ;;  %v5581_v34 = vsub.f32 1.0, %v5580_v55  ;;  %v5573_v30 = vand.u32 2147483647, %v15040_v0 }
 0xd48   :  { %v8265_v54 = vpop.eup %8264  ;;  %v5423_v13 = vadd.f32 %v5401_v16, %v5342_v15  ;;  %v5507_v53 = vmul.f32 %v15042_v32, %v17515_v39  ;;  %v5502_v20 = vsel %vm5499_vm1, %v5501_v47, %v5497_v46  ;;  %vm5509_vm11 = vweird.f32 %v15019_v9  ;;  %v17520_v47 = vld [vmem:[#allocation65_spill] sm:$0xff] }
 0xd49   :  { %v5662_v49 = vmul.f32 %v8265_v54, %v5487_v61  ;;  %v8267_v63 = vpop.eup %8266  ;;  %v5562_v54 = vsel %vm5559_vm9, %v5561_v22, %v5557_v2  ;;  %v5568_v61 = vadd.f32 %v15090_v26, %v5567_v18  ;;  %v5513_v15 = vand.u32 2147483647, %v15019_v9  ;;  %vm15216_vm13 = vmor %vm5509_vm11, %vm5510_vm3 }
 0xd4a   :  { %8272 = vtanh.f32 %v5423_v13  ;;  %v8269_v38 = vpop.eup %8268  ;;  %v15181_v31 = vadd.f32 1.0, %v8267_v63  ;;  %v5508_v4 = vadd.f32 %v15042_v32, %v5507_v53  ;;  %v5515_v18 = vand.u32 2147483648, %v15019_v9 }
 0xd4b   :  { %v15171_v6 = vadd.f32 %v5662_v49, %v5658_v19  ;;  %v8271_v16 = vpop.eup %8270  ;;  %v15185_v8 = vadd.f32 1.0, %v8269_v38  ;;  %8274 = vrcp.f32 %v15169_v44  ;;  %v5659_v49 = vmul.f32 %v5562_v54, %v14886_v27 }
 0xd4c   :  { %v15189_v17 = vadd.f32 1.0, %v8271_v16  ;;  %8276 = vrcp.f32 %v15181_v31  ;;  %v5582_v27 = vmul.f32 %v15134_v21, %v5581_v34  ;;  %v5572_v0 = vsel %vm15200_vm8, %v15090_v26, %v5568_v61 }
 0xd4d   :  { %v5512_v9 = vsel %vm15216_vm13, %v15042_v32, %v5508_v4  ;;  %vm5574_vm5 = vcmp.eq.f32.partialorder %v5573_v30, 8.507059e+37  ;;  %v5522_v38 = vmul.f32 %v15097_v36, %v5521_v10  ;;  %vm5514_vm0 = vcmp.eq.f32.partialorder %v5513_v15, 8.507059e+37 }
 0xd4e   :  { %v5516_v26 = vor.u32 1.1754944e-38, %v5515_v18  ;;  %v5344_v39 = vadd.f32 %v15081_v52, %v17520_v47  ;;  %v5590_v16 = vand.u32 2147483648, %v15077_v62  ;;  %v5583_v32 = vadd.f32 %v15134_v21, %v5582_v27 }
 0xd4f   :  { %v5404_v40 = vpop.f32.mrf.mxu0  ;;  %vm5524_vm15 = vweird.f32 %v15050_v48  ;;  %v5528_v63 = vand.u32 2147483647, %v15050_v48  ;;  %vm5644_vm3 = vweird.f32 %v15169_v44  ;;  %v5633_v4 = vand.u32 2147483647, %v15181_v31 }
 0xd50   :  { %v8273_v13 = vpop.eup %8272  ;;  %v5424_v19 = vadd.f32 %v5404_v40, %v5343_v3  ;;  %v5576_v3 = vor.u32 1.1754944e-38, %v5575_v43  ;;  %v5517_v54 = vsel %vm5514_vm0, %v5516_v26, %v5512_v9  ;;  %v5591_v15 = vor.u32 1.1754944e-38, %v5590_v16  ;;  %vm5526_vm14 = vmor %vm5524_vm15, %vm5525_vm4 }
 0xd51   :  { %v5663_v57 = vmul.f32 %v8273_v13, %v5502_v20  ;;  %v15220_v2 = vpop.eup %8274  ;;  %v5523_v13 = vadd.f32 %v15097_v36, %v5522_v38  ;;  %vm5529_vm9 = vcmp.eq.f32.partialorder %v5528_v63, 8.507059e+37  ;;  %vm5614_vm12 = vweird.f32 %v15185_v8  ;;  %v15421_v63 = vld [vmem:[%s16629_s5 + $0x68] sm:$0xff] }
 0xd52   :  { %8278 = vtanh.f32 %v5424_v19  ;;  %v5577_v22 = vsel %vm5574_vm5, %v5576_v3, %v5572_v0  ;;  %v15229_v53 = vpop.eup %8276  ;;  %v5640_v10 = vmul.f32 %v15220_v2, %v15169_v44  ;;  %v5588_v19 = vand.u32 2147483647, %v15077_v62 }
 0xd53   :  { %8280 = vrcp.f32 %v15185_v8  ;;  %v15209_v46 = vadd.f32 %v5663_v57, %v5659_v49  ;;  %v5660_v40 = vmul.f32 %v5577_v22, %v14879_v29  ;;  %v5625_v49 = vmul.f32 %v15229_v53, %v15181_v31 }
 0xd54   :  { %8282 = vrcp.f32 %v15189_v17  ;;  %v5530_v57 = vand.u32 2147483648, %v15050_v48  ;;  %v5587_v62 = vsel %vm15245_vm7, %v15134_v21, %v5583_v32  ;;  %v5641_v27 = vsub.f32 1.0, %v5640_v10 }
 0xd55   :  { %v5527_v0 = vsel %vm5526_vm14, %v15097_v36, %v5523_v13  ;;  %vm5589_vm1 = vcmp.eq.f32.partialorder %v5588_v19, 8.507059e+37  ;;  %v5626_v9 = vsub.f32 1.0, %v5625_v49  ;;  %vm5645_vm10 = vweird.f32 %v15220_v2  ;;  %v15379_v13 = vld [vmem:[%s16629_s5 + $0x38] sm:$0xff] }
 0xd56   :  { %v5531_v55 = vor.u32 1.1754944e-38, %v5530_v57  ;;  %v5592_v48 = vsel %vm5589_vm1, %v5591_v15, %v5587_v62  ;;  %v5642_v26 = vmul.f32 %v15220_v2, %v5641_v27  ;;  %vm5630_vm8 = vweird.f32 %v15229_v53  ;;  %vm15284_vm11 = vmor %vm5644_vm3, %vm5645_vm10 }
 0xd57   :  { %v5407_v43 = vpop.f32.mrf.mxu0  ;;  %vm5629_vm5 = vweird.f32 %v15181_v31  ;;  %v5635_v19 = vand.u32 2147483648, %v15181_v31  ;;  %v5620_v62 = vand.u32 2147483648, %v15185_v8  ;;  %vm5599_vm15 = vweird.f32 %v15189_v17 }
 0xd58   :  { %v8279_v20 = vpop.eup %8278  ;;  %v5425_v34 = vadd.f32 %v5407_v43, %v5344_v39  ;;  %v5532_v21 = vsel %vm5529_vm9, %v5531_v55, %v5527_v0  ;;  %v5661_v39 = vmul.f32 %v5592_v48, %v14888_v41  ;;  %v5627_v43 = vmul.f32 %v15229_v53, %v5626_v9  ;;  %vm15301_vm6 = vmor %vm5629_vm5, %vm5630_vm8 }
 0xd59   :  { %v15238_v52 = vpop.eup %8280  ;;  %v5664_v61 = vmul.f32 %v8279_v20, %v5517_v54  ;;  %v5648_v20 = vand.u32 2147483647, %v15169_v44  ;;  %v5643_v10 = vadd.f32 %v15220_v2, %v5642_v26  ;;  %v5650_v41 = vand.u32 2147483648, %v15169_v44 }
 0xd5a   :  { %8284 = vtanh.f32 %v5425_v34  ;;  %v15252_v30 = vpop.eup %8282  ;;  %v5610_v18 = vmul.f32 %v15238_v52, %v15185_v8  ;;  %v5628_v34 = vadd.f32 %v15229_v53, %v5627_v43  ;;  %vm5615_vm0 = vweird.f32 %v15238_v52 }
 0xd5b   :  { %v15254_v29 = vadd.f32 %v5664_v61, %v5660_v40  ;;  %v5595_v3 = vmul.f32 %v15252_v30, %v15189_v17  ;;  %vm15288_vm13 = vcmp.eq.f32.partialorder %v5648_v20, 8.507059e+37  ;;  %v5647_v44 = vsel %vm15284_vm11, %v15220_v2, %v5643_v10  ;;  %vm15316_vm7 = vmor %vm5614_vm12, %vm5615_vm0  ;;  %v15372_v61 = vld [vmem:[%s16629_s5 + $0x30] sm:$0xff] }
 0xd5c   :  { %v5611_v22 = vsub.f32 1.0, %v5610_v18  ;;  %v5651_v57 = vor.u32 1.1754944e-38, %v5650_v41  ;;  %v5632_v31 = vsel %vm15301_vm6, %v15229_v53, %v5628_v34  ;;  %v5618_v2 = vand.u32 2147483647, %v15185_v8  ;;  %v15351_v41 = vld [vmem:[%s16629_s5 + $0x18] sm:$0xff]  ;;  %v15358_v34 = vld [vmem:[%s16629_s5 + $0x20] sm:$0xff] }
 0xd5d   :  { %v5596_v32 = vsub.f32 1.0, %v5595_v3  ;;  %8286 = vtanh.f32 %v15254_v29  ;;  %vm5600_vm4 = vweird.f32 %v15252_v30  ;;  %v5636_v3 = vor.u32 1.1754944e-38, %v5635_v19  ;;  %v15386_v19 = vld [vmem:[%s16629_s5 + $0x40] sm:$0xff] }
 0xd5e   :  { %v5612_v54 = vmul.f32 %v15238_v52, %v5611_v22  ;;  %v5652_v0 = vsel %vm15288_vm13, %v5651_v57, %v5647_v44  ;;  %v5605_v48 = vand.u32 2147483648, %v15189_v17  ;;  %vm5634_vm14 = vcmp.eq.f32.partialorder %v5633_v4, 8.507059e+37  ;;  %vm5601_vm1 = vmor %vm5599_vm15, %vm5600_vm4  ;;  %v15393_v44 = vld [vmem:[%s16629_s5 + $0x48] sm:$0xff]  ;;  %v15400_v4 = vld [vmem:[%s16629_s5 + $0x50] sm:$0xff] }
 0xd5f   :  { %v5597_v40 = vmul.f32 %v15252_v30, %v5596_v32  ;;  %v5603_v9 = vand.u32 2147483647, %v15189_v17  ;;  %v5621_v26 = vor.u32 1.1754944e-38, %v5620_v62  ;;  %vm5619_vm9 = vcmp.eq.f32.partialorder %v5618_v2, 8.507059e+37  ;;  %v15330_v17 = vld [vmem:[%s16629_s5] sm:$0xff]  ;;  %v15428_v62 = vld [vmem:[%s16629_s5 + $0x70] sm:$0xff] }
 0xd60   :  { %v8285_v38 = vpop.eup %8284  ;;  %v5613_v49 = vadd.f32 %v15238_v52, %v5612_v54  ;;  %v5606_v32 = vor.u32 1.1754944e-38, %v5605_v48  ;;  %v15344_v54 = vld [vmem:[%s16629_s5 + $0x10] sm:$0xff]  ;;  %v15414_v57 = vld [vmem:[%s16629_s5 + $0x60] sm:$0xff]  ;;  %17531 = vst [vmem:[#allocation70_spill] sm:$0xff] %v15428_v62  ;;  %v15438_v2 = vld [vmem:[%s16629_s5 + $0x78] sm:$0xff] }
 0xd61   :  { %v5665_v16 = vmul.f32 %v8285_v38, %v5532_v21  ;;  %v5598_v18 = vadd.f32 %v15252_v30, %v5597_v40  ;;  %v5637_v21 = vsel %vm5634_vm14, %v5636_v3, %v5632_v31  ;;  %vm5604_vm10 = vcmp.eq.f32.partialorder %v5603_v9, 8.507059e+37  ;;  %v15365_v40 = vld [vmem:[%s16629_s5 + $0x28] sm:$0xff]  ;;  %17533 = vst [vmem:[#allocation15_spill] sm:$0xff] %v15438_v2 }
 0xd62   :  { %v5617_v8 = vsel %vm15316_vm7, %v15238_v52, %v5613_v49  ;;  %v15407_v49 = vld [vmem:[%s16629_s5 + $0x58] sm:$0xff] }
 0xd63   :  { %v15271_v36 = vadd.f32 %v5665_v16, %v5661_v39  ;;  %v8287_v15 = vpop.eup %8286  ;;  %v5602_v39 = vsel %vm5601_vm1, %v15252_v30, %v5598_v18  ;;  %v5622_v43 = vsel %vm5619_vm9, %v5621_v26, %v5617_v8  ;;  %v15337_v30 = vld [vmem:[%s16629_s5 + $0x8] sm:$0xff] }
 0xd64   :  { %v5676_v22 = vmul.f32 %v8287_v15, %v5637_v21  ;;  %v5607_v10 = vsel %vm5604_vm10, %v5606_v32, %v5602_v39  ;;  %v17532_v15 = vld [vmem:[#allocation52_spill] sm:$0xff] }
 0xd65   :  { %8288 = vtanh.f32 %v15271_v36  ;;  %v15433_v31 = vperm.slane %v17532_v15, 1 }
 0xd66   :  { %8290 = vtanh.f32 %v15209_v46 }
 0xd67   :  { %8292 = vtanh.f32 %v15171_v6  ;;  %v5681_v18 = vmul.f32 %v15433_v31, %v17474_v58  ;;  %v5682_v55 = vmul.f32 %v15433_v31, %v17476_v45  ;;  %v5683_v9 = vmul.f32 %v15433_v31, %v17478_v12  ;;  %v17540_v12 = vld [vmem:[#allocation8_spill] sm:$0xff] }
 0xd68   :  { %v5685_v32 = vmul.f32 %v15433_v31, %v17482_v35 }
 0xd69   :  { %v5698_v48 = vadd.f32 %v5682_v55, %v17477_v56 }
 0xd6b   :  { %v8289_v27 = vpop.eup %8288 }
 0xd6c   :  { %v5677_v53 = vmul.f32 %v8289_v27, %v5652_v0  ;;  %v8291_v38 = vpop.eup %8290  ;;  %v5697_v27 = vadd.f32 %v5681_v18, %v17475_v23  ;;  %v17541_v23 = vld [vmem:[#allocation71_spill] sm:$0xff] }
 0xd6d   :  { %v8293_v16 = vpop.eup %8292  ;;  %v5675_v20 = vmul.f32 %v8291_v38, %v5622_v43  ;;  %v5699_v38 = vadd.f32 %v5683_v9, %v17479_v51 }
 0xd6e   :  { %5725 = vmatpush.msrb.mxu1 %v5677_v53  ;;  %v5674_v52 = vmul.f32 %v8293_v16, %v5607_v10 }
 0xd70   :  { %5726 = vmatpush.msrb.mxu1 %v5676_v22  ;;  %v5684_v22 = vmul.f32 %v15433_v31, %v17480_v33  ;;  %v17539_v33 = vld [vmem:[#allocation44_spill] sm:$0xff] }
 0xd72   :  { %5727 = vmatpush.msrb.mxu1 %v5675_v20  ;;  %v5700_v39 = vadd.f32 %v5684_v22, %v17481_v11  ;;  %v5701_v20 = vadd.f32 %v5685_v32, %v17483_v1 }
 0xd74   :  { %5728 = vmatpush.msrb.mxu1 %v5674_v52 }
 0xd75   :  { %7371 = vmatmul.msk.f32.vlgmr.msrb.gmra.mxu1 %vm369_vm2, %v15330_v17 }
 0xd7d   :  { %7372 = vmatmul.msk.f32.gmra.mxu1 %vm369_vm2, %v15337_v30 }
 0xd85   :  { %7373 = vmatmul.msk.f32.gmra.mxu1 %vm369_vm2, %v15344_v54 }
 0xd8d   :  { %7374 = vmatmul.msk.f32.gmra.mxu1 %vm369_vm2, %v15351_v41 }
 0xd95   :  { %7375 = vmatmul.msk.f32.gmra.mxu1 %vm369_vm2, %v15358_v34 }
 0xd9d   :  { %7376 = vmatmul.msk.f32.gmra.mxu1 %vm369_vm2, %v15365_v40 }
 0xda5   :  { %7377 = vmatmul.msk.f32.gmra.mxu1 %vm369_vm2, %v15372_v61 }
 0xdad   :  { %7378 = vmatmul.msk.f32.gmra.mxu1 %vm369_vm2, %v15379_v13 }
 0xdb5   :  { %7379 = vmatmul.msk.f32.gmra.mxu1 %vm369_vm2, %v15386_v19 }
 0xdbd   :  { %7380 = vmatmul.msk.f32.gmra.mxu1 %vm369_vm2, %v15393_v44 }
 0xdc5   :  { %7381 = vmatmul.msk.f32.gmra.mxu1 %vm369_vm2, %v15400_v4 }
 0xdcd   :  { %7382 = vmatmul.msk.f32.gmra.mxu1 %vm369_vm2, %v15407_v49 }
 0xdd5   :  { %7383 = vmatmul.msk.f32.gmra.mxu1 %vm369_vm2, %v15414_v57 }
 0xddd   :  { %7384 = vmatmul.msk.f32.gmra.mxu1 %vm369_vm2, %v15421_v63 }
 0xde5   :  { %7385 = vmatmul.msk.f32.gmra.mxu1 %vm369_vm2, %v15428_v62 }
 0xded   :  { %7386 = vmatmul.msk.f32.gmra.mxu1 %vm369_vm2, %v15438_v2  ;;  %v17542_v2 = vld [vmem:[#allocation62_spill] sm:$0xff] }
 0xdf2   :  { %v5730_v0 = vpop.f32.mrf.mxu1 }
 0xdf3   :  { %v5778_v3 = vadd.f32 %v5730_v0, %v5697_v27  ;;  %v5686_v27 = vmul.f32 %v15433_v31, %v17484_v5 }
 0xdfa   :  { %v5733_v53 = vpop.f32.mrf.mxu1 }
 0xdfb   :  { %v5779_v8 = vadd.f32 %v5733_v53, %v5698_v48  ;;  %v7387_v48 = vmul.f32 -1.442695, %v5778_v3  ;;  %v5702_v53 = vadd.f32 %v5686_v27, %v17485_v59 }
 0xe02   :  { %v5736_v21 = vpop.f32.mrf.mxu1 }
 0xe03   :  { %v5780_v26 = vadd.f32 %v5736_v21, %v5699_v38  ;;  %v7388_v38 = vmul.f32 -1.442695, %v5779_v8  ;;  %v5687_v21 = vmul.f32 %v15433_v31, %v17486_v37  ;;  %v17536_v37 = vld [vmem:[#allocation39_spill] sm:$0xff] }
 0xe05   :  { %v7389_v22 = vmul.f32 -1.442695, %v5780_v26  ;;  %v5703_v32 = vadd.f32 %v5687_v21, %v17487_v25 }
 0xe0a   :  { %v5739_v16 = vpop.f32.mrf.mxu1 }
 0xe0b   :  { %v5781_v43 = vadd.f32 %v5739_v16, %v5700_v39 }
 0xe12   :  { %v5742_v10 = vpop.f32.mrf.mxu1 }
 0xe13   :  { %v5782_v52 = vadd.f32 %v5742_v10, %v5701_v20  ;;  %v7390_v10 = vmul.f32 -1.442695, %v5781_v43 }
 0xe15   :  { %v7391_v55 = vmul.f32 -1.442695, %v5782_v52 }
 0xe17   :  { %8294 = vpow2.f32 %v7391_v55 }
 0xe18   :  { %8296 = vpow2.f32 %v7387_v48 }
 0xe19   :  { %8298 = vpow2.f32 %v7388_v38 }
 0xe1a   :  { %v5745_v15 = vpop.f32.mrf.mxu1  ;;  %8300 = vpow2.f32 %v7389_v22 }
 0xe1b   :  { %v5783_v9 = vadd.f32 %v5745_v15, %v5702_v53  ;;  %v5688_v15 = vmul.f32 %v15433_v31, %v17488_v14 }
 0xe1d   :  { %v7392_v16 = vmul.f32 -1.442695, %v5783_v9  ;;  %v8295_v20 = vpop.eup %8294  ;;  %v5704_v9 = vadd.f32 %v5688_v15, %v17489_v7  ;;  %v17535_v7 = vld [vmem:[#allocation69_spill] sm:$0xff] }
 0xe1e   :  { %v8297_v3 = vpop.eup %8296  ;;  %v15467_v8 = vadd.f32 1.0, %v8295_v20  ;;  %v5693_v14 = vmul.f32 %v15433_v31, %v17535_v7 }
 0xe1f   :  { %8302 = vpow2.f32 %v7392_v16  ;;  %v15469_v27 = vadd.f32 1.0, %v8297_v3  ;;  %v8299_v55 = vpop.eup %8298 }
 0xe20   :  { %8304 = vpow2.f32 %v7390_v10  ;;  %v8301_v53 = vpop.eup %8300  ;;  %v5709_v56 = vadd.f32 %v5693_v14, %v17540_v12  ;;  %vm5907_vm3 = vweird.f32 %v15467_v8 }
 0xe21   :  { %8306 = vrcp.f32 %v15467_v8  ;;  %v15478_v21 = vadd.f32 1.0, %v8301_v53  ;;  %vm5847_vm5 = vweird.f32 %v15469_v27 }
 0xe22   :  { %v5748_v18 = vpop.f32.mrf.mxu1  ;;  %8308 = vrcp.f32 %v15469_v27 }
 0xe23   :  { %v5784_v52 = vadd.f32 %v5748_v18, %v5703_v32  ;;  %v15476_v18 = vadd.f32 1.0, %v8299_v55  ;;  %v5692_v55 = vmul.f32 %v15433_v31, %v17490_v60 }
 0xe25   :  { %v7393_v48 = vmul.f32 -1.442695, %v5784_v52  ;;  %v8303_v43 = vpop.eup %8302  ;;  %v5708_v59 = vadd.f32 %v5692_v55, %v17536_v37  ;;  %v17538_v55 = vld [vmem:[#allocation60_spill] sm:$0xff]  ;;  %vm5862_vm14 = vweird.f32 %v15476_v18 }
 0xe26   :  { %v8305_v22 = vpop.eup %8304  ;;  %v15480_v16 = vadd.f32 1.0, %v8303_v43 }
 0xe27   :  { %8310 = vpow2.f32 %v7393_v48  ;;  %v15483_v10 = vpop.eup %8306  ;;  %v15486_v3 = vadd.f32 1.0, %v8305_v22  ;;  %v5690_v22 = vmul.f32 %v15433_v31, %v17492_v42 }
 0xe28   :  { %8312 = vrcp.f32 %v15476_v18  ;;  %v15488_v52 = vpop.eup %8308  ;;  %vm5908_vm8 = vweird.f32 %v15483_v10  ;;  %vm5922_vm12 = vweird.f32 %v15480_v16 }
 0xe29   :  { %8314 = vrcp.f32 %v15478_v21  ;;  %v5843_v53 = vmul.f32 %v15488_v52, %v15469_v27  ;;  %vm5848_vm11 = vweird.f32 %v15488_v52  ;;  %vm15566_vm13 = vmor %vm5907_vm3, %vm5908_vm8 }
 0xe2a   :  { %v5751_v0 = vpop.f32.mrf.mxu1  ;;  %8316 = vrcp.f32 %v15480_v16  ;;  %vm15578_vm0 = vmor %vm5847_vm5, %vm5848_vm11 }
 0xe2b   :  { %v5785_v38 = vadd.f32 %v5751_v0, %v5704_v9  ;;  %v5903_v0 = vmul.f32 %v15483_v10, %v15467_v8  ;;  %v5844_v42 = vsub.f32 1.0, %v5843_v53 }
 0xe2d   :  { %v7394_v32 = vmul.f32 -1.442695, %v5785_v38  ;;  %v8311_v15 = vpop.eup %8310  ;;  %v5689_v38 = vmul.f32 %v15433_v31, %v17491_v24  ;;  %v5904_v25 = vsub.f32 1.0, %v5903_v0 }
 0xe2e   :  { %v15496_v48 = vpop.eup %8312  ;;  %v15500_v9 = vadd.f32 1.0, %v8311_v15  ;;  %v17537_v15 = vld [vmem:[#allocation73_spill] sm:$0xff] }
 0xe2f   :  { %8318 = vpow2.f32 %v7394_v32  ;;  %v15502_v43 = vpop.eup %8314  ;;  %v17534_v32 = vld [vmem:[#allocation37_spill] sm:$0xff]  ;;  %v5694_v1 = vmul.f32 %v15433_v31, %v17537_v15  ;;  %v5858_v24 = vmul.f32 %v15496_v48, %v15476_v18  ;;  %v5705_v37 = vadd.f32 %v5689_v38, %v17538_v55 }
 0xe30   :  { %8320 = vrcp.f32 %v15486_v3  ;;  %v5691_v60 = vmul.f32 %v15433_v31, %v17534_v32  ;;  %v15515_v35 = vpop.eup %8316  ;;  %v15521_v32 = vmul.f32 %v15502_v43, %v15478_v21  ;;  %v5706_v15 = vadd.f32 %v5690_v22, %v17498_v28  ;;  %v17543_v22 = vld [vmem:[#allocation64_spill] sm:$0xff] }
 0xe31   :  { %8322 = vrcp.f32 %v15500_v9  ;;  %v5905_v45 = vmul.f32 %v15483_v10, %v5904_v25  ;;  %v5918_v53 = vmul.f32 %v15515_v35, %v15480_v16  ;;  %v5710_v58 = vadd.f32 %v5694_v1, %v17541_v23 }
 0xe32   :  { %v15462_v39 = vpop.f32.mrf.mxu1  ;;  %v5707_v51 = vadd.f32 %v5691_v60, %v17539_v33  ;;  %v15542_v60 = vmul.f32 %v15433_v31, %v17543_v22  ;;  %v5845_v1 = vmul.f32 %v15488_v52, %v5844_v42  ;;  %v5853_v33 = vand.u32 2147483648, %v15469_v27 }
 0xe33   :  { %v5786_v14 = vadd.f32 %v15462_v39, %v5705_v37  ;;  %vm5863_vm7 = vweird.f32 %v15496_v48  ;;  %vm5923_vm15 = vweird.f32 %v15515_v35  ;;  %vm5937_vm10 = vweird.f32 %v15500_v9 }
 0xe34   :  { %vm15604_vm1 = vmor %vm5862_vm14, %vm5863_vm7 }
 0xe35   :  { %v8319_v11 = vpop.eup %8318  ;;  %vm15614_vm9 = vmor %vm5922_vm12, %vm5923_vm15 }
 0xe36   :  { %v15524_v7 = vpop.eup %8320  ;;  %v15538_v62 = vadd.f32 1.0, %v8319_v11 }
 0xe37   :  { %v15547_v25 = vmul.f32 %v15524_v7, %v15486_v3  ;;  %vm5893_vm14 = vweird.f32 %v15524_v7 }
 0xe38   :  { %8324 = vrcp.f32 %v15538_v62 }
 0xe3a   :  { %v15471_v26 = vpop.f32.mrf.mxu1 }
 0xe3b   :  { %v5787_v11 = vadd.f32 %v15471_v26, %v5706_v15  ;;  %v5846_v26 = vadd.f32 %v15488_v52, %v5845_v1  ;;  %v5911_v15 = vand.u32 2147483647, %v15467_v8 }
 0xe3d   :  { %v7396_v39 = vmul.f32 -1.442695, %v5787_v11  ;;  %vm5912_vm4 = vcmp.eq.f32.partialorder %v5911_v15, 8.507059e+37 }
 0xe42   :  { %v5760_v20 = vpop.f32.mrf.mxu1 }
 0xe43   :  { %v5788_v38 = vadd.f32 %v5760_v20, %v5707_v51  ;;  %v5851_v51 = vand.u32 2147483647, %v15469_v27  ;;  %v15554_v20 = vpop.eup %8322  ;;  %v5850_v27 = vsel %vm15578_vm0, %v15488_v52, %v5846_v26  ;;  %v5868_v26 = vand.u32 2147483648, %v15476_v18 }
 0xe44   :  { %vm5938_vm11 = vweird.f32 %v15554_v20  ;;  %vm5877_vm0 = vweird.f32 %v15478_v21 }
 0xe45   :  { %v7397_v42 = vmul.f32 -1.442695, %v5788_v38  ;;  %vm15582_vm6 = vcmp.eq.f32.partialorder %v5851_v51, 8.507059e+37  ;;  %vm15657_vm5 = vmor %vm5937_vm10, %vm5938_vm11 }
 0xe4a   :  { %v5763_v5 = vpop.f32.mrf.mxu1 }
 0xe4b   :  { %v5789_v0 = vadd.f32 %v5763_v5, %v5708_v59  ;;  %v15536_v5 = vmul.f32 %v15433_v31, %v17542_v2  ;;  %v5859_v59 = vsub.f32 1.0, %v5858_v24  ;;  %v5913_v24 = vand.u32 2147483648, %v15467_v8 }
 0xe4c   :  { %v5919_v31 = vsub.f32 1.0, %v5918_v53  ;;  %v7395_v53 = vmul.f32 -1.442695, %v5786_v14 }
 0xe4d   :  { %v7398_v12 = vmul.f32 -1.442695, %v5789_v0  ;;  %v5906_v0 = vadd.f32 %v15483_v10, %v5905_v45  ;;  %v5933_v45 = vmul.f32 %v15554_v20, %v15500_v9  ;;  %v5914_v38 = vor.u32 1.1754944e-38, %v5913_v24 }
 0xe4f   :  { %8326 = vpow2.f32 %v7398_v12  ;;  %v5920_v12 = vmul.f32 %v15515_v35, %v5919_v31  ;;  %v5910_v8 = vsel %vm15566_vm13, %v15483_v10, %v5906_v0  ;;  %v15591_v10 = vpop.eup %8324  ;;  %vm5878_vm13 = vweird.f32 %v15502_v43 }
 0xe50   :  { %v5915_v14 = vsel %vm5912_vm4, %v5914_v38, %v5910_v8  ;;  %v5948_v8 = vmul.f32 %v15591_v10, %v15538_v62  ;;  %vm5952_vm4 = vweird.f32 %v15538_v62  ;;  %vm5953_vm7 = vweird.f32 %v15591_v10 }
 0xe51   :  { %v5921_v31 = vadd.f32 %v15515_v35, %v5920_v12  ;;  %v6026_v15 = vmul.f32 %v5915_v14, %v15171_v6 }
 0xe52   :  { %v5766_v22 = vpop.f32.mrf.mxu1 }
 0xe53   :  { %v5790_v23 = vadd.f32 %v5766_v22, %v5709_v56  ;;  %v5860_v56 = vmul.f32 %v15496_v48, %v5859_v59  ;;  %v5934_v59 = vsub.f32 1.0, %v5933_v45  ;;  %v5925_v22 = vsel %vm15614_vm9, %v15515_v35, %v5921_v31 }
 0xe54   :  { %v5943_v35 = vand.u32 2147483648, %v15500_v9  ;;  %v5941_v45 = vand.u32 2147483647, %v15500_v9  ;;  %vm5892_vm9 = vweird.f32 %v15486_v3 }
 0xe55   :  { %8328 = vtanh.f32 %v5790_v23  ;;  %v5854_v23 = vor.u32 1.1754944e-38, %v5853_v33  ;;  %v5861_v24 = vadd.f32 %v15496_v48, %v5860_v56  ;;  %v8327_v11 = vpop.eup %8326  ;;  %v5928_v33 = vand.u32 2147483648, %v15480_v16  ;;  %vm5894_vm10 = vmor %vm5892_vm9, %vm5893_vm14 }
 0xe56   :  { %8330 = vpow2.f32 %v7397_v42  ;;  %v5926_v56 = vand.u32 2147483647, %v15480_v16  ;;  %v5935_v6 = vmul.f32 %v15554_v20, %v5934_v59  ;;  %v15626_v38 = vadd.f32 1.0, %v8327_v11 }
 0xe57   :  { %8332 = vpow2.f32 %v7396_v39  ;;  %v5855_v0 = vsel %vm15582_vm6, %v5854_v23, %v5850_v27  ;;  %v5866_v39 = vand.u32 2147483647, %v15476_v18  ;;  %v5711_v18 = vadd.f32 %v15536_v5, %v17514_v50  ;;  %vm15673_vm6 = vmor %vm5877_vm0, %vm5878_vm13 }
 0xe58   :  { %8334 = vpow2.f32 %v7395_v53  ;;  %v5865_v53 = vsel %vm15604_vm1, %v15496_v48, %v5861_v24  ;;  %v5889_v23 = vsub.f32 1.0, %v15547_v25  ;;  %v5929_v27 = vor.u32 1.1754944e-38, %v5928_v33  ;;  %vm15704_vm1 = vmor %vm5952_vm4, %vm5953_vm7 }
 0xe59   :  { %v5869_v48 = vor.u32 1.1754944e-38, %v5868_v26  ;;  %v17554_v59 = vsub.f32 1.0, %v15521_v32  ;;  %vm5867_vm3 = vcmp.eq.f32.partialorder %v5866_v39, 8.507059e+37  ;;  %vm5927_vm8 = vcmp.eq.f32.partialorder %v5926_v56, 8.507059e+37 }
 0xe5a   :  { %v5769_v51 = vpop.f32.mrf.mxu1  ;;  %v5949_v25 = vsub.f32 1.0, %v5948_v8  ;;  %v5936_v31 = vadd.f32 %v15554_v20, %v5935_v6  ;;  %v5881_v56 = vand.u32 2147483647, %v15478_v21  ;;  %v5944_v6 = vor.u32 1.1754944e-38, %v5943_v35 }
 0xe5b   :  { %v8329_v52 = vpop.eup %8328  ;;  %v5791_v42 = vadd.f32 %v5769_v51, %v5710_v58  ;;  %v5875_v5 = vmul.f32 %v15502_v43, %v17554_v59  ;;  %v5870_v11 = vsel %vm5867_vm3, %v5869_v48, %v5865_v53  ;;  %v5930_v51 = vsel %vm5927_vm8, %v5929_v27, %v5925_v22 }
 0xe5c   :  { %v6030_v37 = vmul.f32 %v8329_v52, %v5855_v0  ;;  %v8331_v12 = vpop.eup %8330  ;;  %v5940_v9 = vsel %vm15657_vm5, %v15554_v20, %v5936_v31  ;;  %vm5942_vm12 = vcmp.eq.f32.partialorder %v5941_v45, 8.507059e+37  ;;  %v5890_v8 = vmul.f32 %v15524_v7, %v5889_v23  ;;  %v17581_v31 = vld [vmem:[#allocation36_spill] sm:$0xff] }
 0xe5d   :  { %8336 = vtanh.f32 %v5791_v42  ;;  %v8333_v1 = vpop.eup %8332  ;;  %v15638_v24 = vadd.f32 1.0, %v8331_v12  ;;  %v5876_v26 = vadd.f32 %v15502_v43, %v5875_v5  ;;  %v5883_v12 = vand.u32 2147483648, %v15478_v21 }
 0xe5e   :  { %v15628_v16 = vadd.f32 %v6030_v37, %v6026_v15  ;;  %v8335_v14 = vpop.eup %8334  ;;  %v15642_v33 = vadd.f32 1.0, %v8333_v1  ;;  %8338 = vrcp.f32 %v15626_v38  ;;  %v6027_v15 = vmul.f32 %v5930_v51, %v15209_v46 }
 0xe5f   :  { %v15646_v0 = vadd.f32 1.0, %v8335_v14  ;;  %8340 = vrcp.f32 %v15638_v24  ;;  %v5950_v46 = vmul.f32 %v15591_v10, %v5949_v25  ;;  %v5880_v21 = vsel %vm15673_vm6, %v15502_v43, %v5876_v26 }
 0xe60   :  { %v5884_v20 = vor.u32 1.1754944e-38, %v5883_v12  ;;  %v5945_v22 = vsel %vm5942_vm12, %v5944_v6, %v5940_v9  ;;  %v5712_v1 = vadd.f32 %v15542_v60, %v17520_v47  ;;  %v5958_v48 = vand.u32 2147483648, %v15538_v62 }
 0xe61   :  { %vm5882_vm15 = vcmp.eq.f32.partialorder %v5881_v56, 8.507059e+37  ;;  %v5951_v43 = vadd.f32 %v15591_v10, %v5950_v46  ;;  %v6028_v60 = vmul.f32 %v5945_v22, %v15254_v29  ;;  %v5891_v25 = vadd.f32 %v15524_v7, %v5890_v8 }
 0xe62   :  { %v5772_v32 = vpop.f32.mrf.mxu1  ;;  %v5885_v14 = vsel %vm5882_vm15, %v5884_v20, %v5880_v21  ;;  %vm6012_vm13 = vweird.f32 %v15626_v38  ;;  %vm5997_vm12 = vweird.f32 %v15638_v24  ;;  %vm5982_vm15 = vweird.f32 %v15642_v33 }
 0xe63   :  { %v8337_v52 = vpop.eup %8336  ;;  %v5792_v42 = vadd.f32 %v5772_v32, %v5711_v18  ;;  %v5956_v32 = vand.u32 2147483647, %v15538_v62  ;;  %v5955_v62 = vsel %vm15704_vm1, %v15591_v10, %v5951_v43  ;;  %v5895_v56 = vsel %vm5894_vm10, %v15524_v7, %v5891_v25 }
 0xe64   :  { %v6031_v37 = vmul.f32 %v8337_v52, %v5870_v11  ;;  %v15677_v18 = vpop.eup %8338  ;;  %vm5967_vm10 = vweird.f32 %v15646_v0 }
 0xe65   :  { %8342 = vtanh.f32 %v5792_v42  ;;  %v15687_v27 = vpop.eup %8340  ;;  %v6008_v23 = vmul.f32 %v15677_v18, %v15626_v38  ;;  %v5898_v42 = vand.u32 2147483648, %v15486_v3  ;;  %vm5957_vm3 = vcmp.eq.f32.partialorder %v5956_v32, 8.507059e+37 }
 0xe66   :  { %8344 = vrcp.f32 %v15642_v33  ;;  %v15666_v58 = vadd.f32 %v6031_v37, %v6027_v15  ;;  %v5993_v52 = vmul.f32 %v15687_v27, %v15638_v24  ;;  %v5896_v15 = vand.u32 2147483647, %v15486_v3 }
 0xe67   :  { %8346 = vrcp.f32 %v15646_v0  ;;  %v5959_v37 = vor.u32 1.1754944e-38, %v5958_v48  ;;  %v6009_v39 = vsub.f32 1.0, %v6008_v23  ;;  %v5899_v46 = vor.u32 1.1754944e-38, %v5898_v42 }
 0xe68   :  { %v5994_v9 = vsub.f32 1.0, %v5993_v52  ;;  %vm5897_vm8 = vcmp.eq.f32.partialorder %v5896_v15, 8.507059e+37  ;;  %v6016_v48 = vand.u32 2147483647, %v15626_v38  ;;  %vm6013_vm11 = vweird.f32 %v15677_v18 }
 0xe69   :  { %v5960_v3 = vsel %vm5957_vm3, %v5959_v37, %v5955_v62  ;;  %v5900_v10 = vsel %vm5897_vm8, %v5899_v46, %v5895_v56  ;;  %v6010_v53 = vmul.f32 %v15677_v18, %v6009_v39  ;;  %vm5998_vm5 = vweird.f32 %v15687_v27  ;;  %vm15743_vm0 = vmor %vm6012_vm13, %vm6013_vm11 }
 0xe6a   :  { %v5775_v59 = vpop.f32.mrf.mxu1  ;;  %v6029_v8 = vmul.f32 %v5960_v3, %v15271_v36  ;;  %v5995_v22 = vmul.f32 %v15687_v27, %v5994_v9  ;;  %v6018_v36 = vand.u32 2147483648, %v15626_v38  ;;  %vm15747_vm6 = vcmp.eq.f32.partialorder %v6016_v48, 8.507059e+37  ;;  %vm15760_vm7 = vmor %vm5997_vm12, %vm5998_vm5 }
 0xe6b   :  { %v8343_v5 = vpop.eup %8342  ;;  %v5793_v35 = vadd.f32 %v5775_v59, %v5712_v1  ;;  %v6011_v59 = vadd.f32 %v15677_v18, %v6010_v53  ;;  %v5988_v52 = vand.u32 2147483648, %v15642_v33 }
 0xe6c   :  { %v15695_v11 = vpop.eup %8344  ;;  %v6032_v51 = vmul.f32 %v8343_v5, %v5885_v14  ;;  %v5996_v5 = vadd.f32 %v15687_v27, %v5995_v22  ;;  %v6019_v32 = vor.u32 1.1754944e-38, %v6018_v36 }
 0xe6d   :  { %8348 = vtanh.f32 %v5793_v35  ;;  %v15711_v29 = vpop.eup %8346  ;;  %v5978_v45 = vmul.f32 %v15695_v11, %v15642_v33  ;;  %v6015_v38 = vsel %vm15743_vm0, %v15677_v18, %v6011_v59  ;;  %vm5983_vm4 = vweird.f32 %v15695_v11  ;;  %v17577_v59 = vld [vmem:[#allocation51_spill] sm:$0xff]  ;;  %v17579_v35 = vld [vmem:[#allocation38_spill] sm:$0xff] }
 0xe6e   :  { %v15713_v26 = vadd.f32 %v6032_v51, %v6028_v60  ;;  %v5963_v12 = vmul.f32 %v15711_v29, %v15646_v0  ;;  %v6001_v60 = vand.u32 2147483647, %v15638_v24  ;;  %v6003_v51 = vand.u32 2147483648, %v15638_v24  ;;  %vm15777_vm9 = vmor %vm5982_vm15, %vm5983_vm4 }
 0xe6f   :  { %v5979_v21 = vsub.f32 1.0, %v5978_v45  ;;  %v6000_v24 = vsel %vm15760_vm7, %v15687_v27, %v5996_v5  ;;  %v5986_v18 = vand.u32 2147483647, %v15642_v33  ;;  %vm5968_vm14 = vweird.f32 %v15711_v29 }
 0xe70   :  { %v5964_v1 = vsub.f32 1.0, %v5963_v12  ;;  %8350 = vtanh.f32 %v15713_v26  ;;  %v6020_v37 = vsel %vm15747_vm6, %v6019_v32, %v6015_v38  ;;  %vm6002_vm1 = vcmp.eq.f32.partialorder %v6001_v60, 8.507059e+37  ;;  %vm5969_vm3 = vmor %vm5967_vm10, %vm5968_vm14 }
 0xe71   :  { %v5980_v43 = vmul.f32 %v15695_v11, %v5979_v21  ;;  %v6004_v45 = vor.u32 1.1754944e-38, %v6003_v51  ;;  %v5973_v27 = vand.u32 2147483648, %v15646_v0  ;;  %v5971_v12 = vand.u32 2147483647, %v15646_v0 }
 0xe72   :  { %v5965_v23 = vmul.f32 %v15711_v29, %v5964_v1  ;;  %v5989_v9 = vor.u32 1.1754944e-38, %v5988_v52  ;;  %vm5987_vm8 = vcmp.eq.f32.partialorder %v5986_v18, 8.507059e+37  ;;  %v17576_v1 = vld [vmem:[#allocation31_spill] sm:$0xff] }
 0xe73   :  { %v8349_v6 = vpop.eup %8348  ;;  %v5981_v25 = vadd.f32 %v15695_v11, %v5980_v43  ;;  %v6005_v3 = vsel %vm6002_vm1, %v6004_v45, %v6000_v24  ;;  %vm5972_vm11 = vcmp.eq.f32.partialorder %v5971_v12, 8.507059e+37 }
 0xe74   :  { %v6033_v20 = vmul.f32 %v8349_v6, %v5900_v10  ;;  %v5966_v15 = vadd.f32 %v15711_v29, %v5965_v23  ;;  %v17578_v23 = vld [vmem:[#allocation27_spill] sm:$0xff] }
 0xe75   :  { %v5985_v33 = vsel %vm15777_vm9, %v15695_v11, %v5981_v25  ;;  %v17580_v25 = vld [vmem:[#allocation55_spill] sm:$0xff] }
 0xe76   :  { %v15730_v7 = vadd.f32 %v6033_v20, %v6029_v8  ;;  %v8351_v42 = vpop.eup %8350  ;;  %v5970_v10 = vsel %vm5969_vm3, %v15711_v29, %v5966_v15  ;;  %v5990_v21 = vsel %vm5987_vm8, %v5989_v9, %v5985_v33  ;;  %v5974_v8 = vor.u32 1.1754944e-38, %v5973_v27 }
 0xe77   :  { %v6044_v6 = vmul.f32 %v8351_v42, %v6005_v3  ;;  %v17584_v3 = vld [vmem:[#allocation43_spill] sm:$0xff] }
 0xe78   :  { %8352 = vtanh.f32 %v15730_v7  ;;  %v5975_v11 = vsel %vm5972_vm11, %v5974_v8, %v5970_v10 }
 0xe79   :  { %8354 = vtanh.f32 %v15666_v58 }
 0xe7a   :  { %8356 = vtanh.f32 %v15628_v16 }
 0xe7e   :  { %v8353_v62 = vpop.eup %8352 }
 0xe7f   :  { %v6045_v56 = vmul.f32 %v8353_v62, %v6020_v37  ;;  %v8355_v46 = vpop.eup %8354  ;;  %v17582_v62 = vld [vmem:[#allocation40_spill] sm:$0xff] }
 0xe80   :  { %v8357_v53 = vpop.eup %8356  ;;  %v6043_v20 = vmul.f32 %v8355_v46, %v5990_v21  ;;  %v17585_v21 = vld [vmem:[#allocation53_spill] sm:$0xff] }
 0xe81   :  { %6093 = vmatpush.msrb.mxu2 %v6045_v56  ;;  %v6042_v22 = vmul.f32 %v8357_v53, %v5975_v11  ;;  %v17583_v56 = vld [vmem:[#allocation57_spill] sm:$0xff] }
 0xe83   :  { %6094 = vmatpush.msrb.mxu2 %v6044_v6 }
 0xe85   :  { %6095 = vmatpush.msrb.mxu2 %v6043_v20 }
 0xe87   :  { %6096 = vmatpush.msrb.mxu2 %v6042_v22 }
 0xe88   :  { %7399 = vmatmul.msk.f32.vlgmr.msrb.gmra.mxu2 %vm369_vm2, %v15330_v17  ;;  %v17569_v17 = vld [vmem:[#allocation70_spill] sm:$0xff] }
 0xe90   :  { %7400 = vmatmul.msk.f32.gmra.mxu2 %vm369_vm2, %v15337_v30  ;;  %v17570_v30 = vld [vmem:[#allocation15_spill] sm:$0xff] }
 0xe98   :  { %7401 = vmatmul.msk.f32.gmra.mxu2 %vm369_vm2, %v15344_v54  ;;  %v17571_v54 = vld [vmem:[#allocation48_spill] sm:$0xff] }
 0xea0   :  { %7402 = vmatmul.msk.f32.gmra.mxu2 %vm369_vm2, %v15351_v41  ;;  %v15821_v41 = vperm.slane %v17571_v54, 1 }
 0xea2   :  { %v6051_v48 = vmul.f32 %v15821_v41, %v17576_v1  ;;  %v6052_v14 = vmul.f32 %v15821_v41, %v17578_v23  ;;  %v6053_v32 = vmul.f32 %v15821_v41, %v17580_v25  ;;  %v6054_v37 = vmul.f32 %v15821_v41, %v17582_v62 }
 0xea3   :  { %v6055_v9 = vmul.f32 %v15821_v41, %v17584_v3 }
 0xea4   :  { %v6067_v43 = vadd.f32 %v6051_v48, %v17577_v59  ;;  %v6068_v60 = vadd.f32 %v6052_v14, %v17579_v35  ;;  %v6069_v52 = vadd.f32 %v6053_v32, %v17581_v31  ;;  %v6070_v33 = vadd.f32 %v6054_v37, %v17583_v56 }
 0xea5   :  { %v6071_v8 = vadd.f32 %v6055_v9, %v17585_v21  ;;  %v17590_v9 = vld [vmem:[#allocation42_spill] sm:$0xff]  ;;  %v17598_v21 = vld [vmem:[#allocation64_spill] sm:$0xff] }
 0xea8   :  { %7403 = vmatmul.msk.f32.gmra.mxu2 %vm369_vm2, %v15358_v34  ;;  %v17572_v34 = vld [vmem:[#allocation47_spill] sm:$0xff] }
 0xeb0   :  { %7404 = vmatmul.msk.f32.gmra.mxu2 %vm369_vm2, %v15365_v40  ;;  %v6049_v40 = vmul.f32 %v15821_v41, %v17572_v34 }
 0xeb8   :  { %7405 = vmatmul.msk.f32.gmra.mxu2 %vm369_vm2, %v15372_v61  ;;  %v17573_v61 = vld [vmem:[#allocation34_spill] sm:$0xff] }
 0xec0   :  { %7406 = vmatmul.msk.f32.gmra.mxu2 %vm369_vm2, %v15379_v13  ;;  %v6065_v13 = vadd.f32 %v6049_v40, %v17573_v61 }
 0xec8   :  { %7407 = vmatmul.msk.f32.gmra.mxu2 %vm369_vm2, %v15386_v19 }
 0xed0   :  { %7408 = vmatmul.msk.f32.gmra.mxu2 %vm369_vm2, %v15393_v44 }
 0xed8   :  { %7409 = vmatmul.msk.f32.gmra.mxu2 %vm369_vm2, %v15400_v4  ;;  %v17574_v4 = vld [vmem:[#allocation45_spill] sm:$0xff] }
 0xee0   :  { %7410 = vmatmul.msk.f32.gmra.mxu2 %vm369_vm2, %v15407_v49  ;;  %v6050_v49 = vmul.f32 %v15821_v41, %v17574_v4 }
 0xee8   :  { %7411 = vmatmul.msk.f32.gmra.mxu2 %vm369_vm2, %v15414_v57  ;;  %v17575_v57 = vld [vmem:[#allocation35_spill] sm:$0xff] }
 0xef0   :  { %7412 = vmatmul.msk.f32.gmra.mxu2 %vm369_vm2, %v15421_v63  ;;  %v6066_v63 = vadd.f32 %v6050_v49, %v17575_v57 }
 0xef8   :  { %7413 = vmatmul.msk.f32.gmra.mxu2 %vm369_vm2, %v17569_v17 }
 0xf00   :  { %7414 = vmatmul.msk.f32.gmra.mxu2 %vm369_vm2, %v17570_v30  ;;  %v17586_v30 = vld [vmem:[#allocation19_spill] sm:$0xff] }
 0xf01   :  { %v6056_v54 = vmul.f32 %v15821_v41, %v17586_v30 }
 0xf0b   :  { %v6098_v19 = vpop.f32.mrf.mxu2 }
 0xf0c   :  { %v6146_v44 = vadd.f32 %v6098_v19, %v6065_v13 }
 0xf0e   :  { %v7415_v27 = vmul.f32 -1.442695, %v6146_v44 }
 0xf13   :  { %v6101_v0 = vpop.f32.mrf.mxu2 }
 0xf14   :  { %v6147_v29 = vadd.f32 %v6101_v0, %v6066_v63  ;;  %v17587_v0 = vld [vmem:[#allocation49_spill] sm:$0xff] }
 0xf16   :  { %v7416_v46 = vmul.f32 -1.442695, %v6147_v29  ;;  %v6072_v29 = vadd.f32 %v6056_v54, %v17587_v0 }
 0xf1b   :  { %v6104_v36 = vpop.f32.mrf.mxu2 }
 0xf1c   :  { %v6148_v5 = vadd.f32 %v6104_v36, %v6067_v43 }
 0xf1e   :  { %v7417_v6 = vmul.f32 -1.442695, %v6148_v5 }
 0xf23   :  { %v6107_v51 = vpop.f32.mrf.mxu2 }
 0xf24   :  { %v6149_v38 = vadd.f32 %v6107_v51, %v6068_v60 }
 0xf26   :  { %v7418_v22 = vmul.f32 -1.442695, %v6149_v38 }
 0xf2b   :  { %v6110_v42 = vpop.f32.mrf.mxu2 }
 0xf2c   :  { %v6150_v24 = vadd.f32 %v6110_v42, %v6069_v52 }
 0xf2e   :  { %v7419_v39 = vmul.f32 -1.442695, %v6150_v24 }
 0xf30   :  { %8358 = vpow2.f32 %v7419_v39 }
 0xf31   :  { %8360 = vpow2.f32 %v7415_v27 }
 0xf32   :  { %8362 = vpow2.f32 %v7416_v46 }
 0xf33   :  { %v6113_v18 = vpop.f32.mrf.mxu2  ;;  %8364 = vpow2.f32 %v7417_v6  ;;  %v6058_v6 = vmul.f32 %v15821_v41, %v17590_v9  ;;  %v17597_v9 = vld [vmem:[#allocation71_spill] sm:$0xff] }
 0xf34   :  { %v6151_v12 = vadd.f32 %v6113_v18, %v6070_v33 }
 0xf36   :  { %v7420_v53 = vmul.f32 -1.442695, %v6151_v12  ;;  %v8359_v20 = vpop.eup %8358  ;;  %v17589_v12 = vld [vmem:[#allocation58_spill] sm:$0xff] }
 0xf37   :  { %v8361_v11 = vpop.eup %8360  ;;  %v15848_v40 = vadd.f32 1.0, %v8359_v20  ;;  %v6057_v46 = vmul.f32 %v15821_v41, %v17589_v12 }
 0xf38   :  { %8366 = vpow2.f32 %v7420_v53  ;;  %v15850_v13 = vadd.f32 1.0, %v8361_v11  ;;  %v8363_v44 = vpop.eup %8362  ;;  %v17591_v53 = vld [vmem:[#allocation37_spill] sm:$0xff] }
 0xf39   :  { %8368 = vpow2.f32 %v7418_v22  ;;  %v8365_v63 = vpop.eup %8364  ;;  %v15857_v43 = vadd.f32 1.0, %v8363_v44  ;;  %v17592_v22 = vld [vmem:[#allocation39_spill] sm:$0xff]  ;;  %v17593_v44 = vld [vmem:[#allocation69_spill] sm:$0xff]  ;;  %vm6275_vm13 = vweird.f32 %v15848_v40 }
 0xf3a   :  { %8370 = vrcp.f32 %v15848_v40  ;;  %v15859_v5 = vadd.f32 1.0, %v8365_v63  ;;  %v17594_v63 = vld [vmem:[#allocation73_spill] sm:$0xff]  ;;  %vm6215_vm12 = vweird.f32 %v15850_v13 }
 0xf3b   :  { %v6116_v15 = vpop.f32.mrf.mxu2  ;;  %8372 = vrcp.f32 %v15850_v13  ;;  %vm6230_vm3 = vweird.f32 %v15857_v43 }
 0xf3c   :  { %v6152_v17 = vadd.f32 %v6116_v15, %v6071_v8  ;;  %v17588_v15 = vld [vmem:[#allocation32_spill] sm:$0xff]  ;;  %v6059_v8 = vmul.f32 %v15821_v41, %v17591_v53 }
 0xf3d   :  { %v6060_v37 = vmul.f32 %v15821_v41, %v17588_v15 }
 0xf3e   :  { %v7421_v49 = vmul.f32 -1.442695, %v6152_v17  ;;  %v8367_v48 = vpop.eup %8366 }
 0xf3f   :  { %v15861_v14 = vadd.f32 1.0, %v8367_v48  ;;  %v8369_v60 = vpop.eup %8368  ;;  %v6076_v17 = vadd.f32 %v6060_v37, %v17592_v22  ;;  %v6073_v22 = vadd.f32 %v6057_v46, %v17538_v55 }
 0xf40   :  { %8374 = vpow2.f32 %v7421_v49  ;;  %v15864_v32 = vpop.eup %8370  ;;  %v15869_v42 = vadd.f32 1.0, %v8369_v60  ;;  %v6061_v49 = vmul.f32 %v15821_v41, %v17593_v44  ;;  %v17595_v44 = vld [vmem:[#allocation44_spill] sm:$0xff] }
 0xf41   :  { %8376 = vrcp.f32 %v15857_v43  ;;  %v15867_v52 = vpop.eup %8372  ;;  %v6271_v18 = vmul.f32 %v15864_v32, %v15848_v40  ;;  %v6075_v15 = vadd.f32 %v6059_v8, %v17595_v44  ;;  %vm6276_vm5 = vweird.f32 %v15864_v32 }
 0xf42   :  { %8378 = vrcp.f32 %v15859_v5  ;;  %v6211_v39 = vmul.f32 %v15867_v52, %v15850_v13  ;;  %vm6216_vm0 = vweird.f32 %v15867_v52  ;;  %vm15947_vm6 = vmor %vm6275_vm13, %vm6276_vm5  ;;  %vm6290_vm14 = vweird.f32 %v15861_v14 }
 0xf43   :  { %v6119_v45 = vpop.f32.mrf.mxu2  ;;  %8380 = vrcp.f32 %v15861_v14  ;;  %v6272_v11 = vsub.f32 1.0, %v6271_v18  ;;  %vm15963_vm7 = vmor %vm6215_vm12, %vm6216_vm0 }
 0xf44   :  { %v6153_v36 = vadd.f32 %v6119_v45, %v6072_v29  ;;  %v6062_v29 = vmul.f32 %v15821_v41, %v17594_v63  ;;  %v6074_v63 = vadd.f32 %v6058_v6, %v17498_v28 }
 0xf46   :  { %v7422_v51 = vmul.f32 -1.442695, %v6153_v36  ;;  %v8375_v24 = vpop.eup %8374  ;;  %v6063_v36 = vmul.f32 %v15821_v41, %v17542_v2  ;;  %v17596_v2 = vld [vmem:[#allocation8_spill] sm:$0xff]  ;;  %v6078_v30 = vadd.f32 %v6062_v29, %v17597_v9 }
 0xf47   :  { %v15876_v45 = vpop.eup %8376  ;;  %v15881_v27 = vadd.f32 1.0, %v8375_v24  ;;  %v6077_v0 = vadd.f32 %v6061_v49, %v17596_v2 }
 0xf48   :  { %8382 = vpow2.f32 %v7422_v51  ;;  %v15883_v33 = vpop.eup %8378  ;;  %v6226_v48 = vmul.f32 %v15876_v45, %v15857_v43  ;;  %v6212_v51 = vsub.f32 1.0, %v6211_v39  ;;  %v6273_v39 = vmul.f32 %v15864_v32, %v6272_v11 }
 0xf49   :  { %8384 = vrcp.f32 %v15869_v42  ;;  %v15891_v20 = vpop.eup %8380  ;;  %v15904_v24 = vmul.f32 %v15883_v33, %v15859_v5  ;;  %v15924_v6 = vadd.f32 %v6063_v36, %v17514_v50  ;;  %vm6231_vm10 = vweird.f32 %v15876_v45 }
 0xf4a   :  { %8386 = vrcp.f32 %v15881_v27  ;;  %v6286_v37 = vmul.f32 %v15891_v20, %v15861_v14  ;;  %v6213_v49 = vmul.f32 %v15867_v52, %v6212_v51  ;;  %vm6291_vm4 = vweird.f32 %v15891_v20  ;;  %vm16003_vm11 = vmor %vm6230_vm3, %vm6231_vm10 }
 0xf4b   :  { %v15843_v10 = vpop.f32.mrf.mxu2  ;;  %v6242_v8 = vsub.f32 1.0, %v15904_v24  ;;  %vm15980_vm9 = vmor %vm6290_vm14, %vm6291_vm4  ;;  %vm6305_vm8 = vweird.f32 %v15881_v27  ;;  %vm6246_vm12 = vweird.f32 %v15883_v33  ;;  %vm6245_vm4 = vweird.f32 %v15859_v5 }
 0xf4c   :  { %v6154_v44 = vadd.f32 %v15843_v10, %v6073_v22  ;;  %v6221_v10 = vand.u32 2147483648, %v15850_v13  ;;  %v6274_v22 = vadd.f32 %v15864_v32, %v6273_v39 }
 0xf4e   :  { %v8383_v60 = vpop.eup %8382 }
 0xf4f   :  { %v15912_v53 = vpop.eup %8384  ;;  %v15921_v12 = vadd.f32 1.0, %v8383_v60 }
 0xf50   :  { %v15931_v29 = vmul.f32 %v15912_v53, %v15869_v42  ;;  %vm6261_vm10 = vweird.f32 %v15912_v53 }
 0xf51   :  { %8388 = vrcp.f32 %v15921_v12  ;;  %vm6320_vm14 = vweird.f32 %v15921_v12 }
 0xf53   :  { %v15852_v19 = vpop.f32.mrf.mxu2 }
 0xf5b   :  { %v6128_v38 = vpop.f32.mrf.mxu2 }
 0xf5c   :  { %v6156_v46 = vadd.f32 %v6128_v38, %v6075_v15  ;;  %v15935_v38 = vpop.eup %8386  ;;  %v6281_v15 = vand.u32 2147483648, %v15848_v40 }
 0xf5d   :  { %vm6306_vm5 = vweird.f32 %v15935_v38 }
 0xf5e   :  { %v7425_v60 = vmul.f32 -1.442695, %v6156_v46  ;;  %v6301_v46 = vmul.f32 %v15935_v38, %v15881_v27 }
 0xf63   :  { %v6131_v54 = vpop.f32.mrf.mxu2 }
 0xf64   :  { %v6157_v18 = vadd.f32 %v6131_v54, %v6076_v17  ;;  %v15919_v17 = vmul.f32 %v15821_v41, %v17598_v21  ;;  %v6227_v54 = vsub.f32 1.0, %v6226_v48  ;;  %v6287_v41 = vsub.f32 1.0, %v6286_v37 }
 0xf65   :  { %v6155_v48 = vadd.f32 %v15852_v19, %v6074_v63  ;;  %v6214_v19 = vadd.f32 %v15867_v52, %v6213_v49  ;;  %v6279_v63 = vand.u32 2147483647, %v15848_v40  ;;  %v6278_v40 = vsel %vm15947_vm6, %v15864_v32, %v6274_v22  ;;  %v15971_v32 = vpop.eup %8388  ;;  %vm16027_vm6 = vmor %vm6305_vm8, %vm6306_vm5 }
 0xf66   :  { %v7426_v11 = vmul.f32 -1.442695, %v6157_v18  ;;  %v7423_v18 = vmul.f32 -1.442695, %v6154_v44  ;;  %v6288_v39 = vmul.f32 %v15891_v20, %v6287_v41  ;;  %v6296_v44 = vand.u32 2147483648, %v15861_v14 }
 0xf67   :  { %v6282_v49 = vor.u32 1.1754944e-38, %v6281_v15  ;;  %vm6280_vm15 = vcmp.eq.f32.partialorder %v6279_v63, 8.507059e+37  ;;  %v6302_v15 = vsub.f32 1.0, %v6301_v46  ;;  %v6294_v63 = vand.u32 2147483647, %v15861_v14 }
 0xf68   :  { %8390 = vpow2.f32 %v7426_v11  ;;  %v6219_v11 = vand.u32 2147483647, %v15850_v13  ;;  %v6218_v13 = vsel %vm15963_vm7, %v15867_v52, %v6214_v19  ;;  %v6297_v37 = vor.u32 1.1754944e-38, %v6296_v44  ;;  %vm16044_vm7 = vmor %vm6245_vm4, %vm6246_vm12 }
 0xf69   :  { %v6283_v22 = vsel %vm6280_vm15, %v6282_v49, %v6278_v40  ;;  %v6236_v40 = vand.u32 2147483648, %v15857_v43  ;;  %vm6295_vm13 = vcmp.eq.f32.partialorder %v6294_v63, 8.507059e+37  ;;  %v6309_v46 = vand.u32 2147483647, %v15881_v27 }
 0xf6a   :  { %vm6220_vm1 = vcmp.eq.f32.partialorder %v6219_v11, 8.507059e+37  ;;  %vm6260_vm8 = vweird.f32 %v15869_v42 }
 0xf6b   :  { %v6134_v36 = vpop.f32.mrf.mxu2  ;;  %vm6310_vm15 = vcmp.eq.f32.partialorder %v6309_v46, 8.507059e+37  ;;  %v6264_v46 = vand.u32 2147483647, %v15869_v42 }
 0xf6c   :  { %v6158_v51 = vadd.f32 %v6134_v36, %v6077_v0  ;;  %v7424_v0 = vmul.f32 -1.442695, %v6155_v48  ;;  %v6222_v48 = vor.u32 1.1754944e-38, %v6221_v10  ;;  %v6228_v36 = vmul.f32 %v15876_v45, %v6227_v54 }
 0xf6d   :  { %v6311_v10 = vand.u32 2147483648, %v15881_v27  ;;  %v6234_v54 = vand.u32 2147483647, %v15857_v43  ;;  %vm6265_vm5 = vcmp.eq.f32.partialorder %v6264_v46, 8.507059e+37 }
 0xf6e   :  { %8392 = vtanh.f32 %v6158_v51  ;;  %v8391_v51 = vpop.eup %8390  ;;  %v6223_v52 = vsel %vm6220_vm1, %v6222_v48, %v6218_v13  ;;  %v6229_v44 = vadd.f32 %v15876_v45, %v6228_v36  ;;  %v6316_v48 = vmul.f32 %v15971_v32, %v15921_v12 }
 0xf6f   :  { %8394 = vpow2.f32 %v7425_v60  ;;  %v6289_v60 = vadd.f32 %v15891_v20, %v6288_v39  ;;  %v6394_v39 = vmul.f32 %v6283_v22, %v15628_v16  ;;  %v15994_v16 = vadd.f32 1.0, %v8391_v51 }
 0xf70   :  { %8396 = vpow2.f32 %v7423_v18  ;;  %v6312_v22 = vor.u32 1.1754944e-38, %v6311_v10  ;;  %v6233_v51 = vsel %vm16003_vm11, %v15876_v45, %v6229_v44  ;;  %vm6235_vm0 = vcmp.eq.f32.partialorder %v6234_v54, 8.507059e+37  ;;  %vm6262_vm11 = vmor %vm6260_vm8, %vm6261_vm10 }
 0xf71   :  { %8398 = vpow2.f32 %v7424_v0  ;;  %v6293_v14 = vsel %vm15980_vm9, %v15891_v20, %v6289_v60  ;;  %v6237_v10 = vor.u32 1.1754944e-38, %v6236_v40  ;;  %vm6321_vm1 = vweird.f32 %v15971_v32 }
 0xf72   :  { %v6298_v43 = vsel %vm6295_vm13, %v6297_v37, %v6293_v14  ;;  %v6326_v20 = vand.u32 2147483648, %v15921_v12  ;;  %vm16075_vm3 = vmor %vm6320_vm14, %vm6321_vm1 }
 0xf73   :  { %v6137_v18 = vpop.f32.mrf.mxu2  ;;  %v6238_v37 = vsel %vm6235_vm0, %v6237_v10, %v6233_v51  ;;  %v6395_v24 = vmul.f32 %v6298_v43, %v15666_v58  ;;  %v6251_v58 = vand.u32 2147483648, %v15859_v5 }
 0xf74   :  { %v8393_v41 = vpop.eup %8392  ;;  %v6159_v19 = vadd.f32 %v6137_v18, %v6078_v30  ;;  %v6303_v30 = vmul.f32 %v15935_v38, %v6302_v15  ;;  %v6257_v15 = vsub.f32 1.0, %v15931_v29  ;;  %v6243_v29 = vmul.f32 %v15883_v33, %v6242_v8 }
 0xf75   :  { %v6398_v0 = vmul.f32 %v8393_v41, %v6223_v52  ;;  %v8395_v11 = vpop.eup %8394  ;;  %v6317_v41 = vsub.f32 1.0, %v6316_v48  ;;  %v6252_v48 = vor.u32 1.1754944e-38, %v6251_v58  ;;  %v6327_v54 = vor.u32 1.1754944e-38, %v6326_v20 }
 0xf76   :  { %8400 = vtanh.f32 %v6159_v19  ;;  %v8397_v49 = vpop.eup %8396  ;;  %v16007_v60 = vadd.f32 1.0, %v8395_v11  ;;  %v6304_v18 = vadd.f32 %v15935_v38, %v6303_v30  ;;  %v6249_v11 = vand.u32 2147483647, %v15859_v5 }
 0xf77   :  { %v15996_v13 = vadd.f32 %v6398_v0, %v6394_v39  ;;  %v8399_v36 = vpop.eup %8398  ;;  %v16017_v52 = vadd.f32 1.0, %v8397_v49  ;;  %8402 = vrcp.f32 %v15994_v16  ;;  %v6244_v0 = vadd.f32 %v15883_v33, %v6243_v29 }
 0xf78   :  { %v16019_v19 = vadd.f32 1.0, %v8399_v36  ;;  %8404 = vrcp.f32 %v16007_v60  ;;  %v6318_v27 = vmul.f32 %v15971_v32, %v6317_v41  ;;  %v6258_v49 = vmul.f32 %v15912_v53, %v6257_v15 }
 0xf79   :  { %v6080_v5 = vadd.f32 %v15919_v17, %v17520_v47  ;;  %vm6250_vm9 = vcmp.eq.f32.partialorder %v6249_v11, 8.507059e+37 }
 0xf7a   :  { %v6319_v43 = vadd.f32 %v15971_v32, %v6318_v27  ;;  %v6259_v41 = vadd.f32 %v15912_v53, %v6258_v49 }
 0xf7b   :  { %v6140_v63 = vpop.f32.mrf.mxu2 }
 0xf7c   :  { %v8401_v45 = vpop.eup %8400  ;;  %v6160_v8 = vadd.f32 %v6140_v63, %v15924_v6  ;;  %v6308_v6 = vsel %vm16027_vm6, %v15935_v38, %v6304_v18  ;;  %v6248_v38 = vsel %vm16044_vm7, %v15883_v33, %v6244_v0  ;;  %v6324_v63 = vand.u32 2147483647, %v15921_v12 }
 0xf7d   :  { %v6399_v39 = vmul.f32 %v8401_v45, %v6238_v37  ;;  %v16048_v40 = vpop.eup %8402  ;;  %v6313_v14 = vsel %vm6310_vm15, %v6312_v22, %v6308_v6  ;;  %v6253_v22 = vsel %vm6250_vm9, %v6252_v48, %v6248_v38  ;;  %v6266_v37 = vand.u32 2147483648, %v15869_v42 }
 0xf7e   :  { %8406 = vtanh.f32 %v6160_v8  ;;  %v16058_v36 = vpop.eup %8404  ;;  %v6376_v15 = vmul.f32 %v16048_v40, %v15994_v16  ;;  %v6396_v29 = vmul.f32 %v6313_v14, %v15713_v26  ;;  %v6323_v12 = vsel %vm16075_vm3, %v15971_v32, %v6319_v43 }
 0xf7f   :  { %8408 = vrcp.f32 %v16019_v19  ;;  %v16041_v44 = vadd.f32 %v6399_v39, %v6395_v24  ;;  %v6361_v26 = vmul.f32 %v16058_v36, %v16007_v60  ;;  %v6263_v58 = vsel %vm6262_vm11, %v15912_v53, %v6259_v41 }
 0xf80   :  { %8410 = vrcp.f32 %v16017_v52  ;;  %v6377_v0 = vsub.f32 1.0, %v6376_v15  ;;  %vm6325_vm13 = vcmp.eq.f32.partialorder %v6324_v63, 8.507059e+37  ;;  %v6267_v27 = vor.u32 1.1754944e-38, %v6266_v37 }
 0xf81   :  { %v6328_v11 = vsel %vm6325_vm13, %v6327_v54, %v6323_v12  ;;  %v6362_v30 = vsub.f32 1.0, %v6361_v26  ;;  %vm6381_vm0 = vweird.f32 %v16048_v40  ;;  %vm6380_vm6 = vweird.f32 %v15994_v16  ;;  %v8636_v26 = vld [vmem:[%s16629_s5 + $0x78] sm:$0xff] }
 0xf82   :  { %v6268_v38 = vsel %vm6265_vm5, %v6267_v27, %v6263_v58  ;;  %v6378_v32 = vmul.f32 %v16048_v40, %v6377_v0  ;;  %v6397_v49 = vmul.f32 %v6328_v11, %v15730_v7  ;;  %v6386_v7 = vand.u32 2147483648, %v15994_v16  ;;  %vm16112_vm4 = vmor %vm6380_vm6, %vm6381_vm0 }
 0xf83   :  { %v6143_v51 = vpop.f32.mrf.mxu2  ;;  %vm6366_vm12 = vweird.f32 %v16058_v36  ;;  %v6371_v41 = vand.u32 2147483648, %v16007_v60  ;;  %vm6365_vm15 = vweird.f32 %v16007_v60  ;;  %vm6350_vm9 = vweird.f32 %v16019_v19 }
 0xf84   :  { %v8407_v33 = vpop.eup %8406  ;;  %v6161_v10 = vadd.f32 %v6143_v51, %v6080_v5  ;;  %v6363_v5 = vmul.f32 %v16058_v36, %v6362_v30  ;;  %v6384_v51 = vand.u32 2147483647, %v15994_v16  ;;  %v6379_v43 = vadd.f32 %v16048_v40, %v6378_v32  ;;  %vm16129_vm1 = vmor %vm6365_vm15, %vm6366_vm12 }
 0xf85   :  { %v16066_v18 = vpop.eup %8408  ;;  %v6400_v17 = vmul.f32 %v8407_v33, %v6253_v22  ;;  %v6387_v45 = vor.u32 1.1754944e-38, %v6386_v7  ;;  %v6356_v37 = vand.u32 2147483648, %v16019_v19  ;;  %v6372_v0 = vor.u32 1.1754944e-38, %v6371_v41  ;;  %v8626_v7 = vld [vmem:[%s16629_s5 + $0x28] sm:$0xff]  ;;  %v8632_v41 = vld [vmem:[%s16629_s5 + $0x58] sm:$0xff] }
 0xf86   :  { %8412 = vtanh.f32 %v6161_v10  ;;  %v16082_v24 = vpop.eup %8410  ;;  %v6346_v39 = vmul.f32 %v16066_v18, %v16019_v19  ;;  %v6364_v15 = vadd.f32 %v16058_v36, %v6363_v5  ;;  %vm16116_vm7 = vcmp.eq.f32.partialorder %v6384_v51, 8.507059e+37  ;;  %v8623_v51 = vld [vmem:[%s16629_s5 + $0x10] sm:$0xff]  ;;  %v8630_v10 = vld [vmem:[%s16629_s5 + $0x48] sm:$0xff] }
 0xf87   :  { %v16084_v8 = vadd.f32 %v6400_v17, %v6396_v29  ;;  %v6331_v6 = vmul.f32 %v16082_v24, %v16017_v52  ;;  %v6369_v17 = vand.u32 2147483647, %v16007_v60  ;;  %v6383_v16 = vsel %vm16112_vm4, %v16048_v40, %v6379_v43  ;;  %v8624_v43 = vld [vmem:[%s16629_s5 + $0x18] sm:$0xff]  ;;  %v8629_v29 = vld [vmem:[%s16629_s5 + $0x40] sm:$0xff] }
 0xf88   :  { %v6347_v14 = vsub.f32 1.0, %v6346_v39  ;;  %vm6351_vm14 = vweird.f32 %v16066_v18  ;;  %v6368_v60 = vsel %vm16129_vm1, %v16058_v36, %v6364_v15  ;;  %v6354_v40 = vand.u32 2147483647, %v16019_v19  ;;  %v8627_v15 = vld [vmem:[%s16629_s5 + $0x30] sm:$0xff] }
 0xf89   :  { %v6332_v20 = vsub.f32 1.0, %v6331_v6  ;;  %8414 = vtanh.f32 %v16084_v8  ;;  %vm6336_vm10 = vweird.f32 %v16082_v24  ;;  %v6388_v39 = vsel %vm16116_vm7, %v6387_v45, %v6383_v16  ;;  %vm16146_vm8 = vmor %vm6350_vm9, %vm6351_vm14  ;;  %v8633_v16 = vld [vmem:[%s16629_s5 + $0x60] sm:$0xff]  ;;  %v8635_v45 = vld [vmem:[%s16629_s5 + $0x70] sm:$0xff] }
 0xf8a   :  { %v6348_v33 = vmul.f32 %v16066_v18, %v6347_v14  ;;  %vm6370_vm3 = vcmp.eq.f32.partialorder %v6369_v17, 8.507059e+37  ;;  %v6341_v36 = vand.u32 2147483648, %v16017_v52  ;;  %vm6335_vm11 = vweird.f32 %v16017_v52  ;;  %v8631_v17 = vld [vmem:[%s16629_s5 + $0x50] sm:$0xff] }
 0xf8b   :  { %v6333_v22 = vmul.f32 %v16082_v24, %v6332_v20  ;;  %v6339_v27 = vand.u32 2147483647, %v16017_v52  ;;  %v6373_v30 = vsel %vm6370_vm3, %v6372_v0, %v6368_v60  ;;  %vm6337_vm13 = vmor %vm6335_vm11, %vm6336_vm10  ;;  %vm6355_vm5 = vcmp.eq.f32.partialorder %v6354_v40, 8.507059e+37  ;;  %v8621_v52 = vld [vmem:[%s16629_s5] sm:$0xff] }
 0xf8c   :  { %v8413_v42 = vpop.eup %8412  ;;  %v6349_v63 = vadd.f32 %v16066_v18, %v6348_v33  ;;  %v8625_v33 = vld [vmem:[%s16629_s5 + $0x20] sm:$0xff] }
 0xf8d   :  { %v6401_v48 = vmul.f32 %v8413_v42, %v6268_v38  ;;  %v6334_v12 = vadd.f32 %v16082_v24, %v6333_v22  ;;  %v6357_v42 = vor.u32 1.1754944e-38, %v6356_v37  ;;  %vm6340_vm0 = vcmp.eq.f32.partialorder %v6339_v27, 8.507059e+37  ;;  %v8628_v22 = vld [vmem:[%s16629_s5 + $0x38] sm:$0xff] }
 0xf8e   :  { %v6353_v19 = vsel %vm16146_vm8, %v16066_v18, %v6349_v63  ;;  %v8634_v63 = vld [vmem:[%s16629_s5 + $0x68] sm:$0xff]  ;;  %v17621_v37 = vld [vmem:[#allocation54_spill] sm:$0xff] }
 0xf8f   :  { %v16099_v53 = vadd.f32 %v6401_v48, %v6397_v49  ;;  %v8415_v46 = vpop.eup %8414  ;;  %v6338_v32 = vsel %vm6337_vm13, %v16082_v24, %v6334_v12  ;;  %v6358_v49 = vsel %vm6355_vm5, %v6357_v42, %v6353_v19  ;;  %v6342_v48 = vor.u32 1.1754944e-38, %v6341_v36  ;;  %v8622_v24 = vld [vmem:[%s16629_s5 + $0x8] sm:$0xff]  ;;  %s6870_s5 = sld [smem:[#allocation2 + $0x2]] }
 0xf90   :  { %v6412_v38 = vmul.f32 %v8415_v46, %v6373_v30  ;;  %v16222_v46 = vperm.slane %v17621_v37, 1  ;;  %v17626_v37 = vld [vmem:[#allocation49_spill] sm:$0xff] }
 0xf91   :  { %8416 = vtanh.f32 %v16099_v53  ;;  %v6343_v18 = vsel %vm6340_vm0, %v6342_v48, %v6338_v32 }
 0xf92   :  { %8418 = vtanh.f32 %v16041_v44  ;;  %v6417_v60 = vmul.f32 %v16222_v46, %v17572_v34  ;;  %v6420_v34 = vmul.f32 %v16222_v46, %v17578_v23 }
 0xf93   :  { %8420 = vtanh.f32 %v15996_v13 }
 0xf94   :  { %v6433_v40 = vadd.f32 %v6417_v60, %v17573_v61  ;;  %v6436_v61 = vadd.f32 %v6420_v34, %v17579_v35  ;;  %v6423_v35 = vmul.f32 %v16222_v46, %v17584_v3 }
 0xf97   :  { %v8417_v54 = vpop.eup %8416 }
 0xf98   :  { %v6413_v6 = vmul.f32 %v8417_v54, %v6388_v39  ;;  %v8419_v11 = vpop.eup %8418  ;;  %v6418_v39 = vmul.f32 %v16222_v46, %v17574_v4 }
 0xf99   :  { %v8421_v14 = vpop.eup %8420  ;;  %v6411_v5 = vmul.f32 %v8419_v11, %v6358_v49 }
 0xf9a   :  { %6461 = vmatpush.msrb.mxu3 %v6413_v6  ;;  %v6410_v20 = vmul.f32 %v8421_v14, %v6343_v18  ;;  %v6434_v0 = vadd.f32 %v6418_v39, %v17575_v57  ;;  %v6419_v6 = vmul.f32 %v16222_v46, %v17576_v1  ;;  %v6421_v57 = vmul.f32 %v16222_v46, %v17580_v25  ;;  %v17622_v25 = vld [vmem:[#allocation58_spill] sm:$0xff] }
 0xf9b   :  { %v6422_v1 = vmul.f32 %v16222_v46, %v17582_v62 }
 0xf9c   :  { %6462 = vmatpush.msrb.mxu3 %v6412_v38  ;;  %v6435_v19 = vadd.f32 %v6419_v6, %v17577_v59  ;;  %v6437_v14 = vadd.f32 %v6421_v57, %v17581_v31 }
 0xf9d   :  { %v6438_v48 = vadd.f32 %v6422_v1, %v17583_v56 }
 0xf9e   :  { %6463 = vmatpush.msrb.mxu3 %v6411_v5 }
 0xfa0   :  { %6464 = vmatpush.msrb.mxu3 %v6410_v20 }
 0xfa1   :  { %7427 = vmatmul.msk.f32.vlgmr.msrb.gmra.mxu3 %vm369_vm2, %v8621_v52 }
 0xfa9   :  { %7428 = vmatmul.msk.f32.gmra.mxu3 %vm369_vm2, %v8622_v24  ;;  %v6425_v24 = vmul.f32 %v16222_v46, %v17622_v25 }
 0xfab   :  { %v6441_v56 = vadd.f32 %v6425_v24, %v17538_v55 }
 0xfb1   :  { %7429 = vmatmul.msk.f32.gmra.mxu3 %vm369_vm2, %v8623_v51  ;;  %v17623_v51 = vld [vmem:[#allocation53_spill] sm:$0xff] }
 0xfb9   :  { %7430 = vmatmul.msk.f32.gmra.mxu3 %vm369_vm2, %v8624_v43  ;;  %v6439_v43 = vadd.f32 %v6423_v35, %v17623_v51 }
 0xfc1   :  { %7431 = vmatmul.msk.f32.gmra.mxu3 %vm369_vm2, %v8625_v33 }
 0xfc9   :  { %7432 = vmatmul.msk.f32.gmra.mxu3 %vm369_vm2, %v8626_v7 }
 0xfd1   :  { %7433 = vmatmul.msk.f32.gmra.mxu3 %vm369_vm2, %v8627_v15  ;;  %v17624_v15 = vld [vmem:[#allocation19_spill] sm:$0xff] }
 0xfd9   :  { %7434 = vmatmul.msk.f32.gmra.mxu3 %vm369_vm2, %v8628_v22  ;;  %v6424_v22 = vmul.f32 %v16222_v46, %v17624_v15 }
 0xfdb   :  { %v6440_v60 = vadd.f32 %v6424_v22, %v17626_v37 }
 0xfe1   :  { %7435 = vmatmul.msk.f32.gmra.mxu3 %vm369_vm2, %v8629_v29 }
 0xfe9   :  { %7436 = vmatmul.msk.f32.gmra.mxu3 %vm369_vm2, %v8630_v10 }
 0xff1   :  { %7437 = vmatmul.msk.f32.gmra.mxu3 %vm369_vm2, %v8631_v17 }
 0xff9   :  { %7438 = vmatmul.msk.f32.gmra.mxu3 %vm369_vm2, %v8632_v41 }
0x1001   :  { %7439 = vmatmul.msk.f32.gmra.mxu3 %vm369_vm2, %v8633_v16 }
0x1009   :  { %7440 = vmatmul.msk.f32.gmra.mxu3 %vm369_vm2, %v8634_v63  ;;  %v17625_v63 = vld [vmem:[#allocation42_spill] sm:$0xff] }
0x1011   :  { %7441 = vmatmul.msk.f32.gmra.mxu3 %vm369_vm2, %v8635_v45  ;;  %v6426_v45 = vmul.f32 %v16222_v46, %v17625_v63 }
0x1013   :  { %v6442_v6 = vadd.f32 %v6426_v45, %v17498_v28  ;;  %v6818_v28 = vpop.permute.xlu0 %6817 }
0x1019   :  { %7442 = vmatmul.msk.f32.gmra.mxu3 %vm369_vm2, %v8636_v26 }
0x1024   :  { %v6466_v12 = vpop.f32.mrf.mxu3 }
0x1025   :  { %v6514_v54 = vadd.f32 %v6466_v12, %v6433_v40 }
0x1027   :  { %v7443_v49 = vmul.f32 -1.442695, %v6514_v54 }
0x1029   :  { %8422 = vpow2.f32 %v7443_v49  ;;  %v17628_v49 = vld [vmem:[#allocation44_spill] sm:$0xff] }
0x102c   :  { %v6469_v58 = vpop.f32.mrf.mxu3 }
0x102d   :  { %v6515_v36 = vadd.f32 %v6469_v58, %v6434_v0 }
0x102f   :  { %v7444_v20 = vmul.f32 -1.442695, %v6515_v36  ;;  %v8423_v3 = vpop.eup %8422 }
0x1030   :  { %v16250_v16 = vadd.f32 1.0, %v8423_v3  ;;  %v17633_v3 = vld [vmem:[#allocation39_spill] sm:$0xff] }
0x1032   :  { %vm6583_vm14 = vweird.f32 %v16250_v16 }
0x1034   :  { %v6472_v27 = vpop.f32.mrf.mxu3 }
0x1035   :  { %v6516_v11 = vadd.f32 %v6472_v27, %v6435_v19 }
0x1037   :  { %v7445_v52 = vmul.f32 -1.442695, %v6516_v11 }
0x103c   :  { %v6475_v30 = vpop.f32.mrf.mxu3 }
0x103d   :  { %v6517_v42 = vadd.f32 %v6475_v30, %v6436_v61  ;;  %v16269_v30 = vpop.permute.xlu1 %6784 }
0x103f   :  { %v7446_v31 = vmul.f32 -1.442695, %v6517_v42  ;;  %v17627_v42 = vld [vmem:[#allocation37_spill] sm:$0xff] }
0x1044   :  { %v6478_v38 = vpop.f32.mrf.mxu3 }
0x1045   :  { %v6518_v59 = vadd.f32 %v6478_v38, %v6437_v14  ;;  %v6427_v38 = vmul.f32 %v16222_v46, %v17627_v42  ;;  %v6823_v63 = vpop.permute.xlu1 %6822 }
0x1047   :  { %v7447_v5 = vmul.f32 -1.442695, %v6518_v59 }
0x1049   :  { %8424 = vpow2.f32 %v7447_v5 }
0x104a   :  { %8426 = vpow2.f32 %v7444_v20 }
0x104b   :  { %8428 = vpow2.f32 %v7445_v52  ;;  %v17631_v52 = vld [vmem:[#allocation73_spill] sm:$0xff] }
0x104c   :  { %v6481_v4 = vpop.f32.mrf.mxu3  ;;  %8430 = vpow2.f32 %v7446_v31  ;;  %v6430_v25 = vmul.f32 %v16222_v46, %v17631_v52 }
0x104d   :  { %v6519_v18 = vadd.f32 %v6481_v4, %v6438_v48  ;;  %v6443_v48 = vadd.f32 %v6427_v38, %v17628_v49 }
0x104f   :  { %v7448_v62 = vmul.f32 -1.442695, %v6519_v18  ;;  %v8425_v17 = vpop.eup %8424  ;;  %v17630_v18 = vld [vmem:[#allocation69_spill] sm:$0xff] }
0x1050   :  { %v8427_v41 = vpop.eup %8426  ;;  %v16255_v12 = vadd.f32 1.0, %v8425_v17  ;;  %v6429_v20 = vmul.f32 %v16222_v46, %v17630_v18  ;;  %v16309_v17 = vadd.f32 %v6430_v25, %v17597_v9 }
0x1051   :  { %8432 = vpow2.f32 %v7448_v62  ;;  %v8429_v26 = vpop.eup %8428  ;;  %v16257_v39 = vadd.f32 1.0, %v8427_v41  ;;  %v6432_v41 = vmul.f32 %v16222_v46, %v17598_v21 }
0x1052   :  { %v8431_v40 = vpop.eup %8430  ;;  %v16260_v36 = vadd.f32 1.0, %v8429_v26  ;;  %v6649_v38 = vand.u32 2147483648, %v16255_v12  ;;  %vm6643_vm2 = vweird.f32 %v16255_v12 }
0x1053   :  { %v16263_v19 = vadd.f32 1.0, %v8431_v40  ;;  %v17634_v40 = vld [vmem:[#allocation61_spill] sm:$0xff]  ;;  %vm6598_vm10 = vweird.f32 %v16257_v39 }
0x1054   :  { %v6484_v32 = vpop.f32.mrf.mxu3  ;;  %v16326_v21 = vmul.f32 %v6818_v28, %v17634_v40  ;;  %v6650_v25 = vor.u32 1.1754944e-38, %v6649_v38  ;;  %v6647_v40 = vand.u32 2147483647, %v16255_v12 }
0x1055   :  { %v6520_v33 = vadd.f32 %v6484_v32, %v6439_v43 }
0x1056   :  { %vm6648_vm3 = vcmp.eq.f32.partialorder %v6647_v40, 8.507059e+37 }
0x1057   :  { %v7449_v10 = vmul.f32 -1.442695, %v6520_v33  ;;  %v8433_v54 = vpop.eup %8432  ;;  %v17632_v33 = vld [vmem:[#allocation62_spill] sm:$0xff] }
0x1058   :  { %v16266_v27 = vadd.f32 1.0, %v8433_v54 }
0x1059   :  { %8434 = vpow2.f32 %v7449_v10  ;;  %v6445_v10 = vadd.f32 %v6429_v20, %v17596_v2 }
0x105a   :  { %8436 = vrcp.f32 %v16250_v16  ;;  %v6664_v49 = vand.u32 2147483648, %v16266_v27  ;;  %vm6658_vm4 = vweird.f32 %v16266_v27  ;;  %v6662_v40 = vand.u32 2147483647, %v16266_v27 }
0x105c   :  { %v6487_v23 = vpop.f32.mrf.mxu3 }
0x105d   :  { %v6521_v0 = vadd.f32 %v6487_v23, %v6440_v60  ;;  %v17629_v23 = vld [vmem:[#allocation32_spill] sm:$0xff]  ;;  %v6828_v60 = vpop.permute.xlu0 %6827 }
0x105e   :  { %v6428_v35 = vmul.f32 %v16222_v46, %v17629_v23 }
0x105f   :  { %v7450_v34 = vmul.f32 -1.442695, %v6521_v0  ;;  %v8435_v61 = vpop.eup %8434 }
0x1060   :  { %v16275_v4 = vpop.eup %8436  ;;  %v16278_v14 = vadd.f32 1.0, %v8435_v61  ;;  %v6444_v15 = vadd.f32 %v6428_v35, %v17633_v3  ;;  %v6589_v3 = vand.u32 2147483648, %v16250_v16 }
0x1061   :  { %vm6584_vm7 = vweird.f32 %v16275_v4 }
0x1062   :  { %v6679_v23 = vand.u32 2147483648, %v16278_v14  ;;  %vm16405_vm9 = vmor %vm6583_vm14, %vm6584_vm7  ;;  %vm6673_vm0 = vweird.f32 %v16278_v14  ;;  %vm6663_vm7 = vcmp.eq.f32.partialorder %v6662_v40, 8.507059e+37  ;;  %vm6613_vm14 = vweird.f32 %v16260_v36 }
0x1064   :  { %v6490_v7 = vpop.f32.mrf.mxu3 }
0x1065   :  { %v6522_v29 = vadd.f32 %v6490_v7, %v6441_v56  ;;  %v6431_v56 = vmul.f32 %v16222_v46, %v17632_v33  ;;  %v17635_v46 = vld [vmem:[#allocation59_spill] sm:$0xff]  ;;  %v16365_v33 = vor.u32 1.1754944e-38, %v6664_v49 }
0x1066   :  { %v16329_v54 = vmul.f32 %v6823_v63, %v17635_v46 }
0x1067   :  { %v7451_v55 = vmul.f32 -1.442695, %v6522_v29  ;;  %v6579_v29 = vmul.f32 %v16275_v4, %v16250_v16  ;;  %v16323_v9 = vadd.f32 %v6431_v56, %v17514_v50  ;;  %v6587_v56 = vand.u32 2147483647, %v16250_v16 }
0x1069   :  { %8438 = vpow2.f32 %v7451_v55  ;;  %v6580_v42 = vsub.f32 1.0, %v6579_v29  ;;  %vm16392_vm1 = vcmp.eq.f32.partialorder %v6587_v56, 8.507059e+37 }
0x106a   :  { %8440 = vrcp.f32 %v16255_v12 }
0x106b   :  { %8442 = vrcp.f32 %v16257_v39 }
0x106c   :  { %v6493_v58 = vpop.f32.mrf.mxu3  ;;  %8444 = vrcp.f32 %v16260_v36 }
0x106d   :  { %v6523_v11 = vadd.f32 %v6493_v58, %v6442_v6  ;;  %8446 = vrcp.f32 %v16263_v19 }
0x106e   :  { %8448 = vrcp.f32 %v16266_v27 }
0x106f   :  { %v7452_v57 = vmul.f32 -1.442695, %v6523_v11  ;;  %v8439_v32 = vpop.eup %8438  ;;  %8450 = vpow2.f32 %v7450_v34  ;;  %v17636_v34 = vld [vmem:[#allocation63_spill] sm:$0xff] }
0x1070   :  { %v16280_v59 = vpop.eup %8440  ;;  %v16293_v31 = vadd.f32 1.0, %v8439_v32  ;;  %v16340_v61 = vmul.f32 %v6828_v60, %v17636_v34 }
0x1071   :  { %v16285_v5 = vpop.eup %8442  ;;  %8452 = vpow2.f32 %v7452_v57  ;;  %v6639_v62 = vmul.f32 %v16280_v59, %v16255_v12  ;;  %v16346_v57 = vadd.f32 %v6432_v41, %v17520_v47  ;;  %vm6644_vm6 = vweird.f32 %v16280_v59 }
0x1072   :  { %v16291_v24 = vpop.eup %8444  ;;  %8454 = vrcp.f32 %v16278_v14  ;;  %v16315_v45 = vmul.f32 %v16285_v5, %v16257_v39  ;;  %vm16387_vm15 = vmor %vm6643_vm2, %vm6644_vm6  ;;  %vm6703_vm8 = vweird.f32 %v16293_v31  ;;  %vm6599_vm13 = vweird.f32 %v16285_v5 }
0x1073   :  { %v16295_v43 = vpop.eup %8446  ;;  %v16319_v26 = vmul.f32 %v16291_v24, %v16260_v36  ;;  %8456 = vrcp.f32 %v16293_v31  ;;  %v6640_v2 = vsub.f32 1.0, %v6639_v62  ;;  %v6581_v62 = vmul.f32 %v16275_v4, %v6580_v42  ;;  %vm16449_vm6 = vmor %vm6598_vm10, %vm6599_vm13 }
0x1074   :  { %v6496_v1 = vpop.f32.mrf.mxu3  ;;  %v16302_v7 = vpop.eup %8448  ;;  %v16333_v58 = vmul.f32 %v16295_v43, %v16263_v19  ;;  %v6595_v32 = vsub.f32 1.0, %v16315_v45 }
0x1075   :  { %v6524_v51 = vadd.f32 %v6496_v1, %v6443_v48  ;;  %v8451_v22 = vpop.eup %8450  ;;  %v6654_v6 = vmul.f32 %v16302_v7, %v16266_v27  ;;  %v6610_v1 = vsub.f32 1.0, %v16319_v26  ;;  %v6641_v48 = vmul.f32 %v16280_v59, %v6640_v2 }
0x1076   :  { %v16337_v11 = vadd.f32 1.0, %v8451_v22  ;;  %v6625_v47 = vsub.f32 1.0, %v16333_v58  ;;  %vm6659_vm12 = vweird.f32 %v16302_v7  ;;  %v6596_v12 = vmul.f32 %v16285_v5, %v6595_v32 }
0x1077   :  { %v7453_v37 = vmul.f32 -1.442695, %v6524_v51  ;;  %v8453_v0 = vpop.eup %8452  ;;  %v6655_v20 = vsub.f32 1.0, %v6654_v6  ;;  %v6642_v41 = vadd.f32 %v16280_v59, %v6641_v48  ;;  %v6590_v6 = vor.u32 1.1754944e-38, %v6589_v3  ;;  %vm16437_vm5 = vmor %vm6658_vm4, %vm6659_vm12 }
0x1078   :  { %v16342_v50 = vpop.eup %8454  ;;  %v16354_v35 = vadd.f32 1.0, %v8453_v0  ;;  %v6694_v60 = vand.u32 2147483648, %v16337_v11  ;;  %v6602_v48 = vand.u32 2147483647, %v16257_v39  ;;  %v6604_v32 = vand.u32 2147483648, %v16257_v39  ;;  %v16444_v0 = vpop.permute.xlu2 %6789 }
0x1079   :  { %8458 = vpow2.f32 %v7453_v37  ;;  %v16356_v18 = vpop.eup %8456  ;;  %v6669_v52 = vmul.f32 %v16342_v50, %v16278_v14  ;;  %v6656_v45 = vmul.f32 %v16302_v7, %v6655_v20  ;;  %v6646_v38 = vsel %vm16387_vm15, %v16280_v59, %v6642_v41 }
0x107a   :  { %8460 = vrcp.f32 %v16337_v11  ;;  %v6699_v22 = vmul.f32 %v16356_v18, %v16293_v31  ;;  %v16403_v49 = vor.u32 1.1754944e-38, %v6694_v60  ;;  %vm6674_vm11 = vweird.f32 %v16342_v50 }
0x107b   :  { %8462 = vrcp.f32 %v16354_v35  ;;  %v6670_v37 = vsub.f32 1.0, %v6669_v52  ;;  %v6707_v52 = vand.u32 2147483647, %v16293_v31  ;;  %v6709_v41 = vand.u32 2147483648, %v16293_v31 }
0x107c   :  { %v6499_v55 = vpop.f32.mrf.mxu3  ;;  %v6700_v34 = vsub.f32 1.0, %v6699_v22  ;;  %vm6704_vm2 = vweird.f32 %v16356_v18  ;;  %vm16453_vm12 = vcmp.eq.f32.partialorder %v6602_v48, 8.507059e+37  ;;  %v6605_v16 = vor.u32 1.1754944e-38, %v6604_v32 }
0x107d   :  { %v6525_v28 = vadd.f32 %v6499_v55, %v6444_v15  ;;  %v16369_v15 = vor.u32 1.1754944e-38, %v6679_v23  ;;  %v6582_v55 = vadd.f32 %v16275_v4, %v6581_v62  ;;  %v6657_v62 = vadd.f32 %v16302_v7, %v6656_v45  ;;  %vm16480_vm15 = vmor %vm6703_vm8, %vm6704_vm2 }
0x107e   :  { %v6701_v3 = vmul.f32 %v16356_v18, %v6700_v34  ;;  %vm16466_vm4 = vcmp.eq.f32.partialorder %v6707_v52, 8.507059e+37  ;;  %v6617_v32 = vand.u32 2147483647, %v16260_v36  ;;  %vm6688_vm10 = vweird.f32 %v16337_v11 }
0x107f   :  { %v7454_v51 = vmul.f32 -1.442695, %v6525_v28  ;;  %v8459_v63 = vpop.eup %8458  ;;  %v6671_v28 = vmul.f32 %v16342_v50, %v6670_v37  ;;  %v6586_v59 = vsel %vm16405_vm9, %v16275_v4, %v6582_v55  ;;  %v6597_v4 = vadd.f32 %v16285_v5, %v6596_v12 }
0x1080   :  { %v16381_v46 = vpop.eup %8460  ;;  %v16396_v42 = vadd.f32 1.0, %v8459_v63  ;;  %v6591_v63 = vsel %vm16392_vm1, %v6590_v6, %v6586_v59  ;;  %v6702_v27 = vadd.f32 %v16356_v18, %v6701_v3  ;;  %v6710_v59 = vor.u32 1.1754944e-38, %v6709_v41 }
0x1081   :  { %8464 = vpow2.f32 %v7454_v51  ;;  %v16411_v23 = vpop.eup %8462  ;;  %v6684_v20 = vmul.f32 %v16381_v46, %v16337_v11  ;;  %v6651_v51 = vsel %vm6648_vm3, %v6650_v25, %v6646_v38  ;;  %v6601_v39 = vsel %vm16449_vm6, %v16285_v5, %v6597_v4  ;;  %vm16509_vm3 = vmor %vm6673_vm0, %vm6674_vm11 }
0x1082   :  { %v6714_v25 = vmul.f32 %v16411_v23, %v16354_v35  ;;  %v6606_v26 = vsel %vm16453_vm12, %v6605_v16, %v6601_v39  ;;  %vm6689_vm1 = vweird.f32 %v16381_v46  ;;  %v6706_v52 = vsel %vm16480_vm15, %v16356_v18, %v6702_v27 }
0x1083   :  { %v6685_v60 = vsub.f32 1.0, %v6684_v20  ;;  %vm6614_vm9 = vweird.f32 %v16291_v24  ;;  %v6677_v41 = vand.u32 2147483647, %v16278_v14  ;;  %vm6718_vm8 = vweird.f32 %v16354_v35 }
0x1084   :  { %v6502_v29 = vpop.f32.mrf.mxu3  ;;  %v6715_v12 = vsub.f32 1.0, %v6714_v25  ;;  %v6724_v25 = vand.u32 2147483648, %v16354_v35  ;;  %vm6719_vm13 = vweird.f32 %v16411_v23  ;;  %vm16523_vm11 = vmor %vm6613_vm14, %vm6614_vm9  ;;  %vm6618_vm2 = vcmp.eq.f32.partialorder %v6617_v32, 8.507059e+37 }
0x1085   :  { %v6526_v2 = vadd.f32 %v6502_v29, %v6445_v10  ;;  %v6686_v20 = vmul.f32 %v16381_v46, %v6685_v60  ;;  %v16530_v60 = vpop.permute.xlu2 %6794  ;;  %vm16550_vm6 = vmor %vm6718_vm8, %vm6719_vm13  ;;  %vm6733_vm12 = vweird.f32 %v16396_v42  ;;  %vm6628_vm15 = vweird.f32 %v16263_v19 }
0x1086   :  { %v6725_v27 = vor.u32 1.1754944e-38, %v6724_v25 }
0x1087   :  { %8466 = vtanh.f32 %v6526_v2  ;;  %v8465_v56 = vpop.eup %8464  ;;  %v6762_v2 = vmul.f32 %v6651_v51, %v15996_v13  ;;  %v6661_v13 = vsel %vm16437_vm5, %v16302_v7, %v6657_v62  ;;  %v6611_v7 = vmul.f32 %v16291_v24, %v6610_v1 }
0x1088   :  { %8468 = vrcp.f32 %v16396_v42  ;;  %v16461_v6 = vadd.f32 1.0, %v8465_v56  ;;  %v6666_v1 = vsel %vm6663_vm7, %v16365_v33, %v6661_v13  ;;  %v6672_v51 = vadd.f32 %v16342_v50, %v6671_v28  ;;  %vm16571_vm7 = vmor %vm6688_vm10, %vm6689_vm1 }
0x1089   :  { %v6716_v33 = vmul.f32 %v16411_v23, %v6715_v12  ;;  %v6763_v18 = vmul.f32 %v6666_v1, %v16041_v44  ;;  %vm6678_vm5 = vcmp.eq.f32.partialorder %v6677_v41, 8.507059e+37  ;;  %v6626_v13 = vmul.f32 %v16295_v43, %v6625_v47  ;;  %v17667_v41 = vld [vmem:[#allocation33_spill] sm:$0xff] }
0x108a   :  { %v6676_v37 = vsel %vm16509_vm3, %v16342_v50, %v6672_v51  ;;  %v6687_v39 = vadd.f32 %v16381_v46, %v6686_v20  ;;  %v6737_v20 = vand.u32 2147483647, %v16396_v42 }
0x108b   :  { %v6627_v5 = vadd.f32 %v16295_v43, %v6626_v13 }
0x108c   :  { %v6505_v22 = vpop.f32.mrf.mxu3  ;;  %vm6738_vm8 = vcmp.eq.f32.partialorder %v6737_v20, 8.507059e+37 }
0x108d   :  { %v8467_v29 = vpop.eup %8466  ;;  %v6527_v45 = vadd.f32 %v6505_v22, %v16309_v17  ;;  %v6612_v22 = vadd.f32 %v16291_v24, %v6611_v7 }
0x108e   :  { %v6766_v55 = vmul.f32 %v8467_v29, %v6591_v63  ;;  %v16473_v48 = vpop.eup %8468  ;;  %v6619_v29 = vand.u32 2147483648, %v16260_v36  ;;  %v6711_v63 = vsel %vm16466_vm4, %v6710_v59, %v6706_v52  ;;  %vm6629_vm4 = vweird.f32 %v16295_v43 }
0x108f   :  { %8470 = vtanh.f32 %v6527_v45  ;;  %v6729_v56 = vmul.f32 %v16473_v48, %v16396_v42  ;;  %v6616_v17 = vsel %vm16523_vm11, %v16291_v24, %v6612_v22  ;;  %v6632_v52 = vand.u32 2147483647, %v16263_v19  ;;  %vm16588_vm1 = vmor %vm6628_vm15, %vm6629_vm4 }
0x1090   :  { %v6770_v34 = vadd.f32 %v6766_v55, %v6762_v2  ;;  %v6717_v2 = vadd.f32 %v16411_v23, %v6716_v33  ;;  %v6620_v36 = vor.u32 1.1754944e-38, %v6619_v29  ;;  %vm6734_vm14 = vweird.f32 %v16473_v48 }
0x1091   :  { %v6730_v55 = vsub.f32 1.0, %v6729_v56  ;;  %v6739_v56 = vand.u32 2147483648, %v16396_v42  ;;  %vm16601_vm10 = vmor %vm6733_vm12, %vm6734_vm14  ;;  %vm6633_vm3 = vcmp.eq.f32.partialorder %v6632_v52, 8.507059e+37  ;;  %vm6748_vm11 = vweird.f32 %v16461_v6 }
0x1092   :  { %8472 = vtanh.f32 %v6770_v34  ;;  %v6681_v34 = vsel %vm6678_vm5, %v16369_v15, %v6676_v37  ;;  %v6621_v58 = vsel %vm6618_vm2, %v6620_v36, %v6616_v17  ;;  %v6721_v15 = vsel %vm16550_vm6, %v16411_v23, %v6717_v2 }
0x1093   :  { %8474 = vrcp.f32 %v16461_v6  ;;  %v6731_v12 = vmul.f32 %v16473_v48, %v6730_v55  ;;  %v6764_v7 = vmul.f32 %v6681_v34, %v16084_v8  ;;  %v6740_v42 = vor.u32 1.1754944e-38, %v6739_v56 }
0x1094   :  { %v6508_v31 = vpop.f32.mrf.mxu3  ;;  %v6754_v55 = vand.u32 2147483648, %v16461_v6 }
0x1095   :  { %v8471_v62 = vpop.eup %8470  ;;  %v6528_v3 = vadd.f32 %v6508_v31, %v16323_v9  ;;  %v6722_v9 = vand.u32 2147483647, %v16354_v35  ;;  %v6732_v31 = vadd.f32 %v16473_v48, %v6731_v12 }
0x1096   :  { %v6767_v4 = vmul.f32 %v8471_v62, %v6606_v26  ;;  %v6692_v26 = vand.u32 2147483647, %v16337_v11  ;;  %v6691_v11 = vsel %vm16571_vm7, %v16381_v46, %v6687_v39  ;;  %v6833_v46 = vpop.permute.xlu2 %6832  ;;  %v6755_v13 = vor.u32 1.1754944e-38, %v6754_v55 }
0x1097   :  { %8476 = vtanh.f32 %v6528_v3  ;;  %vm16541_vm0 = vcmp.eq.f32.partialorder %v6722_v9, 8.507059e+37  ;;  %v6838_v28 = vmul.f32 %v6833_v46, %v17667_v41 }
0x1098   :  { %v8473_v44 = vpop.eup %8472  ;;  %v6771_v45 = vadd.f32 %v6767_v4, %v6763_v18  ;;  %v6726_v1 = vsel %vm16541_vm0, %v6725_v27, %v6721_v15  ;;  %vm6693_vm9 = vcmp.eq.f32.partialorder %v6692_v26, 8.507059e+37 }
0x1099   :  { %v6778_v40 = vmul.f32 %v8473_v44, %v6711_v63  ;;  %v16536_v10 = vpop.eup %8474  ;;  %v6696_v22 = vsel %vm6693_vm9, %v16403_v49, %v6691_v11  ;;  %v6736_v49 = vsel %vm16601_vm10, %v16473_v48, %v6732_v31 }
0x109a   :  { %8478 = vtanh.f32 %v6771_v45  ;;  %v6744_v35 = vmul.f32 %v16536_v10, %v16461_v6  ;;  %v6765_v44 = vmul.f32 %v6696_v22, %v16099_v53  ;;  %v6741_v37 = vsel %vm6738_vm8, %v6740_v42, %v6736_v49 }
0x109b   :  { %v6802_v18 = vmul.f32 %v16269_v30, %v6778_v40  ;;  %vm6749_vm13 = vweird.f32 %v16536_v10  ;;  %v6752_v53 = vand.u32 2147483647, %v16461_v6 }
0x109c   :  { %v6511_v47 = vpop.f32.mrf.mxu3  ;;  %v6745_v51 = vsub.f32 1.0, %v6744_v35  ;;  %vm6750_vm5 = vmor %vm6748_vm11, %vm6749_vm13 }
0x109d   :  { %v8477_v38 = vpop.eup %8476  ;;  %v6529_v16 = vadd.f32 %v6511_v47, %v16346_v57  ;;  %v6634_v57 = vand.u32 2147483648, %v16263_v19  ;;  %v6631_v19 = vsel %vm16588_vm1, %v16295_v43, %v6627_v5  ;;  %v6839_v43 = vadd.f32 %v16329_v54, %v16326_v21 }
0x109e   :  { %v6768_v59 = vmul.f32 %v8477_v38, %v6621_v58  ;;  %v6746_v30 = vmul.f32 %v16536_v10, %v6745_v51  ;;  %vm6753_vm0 = vcmp.eq.f32.partialorder %v6752_v53, 8.507059e+37  ;;  %v6800_v58 = vpop.permute.xlu1 %6799  ;;  %v6849_v5 = vstv %s6870_s5 }
0x109f   :  { %8480 = vtanh.f32 %v6529_v16  ;;  %v6635_v3 = vor.u32 1.1754944e-38, %v6634_v57  ;;  %v6840_v45 = vadd.f32 %v6839_v43, %v16340_v61 }
0x10a0   :  { %v8479_v8 = vpop.eup %8478  ;;  %v6772_v32 = vadd.f32 %v6768_v59, %v6764_v7  ;;  %v6747_v21 = vadd.f32 %v16536_v10, %v6746_v30 }
0x10a1   :  { %v6779_v62 = vmul.f32 %v8479_v8, %v6726_v1  ;;  %v6841_v48 = vadd.f32 %v6840_v45, %v6838_v28 }
0x10a2   :  { %8482 = vtanh.f32 %v6772_v32  ;;  %v6751_v61 = vsel %vm6750_vm5, %v16536_v10, %v6747_v21 }
0x10a3   :  { %v6803_v4 = vmul.f32 %v16444_v0, %v6779_v62  ;;  %v6636_v0 = vsel %vm6633_vm3, %v6635_v3, %v6631_v19  ;;  %v6842_v36 = vrot.slane %v6841_v48, 4  ;;  %v6756_v27 = vsel %vm6753_vm0, %v6755_v13, %v6751_v61 }
0x10a5   :  { %v8481_v9 = vpop.eup %8480  ;;  %v6806_v25 = vadd.f32 %v6803_v4, %v6802_v18  ;;  %v6843_v24 = vadd.f32 %v6842_v36, %v6841_v48 }
0x10a6   :  { %v6769_v63 = vmul.f32 %v8481_v9, %v6636_v0 }
0x10a7   :  { %v6844_v38 = vrot.slane %v6843_v24, 2 }
0x10a8   :  { %v8483_v14 = vpop.eup %8482  ;;  %v6773_v2 = vadd.f32 %v6769_v63, %v6765_v44 }
0x10a9   :  { %v6780_v54 = vmul.f32 %v8483_v14, %v6741_v37  ;;  %v6845_v6 = vadd.f32 %v6844_v38, %v6843_v24 }
0x10aa   :  { %8484 = vtanh.f32 %v6773_v2 }
0x10ab   :  { %v6804_v40 = vmul.f32 %v16530_v60, %v6780_v54  ;;  %v6846_v16 = vrot.slane %v6845_v6, 1 }
0x10ad   :  { %v6807_v17 = vadd.f32 %v6806_v25, %v6804_v40  ;;  %v6847_v59 = vadd.f32 %v6846_v16, %v6845_v6 }
0x10b0   :  { %v8485_v50 = vpop.eup %8484 }
0x10b1   :  { %v6781_v34 = vmul.f32 %v8485_v50, %v6756_v27 }
0x10b3   :  { %v6805_v47 = vmul.f32 %v6800_v58, %v6781_v34 }
0x10b5   :  { %v6808_v39 = vadd.f32 %v6807_v17, %v6805_v47 }
0x10b7   :  { %v6809_v15 = vrot.slane %v6808_v39, 4 }
0x10b9   :  { %v6810_v12 = vadd.f32 %v6809_v15, %v6808_v39 }
0x10bb   :  { %v6811_v60 = vrot.slane %v6810_v12, 2 }
0x10bd   :  { %v6812_v35 = vadd.f32 %v6811_v60, %v6810_v12 }
0x10bf   :  { %v6813_v10 = vrot.slane %v6812_v35, 1 }
0x10c1   :  { %v6814_v7 = vadd.f32 %v6813_v10, %v6812_v35 }
0x10c3   :  { %v6848_v26 = vadd.f32 %v6847_v59, %v6814_v7 }
0x10c5   :  { %v6850_v23 = vadd.f32 %v6849_v5, %v6848_v26 }
0x10c7   :  { %6851 = vst [vmem:[#allocation5] sm:$0x1] %v6850_v23 }
0x10c8   :  { %6862 = dma.vmem_to_hbm [thread:$0]  %s6858_s26, 16, %s6860_s28, [#allocation3]  }
0x10c9   :  { %8675 = dma.done.wait [#allocation3], 16  }
0x10ca   :  { %8676 = vsyncadd [#allocation3], 4294967280 }
0x10cb   :  { %6867 = vsyncpa [#allocation3], 1 }
0x10cc   :  { %6868 = vsyncpa [#allocation4], 1 }

</bundles_post_ra>
